<compile_context>
chip_gen: v5e
topology: v5e:2x2
jax: 0.10.0
libtpu: 0.0.40
codegen_flags: <defaults>
</compile_context>

<pallas_src>
import functools

import numpy as np
import jax
import jax.numpy as jnp
from jax import lax
from jax.experimental import pallas as pl
from jax.experimental.pallas import tpu as pltpu


# neighbor offsets: tap index ordering must match the weight packing / unfold order
OFFS_9 = [(kh - 1, kw - 1) for kh in range(3) for kw in range(3)]             # 3x3 conv taps
OFFS_25 = [(2 * ii - 4, 2 * jj - 4) for ii in range(5) for jj in range(5)]    # dilated 5x5 (center idx 12)


def build_shift_masks(H, W, offsets):
    """mask[t, h*W+w] = 1 iff pixel (h+dh, w+dw) is inside the image (zero padding)."""
    HW = H * W
    m = np.zeros((len(offsets), HW), np.float32)
    for t, (dh, dw) in enumerate(offsets):
        for h in range(H):
            for w in range(W):
                if 0 <= h + dh < H and 0 <= w + dw < W:
                    m[t, h * W + w] = 1.0
    return jnp.asarray(m)


# ----------------------------------------------------------------------------------
# fused kernel: wv 1x1 conv -> online-softmax point attention (25 dilated taps) ->
# class attention over heads -> head-batched (BN + residual + MSConv) via
# block-diagonal im2col matmuls. grid = (B,)
# ----------------------------------------------------------------------------------
def _detail_recovery_kernel(C, NH, HW, img_w, offs25, offs9,
                            res_ref, attn_ref, wvw_ref, wvb_ref, m25_ref, m9_ref,
                            ns_ref, nb_ref, w1_ref, b1_ref, w2_ref, b2_ref,
                            w3_ref, b3_ref, wc_ref, bc_ref,
                            out_ref, x0_ref, im_ref):
    f32 = jnp.float32
    NHC = NH * C

    def relu6(v):
        return jnp.minimum(jnp.maximum(v, 0.0), 6.0)

    def shifted(x, dh, dw, mrow):
        # y[p] = x[p + dh*W + dw] if the neighbor is inside the image else 0
        off = dh * img_w + dw
        if off == 0:
            return x                              # center tap: mask is all ones
        r = pltpu.roll(x, (-off) % HW, 1)         # XLU lane rotation (free-ish)
        return r * mrow                           # zero the wrapped lanes

    # ---- wv: 1x1 Conv + folded BN + ReLU --------------------------------------
    qp = jnp.maximum(
        jnp.dot(wvw_ref[...], res_ref[0], preferred_element_type=f32) + wvb_ref[...],
        0.0)                                                            # (C, HW)

    # ---- point-aware attention: single online-softmax pass over 25 taps -------
    # center tap (idx 12) has forced score 0 and window = qp -> use it as init.
    m_run = jnp.zeros((1, HW), f32)
    l_run = jnp.ones((1, HW), f32)
    acc = qp
    for t, (dh, dw) in enumerate(offs25):
        if t == 12:
            continue
        win = shifted(qp, dh, dw, m25_ref[pl.ds(t, 1), :])
        s = jnp.sum(qp * win, axis=0, keepdims=True)
        m_new = jnp.maximum(m_run, s)
        corr = jnp.exp(m_run - m_new)             # EUP
        p = jnp.exp(s - m_new)                    # EUP
        l_run = corr * l_run + p
        acc = corr * acc + p * win
        m_run = m_new
    pc = qp + acc * pl.reciprocal(l_run, approx=True)                   # (C, HW)

    # ---- per-pixel class attention over heads + folded BN + residual -> x0 ----
    attn_all = attn_ref[0]                                              # (NH*C, HW)
    s_list = [jnp.sum(pc * attn_all[i * C:(i + 1) * C], axis=0, keepdims=True)
              for i in range(NH)]
    mh = s_list[0]
    for s in s_list[1:]:
        mh = jnp.maximum(mh, s)
    eh = [jnp.exp(s - mh) for s in s_list]
    den = eh[0]
    for e in eh[1:]:
        den = den + e
    invh = pl.reciprocal(den, approx=True)
    for i in range(NH):
        cls_i = (eh[i] * invh) * pc                                     # softmax_h * point_center
        x0_ref[pl.ds(i * C, C), :] = (attn_all[i * C:(i + 1) * C]
                                      + cls_i * ns_ref[pl.ds(i * C, C), :]
                                      + nb_ref[pl.ds(i * C, C), :])

    # ---- head-batched MSConv: block-diagonal im2col matmuls -------------------
    m9_rows = [m9_ref[pl.ds(t, 1), :] for t in range(9)]   # hoisted mask rows

    def im2col_all(x_all):                                  # x_all: (NH*C, HW)
        for t, (dh, dw) in enumerate(offs9):
            im_ref[pl.ds(t * NHC, NHC), :] = shifted(x_all, dh, dw, m9_rows[t])
        return im_ref[...]                                  # (9*NH*C, HW)

    # stage 1: conv11/conv12/conv13 for ALL heads -> one (3*NHC, 9*NHC) matmul
    y1 = relu6(jnp.dot(w1_ref[...], im2col_all(x0_ref[...]),
                       preferred_element_type=f32) + b1_ref[...])
    x112 = y1[0:NHC] + y1[NHC:2 * NHC] + y1[2 * NHC:3 * NHC]            # (NH*C, HW)
    # stage 2: conv22/conv23 for ALL heads -> one (2*NHC, 9*NHC) matmul
    y2 = relu6(jnp.dot(w2_ref[...], im2col_all(x112),
                       preferred_element_type=f32) + b2_ref[...])
    x223 = y2[0:NHC] + y2[NHC:2 * NHC]                                  # (NH*C, HW)
    # stage 3: conv33 for ALL heads
    x33 = relu6(jnp.dot(w3_ref[...], im2col_all(x223),
                        preferred_element_type=f32) + b3_ref[...])      # (NH*C, HW)

    # convcat: block-diag 1x1 ConvBN over concat([x112, x223, x33]) per head
    im_ref[pl.ds(0, NHC), :] = x112
    im_ref[pl.ds(NHC, NHC), :] = x223
    im_ref[pl.ds(2 * NHC, NHC), :] = x33
    xc = jnp.dot(wc_ref[...], im_ref[pl.ds(0, 3 * NHC), :],
                 preferred_element_type=f32) + bc_ref[...]
    out_ref[0] = jnp.maximum(xc + x0_ref[...], 0.0)                     # + shortcut, ReLU


def detail_recovery(res, attn, kp):
    B, D, H, W = res.shape
    C = kp["wv_w"].shape[0]
    NHC = kp["ns"].shape[0]
    NH = NHC // C
    HW = H * W
    res_f = res.reshape(B, D, HW)
    attn_f = attn.reshape(B, NHC, HW)

    kernel = functools.partial(_detail_recovery_kernel, C, NH, HW, W,
                               tuple(OFFS_25), tuple(OFFS_9))
    c2 = lambda b: (0, 0)
    # NOTE: for B=1 deployments on v7x (2 TensorCores) a second parallel grid axis
    # (e.g. splitting HW halves) would be needed to keep both cores busy.
    out = pl.pallas_call(
        kernel,
        out_shape=jax.ShapeDtypeStruct((B, NHC, HW), jnp.float32),
        grid=(B,),
        in_specs=[
            pl.BlockSpec((1, D, HW), lambda b: (b, 0, 0)),
            pl.BlockSpec((1, NHC, HW), lambda b: (b, 0, 0)),
            pl.BlockSpec((C, D), c2),
            pl.BlockSpec((C, 1), c2),
            pl.BlockSpec((25, HW), c2),
            pl.BlockSpec((9, HW), c2),
            pl.BlockSpec((NHC, 1), c2),
            pl.BlockSpec((NHC, 1), c2),
            pl.BlockSpec((3 * NHC, 9 * NHC), c2),
            pl.BlockSpec((3 * NHC, 1), c2),
            pl.BlockSpec((2 * NHC, 9 * NHC), c2),
            pl.BlockSpec((2 * NHC, 1), c2),
            pl.BlockSpec((NHC, 9 * NHC), c2),
            pl.BlockSpec((NHC, 1), c2),
            pl.BlockSpec((NHC, 3 * NHC), c2),
            pl.BlockSpec((NHC, 1), c2),
        ],
        out_specs=pl.BlockSpec((1, NHC, HW), lambda b: (b, 0, 0)),
        scratch_shapes=[pltpu.VMEM((NHC, HW), jnp.float32),        # x0 for all heads
                        pltpu.VMEM((9 * NHC, HW), jnp.float32)],   # head-batched im2col
        compiler_params=pltpu.CompilerParams(dimension_semantics=("parallel",)),
    )(res_f, attn_f, kp["wv_w"], kp["wv_b"], kp["mask25"], kp["mask9"],
      kp["ns"], kp["nb"], kp["w1"], kp["b1"], kp["w2"], kp["b2"],
      kp["w3"], kp["b3"], kp["wcat"], kp["bcat"])
    return out.reshape(B, NHC, H, W)


# ----------------------------------------------------------------------------------
# deterministic synthetic parameters (BN eval-mode stats folded into scale/bias)
# ----------------------------------------------------------------------------------
def make_params(key, D, C, NH):
    state = [key]

    def nk():
        state[0], sub = jax.random.split(state[0])
        return sub

    def fold_bn(w, eps=1e-5):
        cout = w.shape[0]
        gamma = 1.0 + 0.1 * jax.random.normal(nk(), (cout,))
        beta = 0.05 * jax.random.normal(nk(), (cout,))
        mean = 0.05 * jax.random.normal(nk(), (cout,))
        var = 1.0 + 0.2 * jax.random.uniform(nk(), (cout,))
        s = gamma / jnp.sqrt(var + eps)
        return w * s.reshape((-1,) + (1,) * (w.ndim - 1)), beta - mean * s

    p = {}
    # wv: ConvBNReLU(decode_channels -> conv_channels, k=1)
    p["wv_w"], p["wv_b"] = fold_bn(0.15 * jax.random.normal(nk(), (C, D)))

    ns, nb, cw, cb, wc, bc = [], [], [], [], [], []
    for _ in range(NH):
        # C_normi (bare BatchNorm2d, eval mode)
        gamma = 1.0 + 0.1 * jax.random.normal(nk(), (C,))
        beta = 0.05 * jax.random.normal(nk(), (C,))
        mean = 0.05 * jax.random.normal(nk(), (C,))
        var = 1.0 + 0.2 * jax.random.uniform(nk(), (C,))
        s = gamma / jnp.sqrt(var + 1e-5)
        ns.append(s); nb.append(beta - mean * s)
        # MSConv: six 3x3 ConvBNReLU6 blocks (OIHW, folded)
        ws, bs = [], []
        for _ in range(6):
            wf, bf = fold_bn(0.1 * jax.random.normal(nk(), (C, C, 3, 3)))
            ws.append(wf); bs.append(bf)
        cw.append(jnp.stack(ws)); cb.append(jnp.stack(bs))
        # convcat: 1x1 ConvBN(3C -> C)
        wcf, bcf = fold_bn(0.1 * jax.random.normal(nk(), (C, 3 * C)))
        wc.append(wcf); bc.append(bcf)

    p["ns"] = jnp.stack(ns); p["nb"] = jnp.stack(nb)
    p["conv_w"] = jnp.stack(cw); p["conv_b"] = jnp.stack(cb)     # (NH,6,C,C,3,3), (NH,6,C)
    p["wcat"] = jnp.stack(wc); p["bcat"] = jnp.stack(bc)         # (NH,C,3C), (NH,C)
    return p


def pack_kernel_params(p, H, W):
    """Repack canonical (folded) params into block-diagonal, head-batched MXU layouts."""
    C = p["wv_w"].shape[0]
    NH = p["ns"].shape[0]
    NHC = NH * C
    conv_w = np.asarray(p["conv_w"])                      # (NH, 6, C, C, 3, 3), OIHW
    conv_b = np.asarray(p["conv_b"])                      # (NH, 6, C)
    # per-head im2col layout: wt[i,j,o,t,c] with tap t = kh*3+kw (matches OFFS_9)
    wt = np.transpose(conv_w, (0, 1, 2, 4, 5, 3)).reshape(NH, 6, C, 9, C)

    def blockdiag_stage(js):
        # rows: conv-outer / head-inner ; cols: tap-outer / head-inner (matches im2col_all)
        nj = len(js)
        Wm = np.zeros((nj * NHC, 9 * NHC), np.float32)
        bm = np.zeros((nj * NHC, 1), np.float32)
        for jj, j in enumerate(js):
            for i in range(NH):
                bm[jj * NHC + i * C: jj * NHC + (i + 1) * C, 0] = conv_b[i, j]
                for t in range(9):
                    Wm[jj * NHC + i * C: jj * NHC + (i + 1) * C,
                       t * NHC + i * C: t * NHC + (i + 1) * C] = wt[i, j, :, t, :]
        return jnp.asarray(Wm), jnp.asarray(bm)

    w1, b1 = blockdiag_stage([0, 1, 2])   # conv11 / conv12 / conv13
    w2, b2 = blockdiag_stage([3, 4])      # conv22 / conv23
    w3, b3 = blockdiag_stage([5])         # conv33

    wcat = np.asarray(p["wcat"])          # (NH, C, 3C): concat order [x112, x223, x33]
    bcat = np.asarray(p["bcat"])          # (NH, C)
    Wc = np.zeros((NHC, 3 * NHC), np.float32)
    Bc = np.zeros((NHC, 1), np.float32)
    for i in range(NH):
        Bc[i * C:(i + 1) * C, 0] = bcat[i]
        for g in range(3):                # group g cols = [x112_all | x223_all | x33_all]
            Wc[i * C:(i + 1) * C, g * NHC + i * C: g * NHC + (i + 1) * C] = \
                wcat[i][:, g * C:(g + 1) * C]

    return {"wv_w": p["wv_w"], "wv_b": p["wv_b"].reshape(C, 1),
            "mask25": build_shift_masks(H, W, OFFS_25),
            "mask9": build_shift_masks(H, W, OFFS_9),
            "ns": p["ns"].reshape(NHC, 1), "nb": p["nb"].reshape(NHC, 1),
            "w1": w1, "b1": b1, "w2": w2, "b2": b2, "w3": w3, "b3": b3,
            "wcat": jnp.asarray(Wc), "bcat": jnp.asarray(Bc)}


# ----------------------------------------------------------------------------------
# pure-JAX reference (mirrors the PyTorch forward directly) for verification
# ----------------------------------------------------------------------------------
def reference_forward(res, attn, params):
    wv_w, wv_b = params["wv_w"], params["wv_b"]
    C = wv_w.shape[0]
    B, D, H, W = res.shape
    NH = attn.shape[1] // C
    HW = H * W

    qp = jnp.maximum(jnp.einsum("od,bdhw->bohw", wv_w, res)
                     + wv_b[None, :, None, None], 0.0)
    pc = qp.reshape(B, C, HW).transpose(0, 2, 1)                           # (B, HW, C)
    pad = jnp.pad(qp, ((0, 0), (0, 0), (4, 4), (4, 4)))
    cols = [pad[:, :, 2 * ii:2 * ii + H, 2 * jj:2 * jj + W].reshape(B, C, HW)
            for ii in range(5) for jj in range(5)]
    q = jnp.stack(cols, axis=2).transpose(0, 3, 2, 1)                      # (B, HW, 25, C)
    scores = jnp.einsum("bpc,bpjc->bpj", pc, q)
    scores = scores.at[:, :, 12].set(0.0)
    pa = jax.nn.softmax(scores, axis=-1)
    pc = pc + jnp.einsum("bpj,bpjc->bpc", pa, q)

    k = attn.reshape(B, NH, C, HW).transpose(0, 3, 1, 2)                   # (B, HW, NH, C)
    ca = jax.nn.softmax(jnp.einsum("bpc,bphc->bph", pc, k), axis=-1)
    cao = jnp.einsum("bph,bpc->bphc", ca, pc)                              # (B, HW, NH, C)
    cao = cao.transpose(0, 2, 3, 1).reshape(B, NH, C, H, W)
    attn_r = attn.reshape(B, NH, C, H, W)

    relu6 = lambda v: jnp.clip(v, 0.0, 6.0)
    outs = []
    for i in range(NH):
        cls_i = cao[:, i]
        attn_i = attn_r[:, i]
        x0 = (attn_i + cls_i * params["ns"][i][None, :, None, None]
              + params["nb"][i][None, :, None, None])

        def c3(x, j):
            y = lax.conv_general_dilated(x, params["conv_w"][i, j], (1, 1),
                                         ((1, 1), (1, 1)),
                                         dimension_numbers=("NCHW", "OIHW", "NCHW"))
            return y + params["conv_b"][i, j][None, :, None, None]

        x11 = relu6(c3(x0, 0)); x12 = relu6(c3(x0, 1)); x13 = relu6(c3(x0, 2))
        x112 = x11 + x13 + x12
        x22 = relu6(c3(x112, 3)); x23 = relu6(c3(x112, 4))
        x223 = x22 + x23
        x33 = relu6(c3(x223, 5))
        xcat = jnp.concatenate([x112, x223, x33], axis=1)
        xc = (jnp.einsum("oc,bchw->bohw", params["wcat"][i], xcat)
              + params["bcat"][i][None, :, None, None])
        outs.append(jnp.maximum(xc + x0, 0.0))
    return jnp.concatenate(outs, axis=1)


if __name__ == "__main__":
    # small config: decode_channels=32, num_classes(=heads)=4 -> conv_channels C=8, 16x16 maps
    B, NH, C, H, W = 2, 4, 8, 16, 16
    D = NH * C                                   # decode_channels; conv_channels = D // NH = 8

    key = jax.random.PRNGKey(0)
    kparams_key, kres, kattn = jax.random.split(key, 3)
    params = make_params(kparams_key, D, C, NH)
    kparams = pack_kernel_params(params, H, W)

    res = jax.random.normal(kres, (B, D, H, W), dtype=jnp.float32)
    attn = jax.random.normal(kattn, (B, NH * C, H, W), dtype=jnp.float32)

    run = jax.jit(detail_recovery)
    out = jax.block_until_ready(run(res, attn, kparams))
    ref = jax.block_until_ready(reference_forward(res, attn, params))

    assert out.shape == (B, NH * C, H, W)
    np.testing.assert_allclose(np.asarray(out), np.asarray(ref), rtol=2e-2, atol=2e-2)
    print("KERNEL_OK")
</pallas_src>

<mosaic_0001>
module attributes {stable_mosaic.version = 11 : i64} {
  func.func @_detail_recovery_kernel(%arg0: i32, %arg1: memref<1x32x256xf32, #tpu.memory_space<vmem>>, %arg2: memref<1x32x256xf32, #tpu.memory_space<vmem>>, %arg3: memref<8x32xf32, #tpu.memory_space<vmem>>, %arg4: memref<8x1xf32, #tpu.memory_space<vmem>>, %arg5: memref<25x256xf32, #tpu.memory_space<vmem>>, %arg6: memref<9x256xf32, #tpu.memory_space<vmem>>, %arg7: memref<32x1xf32, #tpu.memory_space<vmem>>, %arg8: memref<32x1xf32, #tpu.memory_space<vmem>>, %arg9: memref<96x288xf32, #tpu.memory_space<vmem>>, %arg10: memref<96x1xf32, #tpu.memory_space<vmem>>, %arg11: memref<64x288xf32, #tpu.memory_space<vmem>>, %arg12: memref<64x1xf32, #tpu.memory_space<vmem>>, %arg13: memref<32x288xf32, #tpu.memory_space<vmem>>, %arg14: memref<32x1xf32, #tpu.memory_space<vmem>>, %arg15: memref<32x96xf32, #tpu.memory_space<vmem>>, %arg16: memref<32x1xf32, #tpu.memory_space<vmem>>, %arg17: memref<1x32x256xf32, #tpu.memory_space<vmem>>, %arg18: memref<32x256xf32, #tpu.memory_space<vmem>>, %arg19: memref<288x256xf32, #tpu.memory_space<vmem>>) attributes {dimension_semantics = [#tpu.dimension_semantics<parallel>], iteration_bounds = array<i64: 2>, scalar_prefetch = 0 : i64, scratch_operands = 2 : i64, tpu.core_type = #tpu.core_type<tc>, window_params = [{transform_indices = @transform_0, window_bounds = array<i64: 1, 32, 256>}, {transform_indices = @transform_1, window_bounds = array<i64: 1, 32, 256>}, {pipeline_mode = #tpu.pipeline_mode<synchronous>, transform_indices = @transform_2, window_bounds = array<i64: 8, 32>}, {pipeline_mode = #tpu.pipeline_mode<synchronous>, transform_indices = @transform_3, window_bounds = array<i64: 8, 1>}, {pipeline_mode = #tpu.pipeline_mode<synchronous>, transform_indices = @transform_4, window_bounds = array<i64: 25, 256>}, {pipeline_mode = #tpu.pipeline_mode<synchronous>, transform_indices = @transform_5, window_bounds = array<i64: 9, 256>}, {pipeline_mode = #tpu.pipeline_mode<synchronous>, transform_indices = @transform_6, window_bounds = array<i64: 32, 1>}, {pipeline_mode = #tpu.pipeline_mode<synchronous>, transform_indices = @transform_7, window_bounds = array<i64: 32, 1>}, {pipeline_mode = #tpu.pipeline_mode<synchronous>, transform_indices = @transform_8, window_bounds = array<i64: 96, 288>}, {pipeline_mode = #tpu.pipeline_mode<synchronous>, transform_indices = @transform_9, window_bounds = array<i64: 96, 1>}, {pipeline_mode = #tpu.pipeline_mode<synchronous>, transform_indices = @transform_10, window_bounds = array<i64: 64, 288>}, {pipeline_mode = #tpu.pipeline_mode<synchronous>, transform_indices = @transform_11, window_bounds = array<i64: 64, 1>}, {pipeline_mode = #tpu.pipeline_mode<synchronous>, transform_indices = @transform_12, window_bounds = array<i64: 32, 288>}, {pipeline_mode = #tpu.pipeline_mode<synchronous>, transform_indices = @transform_13, window_bounds = array<i64: 32, 1>}, {pipeline_mode = #tpu.pipeline_mode<synchronous>, transform_indices = @transform_14, window_bounds = array<i64: 32, 96>}, {pipeline_mode = #tpu.pipeline_mode<synchronous>, transform_indices = @transform_15, window_bounds = array<i64: 32, 1>}, {transform_indices = @transform_16, window_bounds = array<i64: 1, 32, 256>}]} {
    %c0 = arith.constant 0 : index
    %c0_0 = arith.constant 0 : index
    %0 = vector.load %arg3[%c0, %c0_0] : memref<8x32xf32, #tpu.memory_space<vmem>>, vector<8x32xf32>
    %c0_1 = arith.constant 0 : index
    %c0_2 = arith.constant 0 : index
    %c0_3 = arith.constant 0 : index
    %1 = vector.load %arg1[%c0_1, %c0_2, %c0_3] : memref<1x32x256xf32, #tpu.memory_space<vmem>>, vector<1x32x256xf32>
    %2 = vector.shape_cast %1 : vector<1x32x256xf32> to vector<32x256xf32>
    %cst = arith.constant dense<0.000000e+00> : vector<8x256xf32>
    %3 = tpu.matmul %0, %2, %cst {dimension_numbers = #tpu.dot_dimension_numbers<[1], [0], [0], [1], [0, 0, 1, 1], [], []>} : vector<8x32xf32>, vector<32x256xf32>, vector<8x256xf32> -> vector<8x256xf32>
    %c0_4 = arith.constant 0 : index
    %c0_5 = arith.constant 0 : index
    %4 = vector.load %arg4[%c0_4, %c0_5] : memref<8x1xf32, #tpu.memory_space<vmem>>, vector<8x1xf32>
    %5 = vector.broadcast %4 : vector<8x1xf32> to vector<8x256xf32>
    %6 = arith.addf %3, %5 : vector<8x256xf32>
    %cst_6 = arith.constant 0.000000e+00 : f32
    %7 = vector.broadcast %cst_6 : f32 to vector<8x256xf32>
    %8 = arith.maximumf %6, %7 : vector<8x256xf32>
    %cst_7 = arith.constant 0.000000e+00 : f32
    %9 = vector.broadcast %cst_7 : f32 to vector<1x256xf32>
    %cst_8 = arith.constant 1.000000e+00 : f32
    %10 = vector.broadcast %cst_8 : f32 to vector<1x256xf32>
    %c0_9 = arith.constant 0 : index
    %c0_10 = arith.constant 0 : index
    %11 = vector.load %arg5[%c0_9, %c0_10] : memref<25x256xf32, #tpu.memory_space<vmem>>, vector<1x256xf32>
    %c68_i32 = arith.constant 68 : i32
    %12 = tpu.dynamic_rotate %8 by %c68_i32 dim 1 : vector<8x256xf32>, i32 -> vector<8x256xf32>
    %13 = vector.broadcast %11 : vector<1x256xf32> to vector<8x256xf32>
    %14 = arith.mulf %12, %13 : vector<8x256xf32>
    %15 = arith.mulf %8, %14 : vector<8x256xf32>
    %cst_11 = arith.constant dense<0.000000e+00> : vector<256xf32>
    %16 = vector.multi_reduction <add>, %15, %cst_11 [0] : vector<8x256xf32> to vector<256xf32>
    %17 = vector.shape_cast %16 : vector<256xf32> to vector<1x256xf32>
    %18 = arith.maximumf %9, %17 : vector<1x256xf32>
    %19 = arith.subf %9, %18 : vector<1x256xf32>
    %20 = math.exp %19 : vector<1x256xf32>
    %21 = arith.subf %17, %18 : vector<1x256xf32>
    %22 = math.exp %21 : vector<1x256xf32>
    %23 = arith.mulf %20, %10 : vector<1x256xf32>
    %24 = arith.addf %23, %22 : vector<1x256xf32>
    %25 = vector.broadcast %20 : vector<1x256xf32> to vector<8x256xf32>
    %26 = arith.mulf %25, %8 : vector<8x256xf32>
    %27 = vector.broadcast %22 : vector<1x256xf32> to vector<8x256xf32>
    %28 = arith.mulf %27, %14 : vector<8x256xf32>
    %29 = arith.addf %26, %28 : vector<8x256xf32>
    %c1 = arith.constant 1 : index
    %c0_12 = arith.constant 0 : index
    %30 = vector.load %arg5[%c1, %c0_12] : memref<25x256xf32, #tpu.memory_space<vmem>>, vector<1x256xf32>
    %c66_i32 = arith.constant 66 : i32
    %31 = tpu.dynamic_rotate %8 by %c66_i32 dim 1 : vector<8x256xf32>, i32 -> vector<8x256xf32>
    %32 = vector.broadcast %30 : vector<1x256xf32> to vector<8x256xf32>
    %33 = arith.mulf %31, %32 : vector<8x256xf32>
    %34 = arith.mulf %8, %33 : vector<8x256xf32>
    %cst_13 = arith.constant dense<0.000000e+00> : vector<256xf32>
    %35 = vector.multi_reduction <add>, %34, %cst_13 [0] : vector<8x256xf32> to vector<256xf32>
    %36 = vector.shape_cast %35 : vector<256xf32> to vector<1x256xf32>
    %37 = arith.maximumf %18, %36 : vector<1x256xf32>
    %38 = arith.subf %18, %37 : vector<1x256xf32>
    %39 = math.exp %38 : vector<1x256xf32>
    %40 = arith.subf %36, %37 : vector<1x256xf32>
    %41 = math.exp %40 : vector<1x256xf32>
    %42 = arith.mulf %39, %24 : vector<1x256xf32>
    %43 = arith.addf %42, %41 : vector<1x256xf32>
    %44 = vector.broadcast %39 : vector<1x256xf32> to vector<8x256xf32>
    %45 = arith.mulf %44, %29 : vector<8x256xf32>
    %46 = vector.broadcast %41 : vector<1x256xf32> to vector<8x256xf32>
    %47 = arith.mulf %46, %33 : vector<8x256xf32>
    %48 = arith.addf %45, %47 : vector<8x256xf32>
    %c2 = arith.constant 2 : index
    %c0_14 = arith.constant 0 : index
    %49 = vector.load %arg5[%c2, %c0_14] : memref<25x256xf32, #tpu.memory_space<vmem>>, vector<1x256xf32>
    %c64_i32 = arith.constant 64 : i32
    %50 = tpu.dynamic_rotate %8 by %c64_i32 dim 1 : vector<8x256xf32>, i32 -> vector<8x256xf32>
    %51 = vector.broadcast %49 : vector<1x256xf32> to vector<8x256xf32>
    %52 = arith.mulf %50, %51 : vector<8x256xf32>
    %53 = arith.mulf %8, %52 : vector<8x256xf32>
    %cst_15 = arith.constant dense<0.000000e+00> : vector<256xf32>
    %54 = vector.multi_reduction <add>, %53, %cst_15 [0] : vector<8x256xf32> to vector<256xf32>
    %55 = vector.shape_cast %54 : vector<256xf32> to vector<1x256xf32>
    %56 = arith.maximumf %37, %55 : vector<1x256xf32>
    %57 = arith.subf %37, %56 : vector<1x256xf32>
    %58 = math.exp %57 : vector<1x256xf32>
    %59 = arith.subf %55, %56 : vector<1x256xf32>
    %60 = math.exp %59 : vector<1x256xf32>
    %61 = arith.mulf %58, %43 : vector<1x256xf32>
    %62 = arith.addf %61, %60 : vector<1x256xf32>
    %63 = vector.broadcast %58 : vector<1x256xf32> to vector<8x256xf32>
    %64 = arith.mulf %63, %48 : vector<8x256xf32>
    %65 = vector.broadcast %60 : vector<1x256xf32> to vector<8x256xf32>
    %66 = arith.mulf %65, %52 : vector<8x256xf32>
    %67 = arith.addf %64, %66 : vector<8x256xf32>
    %c3 = arith.constant 3 : index
    %c0_16 = arith.constant 0 : index
    %68 = vector.load %arg5[%c3, %c0_16] : memref<25x256xf32, #tpu.memory_space<vmem>>, vector<1x256xf32>
    %c62_i32 = arith.constant 62 : i32
    %69 = tpu.dynamic_rotate %8 by %c62_i32 dim 1 : vector<8x256xf32>, i32 -> vector<8x256xf32>
    %70 = vector.broadcast %68 : vector<1x256xf32> to vector<8x256xf32>
    %71 = arith.mulf %69, %70 : vector<8x256xf32>
    %72 = arith.mulf %8, %71 : vector<8x256xf32>
    %cst_17 = arith.constant dense<0.000000e+00> : vector<256xf32>
    %73 = vector.multi_reduction <add>, %72, %cst_17 [0] : vector<8x256xf32> to vector<256xf32>
    %74 = vector.shape_cast %73 : vector<256xf32> to vector<1x256xf32>
    %75 = arith.maximumf %56, %74 : vector<1x256xf32>
    %76 = arith.subf %56, %75 : vector<1x256xf32>
    %77 = math.exp %76 : vector<1x256xf32>
    %78 = arith.subf %74, %75 : vector<1x256xf32>
    %79 = math.exp %78 : vector<1x256xf32>
    %80 = arith.mulf %77, %62 : vector<1x256xf32>
    %81 = arith.addf %80, %79 : vector<1x256xf32>
    %82 = vector.broadcast %77 : vector<1x256xf32> to vector<8x256xf32>
    %83 = arith.mulf %82, %67 : vector<8x256xf32>
    %84 = vector.broadcast %79 : vector<1x256xf32> to vector<8x256xf32>
    %85 = arith.mulf %84, %71 : vector<8x256xf32>
    %86 = arith.addf %83, %85 : vector<8x256xf32>
    %c4 = arith.constant 4 : index
    %c0_18 = arith.constant 0 : index
    %87 = vector.load %arg5[%c4, %c0_18] : memref<25x256xf32, #tpu.memory_space<vmem>>, vector<1x256xf32>
    %c60_i32 = arith.constant 60 : i32
    %88 = tpu.dynamic_rotate %8 by %c60_i32 dim 1 : vector<8x256xf32>, i32 -> vector<8x256xf32>
    %89 = vector.broadcast %87 : vector<1x256xf32> to vector<8x256xf32>
    %90 = arith.mulf %88, %89 : vector<8x256xf32>
    %91 = arith.mulf %8, %90 : vector<8x256xf32>
    %cst_19 = arith.constant dense<0.000000e+00> : vector<256xf32>
    %92 = vector.multi_reduction <add>, %91, %cst_19 [0] : vector<8x256xf32> to vector<256xf32>
    %93 = vector.shape_cast %92 : vector<256xf32> to vector<1x256xf32>
    %94 = arith.maximumf %75, %93 : vector<1x256xf32>
    %95 = arith.subf %75, %94 : vector<1x256xf32>
    %96 = math.exp %95 : vector<1x256xf32>
    %97 = arith.subf %93, %94 : vector<1x256xf32>
    %98 = math.exp %97 : vector<1x256xf32>
    %99 = arith.mulf %96, %81 : vector<1x256xf32>
    %100 = arith.addf %99, %98 : vector<1x256xf32>
    %101 = vector.broadcast %96 : vector<1x256xf32> to vector<8x256xf32>
    %102 = arith.mulf %101, %86 : vector<8x256xf32>
    %103 = vector.broadcast %98 : vector<1x256xf32> to vector<8x256xf32>
    %104 = arith.mulf %103, %90 : vector<8x256xf32>
    %105 = arith.addf %102, %104 : vector<8x256xf32>
    %c5 = arith.constant 5 : index
    %c0_20 = arith.constant 0 : index
    %106 = vector.load %arg5[%c5, %c0_20] : memref<25x256xf32, #tpu.memory_space<vmem>>, vector<1x256xf32>
    %c36_i32 = arith.constant 36 : i32
    %107 = tpu.dynamic_rotate %8 by %c36_i32 dim 1 : vector<8x256xf32>, i32 -> vector<8x256xf32>
    %108 = vector.broadcast %106 : vector<1x256xf32> to vector<8x256xf32>
    %109 = arith.mulf %107, %108 : vector<8x256xf32>
    %110 = arith.mulf %8, %109 : vector<8x256xf32>
    %cst_21 = arith.constant dense<0.000000e+00> : vector<256xf32>
    %111 = vector.multi_reduction <add>, %110, %cst_21 [0] : vector<8x256xf32> to vector<256xf32>
    %112 = vector.shape_cast %111 : vector<256xf32> to vector<1x256xf32>
    %113 = arith.maximumf %94, %112 : vector<1x256xf32>
    %114 = arith.subf %94, %113 : vector<1x256xf32>
    %115 = math.exp %114 : vector<1x256xf32>
    %116 = arith.subf %112, %113 : vector<1x256xf32>
    %117 = math.exp %116 : vector<1x256xf32>
    %118 = arith.mulf %115, %100 : vector<1x256xf32>
    %119 = arith.addf %118, %117 : vector<1x256xf32>
    %120 = vector.broadcast %115 : vector<1x256xf32> to vector<8x256xf32>
    %121 = arith.mulf %120, %105 : vector<8x256xf32>
    %122 = vector.broadcast %117 : vector<1x256xf32> to vector<8x256xf32>
    %123 = arith.mulf %122, %109 : vector<8x256xf32>
    %124 = arith.addf %121, %123 : vector<8x256xf32>
    %c6 = arith.constant 6 : index
    %c0_22 = arith.constant 0 : index
    %125 = vector.load %arg5[%c6, %c0_22] : memref<25x256xf32, #tpu.memory_space<vmem>>, vector<1x256xf32>
    %c34_i32 = arith.constant 34 : i32
    %126 = tpu.dynamic_rotate %8 by %c34_i32 dim 1 : vector<8x256xf32>, i32 -> vector<8x256xf32>
    %127 = vector.broadcast %125 : vector<1x256xf32> to vector<8x256xf32>
    %128 = arith.mulf %126, %127 : vector<8x256xf32>
    %129 = arith.mulf %8, %128 : vector<8x256xf32>
    %cst_23 = arith.constant dense<0.000000e+00> : vector<256xf32>
    %130 = vector.multi_reduction <add>, %129, %cst_23 [0] : vector<8x256xf32> to vector<256xf32>
    %131 = vector.shape_cast %130 : vector<256xf32> to vector<1x256xf32>
    %132 = arith.maximumf %113, %131 : vector<1x256xf32>
    %133 = arith.subf %113, %132 : vector<1x256xf32>
    %134 = math.exp %133 : vector<1x256xf32>
    %135 = arith.subf %131, %132 : vector<1x256xf32>
    %136 = math.exp %135 : vector<1x256xf32>
    %137 = arith.mulf %134, %119 : vector<1x256xf32>
    %138 = arith.addf %137, %136 : vector<1x256xf32>
    %139 = vector.broadcast %134 : vector<1x256xf32> to vector<8x256xf32>
    %140 = arith.mulf %139, %124 : vector<8x256xf32>
    %141 = vector.broadcast %136 : vector<1x256xf32> to vector<8x256xf32>
    %142 = arith.mulf %141, %128 : vector<8x256xf32>
    %143 = arith.addf %140, %142 : vector<8x256xf32>
    %c7 = arith.constant 7 : index
    %c0_24 = arith.constant 0 : index
    %144 = vector.load %arg5[%c7, %c0_24] : memref<25x256xf32, #tpu.memory_space<vmem>>, vector<1x256xf32>
    %c32_i32 = arith.constant 32 : i32
    %145 = tpu.dynamic_rotate %8 by %c32_i32 dim 1 : vector<8x256xf32>, i32 -> vector<8x256xf32>
    %146 = vector.broadcast %144 : vector<1x256xf32> to vector<8x256xf32>
    %147 = arith.mulf %145, %146 : vector<8x256xf32>
    %148 = arith.mulf %8, %147 : vector<8x256xf32>
    %cst_25 = arith.constant dense<0.000000e+00> : vector<256xf32>
    %149 = vector.multi_reduction <add>, %148, %cst_25 [0] : vector<8x256xf32> to vector<256xf32>
    %150 = vector.shape_cast %149 : vector<256xf32> to vector<1x256xf32>
    %151 = arith.maximumf %132, %150 : vector<1x256xf32>
    %152 = arith.subf %132, %151 : vector<1x256xf32>
    %153 = math.exp %152 : vector<1x256xf32>
    %154 = arith.subf %150, %151 : vector<1x256xf32>
    %155 = math.exp %154 : vector<1x256xf32>
    %156 = arith.mulf %153, %138 : vector<1x256xf32>
    %157 = arith.addf %156, %155 : vector<1x256xf32>
    %158 = vector.broadcast %153 : vector<1x256xf32> to vector<8x256xf32>
    %159 = arith.mulf %158, %143 : vector<8x256xf32>
    %160 = vector.broadcast %155 : vector<1x256xf32> to vector<8x256xf32>
    %161 = arith.mulf %160, %147 : vector<8x256xf32>
    %162 = arith.addf %159, %161 : vector<8x256xf32>
    %c8 = arith.constant 8 : index
    %c0_26 = arith.constant 0 : index
    %163 = vector.load %arg5[%c8, %c0_26] : memref<25x256xf32, #tpu.memory_space<vmem>>, vector<1x256xf32>
    %c30_i32 = arith.constant 30 : i32
    %164 = tpu.dynamic_rotate %8 by %c30_i32 dim 1 : vector<8x256xf32>, i32 -> vector<8x256xf32>
    %165 = vector.broadcast %163 : vector<1x256xf32> to vector<8x256xf32>
    %166 = arith.mulf %164, %165 : vector<8x256xf32>
    %167 = arith.mulf %8, %166 : vector<8x256xf32>
    %cst_27 = arith.constant dense<0.000000e+00> : vector<256xf32>
    %168 = vector.multi_reduction <add>, %167, %cst_27 [0] : vector<8x256xf32> to vector<256xf32>
    %169 = vector.shape_cast %168 : vector<256xf32> to vector<1x256xf32>
    %170 = arith.maximumf %151, %169 : vector<1x256xf32>
    %171 = arith.subf %151, %170 : vector<1x256xf32>
    %172 = math.exp %171 : vector<1x256xf32>
    %173 = arith.subf %169, %170 : vector<1x256xf32>
    %174 = math.exp %173 : vector<1x256xf32>
    %175 = arith.mulf %172, %157 : vector<1x256xf32>
    %176 = arith.addf %175, %174 : vector<1x256xf32>
    %177 = vector.broadcast %172 : vector<1x256xf32> to vector<8x256xf32>
    %178 = arith.mulf %177, %162 : vector<8x256xf32>
    %179 = vector.broadcast %174 : vector<1x256xf32> to vector<8x256xf32>
    %180 = arith.mulf %179, %166 : vector<8x256xf32>
    %181 = arith.addf %178, %180 : vector<8x256xf32>
    %c9 = arith.constant 9 : index
    %c0_28 = arith.constant 0 : index
    %182 = vector.load %arg5[%c9, %c0_28] : memref<25x256xf32, #tpu.memory_space<vmem>>, vector<1x256xf32>
    %c28_i32 = arith.constant 28 : i32
    %183 = tpu.dynamic_rotate %8 by %c28_i32 dim 1 : vector<8x256xf32>, i32 -> vector<8x256xf32>
    %184 = vector.broadcast %182 : vector<1x256xf32> to vector<8x256xf32>
    %185 = arith.mulf %183, %184 : vector<8x256xf32>
    %186 = arith.mulf %8, %185 : vector<8x256xf32>
    %cst_29 = arith.constant dense<0.000000e+00> : vector<256xf32>
    %187 = vector.multi_reduction <add>, %186, %cst_29 [0] : vector<8x256xf32> to vector<256xf32>
    %188 = vector.shape_cast %187 : vector<256xf32> to vector<1x256xf32>
    %189 = arith.maximumf %170, %188 : vector<1x256xf32>
    %190 = arith.subf %170, %189 : vector<1x256xf32>
    %191 = math.exp %190 : vector<1x256xf32>
    %192 = arith.subf %188, %189 : vector<1x256xf32>
    %193 = math.exp %192 : vector<1x256xf32>
    %194 = arith.mulf %191, %176 : vector<1x256xf32>
    %195 = arith.addf %194, %193 : vector<1x256xf32>
    %196 = vector.broadcast %191 : vector<1x256xf32> to vector<8x256xf32>
    %197 = arith.mulf %196, %181 : vector<8x256xf32>
    %198 = vector.broadcast %193 : vector<1x256xf32> to vector<8x256xf32>
    %199 = arith.mulf %198, %185 : vector<8x256xf32>
    %200 = arith.addf %197, %199 : vector<8x256xf32>
    %c10 = arith.constant 10 : index
    %c0_30 = arith.constant 0 : index
    %201 = vector.load %arg5[%c10, %c0_30] : memref<25x256xf32, #tpu.memory_space<vmem>>, vector<1x256xf32>
    %c4_i32 = arith.constant 4 : i32
    %202 = tpu.dynamic_rotate %8 by %c4_i32 dim 1 : vector<8x256xf32>, i32 -> vector<8x256xf32>
    %203 = vector.broadcast %201 : vector<1x256xf32> to vector<8x256xf32>
    %204 = arith.mulf %202, %203 : vector<8x256xf32>
    %205 = arith.mulf %8, %204 : vector<8x256xf32>
    %cst_31 = arith.constant dense<0.000000e+00> : vector<256xf32>
    %206 = vector.multi_reduction <add>, %205, %cst_31 [0] : vector<8x256xf32> to vector<256xf32>
    %207 = vector.shape_cast %206 : vector<256xf32> to vector<1x256xf32>
    %208 = arith.maximumf %189, %207 : vector<1x256xf32>
    %209 = arith.subf %189, %208 : vector<1x256xf32>
    %210 = math.exp %209 : vector<1x256xf32>
    %211 = arith.subf %207, %208 : vector<1x256xf32>
    %212 = math.exp %211 : vector<1x256xf32>
    %213 = arith.mulf %210, %195 : vector<1x256xf32>
    %214 = arith.addf %213, %212 : vector<1x256xf32>
    %215 = vector.broadcast %210 : vector<1x256xf32> to vector<8x256xf32>
    %216 = arith.mulf %215, %200 : vector<8x256xf32>
    %217 = vector.broadcast %212 : vector<1x256xf32> to vector<8x256xf32>
    %218 = arith.mulf %217, %204 : vector<8x256xf32>
    %219 = arith.addf %216, %218 : vector<8x256xf32>
    %c11 = arith.constant 11 : index
    %c0_32 = arith.constant 0 : index
    %220 = vector.load %arg5[%c11, %c0_32] : memref<25x256xf32, #tpu.memory_space<vmem>>, vector<1x256xf32>
    %c2_i32 = arith.constant 2 : i32
    %221 = tpu.dynamic_rotate %8 by %c2_i32 dim 1 : vector<8x256xf32>, i32 -> vector<8x256xf32>
    %222 = vector.broadcast %220 : vector<1x256xf32> to vector<8x256xf32>
    %223 = arith.mulf %221, %222 : vector<8x256xf32>
    %224 = arith.mulf %8, %223 : vector<8x256xf32>
    %cst_33 = arith.constant dense<0.000000e+00> : vector<256xf32>
    %225 = vector.multi_reduction <add>, %224, %cst_33 [0] : vector<8x256xf32> to vector<256xf32>
    %226 = vector.shape_cast %225 : vector<256xf32> to vector<1x256xf32>
    %227 = arith.maximumf %208, %226 : vector<1x256xf32>
    %228 = arith.subf %208, %227 : vector<1x256xf32>
    %229 = math.exp %228 : vector<1x256xf32>
    %230 = arith.subf %226, %227 : vector<1x256xf32>
    %231 = math.exp %230 : vector<1x256xf32>
    %232 = arith.mulf %229, %214 : vector<1x256xf32>
    %233 = arith.addf %232, %231 : vector<1x256xf32>
    %234 = vector.broadcast %229 : vector<1x256xf32> to vector<8x256xf32>
    %235 = arith.mulf %234, %219 : vector<8x256xf32>
    %236 = vector.broadcast %231 : vector<1x256xf32> to vector<8x256xf32>
    %237 = arith.mulf %236, %223 : vector<8x256xf32>
    %238 = arith.addf %235, %237 : vector<8x256xf32>
    %c13 = arith.constant 13 : index
    %c0_34 = arith.constant 0 : index
    %239 = vector.load %arg5[%c13, %c0_34] : memref<25x256xf32, #tpu.memory_space<vmem>>, vector<1x256xf32>
    %c254_i32 = arith.constant 254 : i32
    %240 = tpu.dynamic_rotate %8 by %c254_i32 dim 1 : vector<8x256xf32>, i32 -> vector<8x256xf32>
    %241 = vector.broadcast %239 : vector<1x256xf32> to vector<8x256xf32>
    %242 = arith.mulf %240, %241 : vector<8x256xf32>
    %243 = arith.mulf %8, %242 : vector<8x256xf32>
    %cst_35 = arith.constant dense<0.000000e+00> : vector<256xf32>
    %244 = vector.multi_reduction <add>, %243, %cst_35 [0] : vector<8x256xf32> to vector<256xf32>
    %245 = vector.shape_cast %244 : vector<256xf32> to vector<1x256xf32>
    %246 = arith.maximumf %227, %245 : vector<1x256xf32>
    %247 = arith.subf %227, %246 : vector<1x256xf32>
    %248 = math.exp %247 : vector<1x256xf32>
    %249 = arith.subf %245, %246 : vector<1x256xf32>
    %250 = math.exp %249 : vector<1x256xf32>
    %251 = arith.mulf %248, %233 : vector<1x256xf32>
    %252 = arith.addf %251, %250 : vector<1x256xf32>
    %253 = vector.broadcast %248 : vector<1x256xf32> to vector<8x256xf32>
    %254 = arith.mulf %253, %238 : vector<8x256xf32>
    %255 = vector.broadcast %250 : vector<1x256xf32> to vector<8x256xf32>
    %256 = arith.mulf %255, %242 : vector<8x256xf32>
    %257 = arith.addf %254, %256 : vector<8x256xf32>
    %c14 = arith.constant 14 : index
    %c0_36 = arith.constant 0 : index
    %258 = vector.load %arg5[%c14, %c0_36] : memref<25x256xf32, #tpu.memory_space<vmem>>, vector<1x256xf32>
    %c252_i32 = arith.constant 252 : i32
    %259 = tpu.dynamic_rotate %8 by %c252_i32 dim 1 : vector<8x256xf32>, i32 -> vector<8x256xf32>
    %260 = vector.broadcast %258 : vector<1x256xf32> to vector<8x256xf32>
    %261 = arith.mulf %259, %260 : vector<8x256xf32>
    %262 = arith.mulf %8, %261 : vector<8x256xf32>
    %cst_37 = arith.constant dense<0.000000e+00> : vector<256xf32>
    %263 = vector.multi_reduction <add>, %262, %cst_37 [0] : vector<8x256xf32> to vector<256xf32>
    %264 = vector.shape_cast %263 : vector<256xf32> to vector<1x256xf32>
    %265 = arith.maximumf %246, %264 : vector<1x256xf32>
    %266 = arith.subf %246, %265 : vector<1x256xf32>
    %267 = math.exp %266 : vector<1x256xf32>
    %268 = arith.subf %264, %265 : vector<1x256xf32>
    %269 = math.exp %268 : vector<1x256xf32>
    %270 = arith.mulf %267, %252 : vector<1x256xf32>
    %271 = arith.addf %270, %269 : vector<1x256xf32>
    %272 = vector.broadcast %267 : vector<1x256xf32> to vector<8x256xf32>
    %273 = arith.mulf %272, %257 : vector<8x256xf32>
    %274 = vector.broadcast %269 : vector<1x256xf32> to vector<8x256xf32>
    %275 = arith.mulf %274, %261 : vector<8x256xf32>
    %276 = arith.addf %273, %275 : vector<8x256xf32>
    %c15 = arith.constant 15 : index
    %c0_38 = arith.constant 0 : index
    %277 = vector.load %arg5[%c15, %c0_38] : memref<25x256xf32, #tpu.memory_space<vmem>>, vector<1x256xf32>
    %c228_i32 = arith.constant 228 : i32
    %278 = tpu.dynamic_rotate %8 by %c228_i32 dim 1 : vector<8x256xf32>, i32 -> vector<8x256xf32>
    %279 = vector.broadcast %277 : vector<1x256xf32> to vector<8x256xf32>
    %280 = arith.mulf %278, %279 : vector<8x256xf32>
    %281 = arith.mulf %8, %280 : vector<8x256xf32>
    %cst_39 = arith.constant dense<0.000000e+00> : vector<256xf32>
    %282 = vector.multi_reduction <add>, %281, %cst_39 [0] : vector<8x256xf32> to vector<256xf32>
    %283 = vector.shape_cast %282 : vector<256xf32> to vector<1x256xf32>
    %284 = arith.maximumf %265, %283 : vector<1x256xf32>
    %285 = arith.subf %265, %284 : vector<1x256xf32>
    %286 = math.exp %285 : vector<1x256xf32>
    %287 = arith.subf %283, %284 : vector<1x256xf32>
    %288 = math.exp %287 : vector<1x256xf32>
    %289 = arith.mulf %286, %271 : vector<1x256xf32>
    %290 = arith.addf %289, %288 : vector<1x256xf32>
    %291 = vector.broadcast %286 : vector<1x256xf32> to vector<8x256xf32>
    %292 = arith.mulf %291, %276 : vector<8x256xf32>
    %293 = vector.broadcast %288 : vector<1x256xf32> to vector<8x256xf32>
    %294 = arith.mulf %293, %280 : vector<8x256xf32>
    %295 = arith.addf %292, %294 : vector<8x256xf32>
    %c16 = arith.constant 16 : index
    %c0_40 = arith.constant 0 : index
    %296 = vector.load %arg5[%c16, %c0_40] : memref<25x256xf32, #tpu.memory_space<vmem>>, vector<1x256xf32>
    %c226_i32 = arith.constant 226 : i32
    %297 = tpu.dynamic_rotate %8 by %c226_i32 dim 1 : vector<8x256xf32>, i32 -> vector<8x256xf32>
    %298 = vector.broadcast %296 : vector<1x256xf32> to vector<8x256xf32>
    %299 = arith.mulf %297, %298 : vector<8x256xf32>
    %300 = arith.mulf %8, %299 : vector<8x256xf32>
    %cst_41 = arith.constant dense<0.000000e+00> : vector<256xf32>
    %301 = vector.multi_reduction <add>, %300, %cst_41 [0] : vector<8x256xf32> to vector<256xf32>
    %302 = vector.shape_cast %301 : vector<256xf32> to vector<1x256xf32>
    %303 = arith.maximumf %284, %302 : vector<1x256xf32>
    %304 = arith.subf %284, %303 : vector<1x256xf32>
    %305 = math.exp %304 : vector<1x256xf32>
    %306 = arith.subf %302, %303 : vector<1x256xf32>
    %307 = math.exp %306 : vector<1x256xf32>
    %308 = arith.mulf %305, %290 : vector<1x256xf32>
    %309 = arith.addf %308, %307 : vector<1x256xf32>
    %310 = vector.broadcast %305 : vector<1x256xf32> to vector<8x256xf32>
    %311 = arith.mulf %310, %295 : vector<8x256xf32>
    %312 = vector.broadcast %307 : vector<1x256xf32> to vector<8x256xf32>
    %313 = arith.mulf %312, %299 : vector<8x256xf32>
    %314 = arith.addf %311, %313 : vector<8x256xf32>
    %c17 = arith.constant 17 : index
    %c0_42 = arith.constant 0 : index
    %315 = vector.load %arg5[%c17, %c0_42] : memref<25x256xf32, #tpu.memory_space<vmem>>, vector<1x256xf32>
    %c224_i32 = arith.constant 224 : i32
    %316 = tpu.dynamic_rotate %8 by %c224_i32 dim 1 : vector<8x256xf32>, i32 -> vector<8x256xf32>
    %317 = vector.broadcast %315 : vector<1x256xf32> to vector<8x256xf32>
    %318 = arith.mulf %316, %317 : vector<8x256xf32>
    %319 = arith.mulf %8, %318 : vector<8x256xf32>
    %cst_43 = arith.constant dense<0.000000e+00> : vector<256xf32>
    %320 = vector.multi_reduction <add>, %319, %cst_43 [0] : vector<8x256xf32> to vector<256xf32>
    %321 = vector.shape_cast %320 : vector<256xf32> to vector<1x256xf32>
    %322 = arith.maximumf %303, %321 : vector<1x256xf32>
    %323 = arith.subf %303, %322 : vector<1x256xf32>
    %324 = math.exp %323 : vector<1x256xf32>
    %325 = arith.subf %321, %322 : vector<1x256xf32>
    %326 = math.exp %325 : vector<1x256xf32>
    %327 = arith.mulf %324, %309 : vector<1x256xf32>
    %328 = arith.addf %327, %326 : vector<1x256xf32>
    %329 = vector.broadcast %324 : vector<1x256xf32> to vector<8x256xf32>
    %330 = arith.mulf %329, %314 : vector<8x256xf32>
    %331 = vector.broadcast %326 : vector<1x256xf32> to vector<8x256xf32>
    %332 = arith.mulf %331, %318 : vector<8x256xf32>
    %333 = arith.addf %330, %332 : vector<8x256xf32>
    %c18 = arith.constant 18 : index
    %c0_44 = arith.constant 0 : index
    %334 = vector.load %arg5[%c18, %c0_44] : memref<25x256xf32, #tpu.memory_space<vmem>>, vector<1x256xf32>
    %c222_i32 = arith.constant 222 : i32
    %335 = tpu.dynamic_rotate %8 by %c222_i32 dim 1 : vector<8x256xf32>, i32 -> vector<8x256xf32>
    %336 = vector.broadcast %334 : vector<1x256xf32> to vector<8x256xf32>
    %337 = arith.mulf %335, %336 : vector<8x256xf32>
    %338 = arith.mulf %8, %337 : vector<8x256xf32>
    %cst_45 = arith.constant dense<0.000000e+00> : vector<256xf32>
    %339 = vector.multi_reduction <add>, %338, %cst_45 [0] : vector<8x256xf32> to vector<256xf32>
    %340 = vector.shape_cast %339 : vector<256xf32> to vector<1x256xf32>
    %341 = arith.maximumf %322, %340 : vector<1x256xf32>
    %342 = arith.subf %322, %341 : vector<1x256xf32>
    %343 = math.exp %342 : vector<1x256xf32>
    %344 = arith.subf %340, %341 : vector<1x256xf32>
    %345 = math.exp %344 : vector<1x256xf32>
    %346 = arith.mulf %343, %328 : vector<1x256xf32>
    %347 = arith.addf %346, %345 : vector<1x256xf32>
    %348 = vector.broadcast %343 : vector<1x256xf32> to vector<8x256xf32>
    %349 = arith.mulf %348, %333 : vector<8x256xf32>
    %350 = vector.broadcast %345 : vector<1x256xf32> to vector<8x256xf32>
    %351 = arith.mulf %350, %337 : vector<8x256xf32>
    %352 = arith.addf %349, %351 : vector<8x256xf32>
    %c19 = arith.constant 19 : index
    %c0_46 = arith.constant 0 : index
    %353 = vector.load %arg5[%c19, %c0_46] : memref<25x256xf32, #tpu.memory_space<vmem>>, vector<1x256xf32>
    %c220_i32 = arith.constant 220 : i32
    %354 = tpu.dynamic_rotate %8 by %c220_i32 dim 1 : vector<8x256xf32>, i32 -> vector<8x256xf32>
    %355 = vector.broadcast %353 : vector<1x256xf32> to vector<8x256xf32>
    %356 = arith.mulf %354, %355 : vector<8x256xf32>
    %357 = arith.mulf %8, %356 : vector<8x256xf32>
    %cst_47 = arith.constant dense<0.000000e+00> : vector<256xf32>
    %358 = vector.multi_reduction <add>, %357, %cst_47 [0] : vector<8x256xf32> to vector<256xf32>
    %359 = vector.shape_cast %358 : vector<256xf32> to vector<1x256xf32>
    %360 = arith.maximumf %341, %359 : vector<1x256xf32>
    %361 = arith.subf %341, %360 : vector<1x256xf32>
    %362 = math.exp %361 : vector<1x256xf32>
    %363 = arith.subf %359, %360 : vector<1x256xf32>
    %364 = math.exp %363 : vector<1x256xf32>
    %365 = arith.mulf %362, %347 : vector<1x256xf32>
    %366 = arith.addf %365, %364 : vector<1x256xf32>
    %367 = vector.broadcast %362 : vector<1x256xf32> to vector<8x256xf32>
    %368 = arith.mulf %367, %352 : vector<8x256xf32>
    %369 = vector.broadcast %364 : vector<1x256xf32> to vector<8x256xf32>
    %370 = arith.mulf %369, %356 : vector<8x256xf32>
    %371 = arith.addf %368, %370 : vector<8x256xf32>
    %c20 = arith.constant 20 : index
    %c0_48 = arith.constant 0 : index
    %372 = vector.load %arg5[%c20, %c0_48] : memref<25x256xf32, #tpu.memory_space<vmem>>, vector<1x256xf32>
    %c196_i32 = arith.constant 196 : i32
    %373 = tpu.dynamic_rotate %8 by %c196_i32 dim 1 : vector<8x256xf32>, i32 -> vector<8x256xf32>
    %374 = vector.broadcast %372 : vector<1x256xf32> to vector<8x256xf32>
    %375 = arith.mulf %373, %374 : vector<8x256xf32>
    %376 = arith.mulf %8, %375 : vector<8x256xf32>
    %cst_49 = arith.constant dense<0.000000e+00> : vector<256xf32>
    %377 = vector.multi_reduction <add>, %376, %cst_49 [0] : vector<8x256xf32> to vector<256xf32>
    %378 = vector.shape_cast %377 : vector<256xf32> to vector<1x256xf32>
    %379 = arith.maximumf %360, %378 : vector<1x256xf32>
    %380 = arith.subf %360, %379 : vector<1x256xf32>
    %381 = math.exp %380 : vector<1x256xf32>
    %382 = arith.subf %378, %379 : vector<1x256xf32>
    %383 = math.exp %382 : vector<1x256xf32>
    %384 = arith.mulf %381, %366 : vector<1x256xf32>
    %385 = arith.addf %384, %383 : vector<1x256xf32>
    %386 = vector.broadcast %381 : vector<1x256xf32> to vector<8x256xf32>
    %387 = arith.mulf %386, %371 : vector<8x256xf32>
    %388 = vector.broadcast %383 : vector<1x256xf32> to vector<8x256xf32>
    %389 = arith.mulf %388, %375 : vector<8x256xf32>
    %390 = arith.addf %387, %389 : vector<8x256xf32>
    %c21 = arith.constant 21 : index
    %c0_50 = arith.constant 0 : index
    %391 = vector.load %arg5[%c21, %c0_50] : memref<25x256xf32, #tpu.memory_space<vmem>>, vector<1x256xf32>
    %c194_i32 = arith.constant 194 : i32
    %392 = tpu.dynamic_rotate %8 by %c194_i32 dim 1 : vector<8x256xf32>, i32 -> vector<8x256xf32>
    %393 = vector.broadcast %391 : vector<1x256xf32> to vector<8x256xf32>
    %394 = arith.mulf %392, %393 : vector<8x256xf32>
    %395 = arith.mulf %8, %394 : vector<8x256xf32>
    %cst_51 = arith.constant dense<0.000000e+00> : vector<256xf32>
    %396 = vector.multi_reduction <add>, %395, %cst_51 [0] : vector<8x256xf32> to vector<256xf32>
    %397 = vector.shape_cast %396 : vector<256xf32> to vector<1x256xf32>
    %398 = arith.maximumf %379, %397 : vector<1x256xf32>
    %399 = arith.subf %379, %398 : vector<1x256xf32>
    %400 = math.exp %399 : vector<1x256xf32>
    %401 = arith.subf %397, %398 : vector<1x256xf32>
    %402 = math.exp %401 : vector<1x256xf32>
    %403 = arith.mulf %400, %385 : vector<1x256xf32>
    %404 = arith.addf %403, %402 : vector<1x256xf32>
    %405 = vector.broadcast %400 : vector<1x256xf32> to vector<8x256xf32>
    %406 = arith.mulf %405, %390 : vector<8x256xf32>
    %407 = vector.broadcast %402 : vector<1x256xf32> to vector<8x256xf32>
    %408 = arith.mulf %407, %394 : vector<8x256xf32>
    %409 = arith.addf %406, %408 : vector<8x256xf32>
    %c22 = arith.constant 22 : index
    %c0_52 = arith.constant 0 : index
    %410 = vector.load %arg5[%c22, %c0_52] : memref<25x256xf32, #tpu.memory_space<vmem>>, vector<1x256xf32>
    %c192_i32 = arith.constant 192 : i32
    %411 = tpu.dynamic_rotate %8 by %c192_i32 dim 1 : vector<8x256xf32>, i32 -> vector<8x256xf32>
    %412 = vector.broadcast %410 : vector<1x256xf32> to vector<8x256xf32>
    %413 = arith.mulf %411, %412 : vector<8x256xf32>
    %414 = arith.mulf %8, %413 : vector<8x256xf32>
    %cst_53 = arith.constant dense<0.000000e+00> : vector<256xf32>
    %415 = vector.multi_reduction <add>, %414, %cst_53 [0] : vector<8x256xf32> to vector<256xf32>
    %416 = vector.shape_cast %415 : vector<256xf32> to vector<1x256xf32>
    %417 = arith.maximumf %398, %416 : vector<1x256xf32>
    %418 = arith.subf %398, %417 : vector<1x256xf32>
    %419 = math.exp %418 : vector<1x256xf32>
    %420 = arith.subf %416, %417 : vector<1x256xf32>
    %421 = math.exp %420 : vector<1x256xf32>
    %422 = arith.mulf %419, %404 : vector<1x256xf32>
    %423 = arith.addf %422, %421 : vector<1x256xf32>
    %424 = vector.broadcast %419 : vector<1x256xf32> to vector<8x256xf32>
    %425 = arith.mulf %424, %409 : vector<8x256xf32>
    %426 = vector.broadcast %421 : vector<1x256xf32> to vector<8x256xf32>
    %427 = arith.mulf %426, %413 : vector<8x256xf32>
    %428 = arith.addf %425, %427 : vector<8x256xf32>
    %c23 = arith.constant 23 : index
    %c0_54 = arith.constant 0 : index
    %429 = vector.load %arg5[%c23, %c0_54] : memref<25x256xf32, #tpu.memory_space<vmem>>, vector<1x256xf32>
    %c190_i32 = arith.constant 190 : i32
    %430 = tpu.dynamic_rotate %8 by %c190_i32 dim 1 : vector<8x256xf32>, i32 -> vector<8x256xf32>
    %431 = vector.broadcast %429 : vector<1x256xf32> to vector<8x256xf32>
    %432 = arith.mulf %430, %431 : vector<8x256xf32>
    %433 = arith.mulf %8, %432 : vector<8x256xf32>
    %cst_55 = arith.constant dense<0.000000e+00> : vector<256xf32>
    %434 = vector.multi_reduction <add>, %433, %cst_55 [0] : vector<8x256xf32> to vector<256xf32>
    %435 = vector.shape_cast %434 : vector<256xf32> to vector<1x256xf32>
    %436 = arith.maximumf %417, %435 : vector<1x256xf32>
    %437 = arith.subf %417, %436 : vector<1x256xf32>
    %438 = math.exp %437 : vector<1x256xf32>
    %439 = arith.subf %435, %436 : vector<1x256xf32>
    %440 = math.exp %439 : vector<1x256xf32>
    %441 = arith.mulf %438, %423 : vector<1x256xf32>
    %442 = arith.addf %441, %440 : vector<1x256xf32>
    %443 = vector.broadcast %438 : vector<1x256xf32> to vector<8x256xf32>
    %444 = arith.mulf %443, %428 : vector<8x256xf32>
    %445 = vector.broadcast %440 : vector<1x256xf32> to vector<8x256xf32>
    %446 = arith.mulf %445, %432 : vector<8x256xf32>
    %447 = arith.addf %444, %446 : vector<8x256xf32>
    %c24 = arith.constant 24 : index
    %c0_56 = arith.constant 0 : index
    %448 = vector.load %arg5[%c24, %c0_56] : memref<25x256xf32, #tpu.memory_space<vmem>>, vector<1x256xf32>
    %c188_i32 = arith.constant 188 : i32
    %449 = tpu.dynamic_rotate %8 by %c188_i32 dim 1 : vector<8x256xf32>, i32 -> vector<8x256xf32>
    %450 = vector.broadcast %448 : vector<1x256xf32> to vector<8x256xf32>
    %451 = arith.mulf %449, %450 : vector<8x256xf32>
    %452 = arith.mulf %8, %451 : vector<8x256xf32>
    %cst_57 = arith.constant dense<0.000000e+00> : vector<256xf32>
    %453 = vector.multi_reduction <add>, %452, %cst_57 [0] : vector<8x256xf32> to vector<256xf32>
    %454 = vector.shape_cast %453 : vector<256xf32> to vector<1x256xf32>
    %455 = arith.maximumf %436, %454 : vector<1x256xf32>
    %456 = arith.subf %436, %455 : vector<1x256xf32>
    %457 = math.exp %456 : vector<1x256xf32>
    %458 = arith.subf %454, %455 : vector<1x256xf32>
    %459 = math.exp %458 : vector<1x256xf32>
    %460 = arith.mulf %457, %442 : vector<1x256xf32>
    %461 = arith.addf %460, %459 : vector<1x256xf32>
    %462 = vector.broadcast %457 : vector<1x256xf32> to vector<8x256xf32>
    %463 = arith.mulf %462, %447 : vector<8x256xf32>
    %464 = vector.broadcast %459 : vector<1x256xf32> to vector<8x256xf32>
    %465 = arith.mulf %464, %451 : vector<8x256xf32>
    %466 = arith.addf %463, %465 : vector<8x256xf32>
    %467 = tpu.reciprocal %461 {approx = true} : vector<1x256xf32> -> vector<1x256xf32>
    %468 = vector.broadcast %467 : vector<1x256xf32> to vector<8x256xf32>
    %469 = arith.mulf %466, %468 : vector<8x256xf32>
    %470 = arith.addf %8, %469 : vector<8x256xf32>
    %c0_58 = arith.constant 0 : index
    %c0_59 = arith.constant 0 : index
    %c0_60 = arith.constant 0 : index
    %471 = vector.load %arg2[%c0_58, %c0_59, %c0_60] : memref<1x32x256xf32, #tpu.memory_space<vmem>>, vector<1x32x256xf32>
    %472 = vector.shape_cast %471 : vector<1x32x256xf32> to vector<32x256xf32>
    %473 = vector.extract_strided_slice %472 {offsets = [0, 0], sizes = [8, 256], strides = [1, 1]} : vector<32x256xf32> to vector<8x256xf32>
    %474 = arith.mulf %470, %473 : vector<8x256xf32>
    %cst_61 = arith.constant dense<0.000000e+00> : vector<256xf32>
    %475 = vector.multi_reduction <add>, %474, %cst_61 [0] : vector<8x256xf32> to vector<256xf32>
    %476 = vector.shape_cast %475 : vector<256xf32> to vector<1x256xf32>
    %477 = vector.extract_strided_slice %472 {offsets = [8, 0], sizes = [8, 256], strides = [1, 1]} : vector<32x256xf32> to vector<8x256xf32>
    %478 = arith.mulf %470, %477 : vector<8x256xf32>
    %cst_62 = arith.constant dense<0.000000e+00> : vector<256xf32>
    %479 = vector.multi_reduction <add>, %478, %cst_62 [0] : vector<8x256xf32> to vector<256xf32>
    %480 = vector.shape_cast %479 : vector<256xf32> to vector<1x256xf32>
    %481 = vector.extract_strided_slice %472 {offsets = [16, 0], sizes = [8, 256], strides = [1, 1]} : vector<32x256xf32> to vector<8x256xf32>
    %482 = arith.mulf %470, %481 : vector<8x256xf32>
    %cst_63 = arith.constant dense<0.000000e+00> : vector<256xf32>
    %483 = vector.multi_reduction <add>, %482, %cst_63 [0] : vector<8x256xf32> to vector<256xf32>
    %484 = vector.shape_cast %483 : vector<256xf32> to vector<1x256xf32>
    %485 = vector.extract_strided_slice %472 {offsets = [24, 0], sizes = [8, 256], strides = [1, 1]} : vector<32x256xf32> to vector<8x256xf32>
    %486 = arith.mulf %470, %485 : vector<8x256xf32>
    %cst_64 = arith.constant dense<0.000000e+00> : vector<256xf32>
    %487 = vector.multi_reduction <add>, %486, %cst_64 [0] : vector<8x256xf32> to vector<256xf32>
    %488 = vector.shape_cast %487 : vector<256xf32> to vector<1x256xf32>
    %489 = arith.maximumf %476, %480 : vector<1x256xf32>
    %490 = arith.maximumf %489, %484 : vector<1x256xf32>
    %491 = arith.maximumf %490, %488 : vector<1x256xf32>
    %492 = arith.subf %476, %491 : vector<1x256xf32>
    %493 = math.exp %492 : vector<1x256xf32>
    %494 = arith.subf %480, %491 : vector<1x256xf32>
    %495 = math.exp %494 : vector<1x256xf32>
    %496 = arith.subf %484, %491 : vector<1x256xf32>
    %497 = math.exp %496 : vector<1x256xf32>
    %498 = arith.subf %488, %491 : vector<1x256xf32>
    %499 = math.exp %498 : vector<1x256xf32>
    %500 = arith.addf %493, %495 : vector<1x256xf32>
    %501 = arith.addf %500, %497 : vector<1x256xf32>
    %502 = arith.addf %501, %499 : vector<1x256xf32>
    %503 = tpu.reciprocal %502 {approx = true} : vector<1x256xf32> -> vector<1x256xf32>
    %504 = arith.mulf %493, %503 : vector<1x256xf32>
    %505 = vector.broadcast %504 : vector<1x256xf32> to vector<8x256xf32>
    %506 = arith.mulf %505, %470 : vector<8x256xf32>
    %507 = vector.extract_strided_slice %472 {offsets = [0, 0], sizes = [8, 256], strides = [1, 1]} : vector<32x256xf32> to vector<8x256xf32>
    %c0_65 = arith.constant 0 : index
    %c0_66 = arith.constant 0 : index
    %508 = vector.load %arg7[%c0_65, %c0_66] : memref<32x1xf32, #tpu.memory_space<vmem>>, vector<8x1xf32>
    %509 = vector.broadcast %508 : vector<8x1xf32> to vector<8x256xf32>
    %510 = arith.mulf %506, %509 : vector<8x256xf32>
    %511 = arith.addf %507, %510 : vector<8x256xf32>
    %c0_67 = arith.constant 0 : index
    %c0_68 = arith.constant 0 : index
    %512 = vector.load %arg8[%c0_67, %c0_68] : memref<32x1xf32, #tpu.memory_space<vmem>>, vector<8x1xf32>
    %513 = vector.broadcast %512 : vector<8x1xf32> to vector<8x256xf32>
    %514 = arith.addf %511, %513 : vector<8x256xf32>
    %c0_69 = arith.constant 0 : index
    %c0_70 = arith.constant 0 : index
    %515 = vector.load %arg18[%c0_69, %c0_70] : memref<32x256xf32, #tpu.memory_space<vmem>>, vector<8x256xf32>
    tpu.vector_store %arg18[%c0_69, %c0_70], %514 {strides = array<i32>} : memref<32x256xf32, #tpu.memory_space<vmem>>, vector<8x256xf32>,
    %516 = arith.mulf %495, %503 : vector<1x256xf32>
    %517 = vector.broadcast %516 : vector<1x256xf32> to vector<8x256xf32>
    %518 = arith.mulf %517, %470 : vector<8x256xf32>
    %519 = vector.extract_strided_slice %472 {offsets = [8, 0], sizes = [8, 256], strides = [1, 1]} : vector<32x256xf32> to vector<8x256xf32>
    %c8_71 = arith.constant 8 : index
    %c0_72 = arith.constant 0 : index
    %520 = vector.load %arg7[%c8_71, %c0_72] : memref<32x1xf32, #tpu.memory_space<vmem>>, vector<8x1xf32>
    %521 = vector.broadcast %520 : vector<8x1xf32> to vector<8x256xf32>
    %522 = arith.mulf %518, %521 : vector<8x256xf32>
    %523 = arith.addf %519, %522 : vector<8x256xf32>
    %c8_73 = arith.constant 8 : index
    %c0_74 = arith.constant 0 : index
    %524 = vector.load %arg8[%c8_73, %c0_74] : memref<32x1xf32, #tpu.memory_space<vmem>>, vector<8x1xf32>
    %525 = vector.broadcast %524 : vector<8x1xf32> to vector<8x256xf32>
    %526 = arith.addf %523, %525 : vector<8x256xf32>
    %c8_75 = arith.constant 8 : index
    %c0_76 = arith.constant 0 : index
    %527 = vector.load %arg18[%c8_75, %c0_76] : memref<32x256xf32, #tpu.memory_space<vmem>>, vector<8x256xf32>
    tpu.vector_store %arg18[%c8_75, %c0_76], %526 {strides = array<i32>} : memref<32x256xf32, #tpu.memory_space<vmem>>, vector<8x256xf32>,
    %528 = arith.mulf %497, %503 : vector<1x256xf32>
    %529 = vector.broadcast %528 : vector<1x256xf32> to vector<8x256xf32>
    %530 = arith.mulf %529, %470 : vector<8x256xf32>
    %531 = vector.extract_strided_slice %472 {offsets = [16, 0], sizes = [8, 256], strides = [1, 1]} : vector<32x256xf32> to vector<8x256xf32>
    %c16_77 = arith.constant 16 : index
    %c0_78 = arith.constant 0 : index
    %532 = vector.load %arg7[%c16_77, %c0_78] : memref<32x1xf32, #tpu.memory_space<vmem>>, vector<8x1xf32>
    %533 = vector.broadcast %532 : vector<8x1xf32> to vector<8x256xf32>
    %534 = arith.mulf %530, %533 : vector<8x256xf32>
    %535 = arith.addf %531, %534 : vector<8x256xf32>
    %c16_79 = arith.constant 16 : index
    %c0_80 = arith.constant 0 : index
    %536 = vector.load %arg8[%c16_79, %c0_80] : memref<32x1xf32, #tpu.memory_space<vmem>>, vector<8x1xf32>
    %537 = vector.broadcast %536 : vector<8x1xf32> to vector<8x256xf32>
    %538 = arith.addf %535, %537 : vector<8x256xf32>
    %c16_81 = arith.constant 16 : index
    %c0_82 = arith.constant 0 : index
    %539 = vector.load %arg18[%c16_81, %c0_82] : memref<32x256xf32, #tpu.memory_space<vmem>>, vector<8x256xf32>
    tpu.vector_store %arg18[%c16_81, %c0_82], %538 {strides = array<i32>} : memref<32x256xf32, #tpu.memory_space<vmem>>, vector<8x256xf32>,
    %540 = arith.mulf %499, %503 : vector<1x256xf32>
    %541 = vector.broadcast %540 : vector<1x256xf32> to vector<8x256xf32>
    %542 = arith.mulf %541, %470 : vector<8x256xf32>
    %543 = vector.extract_strided_slice %472 {offsets = [24, 0], sizes = [8, 256], strides = [1, 1]} : vector<32x256xf32> to vector<8x256xf32>
    %c24_83 = arith.constant 24 : index
    %c0_84 = arith.constant 0 : index
    %544 = vector.load %arg7[%c24_83, %c0_84] : memref<32x1xf32, #tpu.memory_space<vmem>>, vector<8x1xf32>
    %545 = vector.broadcast %544 : vector<8x1xf32> to vector<8x256xf32>
    %546 = arith.mulf %542, %545 : vector<8x256xf32>
    %547 = arith.addf %543, %546 : vector<8x256xf32>
    %c24_85 = arith.constant 24 : index
    %c0_86 = arith.constant 0 : index
    %548 = vector.load %arg8[%c24_85, %c0_86] : memref<32x1xf32, #tpu.memory_space<vmem>>, vector<8x1xf32>
    %549 = vector.broadcast %548 : vector<8x1xf32> to vector<8x256xf32>
    %550 = arith.addf %547, %549 : vector<8x256xf32>
    %c24_87 = arith.constant 24 : index
    %c0_88 = arith.constant 0 : index
    %551 = vector.load %arg18[%c24_87, %c0_88] : memref<32x256xf32, #tpu.memory_space<vmem>>, vector<8x256xf32>
    tpu.vector_store %arg18[%c24_87, %c0_88], %550 {strides = array<i32>} : memref<32x256xf32, #tpu.memory_space<vmem>>, vector<8x256xf32>,
    %c0_89 = arith.constant 0 : index
    %c0_90 = arith.constant 0 : index
    %552 = vector.load %arg6[%c0_89, %c0_90] : memref<9x256xf32, #tpu.memory_space<vmem>>, vector<1x256xf32>
    %c1_91 = arith.constant 1 : index
    %c0_92 = arith.constant 0 : index
    %553 = vector.load %arg6[%c1_91, %c0_92] : memref<9x256xf32, #tpu.memory_space<vmem>>, vector<1x256xf32>
    %c2_93 = arith.constant 2 : index
    %c0_94 = arith.constant 0 : index
    %554 = vector.load %arg6[%c2_93, %c0_94] : memref<9x256xf32, #tpu.memory_space<vmem>>, vector<1x256xf32>
    %c3_95 = arith.constant 3 : index
    %c0_96 = arith.constant 0 : index
    %555 = vector.load %arg6[%c3_95, %c0_96] : memref<9x256xf32, #tpu.memory_space<vmem>>, vector<1x256xf32>
    %c5_97 = arith.constant 5 : index
    %c0_98 = arith.constant 0 : index
    %556 = vector.load %arg6[%c5_97, %c0_98] : memref<9x256xf32, #tpu.memory_space<vmem>>, vector<1x256xf32>
    %c6_99 = arith.constant 6 : index
    %c0_100 = arith.constant 0 : index
    %557 = vector.load %arg6[%c6_99, %c0_100] : memref<9x256xf32, #tpu.memory_space<vmem>>, vector<1x256xf32>
    %c7_101 = arith.constant 7 : index
    %c0_102 = arith.constant 0 : index
    %558 = vector.load %arg6[%c7_101, %c0_102] : memref<9x256xf32, #tpu.memory_space<vmem>>, vector<1x256xf32>
    %c8_103 = arith.constant 8 : index
    %c0_104 = arith.constant 0 : index
    %559 = vector.load %arg6[%c8_103, %c0_104] : memref<9x256xf32, #tpu.memory_space<vmem>>, vector<1x256xf32>
    %c0_105 = arith.constant 0 : index
    %c0_106 = arith.constant 0 : index
    %560 = vector.load %arg9[%c0_105, %c0_106] : memref<96x288xf32, #tpu.memory_space<vmem>>, vector<96x288xf32>
    %c0_107 = arith.constant 0 : index
    %c0_108 = arith.constant 0 : index
    %561 = vector.load %arg18[%c0_107, %c0_108] : memref<32x256xf32, #tpu.memory_space<vmem>>, vector<32x256xf32>
    %c17_i32 = arith.constant 17 : i32
    %562 = tpu.dynamic_rotate %561 by %c17_i32 dim 1 : vector<32x256xf32>, i32 -> vector<32x256xf32>
    %563 = vector.broadcast %552 : vector<1x256xf32> to vector<32x256xf32>
    %564 = arith.mulf %562, %563 : vector<32x256xf32>
    %c0_109 = arith.constant 0 : index
    %c0_110 = arith.constant 0 : index
    %565 = vector.load %arg19[%c0_109, %c0_110] : memref<288x256xf32, #tpu.memory_space<vmem>>, vector<32x256xf32>
    tpu.vector_store %arg19[%c0_109, %c0_110], %564 {strides = array<i32>} : memref<288x256xf32, #tpu.memory_space<vmem>>, vector<32x256xf32>,
    %c16_i32 = arith.constant 16 : i32
    %566 = tpu.dynamic_rotate %561 by %c16_i32 dim 1 : vector<32x256xf32>, i32 -> vector<32x256xf32>
    %567 = vector.broadcast %553 : vector<1x256xf32> to vector<32x256xf32>
    %568 = arith.mulf %566, %567 : vector<32x256xf32>
    %c32 = arith.constant 32 : index
    %c0_111 = arith.constant 0 : index
    %569 = vector.load %arg19[%c32, %c0_111] : memref<288x256xf32, #tpu.memory_space<vmem>>, vector<32x256xf32>
    tpu.vector_store %arg19[%c32, %c0_111], %568 {strides = array<i32>} : memref<288x256xf32, #tpu.memory_space<vmem>>, vector<32x256xf32>,
    %c15_i32 = arith.constant 15 : i32
    %570 = tpu.dynamic_rotate %561 by %c15_i32 dim 1 : vector<32x256xf32>, i32 -> vector<32x256xf32>
    %571 = vector.broadcast %554 : vector<1x256xf32> to vector<32x256xf32>
    %572 = arith.mulf %570, %571 : vector<32x256xf32>
    %c64 = arith.constant 64 : index
    %c0_112 = arith.constant 0 : index
    %573 = vector.load %arg19[%c64, %c0_112] : memref<288x256xf32, #tpu.memory_space<vmem>>, vector<32x256xf32>
    tpu.vector_store %arg19[%c64, %c0_112], %572 {strides = array<i32>} : memref<288x256xf32, #tpu.memory_space<vmem>>, vector<32x256xf32>,
    %c1_i32 = arith.constant 1 : i32
    %574 = tpu.dynamic_rotate %561 by %c1_i32 dim 1 : vector<32x256xf32>, i32 -> vector<32x256xf32>
    %575 = vector.broadcast %555 : vector<1x256xf32> to vector<32x256xf32>
    %576 = arith.mulf %574, %575 : vector<32x256xf32>
    %c96 = arith.constant 96 : index
    %c0_113 = arith.constant 0 : index
    %577 = vector.load %arg19[%c96, %c0_113] : memref<288x256xf32, #tpu.memory_space<vmem>>, vector<32x256xf32>
    tpu.vector_store %arg19[%c96, %c0_113], %576 {strides = array<i32>} : memref<288x256xf32, #tpu.memory_space<vmem>>, vector<32x256xf32>,
    %c128 = arith.constant 128 : index
    %c0_114 = arith.constant 0 : index
    %578 = vector.load %arg19[%c128, %c0_114] : memref<288x256xf32, #tpu.memory_space<vmem>>, vector<32x256xf32>
    tpu.vector_store %arg19[%c128, %c0_114], %561 {strides = array<i32>} : memref<288x256xf32, #tpu.memory_space<vmem>>, vector<32x256xf32>,
    %c255_i32 = arith.constant 255 : i32
    %579 = tpu.dynamic_rotate %561 by %c255_i32 dim 1 : vector<32x256xf32>, i32 -> vector<32x256xf32>
    %580 = vector.broadcast %556 : vector<1x256xf32> to vector<32x256xf32>
    %581 = arith.mulf %579, %580 : vector<32x256xf32>
    %c160 = arith.constant 160 : index
    %c0_115 = arith.constant 0 : index
    %582 = vector.load %arg19[%c160, %c0_115] : memref<288x256xf32, #tpu.memory_space<vmem>>, vector<32x256xf32>
    tpu.vector_store %arg19[%c160, %c0_115], %581 {strides = array<i32>} : memref<288x256xf32, #tpu.memory_space<vmem>>, vector<32x256xf32>,
    %c241_i32 = arith.constant 241 : i32
    %583 = tpu.dynamic_rotate %561 by %c241_i32 dim 1 : vector<32x256xf32>, i32 -> vector<32x256xf32>
    %584 = vector.broadcast %557 : vector<1x256xf32> to vector<32x256xf32>
    %585 = arith.mulf %583, %584 : vector<32x256xf32>
    %c192 = arith.constant 192 : index
    %c0_116 = arith.constant 0 : index
    %586 = vector.load %arg19[%c192, %c0_116] : memref<288x256xf32, #tpu.memory_space<vmem>>, vector<32x256xf32>
    tpu.vector_store %arg19[%c192, %c0_116], %585 {strides = array<i32>} : memref<288x256xf32, #tpu.memory_space<vmem>>, vector<32x256xf32>,
    %c240_i32 = arith.constant 240 : i32
    %587 = tpu.dynamic_rotate %561 by %c240_i32 dim 1 : vector<32x256xf32>, i32 -> vector<32x256xf32>
    %588 = vector.broadcast %558 : vector<1x256xf32> to vector<32x256xf32>
    %589 = arith.mulf %587, %588 : vector<32x256xf32>
    %c224 = arith.constant 224 : index
    %c0_117 = arith.constant 0 : index
    %590 = vector.load %arg19[%c224, %c0_117] : memref<288x256xf32, #tpu.memory_space<vmem>>, vector<32x256xf32>
    tpu.vector_store %arg19[%c224, %c0_117], %589 {strides = array<i32>} : memref<288x256xf32, #tpu.memory_space<vmem>>, vector<32x256xf32>,
    %c239_i32 = arith.constant 239 : i32
    %591 = tpu.dynamic_rotate %561 by %c239_i32 dim 1 : vector<32x256xf32>, i32 -> vector<32x256xf32>
    %592 = vector.broadcast %559 : vector<1x256xf32> to vector<32x256xf32>
    %593 = arith.mulf %591, %592 : vector<32x256xf32>
    %c256 = arith.constant 256 : index
    %c0_118 = arith.constant 0 : index
    %594 = vector.load %arg19[%c256, %c0_118] : memref<288x256xf32, #tpu.memory_space<vmem>>, vector<32x256xf32>
    tpu.vector_store %arg19[%c256, %c0_118], %593 {strides = array<i32>} : memref<288x256xf32, #tpu.memory_space<vmem>>, vector<32x256xf32>,
    %c0_119 = arith.constant 0 : index
    %c0_120 = arith.constant 0 : index
    %595 = vector.load %arg19[%c0_119, %c0_120] : memref<288x256xf32, #tpu.memory_space<vmem>>, vector<288x256xf32>
    %cst_121 = arith.constant dense<0.000000e+00> : vector<96x256xf32>
    %596 = tpu.matmul %560, %595, %cst_121 {dimension_numbers = #tpu.dot_dimension_numbers<[1], [0], [0], [1], [0, 0, 1, 1], [], []>} : vector<96x288xf32>, vector<288x256xf32>, vector<96x256xf32> -> vector<96x256xf32>
    %c0_122 = arith.constant 0 : index
    %c0_123 = arith.constant 0 : index
    %597 = vector.load %arg10[%c0_122, %c0_123] : memref<96x1xf32, #tpu.memory_space<vmem>>, vector<96x1xf32>
    %598 = vector.broadcast %597 : vector<96x1xf32> to vector<96x256xf32>
    %599 = arith.addf %596, %598 : vector<96x256xf32>
    %cst_124 = arith.constant 0.000000e+00 : f32
    %600 = vector.broadcast %cst_124 : f32 to vector<96x256xf32>
    %601 = arith.maximumf %599, %600 : vector<96x256xf32>
    %cst_125 = arith.constant 6.000000e+00 : f32
    %602 = vector.broadcast %cst_125 : f32 to vector<96x256xf32>
    %603 = arith.minimumf %601, %602 : vector<96x256xf32>
    %604 = vector.extract_strided_slice %603 {offsets = [0, 0], sizes = [32, 256], strides = [1, 1]} : vector<96x256xf32> to vector<32x256xf32>
    %605 = vector.extract_strided_slice %603 {offsets = [32, 0], sizes = [32, 256], strides = [1, 1]} : vector<96x256xf32> to vector<32x256xf32>
    %606 = arith.addf %604, %605 : vector<32x256xf32>
    %607 = vector.extract_strided_slice %603 {offsets = [64, 0], sizes = [32, 256], strides = [1, 1]} : vector<96x256xf32> to vector<32x256xf32>
    %608 = arith.addf %606, %607 : vector<32x256xf32>
    %c0_126 = arith.constant 0 : index
    %c0_127 = arith.constant 0 : index
    %609 = vector.load %arg11[%c0_126, %c0_127] : memref<64x288xf32, #tpu.memory_space<vmem>>, vector<64x288xf32>
    %c17_i32_128 = arith.constant 17 : i32
    %610 = tpu.dynamic_rotate %608 by %c17_i32_128 dim 1 : vector<32x256xf32>, i32 -> vector<32x256xf32>
    %611 = vector.broadcast %552 : vector<1x256xf32> to vector<32x256xf32>
    %612 = arith.mulf %610, %611 : vector<32x256xf32>
    %c0_129 = arith.constant 0 : index
    %c0_130 = arith.constant 0 : index
    %613 = vector.load %arg19[%c0_129, %c0_130] : memref<288x256xf32, #tpu.memory_space<vmem>>, vector<32x256xf32>
    tpu.vector_store %arg19[%c0_129, %c0_130], %612 {strides = array<i32>} : memref<288x256xf32, #tpu.memory_space<vmem>>, vector<32x256xf32>,
    %c16_i32_131 = arith.constant 16 : i32
    %614 = tpu.dynamic_rotate %608 by %c16_i32_131 dim 1 : vector<32x256xf32>, i32 -> vector<32x256xf32>
    %615 = vector.broadcast %553 : vector<1x256xf32> to vector<32x256xf32>
    %616 = arith.mulf %614, %615 : vector<32x256xf32>
    %c32_132 = arith.constant 32 : index
    %c0_133 = arith.constant 0 : index
    %617 = vector.load %arg19[%c32_132, %c0_133] : memref<288x256xf32, #tpu.memory_space<vmem>>, vector<32x256xf32>
    tpu.vector_store %arg19[%c32_132, %c0_133], %616 {strides = array<i32>} : memref<288x256xf32, #tpu.memory_space<vmem>>, vector<32x256xf32>,
    %c15_i32_134 = arith.constant 15 : i32
    %618 = tpu.dynamic_rotate %608 by %c15_i32_134 dim 1 : vector<32x256xf32>, i32 -> vector<32x256xf32>
    %619 = vector.broadcast %554 : vector<1x256xf32> to vector<32x256xf32>
    %620 = arith.mulf %618, %619 : vector<32x256xf32>
    %c64_135 = arith.constant 64 : index
    %c0_136 = arith.constant 0 : index
    %621 = vector.load %arg19[%c64_135, %c0_136] : memref<288x256xf32, #tpu.memory_space<vmem>>, vector<32x256xf32>
    tpu.vector_store %arg19[%c64_135, %c0_136], %620 {strides = array<i32>} : memref<288x256xf32, #tpu.memory_space<vmem>>, vector<32x256xf32>,
    %c1_i32_137 = arith.constant 1 : i32
    %622 = tpu.dynamic_rotate %608 by %c1_i32_137 dim 1 : vector<32x256xf32>, i32 -> vector<32x256xf32>
    %623 = vector.broadcast %555 : vector<1x256xf32> to vector<32x256xf32>
    %624 = arith.mulf %622, %623 : vector<32x256xf32>
    %c96_138 = arith.constant 96 : index
    %c0_139 = arith.constant 0 : index
    %625 = vector.load %arg19[%c96_138, %c0_139] : memref<288x256xf32, #tpu.memory_space<vmem>>, vector<32x256xf32>
    tpu.vector_store %arg19[%c96_138, %c0_139], %624 {strides = array<i32>} : memref<288x256xf32, #tpu.memory_space<vmem>>, vector<32x256xf32>,
    %c128_140 = arith.constant 128 : index
    %c0_141 = arith.constant 0 : index
    %626 = vector.load %arg19[%c128_140, %c0_141] : memref<288x256xf32, #tpu.memory_space<vmem>>, vector<32x256xf32>
    tpu.vector_store %arg19[%c128_140, %c0_141], %608 {strides = array<i32>} : memref<288x256xf32, #tpu.memory_space<vmem>>, vector<32x256xf32>,
    %c255_i32_142 = arith.constant 255 : i32
    %627 = tpu.dynamic_rotate %608 by %c255_i32_142 dim 1 : vector<32x256xf32>, i32 -> vector<32x256xf32>
    %628 = vector.broadcast %556 : vector<1x256xf32> to vector<32x256xf32>
    %629 = arith.mulf %627, %628 : vector<32x256xf32>
    %c160_143 = arith.constant 160 : index
    %c0_144 = arith.constant 0 : index
    %630 = vector.load %arg19[%c160_143, %c0_144] : memref<288x256xf32, #tpu.memory_space<vmem>>, vector<32x256xf32>
    tpu.vector_store %arg19[%c160_143, %c0_144], %629 {strides = array<i32>} : memref<288x256xf32, #tpu.memory_space<vmem>>, vector<32x256xf32>,
    %c241_i32_145 = arith.constant 241 : i32
    %631 = tpu.dynamic_rotate %608 by %c241_i32_145 dim 1 : vector<32x256xf32>, i32 -> vector<32x256xf32>
    %632 = vector.broadcast %557 : vector<1x256xf32> to vector<32x256xf32>
    %633 = arith.mulf %631, %632 : vector<32x256xf32>
    %c192_146 = arith.constant 192 : index
    %c0_147 = arith.constant 0 : index
    %634 = vector.load %arg19[%c192_146, %c0_147] : memref<288x256xf32, #tpu.memory_space<vmem>>, vector<32x256xf32>
    tpu.vector_store %arg19[%c192_146, %c0_147], %633 {strides = array<i32>} : memref<288x256xf32, #tpu.memory_space<vmem>>, vector<32x256xf32>,
    %c240_i32_148 = arith.constant 240 : i32
    %635 = tpu.dynamic_rotate %608 by %c240_i32_148 dim 1 : vector<32x256xf32>, i32 -> vector<32x256xf32>
    %636 = vector.broadcast %558 : vector<1x256xf32> to vector<32x256xf32>
    %637 = arith.mulf %635, %636 : vector<32x256xf32>
    %c224_149 = arith.constant 224 : index
    %c0_150 = arith.constant 0 : index
    %638 = vector.load %arg19[%c224_149, %c0_150] : memref<288x256xf32, #tpu.memory_space<vmem>>, vector<32x256xf32>
    tpu.vector_store %arg19[%c224_149, %c0_150], %637 {strides = array<i32>} : memref<288x256xf32, #tpu.memory_space<vmem>>, vector<32x256xf32>,
    %c239_i32_151 = arith.constant 239 : i32
    %639 = tpu.dynamic_rotate %608 by %c239_i32_151 dim 1 : vector<32x256xf32>, i32 -> vector<32x256xf32>
    %640 = vector.broadcast %559 : vector<1x256xf32> to vector<32x256xf32>
    %641 = arith.mulf %639, %640 : vector<32x256xf32>
    %c256_152 = arith.constant 256 : index
    %c0_153 = arith.constant 0 : index
    %642 = vector.load %arg19[%c256_152, %c0_153] : memref<288x256xf32, #tpu.memory_space<vmem>>, vector<32x256xf32>
    tpu.vector_store %arg19[%c256_152, %c0_153], %641 {strides = array<i32>} : memref<288x256xf32, #tpu.memory_space<vmem>>, vector<32x256xf32>,
    %c0_154 = arith.constant 0 : index
    %c0_155 = arith.constant 0 : index
    %643 = vector.load %arg19[%c0_154, %c0_155] : memref<288x256xf32, #tpu.memory_space<vmem>>, vector<288x256xf32>
    %cst_156 = arith.constant dense<0.000000e+00> : vector<64x256xf32>
    %644 = tpu.matmul %609, %643, %cst_156 {dimension_numbers = #tpu.dot_dimension_numbers<[1], [0], [0], [1], [0, 0, 1, 1], [], []>} : vector<64x288xf32>, vector<288x256xf32>, vector<64x256xf32> -> vector<64x256xf32>
    %c0_157 = arith.constant 0 : index
    %c0_158 = arith.constant 0 : index
    %645 = vector.load %arg12[%c0_157, %c0_158] : memref<64x1xf32, #tpu.memory_space<vmem>>, vector<64x1xf32>
    %646 = vector.broadcast %645 : vector<64x1xf32> to vector<64x256xf32>
    %647 = arith.addf %644, %646 : vector<64x256xf32>
    %cst_159 = arith.constant 0.000000e+00 : f32
    %648 = vector.broadcast %cst_159 : f32 to vector<64x256xf32>
    %649 = arith.maximumf %647, %648 : vector<64x256xf32>
    %cst_160 = arith.constant 6.000000e+00 : f32
    %650 = vector.broadcast %cst_160 : f32 to vector<64x256xf32>
    %651 = arith.minimumf %649, %650 : vector<64x256xf32>
    %652 = vector.extract_strided_slice %651 {offsets = [0, 0], sizes = [32, 256], strides = [1, 1]} : vector<64x256xf32> to vector<32x256xf32>
    %653 = vector.extract_strided_slice %651 {offsets = [32, 0], sizes = [32, 256], strides = [1, 1]} : vector<64x256xf32> to vector<32x256xf32>
    %654 = arith.addf %652, %653 : vector<32x256xf32>
    %c0_161 = arith.constant 0 : index
    %c0_162 = arith.constant 0 : index
    %655 = vector.load %arg13[%c0_161, %c0_162] : memref<32x288xf32, #tpu.memory_space<vmem>>, vector<32x288xf32>
    %c17_i32_163 = arith.constant 17 : i32
    %656 = tpu.dynamic_rotate %654 by %c17_i32_163 dim 1 : vector<32x256xf32>, i32 -> vector<32x256xf32>
    %657 = vector.broadcast %552 : vector<1x256xf32> to vector<32x256xf32>
    %658 = arith.mulf %656, %657 : vector<32x256xf32>
    %c0_164 = arith.constant 0 : index
    %c0_165 = arith.constant 0 : index
    %659 = vector.load %arg19[%c0_164, %c0_165] : memref<288x256xf32, #tpu.memory_space<vmem>>, vector<32x256xf32>
    tpu.vector_store %arg19[%c0_164, %c0_165], %658 {strides = array<i32>} : memref<288x256xf32, #tpu.memory_space<vmem>>, vector<32x256xf32>,
    %c16_i32_166 = arith.constant 16 : i32
    %660 = tpu.dynamic_rotate %654 by %c16_i32_166 dim 1 : vector<32x256xf32>, i32 -> vector<32x256xf32>
    %661 = vector.broadcast %553 : vector<1x256xf32> to vector<32x256xf32>
    %662 = arith.mulf %660, %661 : vector<32x256xf32>
    %c32_167 = arith.constant 32 : index
    %c0_168 = arith.constant 0 : index
    %663 = vector.load %arg19[%c32_167, %c0_168] : memref<288x256xf32, #tpu.memory_space<vmem>>, vector<32x256xf32>
    tpu.vector_store %arg19[%c32_167, %c0_168], %662 {strides = array<i32>} : memref<288x256xf32, #tpu.memory_space<vmem>>, vector<32x256xf32>,
    %c15_i32_169 = arith.constant 15 : i32
    %664 = tpu.dynamic_rotate %654 by %c15_i32_169 dim 1 : vector<32x256xf32>, i32 -> vector<32x256xf32>
    %665 = vector.broadcast %554 : vector<1x256xf32> to vector<32x256xf32>
    %666 = arith.mulf %664, %665 : vector<32x256xf32>
    %c64_170 = arith.constant 64 : index
    %c0_171 = arith.constant 0 : index
    %667 = vector.load %arg19[%c64_170, %c0_171] : memref<288x256xf32, #tpu.memory_space<vmem>>, vector<32x256xf32>
    tpu.vector_store %arg19[%c64_170, %c0_171], %666 {strides = array<i32>} : memref<288x256xf32, #tpu.memory_space<vmem>>, vector<32x256xf32>,
    %c1_i32_172 = arith.constant 1 : i32
    %668 = tpu.dynamic_rotate %654 by %c1_i32_172 dim 1 : vector<32x256xf32>, i32 -> vector<32x256xf32>
    %669 = vector.broadcast %555 : vector<1x256xf32> to vector<32x256xf32>
    %670 = arith.mulf %668, %669 : vector<32x256xf32>
    %c96_173 = arith.constant 96 : index
    %c0_174 = arith.constant 0 : index
    %671 = vector.load %arg19[%c96_173, %c0_174] : memref<288x256xf32, #tpu.memory_space<vmem>>, vector<32x256xf32>
    tpu.vector_store %arg19[%c96_173, %c0_174], %670 {strides = array<i32>} : memref<288x256xf32, #tpu.memory_space<vmem>>, vector<32x256xf32>,
    %c128_175 = arith.constant 128 : index
    %c0_176 = arith.constant 0 : index
    %672 = vector.load %arg19[%c128_175, %c0_176] : memref<288x256xf32, #tpu.memory_space<vmem>>, vector<32x256xf32>
    tpu.vector_store %arg19[%c128_175, %c0_176], %654 {strides = array<i32>} : memref<288x256xf32, #tpu.memory_space<vmem>>, vector<32x256xf32>,
    %c255_i32_177 = arith.constant 255 : i32
    %673 = tpu.dynamic_rotate %654 by %c255_i32_177 dim 1 : vector<32x256xf32>, i32 -> vector<32x256xf32>
    %674 = vector.broadcast %556 : vector<1x256xf32> to vector<32x256xf32>
    %675 = arith.mulf %673, %674 : vector<32x256xf32>
    %c160_178 = arith.constant 160 : index
    %c0_179 = arith.constant 0 : index
    %676 = vector.load %arg19[%c160_178, %c0_179] : memref<288x256xf32, #tpu.memory_space<vmem>>, vector<32x256xf32>
    tpu.vector_store %arg19[%c160_178, %c0_179], %675 {strides = array<i32>} : memref<288x256xf32, #tpu.memory_space<vmem>>, vector<32x256xf32>,
    %c241_i32_180 = arith.constant 241 : i32
    %677 = tpu.dynamic_rotate %654 by %c241_i32_180 dim 1 : vector<32x256xf32>, i32 -> vector<32x256xf32>
    %678 = vector.broadcast %557 : vector<1x256xf32> to vector<32x256xf32>
    %679 = arith.mulf %677, %678 : vector<32x256xf32>
    %c192_181 = arith.constant 192 : index
    %c0_182 = arith.constant 0 : index
    %680 = vector.load %arg19[%c192_181, %c0_182] : memref<288x256xf32, #tpu.memory_space<vmem>>, vector<32x256xf32>
    tpu.vector_store %arg19[%c192_181, %c0_182], %679 {strides = array<i32>} : memref<288x256xf32, #tpu.memory_space<vmem>>, vector<32x256xf32>,
    %c240_i32_183 = arith.constant 240 : i32
    %681 = tpu.dynamic_rotate %654 by %c240_i32_183 dim 1 : vector<32x256xf32>, i32 -> vector<32x256xf32>
    %682 = vector.broadcast %558 : vector<1x256xf32> to vector<32x256xf32>
    %683 = arith.mulf %681, %682 : vector<32x256xf32>
    %c224_184 = arith.constant 224 : index
    %c0_185 = arith.constant 0 : index
    %684 = vector.load %arg19[%c224_184, %c0_185] : memref<288x256xf32, #tpu.memory_space<vmem>>, vector<32x256xf32>
    tpu.vector_store %arg19[%c224_184, %c0_185], %683 {strides = array<i32>} : memref<288x256xf32, #tpu.memory_space<vmem>>, vector<32x256xf32>,
    %c239_i32_186 = arith.constant 239 : i32
    %685 = tpu.dynamic_rotate %654 by %c239_i32_186 dim 1 : vector<32x256xf32>, i32 -> vector<32x256xf32>
    %686 = vector.broadcast %559 : vector<1x256xf32> to vector<32x256xf32>
    %687 = arith.mulf %685, %686 : vector<32x256xf32>
    %c256_187 = arith.constant 256 : index
    %c0_188 = arith.constant 0 : index
    %688 = vector.load %arg19[%c256_187, %c0_188] : memref<288x256xf32, #tpu.memory_space<vmem>>, vector<32x256xf32>
    tpu.vector_store %arg19[%c256_187, %c0_188], %687 {strides = array<i32>} : memref<288x256xf32, #tpu.memory_space<vmem>>, vector<32x256xf32>,
    %c0_189 = arith.constant 0 : index
    %c0_190 = arith.constant 0 : index
    %689 = vector.load %arg19[%c0_189, %c0_190] : memref<288x256xf32, #tpu.memory_space<vmem>>, vector<288x256xf32>
    %cst_191 = arith.constant dense<0.000000e+00> : vector<32x256xf32>
    %690 = tpu.matmul %655, %689, %cst_191 {dimension_numbers = #tpu.dot_dimension_numbers<[1], [0], [0], [1], [0, 0, 1, 1], [], []>} : vector<32x288xf32>, vector<288x256xf32>, vector<32x256xf32> -> vector<32x256xf32>
    %c0_192 = arith.constant 0 : index
    %c0_193 = arith.constant 0 : index
    %691 = vector.load %arg14[%c0_192, %c0_193] : memref<32x1xf32, #tpu.memory_space<vmem>>, vector<32x1xf32>
    %692 = vector.broadcast %691 : vector<32x1xf32> to vector<32x256xf32>
    %693 = arith.addf %690, %692 : vector<32x256xf32>
    %cst_194 = arith.constant 0.000000e+00 : f32
    %694 = vector.broadcast %cst_194 : f32 to vector<32x256xf32>
    %695 = arith.maximumf %693, %694 : vector<32x256xf32>
    %cst_195 = arith.constant 6.000000e+00 : f32
    %696 = vector.broadcast %cst_195 : f32 to vector<32x256xf32>
    %697 = arith.minimumf %695, %696 : vector<32x256xf32>
    %c0_196 = arith.constant 0 : index
    %c0_197 = arith.constant 0 : index
    %698 = vector.load %arg19[%c0_196, %c0_197] : memref<288x256xf32, #tpu.memory_space<vmem>>, vector<32x256xf32>
    tpu.vector_store %arg19[%c0_196, %c0_197], %608 {strides = array<i32>} : memref<288x256xf32, #tpu.memory_space<vmem>>, vector<32x256xf32>,
    %c32_198 = arith.constant 32 : index
    %c0_199 = arith.constant 0 : index
    %699 = vector.load %arg19[%c32_198, %c0_199] : memref<288x256xf32, #tpu.memory_space<vmem>>, vector<32x256xf32>
    tpu.vector_store %arg19[%c32_198, %c0_199], %654 {strides = array<i32>} : memref<288x256xf32, #tpu.memory_space<vmem>>, vector<32x256xf32>,
    %c64_200 = arith.constant 64 : index
    %c0_201 = arith.constant 0 : index
    %700 = vector.load %arg19[%c64_200, %c0_201] : memref<288x256xf32, #tpu.memory_space<vmem>>, vector<32x256xf32>
    tpu.vector_store %arg19[%c64_200, %c0_201], %697 {strides = array<i32>} : memref<288x256xf32, #tpu.memory_space<vmem>>, vector<32x256xf32>,
    %c0_202 = arith.constant 0 : index
    %c0_203 = arith.constant 0 : index
    %701 = vector.load %arg15[%c0_202, %c0_203] : memref<32x96xf32, #tpu.memory_space<vmem>>, vector<32x96xf32>
    %c0_204 = arith.constant 0 : index
    %c0_205 = arith.constant 0 : index
    %702 = vector.load %arg19[%c0_204, %c0_205] : memref<288x256xf32, #tpu.memory_space<vmem>>, vector<96x256xf32>
    %cst_206 = arith.constant dense<0.000000e+00> : vector<32x256xf32>
    %703 = tpu.matmul %701, %702, %cst_206 {dimension_numbers = #tpu.dot_dimension_numbers<[1], [0], [0], [1], [0, 0, 1, 1], [], []>} : vector<32x96xf32>, vector<96x256xf32>, vector<32x256xf32> -> vector<32x256xf32>
    %c0_207 = arith.constant 0 : index
    %c0_208 = arith.constant 0 : index
    %704 = vector.load %arg16[%c0_207, %c0_208] : memref<32x1xf32, #tpu.memory_space<vmem>>, vector<32x1xf32>
    %705 = vector.broadcast %704 : vector<32x1xf32> to vector<32x256xf32>
    %706 = arith.addf %703, %705 : vector<32x256xf32>
    %c0_209 = arith.constant 0 : index
    %c0_210 = arith.constant 0 : index
    %707 = vector.load %arg18[%c0_209, %c0_210] : memref<32x256xf32, #tpu.memory_space<vmem>>, vector<32x256xf32>
    %708 = arith.addf %706, %707 : vector<32x256xf32>
    %cst_211 = arith.constant 0.000000e+00 : f32
    %709 = vector.broadcast %cst_211 : f32 to vector<32x256xf32>
    %710 = arith.maximumf %708, %709 : vector<32x256xf32>
    %c0_212 = arith.constant 0 : index
    %c0_213 = arith.constant 0 : index
    %c0_214 = arith.constant 0 : index
    %711 = vector.load %arg17[%c0_212, %c0_213, %c0_214] : memref<1x32x256xf32, #tpu.memory_space<vmem>>, vector<1x32x256xf32>
    %712 = vector.shape_cast %711 : vector<1x32x256xf32> to vector<32x256xf32>
    %713 = vector.shape_cast %710 : vector<32x256xf32> to vector<1x32x256xf32>
    tpu.vector_store %arg17[%c0_212, %c0_213, %c0_214], %713 {strides = array<i32>} : memref<1x32x256xf32, #tpu.memory_space<vmem>>, vector<1x32x256xf32>,
    return
  }
  func.func @transform_0(%arg0: i32) -> (i32, i32, i32) {
    %c0_i32 = arith.constant 0 : i32
    %c0_i32_0 = arith.constant 0 : i32
    %c0_i32_1 = arith.constant 0 : i32
    return %arg0, %c0_i32, %c0_i32_0 : i32, i32, i32
  }
  func.func @transform_1(%arg0: i32) -> (i32, i32, i32) {
    %c0_i32 = arith.constant 0 : i32
    %c0_i32_0 = arith.constant 0 : i32
    %c0_i32_1 = arith.constant 0 : i32
    return %arg0, %c0_i32, %c0_i32_0 : i32, i32, i32
  }
  func.func @transform_2(%arg0: i32) -> (i32, i32) {
    %c0_i32 = arith.constant 0 : i32
    %c0_i32_0 = arith.constant 0 : i32
    %c0_i32_1 = arith.constant 0 : i32
    return %c0_i32, %c0_i32_0 : i32, i32
  }
  func.func @transform_3(%arg0: i32) -> (i32, i32) {
    %c0_i32 = arith.constant 0 : i32
    %c0_i32_0 = arith.constant 0 : i32
    %c0_i32_1 = arith.constant 0 : i32
    return %c0_i32, %c0_i32_0 : i32, i32
  }
  func.func @transform_4(%arg0: i32) -> (i32, i32) {
    %c0_i32 = arith.constant 0 : i32
    %c0_i32_0 = arith.constant 0 : i32
    %c0_i32_1 = arith.constant 0 : i32
    return %c0_i32, %c0_i32_0 : i32, i32
  }
  func.func @transform_5(%arg0: i32) -> (i32, i32) {
    %c0_i32 = arith.constant 0 : i32
    %c0_i32_0 = arith.constant 0 : i32
    %c0_i32_1 = arith.constant 0 : i32
    return %c0_i32, %c0_i32_0 : i32, i32
  }
  func.func @transform_6(%arg0: i32) -> (i32, i32) {
    %c0_i32 = arith.constant 0 : i32
    %c0_i32_0 = arith.constant 0 : i32
    %c0_i32_1 = arith.constant 0 : i32
    return %c0_i32, %c0_i32_0 : i32, i32
  }
  func.func @transform_7(%arg0: i32) -> (i32, i32) {
    %c0_i32 = arith.constant 0 : i32
    %c0_i32_0 = arith.constant 0 : i32
    %c0_i32_1 = arith.constant 0 : i32
    return %c0_i32, %c0_i32_0 : i32, i32
  }
  func.func @transform_8(%arg0: i32) -> (i32, i32) {
    %c0_i32 = arith.constant 0 : i32
    %c0_i32_0 = arith.constant 0 : i32
    %c0_i32_1 = arith.constant 0 : i32
    return %c0_i32, %c0_i32_0 : i32, i32
  }
  func.func @transform_9(%arg0: i32) -> (i32, i32) {
    %c0_i32 = arith.constant 0 : i32
    %c0_i32_0 = arith.constant 0 : i32
    %c0_i32_1 = arith.constant 0 : i32
    return %c0_i32, %c0_i32_0 : i32, i32
  }
  func.func @transform_10(%arg0: i32) -> (i32, i32) {
    %c0_i32 = arith.constant 0 : i32
    %c0_i32_0 = arith.constant 0 : i32
    %c0_i32_1 = arith.constant 0 : i32
    return %c0_i32, %c0_i32_0 : i32, i32
  }
  func.func @transform_11(%arg0: i32) -> (i32, i32) {
    %c0_i32 = arith.constant 0 : i32
    %c0_i32_0 = arith.constant 0 : i32
    %c0_i32_1 = arith.constant 0 : i32
    return %c0_i32, %c0_i32_0 : i32, i32
  }
  func.func @transform_12(%arg0: i32) -> (i32, i32) {
    %c0_i32 = arith.constant 0 : i32
    %c0_i32_0 = arith.constant 0 : i32
    %c0_i32_1 = arith.constant 0 : i32
    return %c0_i32, %c0_i32_0 : i32, i32
  }
  func.func @transform_13(%arg0: i32) -> (i32, i32) {
    %c0_i32 = arith.constant 0 : i32
    %c0_i32_0 = arith.constant 0 : i32
    %c0_i32_1 = arith.constant 0 : i32
    return %c0_i32, %c0_i32_0 : i32, i32
  }
  func.func @transform_14(%arg0: i32) -> (i32, i32) {
    %c0_i32 = arith.constant 0 : i32
    %c0_i32_0 = arith.constant 0 : i32
    %c0_i32_1 = arith.constant 0 : i32
    return %c0_i32, %c0_i32_0 : i32, i32
  }
  func.func @transform_15(%arg0: i32) -> (i32, i32) {
    %c0_i32 = arith.constant 0 : i32
    %c0_i32_0 = arith.constant 0 : i32
    %c0_i32_1 = arith.constant 0 : i32
    return %c0_i32, %c0_i32_0 : i32, i32
  }
  func.func @transform_16(%arg0: i32) -> (i32, i32, i32) {
    %c0_i32 = arith.constant 0 : i32
    %c0_i32_0 = arith.constant 0 : i32
    %c0_i32_1 = arith.constant 0 : i32
    return %arg0, %c0_i32, %c0_i32_0 : i32, i32, i32
  }
}

</mosaic_0001>

<bundles_post_ra>
// kernel: detail_recovery.1
= control target key start
LH: loop header
LB: loop body
LE: loop exit
PB: predicated region body
PF: predicated region fallthrough
CT: control target
= control target key end

     0   :  { %s5222_s21 = smov 0   ;;  %s8175_s0 = inlined_call_operand.vmem [shape: f32[2,32,256], index: 0, kind: input, shape index: {}]   ;;  %s8176_s1 = inlined_call_operand.vmem [shape: f32[2,32,256], index: 1, kind: input, shape index: {}]   ;;  %s8177_s2 = inlined_call_operand.vmem [shape: f32[8,32], index: 2, kind: input, shape index: {}]   ;;  %s8178_s3 = inlined_call_operand.vmem [shape: f32[8,1], index: 3, kind: input, shape index: {}]   ;;  %s8179_s4 = inlined_call_operand.vmem [shape: f32[25,256], index: 4, kind: input, shape index: {}]   ;;  %s8180_s5 = inlined_call_operand.vmem [shape: f32[9,256], index: 5, kind: input, shape index: {}]   ;;  %s8181_s6 = inlined_call_operand.vmem [shape: f32[32,1], index: 6, kind: input, shape index: {}]   ;;  %s8182_s7 = inlined_call_operand.vmem [shape: f32[32,1], index: 7, kind: input, shape index: {}]   ;;  %s8183_s8 = inlined_call_operand.vmem [shape: f32[96,288], index: 8, kind: input, shape index: {}]   ;;  %s8184_s9 = inlined_call_operand.vmem [shape: f32[96,1], index: 9, kind: input, shape index: {}]   ;;  %s8185_s10 = inlined_call_operand.vmem [shape: f32[64,288], index: 10, kind: input, shape index: {}]   ;;  %s8186_s11 = inlined_call_operand.vmem [shape: f32[64,1], index: 11, kind: input, shape index: {}]   ;;  %s8187_s12 = inlined_call_operand.vmem [shape: f32[32,288], index: 12, kind: input, shape index: {}]   ;;  %s8188_s13 = inlined_call_operand.vmem [shape: f32[32,1], index: 13, kind: input, shape index: {}]   ;;  %s8189_s14 = inlined_call_operand.vmem [shape: f32[32,96], index: 14, kind: input, shape index: {}]   ;;  %s8190_s15 = inlined_call_operand.vmem [shape: f32[32,1], index: 15, kind: input, shape index: {}]   ;;  %s8191_s16 = inlined_call_operand.vmem [shape: f32[2,32,256], index: 16, kind: output, shape index: {}]  }
   0x1   :  { %8282 = sst [smem:[#allocation38_spill]] %s8175_s0 }
   0x2 LB: > { %s4730_s22 = sadd.s32 4294967295, %s5107_s21   ;;  %p4734_p0 = scmp.ge.s32.totalorder %s5107_s21, 1  ;;  %s5107_s21 = sphi %s5222_s21, %s26_s21  }
   0x3   : > { %p472_p1 = scmp.lt.s32.totalorder %s5107_s21, 3 }
   0x5   : > { %p473_p2 = pnand %p4734_p0, %p472_p1 }
   0x7   : > { %476 = sbr.rel (%p473_p2) target bundleno = 2232 (0x8b8), region = 84 }
   0xc   : > { %p527_p3 = scmp.lt.s32.totalorder %s4730_s22, 1  ;;  %v551_v0 = vld [vmem:[%s8178_s3] sm:$0xff]  ;;  %v5109_v1 = vmov 0   ;;  %s8283_s28 = sld [smem:[#allocation38_spill]]  ;;  %vm557_vm0 = vcmask 261120   ;;  %v2047_v18 = vld [vmem:[%s8181_s6 + $0x18] sm:$0xff]  ;;  %v608_v20 = vlaneseq }
   0xd   : > { %4882 = vset.pattern.permute.xlu0 %v5109_v1  ;;  %4883 = vset.pattern.permute.xlu1 %v5109_v1  ;;  %v542_v10 = vld [vmem:[%s8177_s2] sm:$0xff]  ;;  %s5110_s17 = smov 66   ;;  %s5111_s18 = smov 68   ;;  %v2057_v19 = vld [vmem:[%s8182_s7 + $0x18] sm:$0xff]  ;;  %v2009_v22 = vld [vmem:[%s8182_s7 + $0x8] sm:$0xff] }
   0xe   : > { %s8398_s22 = smov (!%p527_p3, %s4730_s22), 1  ;;  %554 = vperm.xlu0 %4882, %v551_v0   ;;  %4884 = vset.pattern.permute.xlu2 %v5109_v1  ;;  %s5112_s19 = smov 64   ;;  %v5292_v21 = vand.u32 127, %v608_v20  ;;  %v603_v23 = vld [vmem:[%s8179_s4] ss:$8 sm:$0x3] }
   0xf   : > { %s5233_s25 = sshll.u32 %s8398_s22, 6  ;;  %s5113_s20 = smov 62   ;;  %v614_v24 = vperm.slane %v603_v23, 0  ;;  %v615_v25 = vperm.slane %v603_v23, 1 }
  0x10   : > { %s5114_s22 = smov 60   ;;  %s5115_s23 = smov 36   ;;  %8284 = vst [vmem:[#allocation4_spill] sm:$0xff] %v5292_v21  ;;  %vm610_vm1 = vcmp.lt.s32.totalorder %v5292_v21, 68  ;;  %vm662_vm2 = vcmp.lt.s32.totalorder %v5292_v21, 66  ;;  %vm716_vm3 = vcmp.lt.s32.totalorder %v5292_v21, 64 }
  0x11   : > { %s5116_s24 = smov 34   ;;  %s5117_s26 = smov 32   ;;  %v4761_v28 = vld [vmem:[%s8179_s4 + $0x24] ss:$8 sm:$0x3]  ;;  %vm770_vm4 = vcmp.lt.s32.totalorder %v5292_v21, 62 }
  0x12   : > { %s531_s29 = scalar_lea.vmem %s8283_s28, %s5233_s25  ;;  %s5118_s27 = smov 30   ;;  %v1631_v34 = vperm.slane %v4761_v28, 0  ;;  %v4743_v37 = vld [vmem:[%s8179_s4 + $0x1] ss:$8 sm:$0x3]  ;;  %v1632_v44 = vperm.slane %v4761_v28, 1 }
  0x13   : > { %v549_v2 = vld [vmem:[%s531_s29 + $0x30] sm:$0xff]  ;;  %v550_v3 = vld [vmem:[%s531_s29 + $0x38] sm:$0xff]  ;;  %v547_v4 = vld [vmem:[%s531_s29 + $0x20] sm:$0xff]  ;;  %s5119_s28 = smov 28   ;;  %s5121_s30 = smov 2   ;;  %v666_v41 = vperm.slane %v4743_v37, 0 }
  0x14   : > { %573 = vmatpush.msra.mxu0 %v549_v2  ;;  %593 = vmatpush.msra.mxu1 %v550_v3  ;;  %v548_v5 = vld [vmem:[%s531_s29 + $0x28] sm:$0xff]  ;;  %v545_v6 = vld [vmem:[%s531_s29 + $0x10] sm:$0xff]  ;;  %v546_v7 = vld [vmem:[%s531_s29 + $0x18] sm:$0xff]  ;;  %s5122_s0 = smov 126   ;;  %v667_v42 = vperm.slane %v4743_v37, 1  ;;  %vm824_vm5 = vcmp.lt.s32.totalorder %v5292_v21, 60 }
  0x15   : > { %v543_v8 = vld [vmem:[%s531_s29] sm:$0xff]  ;;  %v544_v9 = vld [vmem:[%s531_s29 + $0x8] sm:$0xff]  ;;  %s5120_s29 = smov 4   ;;  %vm878_vm6 = vcmp.lt.s32.totalorder %v5292_v21, 36  ;;  %vm932_vm7 = vcmp.lt.s32.totalorder %v5292_v21, 34  ;;  %vm986_vm8 = vcmp.lt.s32.totalorder %v5292_v21, 32 }
  0x16   : > { %574 = vmatpush.msra.mxu0 %v547_v4  ;;  %594 = vmatpush.msra.mxu1 %v548_v5  ;;  %v4762_v40 = vld [vmem:[%s8179_s4 + $0x25] ss:$8 sm:$0x3]  ;;  %v4744_v56 = vld [vmem:[%s8179_s4 + $0x2] ss:$8 sm:$0x3] }
  0x17   : > { %v1678_v48 = vperm.slane %v4762_v40, 0  ;;  %v1679_v53 = vperm.slane %v4762_v40, 1  ;;  %v720_v5 = vperm.slane %v4744_v56, 0  ;;  %vm1040_vm9 = vcmp.lt.s32.totalorder %v5292_v21, 30 }
  0x18   : > { %575 = vmatpush.msra.mxu0 %v545_v6  ;;  %595 = vmatpush.msra.mxu1 %v546_v7  ;;  %vm1094_vm10 = vcmp.lt.s32.totalorder %v5292_v21, 28  ;;  %vm1148_vm11 = vcmp.lt.s32.totalorder %v5292_v21, 4  ;;  %vm1202_vm12 = vcmp.lt.s32.totalorder %v5292_v21, 2  ;;  %vm1256_vm13 = vcmp.lt.s32.totalorder %v5292_v21, 126 }
  0x19   : > { %vm1310_vm14 = vcmp.lt.s32.totalorder %v5292_v21, 124  ;;  %vm1364_vm15 = vcmp.lt.s32.totalorder %v5292_v21, 100 }
  0x1a   : > { %576 = vmatpush.msra.mxu0 %v543_v8  ;;  %596 = vmatpush.msra.mxu1 %v544_v9  ;;  %v721_v8 = vperm.slane %v4744_v56, 1 }
  0x1b   : > { %4741 = vmatmul.msk.f32.vlgmr.msra.gmra.mxu0 %vm557_vm0, %v542_v10  ;;  %4742 = vmatmul.msk.f32.vlgmr.msra.gmra.mxu1 %vm557_vm0, %v542_v10 }
  0x80   : > { %v555_v11 = vpop.permute.xlu0 %554 }
  0x98   : > { %v578_v12 = vpop.f32.mrf.mxu0  ;;  %v598_v13 = vpop.f32.mrf.mxu1 }
  0x99   : > { %v579_v14 = vadd.f32 %v578_v12, %v555_v11  ;;  %v599_v15 = vadd.f32 %v598_v13, %v555_v11 }
  0x9b   : > { %v5244_v16 = vmax.f32 %v579_v14, 0.0  ;;  %v5246_v17 = vmax.f32 %v599_v15, 0.0 }
  0x9d   : > { %660 = vrot.lane.b32.xlu2 %v5246_v17, %s5110_s17  ;;  %606 = vrot.lane.b32.xlu1 %v5246_v17, %s5111_s18 }
  0x9e   : > { %604 = vrot.lane.b32.xlu0 %v5244_v16, %s5111_s18  ;;  %s5124_s18 = smov 100  }
  0xa5   : > { %712 = vrot.lane.b32.xlu2 %v5244_v16, %s5112_s19  ;;  %658 = vrot.lane.b32.xlu1 %v5244_v16, %s5110_s17  ;;  %s5123_s17 = smov 124  }
  0xa6   : > { %714 = vrot.lane.b32.xlu0 %v5246_v17, %s5112_s19  ;;  %s5125_s19 = smov 98  }
  0xad   : > { %768 = vrot.lane.b32.xlu2 %v5246_v17, %s5113_s20  ;;  %766 = vrot.lane.b32.xlu1 %v5244_v16, %s5113_s20  ;;  %s5126_s20 = smov 96  }
  0xae   : > { %820 = vrot.lane.b32.xlu0 %v5244_v16, %s5114_s22 }
  0xb5   : > { %874 = vrot.lane.b32.xlu2 %v5244_v16, %s5115_s23  ;;  %822 = vrot.lane.b32.xlu1 %v5246_v17, %s5114_s22  ;;  %s5127_s22 = smov 94  }
  0xb6   : > { %876 = vrot.lane.b32.xlu0 %v5246_v17, %s5115_s23  ;;  %s8320_s23 = smov 127  }
  0xbd   : > { %930 = vrot.lane.b32.xlu2 %v5246_v17, %s5116_s24  ;;  %928 = vrot.lane.b32.xlu1 %v5244_v16, %s5116_s24  ;;  %s8198_s24 = smov 127  }
  0xbe   : > { %982 = vrot.lane.b32.xlu0 %v5244_v16, %s5117_s26 }
  0xc5   : > { %1036 = vrot.lane.b32.xlu2 %v5244_v16, %s5118_s27  ;;  %984 = vrot.lane.b32.xlu1 %v5246_v17, %s5117_s26  ;;  %s5128_s26 = smov 92  }
  0xc6   : > { %1038 = vrot.lane.b32.xlu0 %v5246_v17, %s5118_s27  ;;  %s8246_s27 = smov 1  }
  0xcd   : > { %1092 = vrot.lane.b32.xlu2 %v5246_v17, %s5119_s28  ;;  %1090 = vrot.lane.b32.xlu1 %v5244_v16, %s5119_s28  ;;  %s8248_s28 = smov 15  }
  0xce   : > { %1144 = vrot.lane.b32.xlu0 %v5244_v16, %s5120_s29 }
  0xd5   : > { %1198 = vrot.lane.b32.xlu2 %v5244_v16, %s5121_s30  ;;  %1146 = vrot.lane.b32.xlu1 %v5246_v17, %s5120_s29  ;;  %s8242_s29 = smov 16  }
  0xd6   : > { %1200 = vrot.lane.b32.xlu0 %v5246_v17, %s5121_s30  ;;  %s8196_s30 = smov 17  }
  0xdd   : > { %1254 = vrot.lane.b32.xlu2 %v5246_v17, %s5122_s0  ;;  %1252 = vrot.lane.b32.xlu1 %v5244_v16, %s5122_s0  ;;  %s8194_s0 = smov 111  }
  0xde   : > { %1306 = vrot.lane.b32.xlu0 %v5244_v16, %s5123_s17 }
  0xe5   : > { %1360 = vrot.lane.b32.xlu2 %v5244_v16, %s5124_s18  ;;  %1308 = vrot.lane.b32.xlu1 %v5246_v17, %s5123_s17  ;;  %s5134_s17 = smov 112  }
  0xe6   : > { %1362 = vrot.lane.b32.xlu0 %v5246_v17, %s5124_s18  ;;  %s8346_s18 = smov 15  }
  0xed   : > { %1416 = vrot.lane.b32.xlu2 %v5246_v17, %s5125_s19  ;;  %1414 = vrot.lane.b32.xlu1 %v5244_v16, %s5125_s19  ;;  %s8349_s19 = smov 113  }
  0xee   : > { %1468 = vrot.lane.b32.xlu0 %v5244_v16, %s5126_s20 }
  0xf5   : > { %1522 = vrot.lane.b32.xlu2 %v5244_v16, %s5127_s22  ;;  %1470 = vrot.lane.b32.xlu1 %v5246_v17, %s5126_s20  ;;  %s8244_s20 = smov 113  }
  0xf6   : > { %1524 = vrot.lane.b32.xlu0 %v5246_v17, %s5127_s22 }
  0xf7   : > { %v661_v33 = vpop.permute.xlu2 %660 }
  0xfd   : > { %1578 = vrot.lane.b32.xlu2 %v5246_v17, %s5128_s26  ;;  %1576 = vrot.lane.b32.xlu1 %v5244_v16, %s5128_s26  ;;  %s536_s26 = scalar_lea.vmem %s8176_s1, %s5233_s25 }
  0xfe   : > { %2050 = vperm.xlu0 %4882, %v2047_v18  }
  0xff   : > { %v713_v1 = vpop.permute.xlu2 %712 }
 0x106   : > { %2060 = vperm.xlu0 %4882, %v2057_v19  }
 0x10e   : > { %2012 = vperm.xlu0 %4882, %v2009_v22  }
 0x10f   : > { %v607_v26 = vpop.permute.xlu1 %606 }
 0x110   : > { %v605_v27 = vpop.permute.xlu0 %604 }
 0x111   : > { %v611_v29 = vsel %vm610_vm1, %v605_v27, %v607_v26  ;;  %v612_v30 = vsel %vm610_vm1, %v607_v26, %v605_v27  ;;  %v4763_v27 = vld [vmem:[%s8179_s4 + $0x26] ss:$8 sm:$0x3]  ;;  %vm1418_vm1 = vcmp.lt.s32.totalorder %v5292_v21, 98 }
 0x112   : > { %v5304_v31 = vmul.f32 %v614_v24, %v612_v30  ;;  %v5306_v32 = vmul.f32 %v615_v25, %v611_v29  ;;  %v5319_v47 = vmul.f32 %v1631_v34, %v611_v29  ;;  %v5329_v59 = vmul.f32 %v1632_v44, %v612_v30 }
 0x113   : > { %v1725_v40 = vperm.slane %v4763_v27, 0 }
 0x114   : > { %v620_v35 = vmul.f32 %v5304_v31, %v5244_v16  ;;  %v621_v36 = vmul.f32 %v5306_v32, %v5246_v17  ;;  %v1637_v60 = vmul.f32 %v5319_v47, %v5244_v16  ;;  %v1638_v12 = vmul.f32 %v5329_v59, %v5246_v17 }
 0x116   : > { %v622_v38 = vrot.slane %v620_v35, 4  ;;  %v628_v39 = vrot.slane %v621_v36, 4  ;;  %v1639_v13 = vrot.slane %v1637_v60, 4  ;;  %v1645_v30 = vrot.slane %v1638_v12, 4 }
 0x117   : > { %v659_v43 = vpop.permute.xlu1 %658 }
 0x118   : > { %v623_v45 = vadd.f32 %v622_v38, %v620_v35  ;;  %v629_v46 = vadd.f32 %v628_v39, %v621_v36  ;;  %v663_v49 = vsel %vm662_vm2, %v659_v43, %v661_v33  ;;  %v664_v50 = vsel %vm662_vm2, %v661_v33, %v659_v43  ;;  %v715_v61 = vpop.permute.xlu0 %714 }
 0x119   : > { %v5321_v54 = vmul.f32 %v666_v41, %v664_v50  ;;  %v5323_v55 = vmul.f32 %v667_v42, %v663_v49  ;;  %v5337_v0 = vmul.f32 %v1678_v48, %v663_v49  ;;  %v5339_v4 = vmul.f32 %v1679_v53, %v664_v50 }
 0x11a   : > { %v624_v51 = vrot.slane %v623_v45, 2  ;;  %v630_v52 = vrot.slane %v629_v46, 2  ;;  %v5343_v9 = vsel %vm716_vm3, %v715_v61, %v713_v1  ;;  %v717_v19 = vsel %vm716_vm3, %v713_v1, %v715_v61 }
 0x11b   : > { %v672_v62 = vmul.f32 %v5321_v54, %v5244_v16  ;;  %v673_v63 = vmul.f32 %v5323_v55, %v5246_v17  ;;  %v1684_v18 = vmul.f32 %v5337_v0, %v5244_v16  ;;  %v1685_v23 = vmul.f32 %v5339_v4, %v5246_v17 }
 0x11c   : > { %v625_v57 = vadd.f32 %v624_v51, %v623_v45  ;;  %v631_v58 = vadd.f32 %v630_v52, %v629_v46  ;;  %v5358_v24 = vmul.f32 %v720_v5, %v5343_v9  ;;  %v1640_v29 = vadd.f32 %v1639_v13, %v1637_v60 }
 0x11d   : > { %v674_v6 = vrot.slane %v672_v62, 4  ;;  %v680_v7 = vrot.slane %v673_v63, 4  ;;  %v5364_v33 = vmul.f32 %v721_v8, %v717_v19  ;;  %v1686_v37 = vrot.slane %v1684_v18, 4 }
 0x11e   : > { %v626_v2 = vrot.slane %v625_v57, 1  ;;  %v632_v3 = vrot.slane %v631_v58, 1  ;;  %v1692_v39 = vrot.slane %v1685_v23, 4  ;;  %v726_v41 = vmul.f32 %v5358_v24, %v5244_v16 }
 0x11f   : > { %v675_v14 = vadd.f32 %v674_v6, %v672_v62  ;;  %v681_v15 = vadd.f32 %v680_v7, %v673_v63  ;;  %v1641_v46 = vrot.slane %v1640_v29, 2  ;;  %v1646_v48 = vadd.f32 %v1645_v30, %v1638_v12 }
 0x120   : > { %v627_v10 = vadd.f32 %v626_v2, %v625_v57  ;;  %v633_v11 = vadd.f32 %v632_v3, %v631_v58  ;;  %v727_v49 = vmul.f32 %v5364_v33, %v5246_v17  ;;  %v728_v50 = vrot.slane %v726_v41, 4 }
 0x121   : > { %v676_v25 = vrot.slane %v675_v14, 2  ;;  %v682_v26 = vrot.slane %v681_v15, 2  ;;  %v1687_v56 = vadd.f32 %v1686_v37, %v1684_v18  ;;  %v1693_v58 = vadd.f32 %v1692_v39, %v1685_v23 }
 0x122   : > { %v5351_v20 = vmax.f32 %v627_v10, 0.0  ;;  %v5353_v22 = vmax.f32 %v633_v11, 0.0  ;;  %v729_v60 = vadd.f32 %v728_v50, %v726_v41  ;;  %v734_v61 = vrot.slane %v727_v49, 4 }
 0x123   : > { %v677_v35 = vadd.f32 %v676_v25, %v675_v14  ;;  %v683_v36 = vadd.f32 %v682_v26, %v681_v15  ;;  %v1726_v1 = vperm.slane %v4763_v27, 1  ;;  %v5379_v6 = vmul.f32 %v1725_v40, %v717_v19 }
 0x124   : > { %v636_v28 = vsub.f32 0.0, %v5351_v20  ;;  %v637_v34 = vsub.f32 0.0, %v5353_v22  ;;  %v642_v38 = vsub.f32 %v627_v10, %v5351_v20  ;;  %v643_v43 = vsub.f32 %v633_v11, %v5353_v22 }
 0x125   : > { %v678_v44 = vrot.slane %v677_v35, 1  ;;  %v684_v45 = vrot.slane %v683_v36, 1  ;;  %v730_v3 = vrot.slane %v729_v60, 2  ;;  %v735_v5 = vadd.f32 %v734_v61, %v727_v49  ;;  %v4745_v49 = vld [vmem:[%s8179_s4 + $0x3] ss:$8 sm:$0x3] }
 0x126   : > { %v638_v42 = vmul.f32 1.442695, %v636_v28  ;;  %v640_v51 = vmul.f32 1.442695, %v637_v34  ;;  %v644_v57 = vmul.f32 1.442695, %v642_v38  ;;  %v1642_v7 = vadd.f32 %v1641_v46, %v1640_v29 }
 0x127   : > { %v679_v52 = vadd.f32 %v678_v44, %v677_v35  ;;  %v685_v53 = vadd.f32 %v684_v45, %v683_v36  ;;  %v646_v62 = vmul.f32 1.442695, %v643_v43  ;;  %v1647_v8 = vrot.slane %v1646_v48, 2 }
 0x128   : > { %4885 = vpow2.f32 %v638_v42  ;;  %v1688_v10 = vrot.slane %v1687_v56, 2  ;;  %v1694_v11 = vrot.slane %v1693_v58, 2  ;;  %v731_v12 = vadd.f32 %v730_v3, %v729_v60  ;;  %v769_v60 = vpop.permute.xlu2 %768 }
 0x129   : > { %v5374_v63 = vmax.f32 %v5351_v20, %v679_v52  ;;  %v5377_v2 = vmax.f32 %v5353_v22, %v685_v53  ;;  %4887 = vpow2.f32 %v640_v51  ;;  %v736_v13 = vrot.slane %v735_v5, 2 }
 0x12a   : > { %4889 = vpow2.f32 %v644_v57  ;;  %v732_v18 = vrot.slane %v731_v12, 1  ;;  %v1731_v19 = vmul.f32 %v5379_v6, %v5244_v16  ;;  %v1643_v26 = vrot.slane %v1642_v7, 1 }
 0x12b   : > { %4891 = vpow2.f32 %v646_v62  ;;  %v688_v14 = vsub.f32 %v5351_v20, %v5374_v63  ;;  %v689_v15 = vsub.f32 %v5353_v22, %v5377_v2  ;;  %v737_v23 = vadd.f32 %v736_v13, %v735_v5 }
 0x12c   : > { %v1648_v27 = vadd.f32 %v1647_v8, %v1646_v48  ;;  %v694_v28 = vsub.f32 %v679_v52, %v5374_v63  ;;  %v1689_v29 = vadd.f32 %v1688_v10, %v1687_v56  ;;  %v1695_v30 = vadd.f32 %v1694_v11, %v1693_v58 }
 0x12d   : > { %v5389_v34 = vmul.f32 %v1726_v1, %v5343_v9  ;;  %v690_v20 = vmul.f32 1.442695, %v688_v14  ;;  %v695_v36 = vsub.f32 %v685_v53, %v5377_v2  ;;  %v733_v22 = vadd.f32 %v732_v18, %v731_v12  ;;  %v767_v53 = vpop.permute.xlu1 %766  ;;  %v4764_v14 = vld [vmem:[%s8179_s4 + $0x27] ss:$8 sm:$0x3] }
 0x12e   : > { %v4886_v25 = vpop.eup %4885  ;;  %v692_v38 = vmul.f32 1.442695, %v689_v15  ;;  %v738_v39 = vrot.slane %v737_v23, 1  ;;  %v1733_v40 = vrot.slane %v1731_v19, 4  ;;  %v5392_v42 = vadd.f32 %v1643_v26, %v1642_v7 }
 0x12f   : > { %v4888_v35 = vpop.eup %4887  ;;  %v1649_v43 = vrot.slane %v1648_v27, 1  ;;  %v696_v44 = vmul.f32 1.442695, %v694_v28  ;;  %v5395_v45 = vmax.f32 %v5374_v63, %v733_v22  ;;  %v1690_v46 = vrot.slane %v1689_v29, 1 }
 0x130   : > { %v4890_v37 = vpop.eup %4889  ;;  %v1696_v9 = vrot.slane %v1695_v30, 1  ;;  %v1732_v48 = vmul.f32 %v5389_v34, %v5246_v17  ;;  %v650_v50 = vmul.f32 %v4886_v25, %v5244_v16  ;;  %v651_v51 = vmul.f32 %v4888_v35, %v5246_v17 }
 0x131   : > { %v4892_v41 = vpop.eup %4891  ;;  %4893 = vpow2.f32 %v690_v20  ;;  %v698_v52 = vmul.f32 1.442695, %v695_v36  ;;  %v652_v56 = vmul.f32 %v4890_v37, %v5304_v31  ;;  %v739_v57 = vadd.f32 %v738_v39, %v737_v23 }
 0x132   : > { %4895 = vpow2.f32 %v692_v38  ;;  %v1734_v58 = vadd.f32 %v1733_v40, %v1731_v19  ;;  %v653_v61 = vmul.f32 %v4892_v41, %v5306_v32  ;;  %v742_v62 = vsub.f32 %v5374_v63, %v5395_v45 }
 0x133   : > { %4897 = vpow2.f32 %v696_v44  ;;  %v775_v1 = vperm.slane %v4745_v49, 1  ;;  %v5410_v3 = vmax.f32 %v5377_v2, %v739_v57  ;;  %v748_v5 = vsub.f32 %v733_v22, %v5395_v45 }
 0x134   : > { %v774_v7 = vperm.slane %v4745_v49, 0  ;;  %v771_v31 = vsel %vm770_vm4, %v767_v53, %v769_v60  ;;  %v5415_v8 = vadd.f32 %v1649_v43, %v1648_v27  ;;  %v5417_v10 = vadd.f32 %v1690_v46, %v1689_v29  ;;  %v4746_v46 = vld [vmem:[%s8179_s4 + $0x4] ss:$8 sm:$0x3] }
 0x135   : > { %v5419_v11 = vadd.f32 %v1696_v9, %v1695_v30  ;;  %v1739_v32 = vrot.slane %v1732_v48, 4  ;;  %v648_v12 = vadd.f32 %v4890_v37, %v4886_v25  ;;  %v649_v13 = vadd.f32 %v4892_v41, %v4888_v35 }
 0x136   : > { %4899 = vpow2.f32 %v698_v52  ;;  %v1735_v63 = vrot.slane %v1734_v58, 2  ;;  %v654_v18 = vadd.f32 %v652_v56, %v650_v50  ;;  %v744_v23 = vmul.f32 1.442695, %v742_v62  ;;  %v823_v56 = vpop.permute.xlu1 %822 }
 0x137   : > { %v4894_v15 = vpop.eup %4893  ;;  %v772_v19 = vsel %vm770_vm4, %v769_v60, %v767_v53  ;;  %v5426_v26 = vmul.f32 %v775_v1, %v771_v31  ;;  %v655_v28 = vadd.f32 %v653_v61, %v651_v51  ;;  %v743_v25 = vsub.f32 %v5377_v2, %v5410_v3 }
 0x138   : > { %v4896_v27 = vpop.eup %4895  ;;  %v750_v29 = vmul.f32 1.442695, %v748_v5  ;;  %v5430_v30 = vmul.f32 %v774_v7, %v772_v19  ;;  %v749_v20 = vsub.f32 %v739_v57, %v5410_v3  ;;  %v1740_v36 = vadd.f32 %v1739_v32, %v1732_v48 }
 0x139   : > { %v4898_v35 = vpop.eup %4897  ;;  %v1772_v22 = vperm.slane %v4764_v14, 0  ;;  %v781_v37 = vmul.f32 %v5426_v26, %v5246_v17  ;;  %v700_v38 = vmul.f32 %v4894_v15, %v648_v12  ;;  %v5435_v39 = vadd.f32 %v1735_v63, %v1734_v58 }
 0x13a   : > { %v1773_v40 = vperm.slane %v4764_v14, 1  ;;  %v780_v41 = vmul.f32 %v5430_v30, %v5244_v16  ;;  %v701_v43 = vmul.f32 %v4896_v27, %v649_v13  ;;  %v704_v2 = vmul.f32 %v4894_v15, %v654_v18 }
 0x13b   : > { %4901 = vpow2.f32 %v744_v23  ;;  %v788_v44 = vrot.slane %v781_v37, 4  ;;  %v706_v48 = vmul.f32 %v4898_v35, %v5321_v54  ;;  %v746_v49 = vmul.f32 1.442695, %v743_v25  ;;  %v821_v54 = vpop.permute.xlu0 %820 }
 0x13c   : > { %v4900_v9 = vpop.eup %4899  ;;  %4903 = vpow2.f32 %v750_v29  ;;  %v782_v50 = vrot.slane %v780_v41, 4  ;;  %v752_v51 = vmul.f32 1.442695, %v749_v20  ;;  %v5443_v53 = vmul.f32 %v1772_v22, %v771_v31 }
 0x13d   : > { %v789_v52 = vadd.f32 %v788_v44, %v781_v37  ;;  %v702_v57 = vadd.f32 %v4898_v35, %v700_v38  ;;  %v705_v58 = vmul.f32 %v4896_v27, %v655_v28  ;;  %v829_v61 = vperm.slane %v4746_v46, 1  ;;  %v5472_v38 = vld [vmem:[%s8179_s4 + $0x30] ss:$8 sm:$0x3] }
 0x13e   : > { %v783_v60 = vadd.f32 %v782_v50, %v780_v41  ;;  %v707_v62 = vmul.f32 %v4900_v9, %v5323_v55  ;;  %v5447_v5 = vmul.f32 %v1773_v40, %v772_v19  ;;  %v828_v7 = vperm.slane %v4746_v46, 0 }
 0x13f   : > { %v790_v1 = vrot.slane %v789_v52, 2  ;;  %4905 = vpow2.f32 %v746_v49  ;;  %v1741_v32 = vrot.slane %v1740_v36, 2  ;;  %v5451_v31 = vsel %vm824_vm5, %v821_v54, %v823_v56 }
 0x140   : > { %v784_v12 = vrot.slane %v783_v60, 2  ;;  %v708_v63 = vadd.f32 %v706_v48, %v704_v2  ;;  %4907 = vpow2.f32 %v752_v51  ;;  %v1778_v15 = vmul.f32 %v5443_v53, %v5244_v16 }
 0x141   : > { %v4902_v13 = vpop.eup %4901  ;;  %v791_v14 = vadd.f32 %v790_v1, %v789_v52  ;;  %v5457_v19 = vsel %vm824_vm5, %v823_v56, %v821_v54  ;;  %v5460_v27 = vmul.f32 %v829_v61, %v5451_v31  ;;  %v703_v28 = vadd.f32 %v4900_v9, %v701_v43 }
 0x142   : > { %v4904_v55 = vpop.eup %4903  ;;  %v754_v18 = vmul.f32 %v4902_v13, %v702_v57  ;;  %v785_v23 = vadd.f32 %v784_v12, %v783_v60  ;;  %v1779_v29 = vmul.f32 %v5447_v5, %v5246_v17  ;;  %v5465_v35 = vmul.f32 %v828_v7, %v5457_v19 }
 0x143   : > { %v792_v25 = vrot.slane %v791_v14, 1  ;;  %v709_v20 = vadd.f32 %v707_v62, %v705_v58  ;;  %v5467_v22 = vadd.f32 %v1741_v32, %v1740_v36  ;;  %v835_v40 = vmul.f32 %v5460_v27, %v5246_v17 }
 0x144   : > { %v786_v37 = vrot.slane %v785_v23, 1  ;;  %v758_v41 = vmul.f32 %v4902_v13, %v708_v63  ;;  %v760_v43 = vmul.f32 %v4904_v55, %v5358_v24  ;;  %v834_v44 = vmul.f32 %v5465_v35, %v5244_v16 }
 0x145   : > { %v793_v2 = vadd.f32 %v792_v25, %v791_v14  ;;  %v4906_v46 = vpop.eup %4905  ;;  %v5479_v9 = vadd.f32 %v4904_v55, %v754_v18  ;;  %v1780_v48 = vrot.slane %v1778_v15, 4  ;;  %v842_v49 = vrot.slane %v835_v40, 4  ;;  %v4747_v14 = vld [vmem:[%s8179_s4 + $0x5] ss:$8 sm:$0x3] }
 0x146   : > { %v787_v36 = vadd.f32 %v786_v37, %v785_v23  ;;  %v4908_v50 = vpop.eup %4907  ;;  %v1786_v52 = vrot.slane %v1779_v29, 4  ;;  %v1819_v56 = vperm.slane %v5472_v38, 0  ;;  %v836_v57 = vrot.slane %v834_v44, 4 }
 0x147   : > { %v5482_v51 = vmax.f32 %v5410_v3, %v793_v2  ;;  %v755_v58 = vmul.f32 %v4906_v46, %v703_v28  ;;  %v759_v24 = vmul.f32 %v4906_v46, %v709_v20  ;;  %v843_v61 = vadd.f32 %v842_v49, %v835_v40  ;;  %v877_v20 = vpop.permute.xlu0 %876 }
 0x148   : > { %v5486_v60 = vmax.f32 %v5395_v45, %v787_v36  ;;  %v762_v62 = vadd.f32 %v760_v43, %v758_v41  ;;  %v837_v7 = vadd.f32 %v836_v57, %v834_v44  ;;  %v761_v32 = vmul.f32 %v4908_v50, %v5364_v33  ;;  %v875_v41 = vpop.permute.xlu2 %874  ;;  %v929_v57 = vpop.permute.xlu1 %928 }
 0x149   : > { %v797_v1 = vsub.f32 %v5410_v3, %v5482_v51  ;;  %v803_v54 = vsub.f32 %v793_v2, %v5482_v51  ;;  %v844_v63 = vrot.slane %v843_v61, 2  ;;  %v5498_v18 = vadd.f32 %v1780_v48, %v1778_v15 }
 0x14a   : > { %v796_v12 = vsub.f32 %v5395_v45, %v5486_v60  ;;  %v802_v13 = vsub.f32 %v787_v36, %v5486_v60  ;;  %v838_v23 = vrot.slane %v837_v7, 2  ;;  %v5501_v45 = vadd.f32 %v1786_v52, %v1779_v29  ;;  %v4748_v52 = vld [vmem:[%s8179_s4 + $0x6] ss:$8 sm:$0x3] }
 0x14b   : > { %v800_v55 = vmul.f32 1.442695, %v797_v1  ;;  %v806_v25 = vmul.f32 1.442695, %v803_v54  ;;  %v845_v33 = vadd.f32 %v844_v63, %v843_v61  ;;  %v882_v40 = vperm.slane %v4747_v14, 0 }
 0x14c   : > { %v798_v3 = vmul.f32 1.442695, %v796_v12  ;;  %v804_v28 = vmul.f32 1.442695, %v802_v13  ;;  %v839_v37 = vadd.f32 %v838_v23, %v837_v7  ;;  %v1820_v43 = vperm.slane %v5472_v38, 1 }
 0x14d   : > { %4909 = vpow2.f32 %v800_v55  ;;  %v846_v2 = vrot.slane %v845_v33, 1  ;;  %v883_v15 = vperm.slane %v4747_v14, 1  ;;  %v757_v44 = vadd.f32 %v4908_v50, %v755_v58 }
 0x14e   : > { %4911 = vpow2.f32 %v798_v3  ;;  %v840_v46 = vrot.slane %v839_v37, 1  ;;  %v879_v36 = vsel %vm878_vm6, %v875_v41, %v877_v20  ;;  %v763_v48 = vadd.f32 %v761_v32, %v759_v24 }
 0x14f   : > { %4913 = vpow2.f32 %v804_v28  ;;  %v847_v49 = vadd.f32 %v846_v2, %v845_v33  ;;  %v880_v29 = vsel %vm878_vm6, %v877_v20, %v875_v41  ;;  %v5514_v58 = vmul.f32 %v883_v15, %v879_v36 }
 0x150   : > { %4915 = vpow2.f32 %v806_v25  ;;  %v841_v61 = vadd.f32 %v840_v46, %v839_v37  ;;  %v5512_v50 = vmul.f32 %v882_v40, %v880_v29  ;;  %v5520_v24 = vmul.f32 %v1819_v56, %v5451_v31  ;;  %v931_v46 = vpop.permute.xlu2 %930 }
 0x151   : > { %v5517_v1 = vmax.f32 %v5482_v51, %v847_v49  ;;  %v5523_v54 = vmul.f32 %v1820_v43, %v5457_v19  ;;  %v936_v13 = vperm.slane %v4748_v52, 0  ;;  %v937_v63 = vperm.slane %v4748_v52, 1 }
 0x152   : > { %8285 = vst [vmem:[#allocation5_spill] sm:$0xff] %v5520_v24  ;;  %v5527_v32 = vmax.f32 %v5486_v60, %v841_v61  ;;  %v888_v12 = vmul.f32 %v5512_v50, %v5244_v16  ;;  %v889_v19 = vmul.f32 %v5514_v58, %v5246_v17  ;;  %v934_v52 = vsel %vm932_vm7, %v931_v46, %v929_v57 }
 0x153   : > { %8286 = vst [vmem:[#allocation6_spill] sm:$0xff] %v5523_v54  ;;  %v4910_v7 = vpop.eup %4909  ;;  %v851_v31 = vsub.f32 %v5482_v51, %v5517_v1  ;;  %v857_v56 = vsub.f32 %v847_v49, %v5517_v1  ;;  %vm1472_vm2 = vcmp.lt.s32.totalorder %v5292_v21, 96  ;;  %vm1526_vm3 = vcmp.lt.s32.totalorder %v5292_v21, 94 }
 0x154   : > { %v4912_v14 = vpop.eup %4911  ;;  %v809_v55 = vmul.f32 %v4910_v7, %v757_v44  ;;  %v850_v25 = vsub.f32 %v5486_v60, %v5527_v32  ;;  %v856_v33 = vsub.f32 %v841_v61, %v5527_v32  ;;  %v813_v37 = vmul.f32 %v4910_v7, %v763_v48 }
 0x155   : > { %v4914_v23 = vpop.eup %4913  ;;  %v808_v3 = vmul.f32 %v4912_v14, %v5479_v9  ;;  %v812_v28 = vmul.f32 %v4912_v14, %v762_v62  ;;  %v854_v41 = vmul.f32 1.442695, %v851_v31  ;;  %v890_v51 = vrot.slane %v888_v12, 4  ;;  %v983_v31 = vpop.permute.xlu0 %982 }
 0x156   : > { %v4916_v20 = vpop.eup %4915  ;;  %v814_v40 = vmul.f32 %v4914_v23, %v5430_v30  ;;  %v852_v15 = vmul.f32 1.442695, %v850_v25  ;;  %v860_v44 = vmul.f32 1.442695, %v857_v56  ;;  %v858_v9 = vmul.f32 1.442695, %v856_v33 }
 0x157   : > { %v810_v43 = vadd.f32 %v4914_v23, %v808_v3  ;;  %v811_v2 = vadd.f32 %v4916_v20, %v809_v55  ;;  %v815_v36 = vmul.f32 %v4916_v20, %v5426_v26  ;;  %4917 = vpow2.f32 %v854_v41  ;;  %v4749_v30 = vld [vmem:[%s8179_s4 + $0x7] ss:$8 sm:$0x3]  ;;  %v985_v26 = vpop.permute.xlu1 %984 }
 0x158   : > { %v891_v62 = vadd.f32 %v890_v51, %v888_v12  ;;  %v816_v49 = vadd.f32 %v814_v40, %v812_v28  ;;  %4919 = vpow2.f32 %v852_v15  ;;  %v896_v60 = vrot.slane %v889_v19, 4 }
 0x159   : > { %v933_v48 = vsel %vm932_vm7, %v929_v57, %v931_v46  ;;  %4921 = vpow2.f32 %v858_v9  ;;  %v5551_v12 = vmul.f32 %v936_v13, %v934_v52  ;;  %v990_v56 = vperm.slane %v4749_v30, 0 }
 0x15a   : > { %v892_v29 = vrot.slane %v891_v62, 2  ;;  %v5549_v61 = vmul.f32 %v937_v63, %v933_v48  ;;  %4923 = vpow2.f32 %v860_v44  ;;  %v897_v7 = vadd.f32 %v896_v60, %v889_v19 }
 0x15b   : > { %v991_v23 = vperm.slane %v4749_v30, 1  ;;  %v942_v57 = vmul.f32 %v5551_v12, %v5244_v16  ;;  %v987_v63 = vsel %vm986_vm8, %v983_v31, %v985_v26  ;;  %v988_v28 = vsel %vm986_vm8, %v985_v26, %v983_v31 }
 0x15c   : > { %v893_v14 = vadd.f32 %v892_v29, %v891_v62  ;;  %v943_v55 = vmul.f32 %v5549_v61, %v5246_v17  ;;  %v898_v3 = vrot.slane %v897_v7, 2  ;;  %v817_v33 = vadd.f32 %v815_v36, %v813_v37 }
 0x15d   : > { %v4918_v25 = vpop.eup %4917  ;;  %v5558_v20 = vmul.f32 %v990_v56, %v988_v28  ;;  %v944_v15 = vrot.slane %v942_v57, 4  ;;  %v5560_v44 = vmul.f32 %v991_v23, %v987_v63  ;;  %vm1580_vm4 = vcmp.lt.s32.totalorder %v5292_v21, 92 }
 0x15e   : > { %v894_v19 = vrot.slane %v893_v14, 1  ;;  %v950_v13 = vrot.slane %v943_v55, 4  ;;  %v4920_v40 = vpop.eup %4919  ;;  %v863_v41 = vmul.f32 %v4918_v25, %v811_v2  ;;  %v899_v51 = vadd.f32 %v898_v3, %v897_v7 }
 0x15f   : > { %v4922_v46 = vpop.eup %4921  ;;  %v862_v9 = vmul.f32 %v4920_v40, %v810_v43  ;;  %v866_v62 = vmul.f32 %v4920_v40, %v816_v49  ;;  %v945_v37 = vadd.f32 %v944_v15, %v942_v57  ;;  %v996_v36 = vmul.f32 %v5558_v20, %v5244_v16 }
 0x160   : > { %v895_v60 = vadd.f32 %v894_v19, %v893_v14  ;;  %v951_v48 = vadd.f32 %v950_v13, %v943_v55  ;;  %v4924_v30 = vpop.eup %4923  ;;  %v868_v29 = vmul.f32 %v4922_v46, %v5465_v35  ;;  %v900_v52 = vrot.slane %v899_v51, 1 }
 0x161   : > { %v864_v26 = vadd.f32 %v4922_v46, %v862_v9  ;;  %v5565_v31 = vadd.f32 %v4924_v30, %v863_v41  ;;  %v867_v2 = vmul.f32 %v4918_v25, %v817_v33  ;;  %v869_v56 = vmul.f32 %v4924_v30, %v5460_v27  ;;  %v4750_v25 = vld [vmem:[%s8179_s4 + $0x10] ss:$8 sm:$0x3] }
 0x162   : > { %v902_v7 = vmax.f32 %v5527_v32, %v895_v60  ;;  %v901_v43 = vadd.f32 %v900_v52, %v899_v51  ;;  %v946_v49 = vrot.slane %v945_v37, 2  ;;  %v952_v14 = vrot.slane %v951_v48, 2 }
 0x163   : > { %v870_v55 = vadd.f32 %v868_v29, %v866_v62  ;;  %v997_v3 = vmul.f32 %v5560_v44, %v5246_v17  ;;  %v998_v19 = vrot.slane %v996_v36, 4  ;;  %v1044_v9 = vperm.slane %v4750_v25, 0  ;;  %v1039_v62 = vpop.permute.xlu0 %1038  ;;  %v1037_v29 = vpop.permute.xlu2 %1036 }
 0x164   : > { %v904_v23 = vsub.f32 %v5527_v32, %v902_v7  ;;  %v910_v35 = vsub.f32 %v895_v60, %v902_v7  ;;  %v903_v57 = vmax.f32 %v5517_v1, %v901_v43  ;;  %v947_v63 = vadd.f32 %v946_v49, %v945_v37 }
 0x165   : > { %v953_v28 = vadd.f32 %v952_v14, %v951_v48  ;;  %v1004_v13 = vrot.slane %v997_v3, 4  ;;  %v999_v15 = vadd.f32 %v998_v19, %v996_v36  ;;  %v871_v52 = vadd.f32 %v869_v56, %v867_v2 }
 0x166   : > { %v906_v27 = vmul.f32 1.442695, %v904_v23  ;;  %v912_v33 = vmul.f32 1.442695, %v910_v35  ;;  %v905_v32 = vsub.f32 %v5517_v1, %v903_v57  ;;  %v911_v40 = vsub.f32 %v901_v43, %v903_v57 }
 0x167   : > { %v948_v41 = vrot.slane %v947_v63, 1  ;;  %v954_v51 = vrot.slane %v953_v28, 1  ;;  %v1005_v46 = vadd.f32 %v1004_v13, %v997_v3  ;;  %v1000_v49 = vrot.slane %v999_v15, 2 }
 0x168   : > { %4925 = vpow2.f32 %v906_v27  ;;  %v908_v60 = vmul.f32 1.442695, %v905_v32  ;;  %v914_v48 = vmul.f32 1.442695, %v911_v40  ;;  %v1045_v1 = vperm.slane %v4750_v25, 1 }
 0x169   : > { %4927 = vpow2.f32 %v912_v33  ;;  %v949_v30 = vadd.f32 %v948_v41, %v947_v63  ;;  %v955_v37 = vadd.f32 %v954_v51, %v953_v28  ;;  %v1006_v14 = vrot.slane %v1005_v46, 2 }
 0x16a   : > { %4929 = vpow2.f32 %v908_v60  ;;  %v1042_v43 = vsel %vm1040_vm9, %v1039_v62, %v1037_v29  ;;  %v1001_v35 = vadd.f32 %v1000_v49, %v999_v15  ;;  %v1041_v63 = vsel %vm1040_vm9, %v1037_v29, %v1039_v62 }
 0x16b   : > { %v956_v23 = vmax.f32 %v902_v7, %v949_v30  ;;  %4931 = vpow2.f32 %v914_v48  ;;  %v957_v36 = vmax.f32 %v903_v57, %v955_v37  ;;  %v1007_v3 = vadd.f32 %v1006_v14, %v1005_v46 }
 0x16c   : > { %v5582_v33 = vmul.f32 %v1044_v9, %v1042_v43  ;;  %v1002_v13 = vrot.slane %v1001_v35, 1  ;;  %vm2280_vm5 = vcmp.lt.s32.totalorder %v5292_v21, 1  ;;  %vm2234_vm6 = vcmp.lt.s32.totalorder %v5292_v21, 15 }
 0x16d   : > { %v958_v19 = vsub.f32 %v902_v7, %v956_v23  ;;  %v964_v27 = vsub.f32 %v949_v30, %v956_v23  ;;  %v959_v56 = vsub.f32 %v903_v57, %v957_v36  ;;  %v965_v28 = vsub.f32 %v955_v37, %v957_v36 }
 0x16e   : > { %v4926_v2 = vpop.eup %4925  ;;  %v1008_v32 = vrot.slane %v1007_v3, 1  ;;  %v1003_v46 = vadd.f32 %v1002_v13, %v1001_v35  ;;  %v5584_v7 = vmul.f32 %v1045_v1, %v1041_v63  ;;  %v1050_v57 = vmul.f32 %v5582_v33, %v5244_v16 }
 0x16f   : > { %v4928_v25 = vpop.eup %4927  ;;  %v916_v40 = vmul.f32 %v4926_v2, %v864_v26  ;;  %v920_v41 = vmul.f32 %v4926_v2, %v870_v55  ;;  %v960_v51 = vmul.f32 1.442695, %v958_v19  ;;  %v966_v60 = vmul.f32 1.442695, %v964_v27  ;;  %v1091_v27 = vpop.permute.xlu1 %1090 }
 0x170   : > { %v962_v48 = vmul.f32 1.442695, %v959_v56  ;;  %v968_v15 = vmul.f32 1.442695, %v965_v28  ;;  %v4930_v30 = vpop.eup %4929  ;;  %v922_v62 = vmul.f32 %v4928_v25, %v5512_v50  ;;  %v1009_v9 = vadd.f32 %v1008_v32, %v1007_v3 }
 0x171   : > { %4933 = vpow2.f32 %v960_v51  ;;  %v4932_v29 = vpop.eup %4931  ;;  %v917_v37 = vmul.f32 %v4930_v30, %v5565_v31  ;;  %v918_v26 = vadd.f32 %v4928_v25, %v916_v40  ;;  %v921_v55 = vmul.f32 %v4930_v30, %v871_v52  ;;  %v4751_v30 = vld [vmem:[%s8179_s4 + $0x11] ss:$8 sm:$0x3] }
 0x172   : > { %4935 = vpow2.f32 %v962_v48  ;;  %v924_v49 = vadd.f32 %v922_v62, %v920_v41  ;;  %v5590_v14 = vmax.f32 %v956_v23, %v1003_v46  ;;  %v5592_v1 = vmax.f32 %v957_v36, %v1009_v9 }
 0x173   : > { %4937 = vpow2.f32 %v966_v60  ;;  %v923_v43 = vmul.f32 %v4932_v29, %v5514_v58  ;;  %v1051_v50 = vmul.f32 %v5584_v7, %v5246_v17  ;;  %v1052_v35 = vrot.slane %v1050_v57, 4 }
 0x174   : > { %4939 = vpow2.f32 %v968_v15  ;;  %v919_v3 = vadd.f32 %v4932_v29, %v917_v37  ;;  %v1012_v19 = vsub.f32 %v956_v23, %v5590_v14  ;;  %v1013_v31 = vsub.f32 %v957_v36, %v5592_v1  ;;  %v1093_v37 = vpop.permute.xlu2 %1092 }
 0x175   : > { %v1018_v52 = vsub.f32 %v1003_v46, %v5590_v14  ;;  %v5602_v63 = vmul.f32 %v5520_v24, %v5244_v16  ;;  %v1019_v2 = vsub.f32 %v1009_v9, %v5592_v1  ;;  %v1053_v58 = vadd.f32 %v1052_v35, %v1050_v57 }
 0x176   : > { %v1058_v56 = vrot.slane %v1051_v50, 4  ;;  %v925_v13 = vadd.f32 %v923_v43, %v921_v55  ;;  %v1014_v32 = vmul.f32 1.442695, %v1012_v19  ;;  %v1016_v25 = vmul.f32 1.442695, %v1013_v31 }
 0x177   : > { %v4934_v28 = vpop.eup %4933  ;;  %v1020_v40 = vmul.f32 1.442695, %v1018_v52  ;;  %v5607_v23 = vmul.f32 %v5523_v54, %v5246_v17  ;;  %v1054_v51 = vrot.slane %v1053_v58, 2  ;;  %v1022_v57 = vmul.f32 1.442695, %v1019_v2 }
 0x178   : > { %v4936_v41 = vpop.eup %4935  ;;  %v970_v36 = vmul.f32 %v4934_v28, %v918_v26  ;;  %v974_v15 = vmul.f32 %v4934_v28, %v924_v49  ;;  %4941 = vpow2.f32 %v1014_v32  ;;  %v1059_v46 = vadd.f32 %v1058_v56, %v1051_v50  ;;  %v4752_v2 = vld [vmem:[%s8179_s4 + $0x12] ss:$8 sm:$0x3]  ;;  %v1145_v28 = vpop.permute.xlu0 %1144 }
 0x179   : > { %v4938_v60 = vpop.eup %4937  ;;  %v971_v48 = vmul.f32 %v4936_v41, %v919_v3  ;;  %4943 = vpow2.f32 %v1016_v25  ;;  %v1055_v29 = vadd.f32 %v1054_v51, %v1053_v58  ;;  %v975_v26 = vmul.f32 %v4936_v41, %v925_v13  ;;  %v1147_v41 = vpop.permute.xlu1 %1146 }
 0x17a   : > { %v4940_v62 = vpop.eup %4939  ;;  %v976_v9 = vmul.f32 %v4938_v60, %v5551_v12  ;;  %4945 = vpow2.f32 %v1020_v40  ;;  %v1060_v43 = vrot.slane %v1059_v46, 2  ;;  %v972_v35 = vadd.f32 %v4938_v60, %v970_v36 }
 0x17b   : > { %v977_v55 = vmul.f32 %v4940_v62, %v5549_v61  ;;  %v1056_v49 = vrot.slane %v1055_v29, 1  ;;  %v1098_v3 = vperm.slane %v4751_v30, 0  ;;  %v1095_v50 = vsel %vm1094_vm10, %v1091_v27, %v1093_v37 }
 0x17c   : > { %v973_v19 = vadd.f32 %v4940_v62, %v971_v48  ;;  %v1061_v31 = vadd.f32 %v1060_v43, %v1059_v46  ;;  %v1099_v52 = vperm.slane %v4751_v30, 1  ;;  %v1096_v12 = vsel %vm1094_vm10, %v1093_v37, %v1091_v27 }
 0x17d   : > { %v978_v58 = vadd.f32 %v976_v9, %v974_v15  ;;  %4947 = vpow2.f32 %v1022_v57  ;;  %v1057_v61 = vadd.f32 %v1056_v49, %v1055_v29  ;;  %v5622_v56 = vmul.f32 %v1098_v3, %v1096_v12 }
 0x17e   : > { %v4942_v13 = vpop.eup %4941  ;;  %v979_v32 = vadd.f32 %v977_v55, %v975_v26  ;;  %v1062_v25 = vrot.slane %v1061_v31, 1  ;;  %v5624_v40 = vmul.f32 %v1099_v52, %v1095_v50  ;;  %v1152_v48 = vperm.slane %v4752_v2, 0 }
 0x17f   : > { %v4944_v36 = vpop.eup %4943  ;;  %v1024_v27 = vmul.f32 %v4942_v13, %v972_v35  ;;  %v5628_v51 = vmax.f32 %v5590_v14, %v1057_v61  ;;  %v1104_v60 = vmul.f32 %v5622_v56, %v5244_v16  ;;  %v1153_v9 = vperm.slane %v4752_v2, 1 }
 0x180   : > { %v4946_v15 = vpop.eup %4945  ;;  %v1025_v46 = vmul.f32 %v4944_v36, %v973_v19  ;;  %v1063_v30 = vadd.f32 %v1062_v25, %v1061_v31  ;;  %v1105_v62 = vmul.f32 %v5624_v40, %v5246_v17  ;;  %v1028_v57 = vmul.f32 %v4942_v13, %v978_v58 }
 0x181   : > { %v1066_v29 = vsub.f32 %v5590_v14, %v5628_v51  ;;  %v1072_v37 = vsub.f32 %v1057_v61, %v5628_v51  ;;  %v1149_v26 = vsel %vm1148_vm11, %v1145_v28, %v1147_v41  ;;  %v1026_v55 = vadd.f32 %v4946_v15, %v1024_v27 }
 0x182   : > { %v1029_v43 = vmul.f32 %v4944_v36, %v979_v32  ;;  %v5640_v35 = vmax.f32 %v5592_v1, %v1063_v30  ;;  %v1106_v49 = vrot.slane %v1104_v60, 4  ;;  %v1030_v50 = vmul.f32 %v4946_v15, %v5558_v20  ;;  %v4753_v20 = vld [vmem:[%s8179_s4 + $0x13] ss:$8 sm:$0x3] }
 0x183   : > { %v4948_v3 = vpop.eup %4947  ;;  %v1068_v19 = vmul.f32 1.442695, %v1066_v29  ;;  %v1074_v31 = vmul.f32 1.442695, %v1072_v37  ;;  %v1112_v52 = vrot.slane %v1105_v62, 4  ;;  %v1150_v13 = vsel %vm1148_vm11, %v1147_v41, %v1145_v28  ;;  %v1201_v28 = vpop.permute.xlu0 %1200 }
 0x184   : > { %v1027_v12 = vadd.f32 %v4948_v3, %v1025_v46  ;;  %v1067_v14 = vsub.f32 %v5592_v1, %v5640_v35  ;;  %v1073_v2 = vsub.f32 %v1063_v30, %v5640_v35  ;;  %v1107_v58 = vadd.f32 %v1106_v49, %v1104_v60 }
 0x185   : > { %4949 = vpow2.f32 %v1068_v19  ;;  %v1113_v61 = vadd.f32 %v1112_v52, %v1105_v62  ;;  %v5648_v32 = vmul.f32 %v1153_v9, %v1149_v26  ;;  %v1031_v25 = vmul.f32 %v4948_v3, %v5560_v44  ;;  %v1199_v9 = vpop.permute.xlu2 %1198 }
 0x186   : > { %v1070_v36 = vmul.f32 1.442695, %v1067_v14  ;;  %4951 = vpow2.f32 %v1074_v31  ;;  %v1108_v27 = vrot.slane %v1107_v58, 2  ;;  %v5654_v15 = vmul.f32 %v1152_v48, %v1150_v13 }
 0x187   : > { %v1114_v1 = vrot.slane %v1113_v61, 2  ;;  %v1159_v60 = vmul.f32 %v5648_v32, %v5246_v17  ;;  %v1076_v41 = vmul.f32 1.442695, %v1073_v2  ;;  %v1206_v30 = vperm.slane %v4753_v20, 0 }
 0x188   : > { %v1109_v46 = vadd.f32 %v1108_v27, %v1107_v58  ;;  %v1207_v62 = vperm.slane %v4753_v20, 1  ;;  %4953 = vpow2.f32 %v1070_v36  ;;  %v1158_v44 = vmul.f32 %v5654_v15, %v5244_v16 }
 0x189   : > { %v1115_v29 = vadd.f32 %v1114_v1, %v1113_v61  ;;  %v1166_v37 = vrot.slane %v1159_v60, 4  ;;  %v1032_v26 = vadd.f32 %v1030_v50, %v1028_v57  ;;  %v1203_v49 = vsel %vm1202_vm12, %v1199_v9, %v1201_v28 }
 0x18a   : > { %v1110_v48 = vrot.slane %v1109_v46, 1  ;;  %v1204_v3 = vsel %vm1202_vm12, %v1201_v28, %v1199_v9  ;;  %v1160_v52 = vrot.slane %v1158_v44, 4  ;;  %4955 = vpow2.f32 %v1076_v41 }
 0x18b   : > { %v4950_v19 = vpop.eup %4949  ;;  %v1116_v31 = vrot.slane %v1115_v29, 1  ;;  %v1167_v14 = vadd.f32 %v1166_v37, %v1159_v60  ;;  %v5661_v13 = vmul.f32 %v1206_v30, %v1204_v3  ;;  %v5663_v36 = vmul.f32 %v1207_v62, %v1203_v49 }
 0x18c   : > { %v4952_v2 = vpop.eup %4951  ;;  %v1078_v58 = vmul.f32 %v4950_v19, %v1026_v55  ;;  %v1111_v20 = vadd.f32 %v1110_v48, %v1109_v46  ;;  %v1033_v61 = vadd.f32 %v1031_v25, %v1029_v43  ;;  %v1161_v1 = vadd.f32 %v1160_v52, %v1158_v44 }
 0x18d   : > { %v1117_v27 = vadd.f32 %v1116_v31, %v1115_v29  ;;  %v1168_v38 = vrot.slane %v1167_v14, 2  ;;  %v1082_v57 = vmul.f32 %v4950_v19, %v1032_v26  ;;  %v1084_v50 = vmul.f32 %v4952_v2, %v5582_v33  ;;  %v4754_v26 = vld [vmem:[%s8179_s4 + $0x15] ss:$8 sm:$0x3] }
 0x18e   : > { %v5667_v28 = vmax.f32 %v5628_v51, %v1111_v20  ;;  %v4954_v60 = vpop.eup %4953  ;;  %v1080_v30 = vadd.f32 %v4952_v2, %v1078_v58  ;;  %v1212_v55 = vmul.f32 %v5661_v13, %v5244_v16  ;;  %v1213_v43 = vmul.f32 %v5663_v36, %v5246_v17  ;;  %v1253_v58 = vpop.permute.xlu1 %1252 }
 0x18f   : > { %v1119_v41 = vmax.f32 %v5640_v35, %v1117_v27  ;;  %v1079_v25 = vmul.f32 %v4954_v60, %v1027_v12  ;;  %v1162_v62 = vrot.slane %v1161_v1, 2  ;;  %v1083_v9 = vmul.f32 %v4954_v60, %v1033_v61 }
 0x190   : > { %v1120_v46 = vsub.f32 %v5628_v51, %v5667_v28  ;;  %v1126_v33 = vsub.f32 %v1111_v20, %v5667_v28  ;;  %v1169_v37 = vadd.f32 %v1168_v38, %v1167_v14  ;;  %v4956_v48 = vpop.eup %4955  ;;  %v1086_v49 = vadd.f32 %v1084_v50, %v1082_v57 }
 0x191   : > { %v1121_v29 = vsub.f32 %v5640_v35, %v1119_v41  ;;  %v1127_v44 = vsub.f32 %v1117_v27, %v1119_v41  ;;  %v1163_v12 = vadd.f32 %v1162_v62, %v1161_v1  ;;  %v1214_v2 = vrot.slane %v1212_v55, 4  ;;  %v1255_v27 = vpop.permute.xlu2 %1254 }
 0x192   : > { %v1122_v3 = vmul.f32 1.442695, %v1120_v46  ;;  %v1128_v19 = vmul.f32 1.442695, %v1126_v33  ;;  %v1170_v51 = vrot.slane %v1169_v37, 1  ;;  %v1220_v61 = vrot.slane %v1213_v43, 4 }
 0x193   : > { %v1124_v31 = vmul.f32 1.442695, %v1121_v29  ;;  %v1130_v52 = vmul.f32 1.442695, %v1127_v44  ;;  %v1164_v20 = vrot.slane %v1163_v12, 1  ;;  %v1260_v35 = vperm.slane %v4754_v26, 0 }
 0x194   : > { %4957 = vpow2.f32 %v1122_v3  ;;  %v1085_v38 = vmul.f32 %v4956_v48, %v5584_v7  ;;  %v1171_v14 = vadd.f32 %v1170_v51, %v1169_v37  ;;  %v1215_v60 = vadd.f32 %v1214_v2, %v1212_v55 }
 0x195   : > { %4959 = vpow2.f32 %v1124_v31  ;;  %v1165_v57 = vadd.f32 %v1164_v20, %v1163_v12  ;;  %v1221_v50 = vadd.f32 %v1220_v61, %v1213_v43  ;;  %v1257_v1 = vsel %vm1256_vm13, %v1253_v58, %v1255_v27 }
 0x196   : > { %4961 = vpow2.f32 %v1128_v19  ;;  %v5685_v46 = vmax.f32 %v1119_v41, %v1171_v14  ;;  %v1216_v33 = vrot.slane %v1215_v60, 2  ;;  %v1261_v62 = vperm.slane %v4754_v26, 1 }
 0x197   : > { %4963 = vpow2.f32 %v1130_v52  ;;  %v5688_v29 = vmax.f32 %v5667_v28, %v1165_v57  ;;  %v1222_v44 = vrot.slane %v1221_v50, 2  ;;  %v1258_v7 = vsel %vm1256_vm13, %v1255_v27, %v1253_v58 }
 0x198   : > { %v5692_v37 = vmul.f32 %v1260_v35, %v1257_v1  ;;  %v1081_v55 = vadd.f32 %v4956_v48, %v1079_v25  ;;  %v1175_v43 = vsub.f32 %v1119_v41, %v5685_v46  ;;  %v1181_v3 = vsub.f32 %v1171_v14, %v5685_v46  ;;  %v4755_v1 = vld [vmem:[%s8179_s4 + $0x16] ss:$8 sm:$0x3] }
 0x199   : > { %v1217_v19 = vadd.f32 %v1216_v33, %v1215_v60  ;;  %v1087_v31 = vadd.f32 %v1085_v38, %v1083_v9  ;;  %v1174_v26 = vsub.f32 %v5667_v28, %v5688_v29  ;;  %v1180_v52 = vsub.f32 %v1165_v57, %v5688_v29 }
 0x19a   : > { %v4958_v12 = vpop.eup %4957  ;;  %v1223_v51 = vadd.f32 %v1222_v44, %v1221_v50  ;;  %v1178_v20 = vmul.f32 1.442695, %v1175_v43  ;;  %v5699_v61 = vmul.f32 %v1261_v62, %v1258_v7  ;;  %v1266_v25 = vmul.f32 %v5692_v37, %v5244_v16  ;;  %v1309_v44 = vpop.permute.xlu1 %1308 }
 0x19b   : > { %v4960_v2 = vpop.eup %4959  ;;  %v1132_v48 = vmul.f32 %v4958_v12, %v1080_v30  ;;  %v1176_v58 = vmul.f32 1.442695, %v1174_v26  ;;  %v1182_v35 = vmul.f32 1.442695, %v1180_v52  ;;  %v1184_v9 = vmul.f32 1.442695, %v1181_v3 }
 0x19c   : > { %v4962_v41 = vpop.eup %4961  ;;  %v1133_v38 = vmul.f32 %v4960_v2, %v1081_v55  ;;  %v1136_v28 = vmul.f32 %v4958_v12, %v1086_v49  ;;  %4965 = vpow2.f32 %v1178_v20  ;;  %v1218_v14 = vrot.slane %v1217_v19, 1 }
 0x19d   : > { %v4964_v27 = vpop.eup %4963  ;;  %v1137_v60 = vmul.f32 %v4960_v2, %v1087_v31  ;;  %v1138_v57 = vmul.f32 %v4962_v41, %v5622_v56  ;;  %4967 = vpow2.f32 %v1176_v58  ;;  %v1224_v50 = vrot.slane %v1223_v51, 1  ;;  %v1307_v56 = vpop.permute.xlu0 %1306 }
 0x19e   : > { %v1139_v33 = vmul.f32 %v4964_v27, %v5624_v40  ;;  %4969 = vpow2.f32 %v1182_v35  ;;  %v1219_v30 = vadd.f32 %v1218_v14, %v1217_v19  ;;  %v1267_v62 = vmul.f32 %v5699_v61, %v5246_v17  ;;  %v2023_v40 = vld [vmem:[%s8181_s6 + $0x10] sm:$0xff] }
 0x19f   : > { %4971 = vpow2.f32 %v1184_v9  ;;  %v1225_v7 = vadd.f32 %v1224_v50, %v1223_v51  ;;  %v1268_v55 = vrot.slane %v1266_v25, 4  ;;  %v1134_v43 = vadd.f32 %v4962_v41, %v1132_v48  ;;  %2026 = vperm.xlu1 %4883, %v2023_v40  }
 0x1a0   : > { %v5713_v3 = vmax.f32 %v5688_v29, %v1219_v30  ;;  %v1274_v12 = vrot.slane %v1267_v62, 4  ;;  %v1314_v31 = vperm.slane %v4755_v1, 0  ;;  %v1135_v19 = vadd.f32 %v4964_v27, %v1133_v38 }
 0x1a1   : > { %v5719_v26 = vmax.f32 %v5685_v46, %v1225_v7  ;;  %v1269_v52 = vadd.f32 %v1268_v55, %v1266_v25  ;;  %v1311_v51 = vsel %vm1310_vm14, %v1307_v56, %v1309_v44  ;;  %v1140_v20 = vadd.f32 %v1138_v57, %v1136_v28 }
 0x1a2   : > { %v4966_v2 = vpop.eup %4965  ;;  %v1141_v41 = vadd.f32 %v1139_v33, %v1137_v60  ;;  %v1228_v48 = vsub.f32 %v5688_v29, %v5713_v3  ;;  %v1234_v58 = vsub.f32 %v1219_v30, %v5713_v3  ;;  %v1275_v38 = vadd.f32 %v1274_v12, %v1267_v62 }
 0x1a3   : > { %v4968_v35 = vpop.eup %4967  ;;  %v1229_v9 = vsub.f32 %v5685_v46, %v5719_v26  ;;  %v1235_v27 = vsub.f32 %v1225_v7, %v5719_v26  ;;  %v1315_v25 = vperm.slane %v4755_v1, 1  ;;  %v1187_v55 = vmul.f32 %v4966_v2, %v1135_v19 }
 0x1a4   : > { %v4970_v14 = vpop.eup %4969  ;;  %v1186_v50 = vmul.f32 %v4968_v35, %v1134_v43  ;;  %v1230_v40 = vmul.f32 1.442695, %v1228_v48  ;;  %v5729_v49 = vmul.f32 %v1314_v31, %v1311_v51  ;;  %v1191_v60 = vmul.f32 %v4966_v2, %v1141_v41  ;;  %v1361_v41 = vpop.permute.xlu2 %1360 }
 0x1a5   : > { %v4972_v28 = vpop.eup %4971  ;;  %v1232_v57 = vmul.f32 1.442695, %v1229_v9  ;;  %v1270_v29 = vrot.slane %v1269_v52, 2  ;;  %v1312_v33 = vsel %vm1310_vm14, %v1309_v44, %v1307_v56  ;;  %v1190_v30 = vmul.f32 %v4968_v35, %v1140_v20  ;;  %v4756_v44 = vld [vmem:[%s8179_s4 + $0x17] ss:$8 sm:$0x3]  ;;  %v1363_v2 = vpop.permute.xlu0 %1362 }
 0x1a6   : > { %v1192_v46 = vmul.f32 %v4970_v14, %v5654_v15  ;;  %v1236_v54 = vmul.f32 1.442695, %v1234_v58  ;;  %v1238_v7 = vmul.f32 1.442695, %v1235_v27  ;;  %v1188_v62 = vadd.f32 %v4970_v14, %v1186_v50 }
 0x1a7   : > { %4973 = vpow2.f32 %v1230_v40  ;;  %v1271_v1 = vadd.f32 %v1270_v29, %v1269_v52  ;;  %v1276_v43 = vrot.slane %v1275_v38, 2  ;;  %v1189_v12 = vadd.f32 %v4972_v28, %v1187_v55 }
 0x1a8   : > { %v1193_v31 = vmul.f32 %v4972_v28, %v5648_v32  ;;  %v5735_v19 = vmul.f32 %v1315_v25, %v1312_v33  ;;  %v1320_v51 = vmul.f32 %v5729_v49, %v5244_v16  ;;  %4975 = vpow2.f32 %v1232_v57 }
 0x1a9   : > { %v1272_v15 = vrot.slane %v1271_v1, 1  ;;  %v1277_v56 = vadd.f32 %v1276_v43, %v1275_v38  ;;  %v1194_v52 = vadd.f32 %v1192_v46, %v1190_v30  ;;  %4977 = vpow2.f32 %v1236_v54 }
 0x1aa   : > { %v1321_v32 = vmul.f32 %v5735_v19, %v5246_v17  ;;  %v1322_v20 = vrot.slane %v1320_v51, 4  ;;  %v1368_v35 = vperm.slane %v4756_v44, 0  ;;  %v1369_v9 = vperm.slane %v4756_v44, 1 }
 0x1ab   : > { %v1273_v48 = vadd.f32 %v1272_v15, %v1271_v1  ;;  %v1278_v58 = vrot.slane %v1277_v56, 1  ;;  %v1365_v14 = vsel %vm1364_vm15, %v1361_v41, %v1363_v2  ;;  %v1366_v50 = vsel %vm1364_vm15, %v1363_v2, %v1361_v41 }
 0x1ac   : > { %v1323_v27 = vadd.f32 %v1322_v20, %v1320_v51  ;;  %v1328_v25 = vrot.slane %v1321_v32, 4  ;;  %v1833_v38 = vrot.slane %v5607_v23, 4  ;;  %v1195_v40 = vadd.f32 %v1193_v31, %v1191_v60 }
 0x1ad   : > { %v4974_v55 = vpop.eup %4973  ;;  %v1279_v28 = vadd.f32 %v1278_v58, %v1277_v56  ;;  %v1280_v54 = vmax.f32 %v5713_v3, %v1273_v48  ;;  %4979 = vpow2.f32 %v1238_v7  ;;  %v5751_v43 = vmul.f32 %v1368_v35, %v1365_v14  ;;  %v1415_v14 = vpop.permute.xlu1 %1414 }
 0x1ae   : > { %v1240_v57 = vmul.f32 %v4974_v55, %v1188_v62  ;;  %v1324_v29 = vrot.slane %v1323_v27, 2  ;;  %v1329_v33 = vadd.f32 %v1328_v25, %v1321_v32  ;;  %v4976_v30 = vpop.eup %4975  ;;  %v5753_v51 = vmul.f32 %v1369_v9, %v1366_v50 }
 0x1af   : > { %v5748_v46 = vmax.f32 %v5719_v26, %v1279_v28  ;;  %v1282_v1 = vsub.f32 %v5713_v3, %v1280_v54  ;;  %v4978_v44 = vpop.eup %4977  ;;  %v1241_v15 = vmul.f32 %v4976_v30, %v1189_v12  ;;  %v1244_v60 = vmul.f32 %v4974_v55, %v1194_v52  ;;  %v4757_v3 = vld [vmem:[%s8179_s4 + $0x20] ss:$8 sm:$0x3] }
 0x1b0   : > { %v1288_v31 = vsub.f32 %v1273_v48, %v1280_v54  ;;  %v1325_v56 = vadd.f32 %v1324_v29, %v1323_v27  ;;  %v1245_v2 = vmul.f32 %v4976_v30, %v1195_v40  ;;  %v1242_v20 = vadd.f32 %v4978_v44, %v1240_v57  ;;  %v1975_v40 = vld [vmem:[%s8181_s6] sm:$0xff] }
 0x1b1   : > { %v1283_v7 = vsub.f32 %v5719_v26, %v5748_v46  ;;  %v1284_v62 = vmul.f32 1.442695, %v1282_v1  ;;  %v1289_v32 = vsub.f32 %v1279_v28, %v5748_v46  ;;  %v1330_v35 = vrot.slane %v1329_v33, 2  ;;  %v1417_v28 = vpop.permute.xlu2 %1416  ;;  %1978 = vperm.xlu1 %4883, %v1975_v40  }
 0x1b2   : > { %v1290_v41 = vmul.f32 1.442695, %v1288_v31  ;;  %v1326_v58 = vrot.slane %v1325_v56, 1  ;;  %v1374_v48 = vmul.f32 %v5751_v43, %v5244_v16  ;;  %v1375_v25 = vmul.f32 %v5753_v51, %v5246_v17 }
 0x1b3   : > { %4981 = vpow2.f32 %v1284_v62  ;;  %v1286_v12 = vmul.f32 1.442695, %v1283_v7  ;;  %v1292_v52 = vmul.f32 1.442695, %v1289_v32  ;;  %v4980_v9 = vpop.eup %4979  ;;  %v1331_v27 = vadd.f32 %v1330_v35, %v1329_v33 }
 0x1b4   : > { %4983 = vpow2.f32 %v1290_v41  ;;  %v1327_v26 = vadd.f32 %v1326_v58, %v1325_v56  ;;  %v1246_v50 = vmul.f32 %v4978_v44, %v5661_v13  ;;  %v1376_v55 = vrot.slane %v1374_v48, 4 }
 0x1b5   : > { %4985 = vpow2.f32 %v1286_v12  ;;  %v1332_v57 = vrot.slane %v1331_v27, 1  ;;  %v1382_v30 = vrot.slane %v1375_v25, 4  ;;  %v1422_v33 = vperm.slane %v4757_v3, 0 }
 0x1b6   : > { %v5770_v29 = vmax.f32 %v1280_v54, %v1327_v26  ;;  %4987 = vpow2.f32 %v1292_v52  ;;  %v1377_v1 = vadd.f32 %v1376_v55, %v1374_v48  ;;  %v1423_v31 = vperm.slane %v4757_v3, 1 }
 0x1b7   : > { %v1419_v13 = vsel %vm1418_vm1, %v1415_v14, %v1417_v28  ;;  %v1333_v44 = vadd.f32 %v1332_v57, %v1331_v27  ;;  %v1383_v62 = vadd.f32 %v1382_v30, %v1375_v25  ;;  %v1243_v41 = vadd.f32 %v4980_v9, %v1241_v15 }
 0x1b8   : > { %v1336_v56 = vsub.f32 %v1280_v54, %v5770_v29  ;;  %v1342_v7 = vsub.f32 %v1327_v26, %v5770_v29  ;;  %v1248_v58 = vadd.f32 %v1246_v50, %v1244_v60  ;;  %v1378_v35 = vrot.slane %v1377_v1, 2 }
 0x1b9   : > { %v4982_v32 = vpop.eup %4981  ;;  %v1420_v12 = vsel %vm1418_vm1, %v1417_v28, %v1415_v14  ;;  %v1247_v52 = vmul.f32 %v4980_v9, %v5663_v36  ;;  %v5780_v3 = vmax.f32 %v5748_v46, %v1333_v44  ;;  %v5782_v27 = vmul.f32 %v1422_v33, %v1419_v13 }
 0x1ba   : > { %v4984_v40 = vpop.eup %4983  ;;  %v1338_v48 = vmul.f32 1.442695, %v1336_v56  ;;  %v1294_v55 = vmul.f32 %v4982_v32, %v1242_v20  ;;  %v1344_v26 = vmul.f32 1.442695, %v1342_v7  ;;  %v1379_v25 = vadd.f32 %v1378_v35, %v1377_v1  ;;  %v1471_v56 = vpop.permute.xlu1 %1470 }
 0x1bb   : > { %v4986_v54 = vpop.eup %4985  ;;  %v1384_v57 = vrot.slane %v1383_v62, 2  ;;  %v1249_v15 = vadd.f32 %v1247_v52, %v1245_v2  ;;  %v1337_v60 = vsub.f32 %v5748_v46, %v5780_v3  ;;  %v5786_v50 = vmul.f32 %v1423_v31, %v1420_v12  ;;  %v4758_v20 = vld [vmem:[%s8179_s4 + $0x21] ss:$8 sm:$0x3]  ;;  %v1469_v12 = vpop.permute.xlu0 %1468 }
 0x1bc   : > { %v4988_v36 = vpop.eup %4987  ;;  %v1298_v9 = vmul.f32 %v4982_v32, %v1248_v58  ;;  %v1300_v14 = vmul.f32 %v4984_v40, %v5692_v37  ;;  %4989 = vpow2.f32 %v1338_v48  ;;  %v1343_v28 = vsub.f32 %v1333_v44, %v5780_v3 }
 0x1bd   : > { %v1295_v30 = vmul.f32 %v4986_v54, %v1243_v41  ;;  %v1340_v2 = vmul.f32 1.442695, %v1337_v60  ;;  %4991 = vpow2.f32 %v1344_v26  ;;  %v1380_v33 = vrot.slane %v1379_v25, 1 }
 0x1be   : > { %v1296_v46 = vadd.f32 %v4984_v40, %v1294_v55  ;;  %v1346_v1 = vmul.f32 1.442695, %v1343_v28  ;;  %v1385_v31 = vadd.f32 %v1384_v57, %v1383_v62  ;;  %v1428_v13 = vmul.f32 %v5782_v27, %v5244_v16 }
 0x1bf   : > { %4993 = vpow2.f32 %v1340_v2  ;;  %v1381_v37 = vadd.f32 %v1380_v33, %v1379_v25  ;;  %v1429_v44 = vmul.f32 %v5786_v50, %v5246_v17  ;;  %v1476_v7 = vperm.slane %v4758_v20, 0 }
 0x1c0   : > { %v1299_v32 = vmul.f32 %v4986_v54, %v1249_v15  ;;  %v1301_v58 = vmul.f32 %v4988_v36, %v5699_v61  ;;  %v1386_v41 = vrot.slane %v1385_v31, 1  ;;  %v1430_v35 = vrot.slane %v1428_v13, 4 }
 0x1c1   : > { %v5800_v40 = vmax.f32 %v5770_v29, %v1381_v37  ;;  %v1436_v62 = vrot.slane %v1429_v44, 4  ;;  %v1477_v52 = vperm.slane %v4758_v20, 1  ;;  %v1473_v48 = vsel %vm1472_vm2, %v1469_v12, %v1471_v56 }
 0x1c2   : > { %v4990_v55 = vpop.eup %4989  ;;  %v1387_v26 = vadd.f32 %v1386_v41, %v1385_v31  ;;  %v1431_v25 = vadd.f32 %v1430_v35, %v1428_v13  ;;  %v1474_v57 = vsel %vm1472_vm2, %v1471_v56, %v1469_v12  ;;  %v5806_v54 = vmul.f32 %v1476_v7, %v1473_v48 }
 0x1c3   : > { %v4992_v61 = vpop.eup %4991  ;;  %v1302_v15 = vadd.f32 %v1300_v14, %v1298_v9  ;;  %4995 = vpow2.f32 %v1346_v1  ;;  %v1390_v60 = vsub.f32 %v5770_v29, %v5800_v40  ;;  %v1396_v28 = vsub.f32 %v1381_v37, %v5800_v40 }
 0x1c4   : > { %v1348_v20 = vmul.f32 %v4990_v55, %v1296_v46  ;;  %v5812_v2 = vmax.f32 %v5780_v3, %v1387_v26  ;;  %v1432_v33 = vrot.slane %v1431_v25, 2  ;;  %v1437_v31 = vadd.f32 %v1436_v62, %v1429_v44 }
 0x1c5   : > { %v4994_v13 = vpop.eup %4993  ;;  %v8287_v56 = vrot.slane %v5602_v63, 4  ;;  %v1297_v41 = vadd.f32 %v4988_v36, %v1295_v30  ;;  %v1392_v9 = vmul.f32 1.442695, %v1390_v60  ;;  %v5819_v14 = vmul.f32 %v1477_v52, %v1474_v57 }
 0x1c6   : > { %v1352_v1 = vmul.f32 %v4990_v55, %v1302_v15  ;;  %v1354_v29 = vmul.f32 %v4992_v61, %v5729_v49  ;;  %v1398_v37 = vmul.f32 1.442695, %v1396_v28  ;;  %v1482_v46 = vmul.f32 %v5806_v54, %v5244_v16 }
 0x1c7   : > { %v5817_v7 = vadd.f32 %v8287_v56, %v5602_v63  ;;  %v5827_v44 = vadd.f32 %v1833_v38, %v5607_v23  ;;  %v1303_v35 = vadd.f32 %v1301_v58, %v1299_v32  ;;  %v1391_v63 = vsub.f32 %v5780_v3, %v5812_v2  ;;  %v4759_v3 = vld [vmem:[%s8179_s4 + $0x22] ss:$8 sm:$0x3] }
 0x1c8   : > { %v1433_v36 = vadd.f32 %v1432_v33, %v1431_v25  ;;  %v1349_v30 = vmul.f32 %v4994_v13, %v1297_v41  ;;  %v1350_v12 = vadd.f32 %v4992_v61, %v1348_v20  ;;  %v1397_v62 = vsub.f32 %v1387_v26, %v5812_v2  ;;  %v1525_v26 = vpop.permute.xlu0 %1524  ;;  %v1523_v33 = vpop.permute.xlu2 %1522 }
 0x1c9   : > { %v1438_v52 = vrot.slane %v1437_v31, 2  ;;  %v4996_v49 = vpop.eup %4995  ;;  %v1353_v48 = vmul.f32 %v4994_v13, %v1303_v35  ;;  %4997 = vpow2.f32 %v1392_v9  ;;  %v1483_v57 = vmul.f32 %v5819_v14, %v5246_v17 }
 0x1ca   : > { %v1434_v55 = vrot.slane %v1433_v36, 1  ;;  %v1356_v15 = vadd.f32 %v1354_v29, %v1352_v1  ;;  %4999 = vpow2.f32 %v1398_v37  ;;  %v1484_v38 = vrot.slane %v1482_v46, 4 }
 0x1cb   : > { %v1439_v23 = vadd.f32 %v1438_v52, %v1437_v31  ;;  %v1394_v32 = vmul.f32 1.442695, %v1391_v63  ;;  %v1490_v25 = vrot.slane %v1483_v57, 4  ;;  %v1355_v61 = vmul.f32 %v4996_v49, %v5735_v19 }
 0x1cc   : > { %v1435_v58 = vadd.f32 %v1434_v55, %v1433_v36  ;;  %v1400_v60 = vmul.f32 1.442695, %v1397_v62  ;;  %v1485_v20 = vadd.f32 %v1484_v38, %v1482_v46  ;;  %v1530_v56 = vperm.slane %v4759_v3, 0 }
 0x1cd   : > { %v1440_v28 = vrot.slane %v1439_v23, 1  ;;  %v1491_v31 = vadd.f32 %v1490_v25, %v1483_v57  ;;  %v1531_v41 = vperm.slane %v4759_v3, 1  ;;  %v1527_v29 = vsel %vm1526_vm3, %v1523_v33, %v1525_v26 }
 0x1ce   : > { %v5840_v13 = vmax.f32 %v5800_v40, %v1435_v58  ;;  %v1486_v1 = vrot.slane %v1485_v20, 2  ;;  %v1528_v37 = vsel %vm1526_vm3, %v1525_v26, %v1523_v33  ;;  %5001 = vpow2.f32 %v1394_v32 }
 0x1cf   : > { %v1441_v9 = vadd.f32 %v1440_v28, %v1439_v23  ;;  %v4998_v35 = vpop.eup %4997  ;;  %v1492_v36 = vrot.slane %v1491_v31, 2  ;;  %v1351_v62 = vadd.f32 %v4996_v49, %v1349_v30  ;;  %5003 = vpow2.f32 %v1400_v60  ;;  %v1985_v60 = vld [vmem:[%s8182_s7] sm:$0xff] }
 0x1d0   : > { %v1444_v63 = vsub.f32 %v5800_v40, %v5840_v13  ;;  %v1450_v19 = vsub.f32 %v1435_v58, %v5840_v13  ;;  %v5000_v46 = vpop.eup %4999  ;;  %v1402_v52 = vmul.f32 %v4998_v35, %v1350_v12  ;;  %v1487_v57 = vadd.f32 %v1486_v1, %v1485_v20  ;;  %1988 = vperm.xlu1 %4883, %v1985_v60  }
 0x1d1   : > { %v5846_v55 = vmax.f32 %v5812_v2, %v1441_v9  ;;  %v5848_v38 = vmul.f32 %v1530_v56, %v1527_v29  ;;  %v5850_v3 = vmul.f32 %v1531_v41, %v1528_v37  ;;  %v1357_v32 = vadd.f32 %v1355_v61, %v1353_v48  ;;  %v1579_v29 = vpop.permute.xlu2 %1578 }
 0x1d2   : > { %v1446_v23 = vmul.f32 1.442695, %v1444_v63  ;;  %v1452_v25 = vmul.f32 1.442695, %v1450_v19  ;;  %v1406_v26 = vmul.f32 %v4998_v35, %v1356_v15  ;;  %v1408_v30 = vmul.f32 %v5000_v46, %v5751_v43 }
 0x1d3   : > { %v1445_v40 = vsub.f32 %v5812_v2, %v5846_v55  ;;  %v1451_v58 = vsub.f32 %v1441_v9, %v5846_v55  ;;  %v1488_v12 = vrot.slane %v1487_v57, 1  ;;  %v1493_v49 = vadd.f32 %v1492_v36, %v1491_v31  ;;  %v4760_v15 = vld [vmem:[%s8179_s4 + $0x23] ss:$8 sm:$0x3]  ;;  %v1577_v31 = vpop.permute.xlu1 %1576 }
 0x1d4   : > { %v1404_v28 = vadd.f32 %v5000_v46, %v1402_v52  ;;  %5005 = vpow2.f32 %v1446_v23  ;;  %v5002_v48 = vpop.eup %5001  ;;  %v1536_v56 = vmul.f32 %v5848_v38, %v5244_v16  ;;  %v1537_v43 = vmul.f32 %v5850_v3, %v5246_v17 }
 0x1d5   : > { %v1448_v20 = vmul.f32 1.442695, %v1445_v40  ;;  %v1454_v33 = vmul.f32 1.442695, %v1451_v58  ;;  %v1489_v61 = vadd.f32 %v1488_v12, %v1487_v57  ;;  %v1494_v2 = vrot.slane %v1493_v49, 1  ;;  %v5004_v1 = vpop.eup %5003 }
 0x1d6   : > { %v1403_v41 = vmul.f32 %v5002_v48, %v1351_v62  ;;  %v1407_v9 = vmul.f32 %v5002_v48, %v1357_v32  ;;  %5007 = vpow2.f32 %v1452_v25  ;;  %v1538_v63 = vrot.slane %v1536_v56, 4 }
 0x1d7   : > { %5009 = vpow2.f32 %v1448_v20  ;;  %v1495_v37 = vadd.f32 %v1494_v2, %v1493_v49  ;;  %v5868_v35 = vmax.f32 %v5840_v13, %v1489_v61  ;;  %v1544_v19 = vrot.slane %v1537_v43, 4 }
 0x1d8   : > { %5011 = vpow2.f32 %v1454_v33  ;;  %v1584_v36 = vperm.slane %v4760_v15, 0  ;;  %v1581_v46 = vsel %vm1580_vm4, %v1577_v31, %v1579_v29  ;;  %v1539_v23 = vadd.f32 %v1538_v63, %v1536_v56 }
 0x1d9   : > { %v5873_v62 = vmax.f32 %v5846_v55, %v1495_v37  ;;  %v1498_v52 = vsub.f32 %v5840_v13, %v5868_v35  ;;  %v1504_v57 = vsub.f32 %v1489_v61, %v5868_v35  ;;  %v1405_v40 = vadd.f32 %v5004_v1, %v1403_v41 }
 0x1da   : > { %v5006_v32 = vpop.eup %5005  ;;  %v1409_v58 = vmul.f32 %v5004_v1, %v5753_v51  ;;  %v1410_v25 = vadd.f32 %v1408_v30, %v1406_v26  ;;  %v1545_v12 = vadd.f32 %v1544_v19, %v1537_v43  ;;  %v1585_v33 = vperm.slane %v4760_v15, 1 }
 0x1db   : > { %v1499_v49 = vsub.f32 %v5846_v55, %v5873_v62  ;;  %v1500_v60 = vmul.f32 1.442695, %v1498_v52  ;;  %v1505_v20 = vsub.f32 %v1495_v37, %v5873_v62  ;;  %v1540_v2 = vrot.slane %v1539_v23, 2 }
 0x1dc   : > { %v5008_v48 = vpop.eup %5007  ;;  %v1546_v24 = vrot.slane %v1545_v12, 2  ;;  %v1582_v13 = vsel %vm1580_vm4, %v1579_v29, %v1577_v31  ;;  %v5884_v61 = vmul.f32 %v1584_v36, %v1581_v46  ;;  %v1788_v51 = vrot.slane %v5501_v45, 2  ;;  %v1999_v31 = vld [vmem:[%s8181_s6 + $0x8] sm:$0xff] }
 0x1dd   : > { %v5010_v56 = vpop.eup %5009  ;;  %v1829_v26 = vrot.slane %v5817_v7, 2  ;;  %v1835_v30 = vrot.slane %v5827_v44, 2  ;;  %v1506_v55 = vmul.f32 1.442695, %v1504_v57  ;;  %v1411_v41 = vadd.f32 %v1409_v58, %v1407_v9  ;;  %2002 = vperm.xlu2 %4884, %v1999_v31  }
 0x1de   : > { %v5012_v43 = vpop.eup %5011  ;;  %v1456_v1 = vmul.f32 %v5006_v32, %v1404_v28  ;;  %5013 = vpow2.f32 %v1500_v60  ;;  %v1502_v15 = vmul.f32 1.442695, %v1499_v49  ;;  %v1508_v37 = vmul.f32 1.442695, %v1505_v20 }
 0x1df   : > { %v1541_v63 = vadd.f32 %v1540_v2, %v1539_v23  ;;  %v1547_v19 = vadd.f32 %v1546_v24, %v1545_v12  ;;  %v5889_v52 = vmul.f32 %v1585_v33, %v1582_v13  ;;  %v1457_v29 = vmul.f32 %v5010_v56, %v1405_v40 }
 0x1e0   : > { %v1460_v36 = vmul.f32 %v5006_v32, %v1410_v25  ;;  %v1462_v46 = vmul.f32 %v5008_v48, %v5782_v27  ;;  %v1590_v57 = vmul.f32 %v5884_v61, %v5244_v16  ;;  %5015 = vpow2.f32 %v1506_v55 }
 0x1e1   : > { %v1542_v28 = vrot.slane %v1541_v63, 1  ;;  %v1548_v9 = vrot.slane %v1547_v19, 1  ;;  %v1591_v24 = vmul.f32 %v5889_v52, %v5246_v17  ;;  %v1461_v23 = vmul.f32 %v5010_v56, %v1411_v41 }
 0x1e2   : > { %v1463_v58 = vmul.f32 %v5012_v43, %v5786_v50  ;;  %5017 = vpow2.f32 %v1502_v15  ;;  %v1592_v12 = vrot.slane %v1590_v57, 4  ;;  %v1737_v49 = vrot.slane %v5435_v39, 1 }
 0x1e3   : > { %5019 = vpow2.f32 %v1508_v37  ;;  %v1543_v40 = vadd.f32 %v1542_v28, %v1541_v63  ;;  %v1549_v32 = vadd.f32 %v1548_v9, %v1547_v19  ;;  %v1598_v25 = vrot.slane %v1591_v24, 4 }
 0x1e4   : > { %v5014_v27 = vpop.eup %5013  ;;  %v1743_v60 = vrot.slane %v5467_v22, 1  ;;  %v8288_v20 = vrot.slane %v5498_v18, 2  ;;  %v1593_v2 = vadd.f32 %v1592_v12, %v1590_v57  ;;  %v1789_v13 = vadd.f32 %v1788_v51, %v5501_v45  ;;  %v2033_v51 = vld [vmem:[%s8182_s7 + $0x10] sm:$0xff] }
 0x1e5   : > { %v5907_v50 = vmax.f32 %v5868_v35, %v1543_v40  ;;  %v5910_v56 = vmax.f32 %v5873_v62, %v1549_v32  ;;  %v1599_v55 = vadd.f32 %v1598_v25, %v1591_v24  ;;  %v1830_v41 = vadd.f32 %v1829_v26, %v5817_v7  ;;  %2036 = vperm.xlu2 %4884, %v2033_v51  }
 0x1e6   : > { %v1783_v33 = vadd.f32 %v8288_v20, %v5498_v18  ;;  %v1836_v15 = vadd.f32 %v1835_v30, %v5827_v44  ;;  %v1458_v37 = vadd.f32 %v5008_v48, %v1456_v1  ;;  %v1594_v63 = vrot.slane %v1593_v2, 2  ;;  %v5016_v19 = vpop.eup %5015 }
 0x1e7   : > { %v1459_v31 = vadd.f32 %v5012_v43, %v1457_v29  ;;  %v1464_v28 = vadd.f32 %v1462_v46, %v1460_v36  ;;  %v1465_v18 = vadd.f32 %v1463_v58, %v1461_v23  ;;  %v1552_v45 = vsub.f32 %v5868_v35, %v5907_v50 }
 0x1e8   : > { %v5018_v57 = vpop.eup %5017  ;;  %v1510_v9 = vmul.f32 %v5014_v27, %v1458_v37  ;;  %v1553_v7 = vsub.f32 %v5873_v62, %v5910_v56  ;;  %v1558_v44 = vsub.f32 %v1543_v40, %v5907_v50  ;;  %v1559_v48 = vsub.f32 %v1549_v32, %v5910_v56 }
 0x1e9   : > { %v5020_v26 = vpop.eup %5019  ;;  %v1514_v30 = vmul.f32 %v5014_v27, %v1464_v28  ;;  %v1554_v43 = vmul.f32 1.442695, %v1552_v45  ;;  %v1595_v1 = vadd.f32 %v1594_v63, %v1593_v2  ;;  %v1600_v29 = vrot.slane %v1599_v55, 2 }
 0x1ea   : > { %v1516_v35 = vmul.f32 %v5016_v19, %v5806_v54  ;;  %v1556_v36 = vmul.f32 1.442695, %v1553_v7  ;;  %v1560_v46 = vmul.f32 1.442695, %v1558_v44  ;;  %v1562_v24 = vmul.f32 1.442695, %v1559_v48 }
 0x1eb   : > { %v1511_v23 = vmul.f32 %v5018_v57, %v1459_v31  ;;  %5021 = vpow2.f32 %v1554_v43  ;;  %v1596_v58 = vrot.slane %v1595_v1, 1  ;;  %v1601_v12 = vadd.f32 %v1600_v29, %v1599_v55 }
 0x1ec   : > { %v1784_v62 = vrot.slane %v1783_v33, 1  ;;  %v1515_v25 = vmul.f32 %v5018_v57, %v1465_v18  ;;  %v1517_v40 = vmul.f32 %v5020_v26, %v5819_v14  ;;  %5023 = vpow2.f32 %v1556_v36 }
 0x1ed   : > { %v1790_v32 = vrot.slane %v1789_v13, 1  ;;  %5025 = vpow2.f32 %v1560_v46  ;;  %v1597_v27 = vadd.f32 %v1596_v58, %v1595_v1  ;;  %v1602_v20 = vrot.slane %v1601_v12, 1 }
 0x1ee   : > { %v1831_v2 = vrot.slane %v1830_v41, 1  ;;  %v1837_v37 = vrot.slane %v1836_v15, 1  ;;  %v1512_v63 = vadd.f32 %v5016_v19, %v1510_v9  ;;  %5027 = vpow2.f32 %v1562_v24 }
 0x1ef   : > { %v1513_v54 = vadd.f32 %v5020_v26, %v1511_v23  ;;  %v1518_v28 = vadd.f32 %v1516_v35, %v1514_v30  ;;  %v1603_v45 = vadd.f32 %v1602_v20, %v1601_v12  ;;  %v1604_v31 = vmax.f32 %v5907_v50, %v1597_v27 }
 0x1f0   : > { %v5927_v55 = vadd.f32 %v1737_v49, %v5435_v39  ;;  %v5930_v18 = vadd.f32 %v1743_v60, %v5467_v22  ;;  %v5932_v14 = vadd.f32 %v1784_v62, %v1783_v33  ;;  %v1519_v51 = vadd.f32 %v1517_v40, %v1515_v25 }
 0x1f1   : > { %v5022_v57 = vpop.eup %5021  ;;  %v5934_v7 = vadd.f32 %v1790_v32, %v1789_v13  ;;  %v1605_v19 = vmax.f32 %v5910_v56, %v1603_v45  ;;  %v1606_v9 = vsub.f32 %v5907_v50, %v1604_v31  ;;  %v1612_v44 = vsub.f32 %v1597_v27, %v1604_v31 }
 0x1f2   : > { %v5024_v48 = vpop.eup %5023  ;;  %v5938_v26 = vadd.f32 %v1831_v2, %v1830_v41  ;;  %v5940_v30 = vadd.f32 %v1837_v37, %v1836_v15  ;;  %v1564_v39 = vmul.f32 %v5022_v57, %v1512_v63  ;;  %v1651_v22 = vmax.f32 %v1604_v31, %v5392_v42 }
 0x1f3   : > { %v5026_v49 = vpop.eup %5025  ;;  %v1565_v60 = vmul.f32 %v5024_v48, %v1513_v54  ;;  %v1568_v33 = vmul.f32 %v5022_v57, %v1518_v28  ;;  %v1607_v43 = vsub.f32 %v5910_v56, %v1605_v19  ;;  %v1608_v13 = vmul.f32 1.442695, %v1606_v9 }
 0x1f4   : > { %v5028_v1 = vpop.eup %5027  ;;  %v1566_v29 = vadd.f32 %v5026_v49, %v1564_v39  ;;  %v1569_v35 = vmul.f32 %v5024_v48, %v1519_v51  ;;  %v1613_v36 = vsub.f32 %v1603_v45, %v1605_v19  ;;  %v1614_v50 = vmul.f32 1.442695, %v1612_v44 }
 0x1f5   : > { %v1567_v46 = vadd.f32 %v5028_v1, %v1565_v60  ;;  %v1570_v41 = vmul.f32 %v5026_v49, %v5848_v38  ;;  %5029 = vpow2.f32 %v1608_v13  ;;  %v1610_v15 = vmul.f32 1.442695, %v1607_v43 }
 0x1f6   : > { %v1571_v24 = vmul.f32 %v5028_v1, %v5850_v3  ;;  %5031 = vpow2.f32 %v1614_v50  ;;  %v1616_v23 = vmul.f32 1.442695, %v1613_v36  ;;  %v1652_v58 = vmax.f32 %v1605_v19, %v5415_v8 }
 0x1f7   : > { %v1572_v12 = vadd.f32 %v1570_v41, %v1568_v33  ;;  %5033 = vpow2.f32 %v1610_v15  ;;  %v1653_v56 = vsub.f32 %v1604_v31, %v1651_v22  ;;  %v1659_v62 = vsub.f32 %v5392_v42, %v1651_v22 }
 0x1f8   : > { %5035 = vpow2.f32 %v1616_v23  ;;  %v1654_v25 = vsub.f32 %v1605_v19, %v1652_v58  ;;  %v1660_v40 = vsub.f32 %v5415_v8, %v1652_v58  ;;  %v1698_v32 = vmax.f32 %v1651_v22, %v5417_v10 }
 0x1f9   : > { %v1573_v38 = vadd.f32 %v1571_v24, %v1569_v35  ;;  %v1655_v27 = vmul.f32 1.442695, %v1653_v56  ;;  %v1661_v20 = vmul.f32 1.442695, %v1659_v62  ;;  %v1699_v3 = vmax.f32 %v1652_v58, %v5419_v11 }
 0x1fa   : > { %v1657_v2 = vmul.f32 1.442695, %v1654_v25  ;;  %v1663_v37 = vmul.f32 1.442695, %v1660_v40  ;;  %v1700_v63 = vsub.f32 %v1651_v22, %v1698_v32  ;;  %v1706_v54 = vsub.f32 %v5417_v10, %v1698_v32 }
 0x1fb   : > { %v5030_v28 = vpop.eup %5029  ;;  %5037 = vpow2.f32 %v1655_v27  ;;  %v1701_v45 = vsub.f32 %v1652_v58, %v1699_v3  ;;  %v1707_v42 = vsub.f32 %v5419_v11, %v1699_v3  ;;  %v5954_v31 = vmax.f32 %v1698_v32, %v5927_v55 }
 0x1fc   : > { %v5032_v8 = vpop.eup %5031  ;;  %v1618_v51 = vmul.f32 %v5030_v28, %v1566_v29  ;;  %v1622_v57 = vmul.f32 %v5030_v28, %v1572_v12  ;;  %5039 = vpow2.f32 %v1657_v2  ;;  %v1702_v19 = vmul.f32 1.442695, %v1700_v63 }
 0x1fd   : > { %v5034_v9 = vpop.eup %5033  ;;  %v1624_v44 = vmul.f32 %v5032_v8, %v5884_v61  ;;  %5041 = vpow2.f32 %v1661_v20  ;;  %v1704_v48 = vmul.f32 1.442695, %v1701_v45  ;;  %v1708_v39 = vmul.f32 1.442695, %v1706_v54 }
 0x1fe   : > { %v5036_v10 = vpop.eup %5035  ;;  %v1619_v22 = vmul.f32 %v5034_v9, %v1567_v46  ;;  %v1620_v49 = vadd.f32 %v5032_v8, %v1618_v51  ;;  %v1623_v60 = vmul.f32 %v5034_v9, %v1573_v38  ;;  %5043 = vpow2.f32 %v1663_v37 }
 0x1ff   : > { %v1625_v11 = vmul.f32 %v5036_v10, %v5889_v52  ;;  %v1626_v33 = vadd.f32 %v1624_v44, %v1622_v57  ;;  %5045 = vpow2.f32 %v1702_v19  ;;  %v1710_v43 = vmul.f32 1.442695, %v1707_v42 }
 0x200   : > { %v1621_v13 = vadd.f32 %v5036_v10, %v1619_v22  ;;  %5047 = vpow2.f32 %v1704_v48  ;;  %v1746_v1 = vmax.f32 %v1699_v3, %v5930_v18  ;;  %v1747_v29 = vsub.f32 %v1698_v32, %v5954_v31 }
 0x201   : > { %v5038_v61 = vpop.eup %5037  ;;  %v1627_v35 = vadd.f32 %v1625_v11, %v1623_v60  ;;  %5049 = vpow2.f32 %v1708_v39  ;;  %v1753_v36 = vsub.f32 %v5927_v55, %v5954_v31  ;;  %v5964_v50 = vmax.f32 %v5954_v31, %v5932_v14 }
 0x202   : > { %v5040_v52 = vpop.eup %5039  ;;  %v1665_v46 = vmul.f32 %v5038_v61, %v1620_v49  ;;  %v1669_v41 = vmul.f32 %v5038_v61, %v1626_v33  ;;  %5051 = vpow2.f32 %v1710_v43  ;;  %v1748_v15 = vsub.f32 %v1699_v3, %v1746_v1 }
 0x203   : > { %v5042_v24 = vpop.eup %5041  ;;  %v1666_v23 = vmul.f32 %v5040_v52, %v1621_v13  ;;  %v1670_v58 = vmul.f32 %v5040_v52, %v1627_v35  ;;  %v1749_v12 = vmul.f32 1.442695, %v1747_v29  ;;  %v1754_v56 = vsub.f32 %v5930_v18, %v1746_v1 }
 0x204   : > { %v5044_v62 = vpop.eup %5043  ;;  %v1667_v25 = vadd.f32 %v5042_v24, %v1665_v46  ;;  %v1671_v40 = vmul.f32 %v5042_v24, %v5319_v47  ;;  %v1751_v55 = vmul.f32 1.442695, %v1748_v15  ;;  %v1755_v32 = vmul.f32 1.442695, %v1753_v36 }
 0x205   : > { %v5046_v38 = vpop.eup %5045  ;;  %v1668_v27 = vadd.f32 %v5044_v62, %v1666_v23  ;;  %v1672_v20 = vmul.f32 %v5044_v62, %v5329_v59  ;;  %5053 = vpow2.f32 %v1749_v12  ;;  %v1757_v2 = vmul.f32 1.442695, %v1754_v56 }
 0x206   : > { %v5048_v37 = vpop.eup %5047  ;;  %v1673_v3 = vadd.f32 %v1671_v40, %v1669_v41  ;;  %v1712_v63 = vmul.f32 %v5046_v38, %v1667_v25  ;;  %5055 = vpow2.f32 %v1751_v55  ;;  %v1793_v54 = vmax.f32 %v1746_v1, %v5934_v7 }
 0x207   : > { %v5050_v28 = vpop.eup %5049  ;;  %v1674_v18 = vadd.f32 %v1672_v20, %v1670_v58  ;;  %v1713_v45 = vmul.f32 %v5048_v37, %v1668_v27  ;;  %5057 = vpow2.f32 %v1755_v32  ;;  %v1794_v47 = vsub.f32 %v5954_v31, %v5964_v50 }
 0x208   : > { %v5052_v42 = vpop.eup %5051  ;;  %v1714_v8 = vadd.f32 %v5050_v28, %v1712_v63  ;;  %v1716_v51 = vmul.f32 %v5046_v38, %v1673_v3  ;;  %v1718_v59 = vmul.f32 %v5050_v28, %v5337_v0  ;;  %5059 = vpow2.f32 %v1757_v2 }
 0x209   : > { %v1715_v57 = vadd.f32 %v5052_v42, %v1713_v45  ;;  %v1717_v19 = vmul.f32 %v5048_v37, %v1674_v18  ;;  %v1719_v9 = vmul.f32 %v5052_v42, %v5339_v4  ;;  %v1795_v44 = vsub.f32 %v1746_v1, %v1793_v54 }
 0x20a   : > { %v1720_v48 = vadd.f32 %v1718_v59, %v1716_v51  ;;  %v1796_v39 = vmul.f32 1.442695, %v1794_v47  ;;  %v1800_v10 = vsub.f32 %v5932_v14, %v5964_v50  ;;  %v1801_v22 = vsub.f32 %v5934_v7, %v1793_v54 }
 0x20b   : > { %v5054_v49 = vpop.eup %5053  ;;  %v1721_v31 = vadd.f32 %v1719_v9, %v1717_v19  ;;  %v1798_v60 = vmul.f32 1.442695, %v1795_v44  ;;  %v1839_v11 = vmax.f32 %v5964_v50, %v5938_v26  ;;  %v1840_v0 = vmax.f32 %v1793_v54, %v5940_v30 }
 0x20c   : > { %v5056_v33 = vpop.eup %5055  ;;  %v1759_v43 = vmul.f32 %v5054_v49, %v1714_v8  ;;  %v1763_v13 = vmul.f32 %v5054_v49, %v1720_v48  ;;  %5061 = vpow2.f32 %v1796_v39  ;;  %v1802_v4 = vmul.f32 1.442695, %v1800_v10  ;;  %v5993_v49 = vld [vmem:[%s536_s26] sm:$0xff] }
 0x20d   : > { %v5058_v1 = vpop.eup %5057  ;;  %v1760_v29 = vmul.f32 %v5056_v33, %v1715_v57  ;;  %v1764_v61 = vmul.f32 %v5056_v33, %v1721_v31  ;;  %5063 = vpow2.f32 %v1798_v60  ;;  %v1804_v14 = vmul.f32 1.442695, %v1801_v22  ;;  %v8289_v57 = vld [vmem:[#allocation5_spill] sm:$0xff]  ;;  %v6001_v33 = vld [vmem:[%s536_s26 + $0x30] sm:$0xff] }
 0x20e   : > { %v5060_v35 = vpop.eup %5059  ;;  %v1761_v7 = vadd.f32 %v5058_v1, %v1759_v43  ;;  %v1765_v36 = vmul.f32 %v5058_v1, %v5379_v6  ;;  %5065 = vpow2.f32 %v1802_v4  ;;  %v1841_v52 = vsub.f32 %v5964_v50, %v1839_v11  ;;  %v5995_v31 = vld [vmem:[%s536_s26 + $0x8] sm:$0xff]  ;;  %v6010_v1 = vld [vmem:[%s536_s26 + $0x38] sm:$0xff] }
 0x20f   : > { %v1762_v46 = vadd.f32 %v5060_v35, %v1760_v29  ;;  %v1766_v41 = vmul.f32 %v5060_v35, %v5389_v34  ;;  %5067 = vpow2.f32 %v1804_v14  ;;  %v1842_v15 = vsub.f32 %v1793_v54, %v1840_v0  ;;  %v6008_v4 = vld [vmem:[%s536_s26 + $0x28] sm:$0xff] }
 0x210   : > { %v1767_v24 = vadd.f32 %v1765_v36, %v1763_v13  ;;  %v1843_v23 = vmul.f32 1.442695, %v1841_v52  ;;  %v1847_v58 = vsub.f32 %v5938_v26, %v1839_v11  ;;  %v1848_v12 = vsub.f32 %v5940_v30, %v1840_v0  ;;  %v5997_v11 = vld [vmem:[%s536_s26 + $0x10] sm:$0xff]  ;;  %v5999_v0 = vld [vmem:[%s536_s26 + $0x20] sm:$0xff]  ;;  %v6006_v13 = vld [vmem:[%s536_s26 + $0x18] sm:$0xff]  ;;  %s8326_s26 = smov 17  }
 0x211   : > { %v1768_v56 = vadd.f32 %v1766_v41, %v1764_v61  ;;  %v1845_v62 = vmul.f32 1.442695, %v1842_v15  ;;  %vm2188_vm7 = vcmp.lt.s32.totalorder %v5292_v21, 16  ;;  %vm2142_vm8 = vcmp.lt.s32.totalorder %v5292_v21, 17 }
 0x212   : > { %v5062_v25 = vpop.eup %5061  ;;  %5069 = vpow2.f32 %v1843_v23  ;;  %v1849_v40 = vmul.f32 1.442695, %v1847_v58  ;;  %v1851_v6 = vmul.f32 1.442695, %v1848_v12  ;;  %vm2472_vm9 = vcmp.lt.s32.totalorder %v5292_v21, 111 }
 0x213   : > { %v5064_v55 = vpop.eup %5063  ;;  %v1806_v32 = vmul.f32 %v5062_v25, %v1761_v7  ;;  %v1810_v50 = vmul.f32 %v5062_v25, %v1767_v24  ;;  %5071 = vpow2.f32 %v1845_v62  ;;  %vm2426_vm10 = vcmp.lt.s32.totalorder %v5292_v21, 112 }
 0x214   : > { %v5066_v38 = vpop.eup %5065  ;;  %v1807_v34 = vmul.f32 %v5064_v55, %v1762_v46  ;;  %v1811_v27 = vmul.f32 %v5064_v55, %v1768_v56  ;;  %5073 = vpow2.f32 %v1849_v40  ;;  %vm2380_vm11 = vcmp.lt.s32.totalorder %v5292_v21, 113 }
 0x215   : > { %v5068_v20 = vpop.eup %5067  ;;  %v1808_v2 = vadd.f32 %v5066_v38, %v1806_v32  ;;  %v1812_v26 = vmul.f32 %v5066_v38, %v5443_v53  ;;  %5075 = vpow2.f32 %v1851_v6  ;;  %v8290_v53 = vld [vmem:[#allocation6_spill] sm:$0xff]  ;;  %vm2334_vm12 = vcmp.lt.s32.totalorder %v5292_v21, 127 }
 0x216   : > { %v1809_v30 = vadd.f32 %v5068_v20, %v1807_v34  ;;  %v1813_v37 = vmul.f32 %v5068_v20, %v5447_v5 }
 0x217   : > { %v1814_v3 = vadd.f32 %v1812_v26, %v1810_v50 }
 0x218   : > { %v5070_v63 = vpop.eup %5069  ;;  %v1815_v54 = vadd.f32 %v1813_v37, %v1811_v27 }
 0x219   : > { %v5072_v28 = vpop.eup %5071  ;;  %v1853_v18 = vmul.f32 %v5070_v63, %v1808_v2  ;;  %v1857_v45 = vmul.f32 %v5070_v63, %v1814_v3 }
 0x21a   : > { %v5074_v47 = vpop.eup %5073  ;;  %v1854_v42 = vmul.f32 %v5072_v28, %v1809_v30  ;;  %v1858_v8 = vmul.f32 %v5072_v28, %v1815_v54 }
 0x21b   : > { %v5076_v51 = vpop.eup %5075  ;;  %v1855_v59 = vadd.f32 %v5074_v47, %v1853_v18  ;;  %v1859_v19 = vmul.f32 %v5074_v47, %v8289_v57 }
 0x21c   : > { %v1856_v9 = vadd.f32 %v5076_v51, %v1854_v42  ;;  %v1860_v44 = vmul.f32 %v5076_v51, %v8290_v53 }
 0x21d   : > { %v1861_v48 = vadd.f32 %v1859_v19, %v1857_v45  ;;  %5077 = vrcp.f32 %v1855_v59 }
 0x21e   : > { %v1862_v5 = vadd.f32 %v1860_v44, %v1858_v8  ;;  %5079 = vrcp.f32 %v1856_v9 }
 0x223   : > { %v5078_v39 = vpop.eup %5077 }
 0x224   : > { %v5080_v10 = vpop.eup %5079  ;;  %v1865_v22 = vmul.f32 %v5078_v39, %v1861_v48 }
 0x225   : > { %v1866_v60 = vmul.f32 %v5080_v10, %v1862_v5 }
 0x226   : > { %v6004_v43 = vadd.f32 %v1865_v22, %v5244_v16 }
 0x227   : > { %v6013_v29 = vadd.f32 %v1866_v60, %v5246_v17 }
 0x228   : > { %v1877_v61 = vmul.f32 %v5993_v49, %v6004_v43  ;;  %v1891_v14 = vmul.f32 %v5997_v11, %v6004_v43  ;;  %v1905_v35 = vmul.f32 %v5999_v0, %v6004_v43  ;;  %v1919_v16 = vmul.f32 %v6001_v33, %v6004_v43 }
 0x229   : > { %v1878_v7 = vmul.f32 %v5995_v31, %v6013_v29  ;;  %v1892_v36 = vmul.f32 %v6006_v13, %v6013_v29  ;;  %v1906_v17 = vmul.f32 %v6008_v4, %v6013_v29  ;;  %v1920_v52 = vmul.f32 %v6010_v1, %v6013_v29 }
 0x22a   : > { %v1879_v46 = vrot.slane %v1877_v61, 4  ;;  %v1893_v41 = vrot.slane %v1891_v14, 4  ;;  %v1907_v15 = vrot.slane %v1905_v35, 4  ;;  %v1921_v24 = vrot.slane %v1919_v16, 4 }
 0x22b   : > { %v1885_v23 = vrot.slane %v1878_v7, 4  ;;  %v1899_v58 = vrot.slane %v1892_v36, 4  ;;  %v1913_v12 = vrot.slane %v1906_v17, 4  ;;  %v1927_v56 = vrot.slane %v1920_v52, 4 }
 0x22c   : > { %v1880_v62 = vadd.f32 %v1879_v46, %v1877_v61  ;;  %v1894_v25 = vadd.f32 %v1893_v41, %v1891_v14  ;;  %v1908_v40 = vadd.f32 %v1907_v15, %v1905_v35  ;;  %v1922_v6 = vadd.f32 %v1921_v24, %v1919_v16 }
 0x22d   : > { %v1886_v55 = vadd.f32 %v1885_v23, %v1878_v7  ;;  %v1900_v32 = vadd.f32 %v1899_v58, %v1892_v36  ;;  %v1914_v50 = vadd.f32 %v1913_v12, %v1906_v17  ;;  %v1928_v38 = vadd.f32 %v1927_v56, %v1920_v52 }
 0x22e   : > { %v1881_v34 = vrot.slane %v1880_v62, 2  ;;  %v1895_v27 = vrot.slane %v1894_v25, 2  ;;  %v1909_v20 = vrot.slane %v1908_v40, 2  ;;  %v1923_v2 = vrot.slane %v1922_v6, 2 }
 0x22f   : > { %v1887_v26 = vrot.slane %v1886_v55, 2  ;;  %v1901_v30 = vrot.slane %v1900_v32, 2  ;;  %v1915_v37 = vrot.slane %v1914_v50, 2  ;;  %v1929_v3 = vrot.slane %v1928_v38, 2 }
 0x230   : > { %v1882_v63 = vadd.f32 %v1881_v34, %v1880_v62  ;;  %v1896_v54 = vadd.f32 %v1895_v27, %v1894_v25  ;;  %v1910_v28 = vadd.f32 %v1909_v20, %v1908_v40  ;;  %v1924_v18 = vadd.f32 %v1923_v2, %v1922_v6 }
 0x231   : > { %v1888_v45 = vadd.f32 %v1887_v26, %v1886_v55  ;;  %v1902_v47 = vadd.f32 %v1901_v30, %v1900_v32  ;;  %v1916_v42 = vadd.f32 %v1915_v37, %v1914_v50  ;;  %v1930_v8 = vadd.f32 %v1929_v3, %v1928_v38 }
 0x232   : > { %v1883_v51 = vrot.slane %v1882_v63, 1  ;;  %v1897_v59 = vrot.slane %v1896_v54, 1  ;;  %v1911_v57 = vrot.slane %v1910_v28, 1  ;;  %v1925_v5 = vrot.slane %v1924_v18, 1 }
 0x233   : > { %v1889_v19 = vrot.slane %v1888_v45, 1  ;;  %v1903_v9 = vrot.slane %v1902_v47, 1  ;;  %v1917_v53 = vrot.slane %v1916_v42, 1  ;;  %v1931_v22 = vrot.slane %v1930_v8, 1 }
 0x234   : > { %v1884_v44 = vadd.f32 %v1883_v51, %v1882_v63  ;;  %v1898_v48 = vadd.f32 %v1897_v59, %v1896_v54  ;;  %v1912_v60 = vadd.f32 %v1911_v57, %v1910_v28  ;;  %v1926_v16 = vadd.f32 %v1925_v5, %v1924_v18  ;;  %v2051_v51 = vpop.permute.xlu0 %2050 }
 0x235   : > { %v1890_v39 = vadd.f32 %v1889_v19, %v1888_v45  ;;  %v1904_v10 = vadd.f32 %v1903_v9, %v1902_v47  ;;  %v1918_v14 = vadd.f32 %v1917_v53, %v1916_v42  ;;  %v1932_v36 = vadd.f32 %v1931_v22, %v1930_v8  ;;  %v2027_v8 = vpop.permute.xlu1 %2026 }
 0x236   : > { %v1933_v61 = vmax.f32 %v1884_v44, %v1898_v48 }
 0x237   : > { %v1934_v35 = vmax.f32 %v1890_v39, %v1904_v10  ;;  %v2003_v59 = vpop.permute.xlu2 %2002 }
 0x238   : > { %v1935_v7 = vmax.f32 %v1933_v61, %v1912_v60 }
 0x239   : > { %v1936_v17 = vmax.f32 %v1934_v35, %v1918_v14 }
 0x23a   : > { %v1937_v52 = vmax.f32 %v1935_v7, %v1926_v16 }
 0x23b   : > { %v1938_v46 = vmax.f32 %v1936_v17, %v1932_v36 }
 0x23c   : > { %v1939_v41 = vsub.f32 %v1884_v44, %v1937_v52  ;;  %v1945_v15 = vsub.f32 %v1898_v48, %v1937_v52  ;;  %v1951_v24 = vsub.f32 %v1912_v60, %v1937_v52  ;;  %v1957_v23 = vsub.f32 %v1926_v16, %v1937_v52 }
 0x23d   : > { %v1940_v58 = vsub.f32 %v1890_v39, %v1938_v46  ;;  %v1946_v12 = vsub.f32 %v1904_v10, %v1938_v46  ;;  %v1952_v56 = vsub.f32 %v1918_v14, %v1938_v46  ;;  %v1958_v62 = vsub.f32 %v1932_v36, %v1938_v46  ;;  %v1979_v17 = vpop.permute.xlu1 %1978 }
 0x23e   : > { %v1941_v25 = vmul.f32 1.442695, %v1939_v41  ;;  %v1947_v40 = vmul.f32 1.442695, %v1945_v15  ;;  %v1953_v32 = vmul.f32 1.442695, %v1951_v24 }
 0x23f   : > { %v1943_v6 = vmul.f32 1.442695, %v1940_v58  ;;  %v1949_v55 = vmul.f32 1.442695, %v1946_v12  ;;  %v1955_v50 = vmul.f32 1.442695, %v1952_v56  ;;  %v2061_v58 = vpop.permute.xlu0 %2060 }
 0x240   : > { %5081 = vpow2.f32 %v1941_v25  ;;  %v1959_v38 = vmul.f32 1.442695, %v1957_v23  ;;  %v1961_v34 = vmul.f32 1.442695, %v1958_v62 }
 0x241   : > { %5083 = vpow2.f32 %v1943_v6 }
 0x242   : > { %5085 = vpow2.f32 %v1947_v40 }
 0x243   : > { %5087 = vpow2.f32 %v1949_v55 }
 0x244   : > { %5089 = vpow2.f32 %v1953_v32  ;;  %v2037_v32 = vpop.permute.xlu2 %2036 }
 0x245   : > { %5091 = vpow2.f32 %v1955_v50 }
 0x246   : > { %v5082_v27 = vpop.eup %5081  ;;  %5093 = vpow2.f32 %v1959_v38 }
 0x247   : > { %v5084_v20 = vpop.eup %5083  ;;  %5095 = vpow2.f32 %v1961_v34 }
 0x248   : > { %v5086_v2 = vpop.eup %5085 }
 0x249   : > { %v5088_v26 = vpop.eup %5087  ;;  %v1963_v30 = vadd.f32 %v5086_v2, %v5082_v27 }
 0x24a   : > { %v5090_v37 = vpop.eup %5089  ;;  %v1964_v3 = vadd.f32 %v5088_v26, %v5084_v20 }
 0x24b   : > { %v5092_v63 = vpop.eup %5091  ;;  %v1965_v54 = vadd.f32 %v5090_v37, %v1963_v30  ;;  %v4768_v30 = vld [vmem:[%s8180_s5 + $0x3] ss:$8 sm:$0x3] }
 0x24c   : > { %v5094_v28 = vpop.eup %5093  ;;  %v1966_v18 = vadd.f32 %v5092_v63, %v1964_v3  ;;  %v6159_v3 = vperm.slane %v4768_v30, 1 }
 0x24d   : > { %v5096_v45 = vpop.eup %5095  ;;  %v1967_v47 = vadd.f32 %v5094_v28, %v1965_v54 }
 0x24e   : > { %v1968_v42 = vadd.f32 %v5096_v45, %v1966_v18  ;;  %8300 = vst [vmem:[#allocation14_spill] sm:$0xff] %v6159_v3 }
 0x24f   : > { %5097 = vrcp.f32 %v1967_v47 }
 0x250   : > { %5099 = vrcp.f32 %v1968_v42 }
 0x255   : > { %v5098_v57 = vpop.eup %5097 }
 0x256   : > { %v5100_v19 = vpop.eup %5099  ;;  %v2043_v9 = vmul.f32 %v5098_v57, %v5094_v28  ;;  %v2019_v53 = vmul.f32 %v5098_v57, %v5090_v37  ;;  %v1995_v44 = vmul.f32 %v5098_v57, %v5086_v2  ;;  %v1971_v48 = vmul.f32 %v5098_v57, %v5082_v27 }
 0x257   : > { %v2044_v5 = vmul.f32 %v5100_v19, %v5096_v45  ;;  %v2020_v39 = vmul.f32 %v5100_v19, %v5092_v63  ;;  %v1996_v10 = vmul.f32 %v5100_v19, %v5088_v26  ;;  %v1972_v22 = vmul.f32 %v5100_v19, %v5084_v20 }
 0x258   : > { %v2045_v60 = vmul.f32 %v2043_v9, %v6004_v43  ;;  %v2021_v61 = vmul.f32 %v2019_v53, %v6004_v43  ;;  %v1997_v14 = vmul.f32 %v1995_v44, %v6004_v43  ;;  %v1973_v35 = vmul.f32 %v1971_v48, %v6004_v43 }
 0x259   : > { %v2046_v16 = vmul.f32 %v2044_v5, %v6013_v29  ;;  %v2022_v7 = vmul.f32 %v2020_v39, %v6013_v29  ;;  %v1998_v36 = vmul.f32 %v1996_v10, %v6013_v29  ;;  %v1974_v52 = vmul.f32 %v1972_v22, %v6013_v29  ;;  %v4767_v10 = vld [vmem:[%s8180_s5 + $0x2] ss:$8 sm:$0x3] }
 0x25a   : > { %v2053_v46 = vmul.f32 %v2051_v51, %v2045_v60  ;;  %v2029_v41 = vmul.f32 %v2027_v8, %v2021_v61  ;;  %v2005_v15 = vmul.f32 %v2003_v59, %v1997_v14  ;;  %v1981_v24 = vmul.f32 %v1979_v17, %v1973_v35 }
 0x25b   : > { %v2054_v23 = vmul.f32 %v2051_v51, %v2046_v16  ;;  %v2030_v12 = vmul.f32 %v2027_v8, %v2022_v7  ;;  %v2006_v56 = vmul.f32 %v2003_v59, %v1998_v36  ;;  %v1982_v62 = vmul.f32 %v1979_v17, %v1974_v52 }
 0x25c   : > { %v2055_v43 = vadd.f32 %v2053_v46, %v6001_v33  ;;  %v2007_v25 = vadd.f32 %v2005_v15, %v5997_v11  ;;  %v2031_v40 = vadd.f32 %v2029_v41, %v5999_v0  ;;  %v1983_v6 = vadd.f32 %v1981_v24, %v5993_v49  ;;  %v2013_v49 = vpop.permute.xlu0 %2012 }
 0x25d   : > { %v2056_v55 = vadd.f32 %v2054_v23, %v6010_v1  ;;  %v2008_v29 = vadd.f32 %v2006_v56, %v6006_v13  ;;  %v2032_v50 = vadd.f32 %v2030_v12, %v6008_v4  ;;  %v1984_v38 = vadd.f32 %v1982_v62, %v5995_v31  ;;  %v1989_v13 = vpop.permute.xlu1 %1988 }
 0x25e   : > { %v6047_v34 = vadd.f32 %v2061_v58, %v2055_v43  ;;  %v6049_v27 = vadd.f32 %v2037_v32, %v2031_v40  ;;  %v6063_v0 = vadd.f32 %v2013_v49, %v2007_v25  ;;  %v6071_v4 = vadd.f32 %v1989_v13, %v1983_v6 }
 0x25f   : > { %v6051_v33 = vadd.f32 %v2061_v58, %v2056_v55  ;;  %v6059_v11 = vadd.f32 %v2013_v49, %v2008_v29  ;;  %v6061_v31 = vadd.f32 %v2037_v32, %v2032_v50  ;;  %v6073_v1 = vadd.f32 %v1989_v13, %v1984_v38  ;;  %v4766_v13 = vld [vmem:[%s8180_s5 + $0x1] ss:$8 sm:$0x3] }
 0x260   : > { %8291 = vst [vmem:[#allocation5_spill] sm:$0xff] %v6047_v34  ;;  %2268 = vrot.lane.b32.xlu1 %v6049_v27, %s8246_s27  ;;  %2270 = vrot.lane.b32.xlu2 %v6047_v34, %s8246_s27  ;;  %v6157_v37 = vperm.slane %v4768_v30, 0  ;;  %v6195_v14 = vperm.slane %v4767_v10, 0  ;;  %v6203_v36 = vperm.slane %v4767_v10, 1  ;;  %v6253_v30 = vperm.slane %v4766_v13, 1 }
 0x261   : > { %8292 = vst [vmem:[#allocation6_spill] sm:$0xff] %v6049_v27  ;;  %2278 = vrot.lane.b32.xlu0 %v6051_v33, %s8246_s27 }
 0x262   : > { %8293 = vst [vmem:[#allocation7_spill] sm:$0xff] %v6051_v33 }
 0x263   : > { %8294 = vst [vmem:[#allocation8_spill] sm:$0xff] %v6059_v11 }
 0x264   : > { %8295 = vst [vmem:[#allocation9_spill] sm:$0xff] %v6061_v31 }
 0x265   : > { %8296 = vst [vmem:[#allocation10_spill] sm:$0xff] %v6063_v0 }
 0x266   : > { %8297 = vst [vmem:[#allocation11_spill] sm:$0xff] %v6071_v4 }
 0x267   : > { %8298 = vst [vmem:[#allocation12_spill] sm:$0xff] %v6073_v1 }
 0x268   : > { %2276 = vrot.lane.b32.xlu2 %v6061_v31, %s8246_s27  ;;  %2274 = vrot.lane.b32.xlu1 %v6059_v11, %s8246_s27  ;;  %8299 = vst [vmem:[#allocation13_spill] sm:$0xff] %v6157_v37 }
 0x269   : > { %2266 = vrot.lane.b32.xlu0 %v6063_v0, %s8246_s27  ;;  %8301 = vst [vmem:[#allocation15_spill] sm:$0xff] %v6195_v14 }
 0x26a   : > { %8302 = vst [vmem:[#allocation16_spill] sm:$0xff] %v6203_v36 }
 0x26b   : > { %8304 = vst [vmem:[#allocation18_spill] sm:$0xff] %v6253_v30 }
 0x270   : > { %2264 = vrot.lane.b32.xlu2 %v6071_v4, %s8246_s27  ;;  %2224 = vrot.lane.b32.xlu1 %v6047_v34, %s8248_s28 }
 0x271   : > { %2272 = vrot.lane.b32.xlu0 %v6073_v1, %s8246_s27 }
 0x278   : > { %2232 = vrot.lane.b32.xlu2 %v6051_v33, %s8248_s28  ;;  %2230 = vrot.lane.b32.xlu1 %v6061_v31, %s8248_s28 }
 0x279   : > { %2222 = vrot.lane.b32.xlu0 %v6049_v27, %s8248_s28 }
 0x280   : > { %2218 = vrot.lane.b32.xlu1 %v6071_v4, %s8248_s28  ;;  %2220 = vrot.lane.b32.xlu2 %v6063_v0, %s8248_s28 }
 0x281   : > { %2228 = vrot.lane.b32.xlu0 %v6059_v11, %s8248_s28 }
 0x288   : > { %2186 = vrot.lane.b32.xlu1 %v6051_v33, %s8242_s29  ;;  %2226 = vrot.lane.b32.xlu2 %v6073_v1, %s8248_s28 }
 0x289   : > { %2178 = vrot.lane.b32.xlu0 %v6047_v34, %s8242_s29 }
 0x290   : > { %2174 = vrot.lane.b32.xlu1 %v6063_v0, %s8242_s29  ;;  %2176 = vrot.lane.b32.xlu2 %v6049_v27, %s8242_s29 }
 0x291   : > { %2184 = vrot.lane.b32.xlu0 %v6061_v31, %s8242_s29 }
 0x298   : > { %2180 = vrot.lane.b32.xlu1 %v6073_v1, %s8242_s29  ;;  %2182 = vrot.lane.b32.xlu2 %v6059_v11, %s8242_s29 }
 0x299   : > { %2172 = vrot.lane.b32.xlu0 %v6071_v4, %s8242_s29 }
 0x2a0   : > { %2130 = vrot.lane.b32.xlu1 %v6049_v27, %s8196_s30  ;;  %2132 = vrot.lane.b32.xlu2 %v6047_v34, %s8196_s30 }
 0x2a1   : > { %2140 = vrot.lane.b32.xlu0 %v6051_v33, %s8196_s30 }
 0x2a8   : > { %2136 = vrot.lane.b32.xlu1 %v6059_v11, %s8196_s30  ;;  %2138 = vrot.lane.b32.xlu2 %v6061_v31, %s8196_s30 }
 0x2a9   : > { %2128 = vrot.lane.b32.xlu0 %v6063_v0, %s8196_s30 }
 0x2b0   : > { %2126 = vrot.lane.b32.xlu1 %v6071_v4, %s8196_s30  ;;  %2462 = vrot.lane.b32.xlu2 %v6047_v34, %s8194_s0 }
 0x2b1   : > { %2470 = vrot.lane.b32.xlu0 %v6051_v33, %s8194_s0 }
 0x2b8   : > { %2468 = vrot.lane.b32.xlu1 %v6061_v31, %s8194_s0  ;;  %2134 = vrot.lane.b32.xlu2 %v6073_v1, %s8196_s30  ;;  %s8327_s30 = smov 111  }
 0x2b9   : > { %2460 = vrot.lane.b32.xlu0 %v6049_v27, %s8194_s0 }
 0x2ba   : > { %v2271_v20 = vpop.permute.xlu2 %2270 }
 0x2c0   : > { %2456 = vrot.lane.b32.xlu1 %v6071_v4, %s8194_s0  ;;  %2458 = vrot.lane.b32.xlu2 %v6063_v0, %s8194_s0 }
 0x2c1   : > { %2466 = vrot.lane.b32.xlu0 %v6059_v11, %s8194_s0 }
 0x2c2   : > { %v2277_v2 = vpop.permute.xlu2 %2276 }
 0x2c8   : > { %2424 = vrot.lane.b32.xlu1 %v6051_v33, %s5134_s17  ;;  %2464 = vrot.lane.b32.xlu2 %v6073_v1, %s8194_s0 }
 0x2c9   : > { %2416 = vrot.lane.b32.xlu0 %v6047_v34, %s5134_s17 }
 0x2ca   : > { %v2265_v26 = vpop.permute.xlu2 %2264 }
 0x2d0   : > { %2412 = vrot.lane.b32.xlu1 %v6063_v0, %s5134_s17  ;;  %2414 = vrot.lane.b32.xlu2 %v6049_v27, %s5134_s17 }
 0x2d1   : > { %2422 = vrot.lane.b32.xlu0 %v6061_v31, %s5134_s17 }
 0x2d2   : > { %v2269_v63 = vpop.permute.xlu1 %2268  ;;  %v2233_v54 = vpop.permute.xlu2 %2232 }
 0x2d3   : > { %v2279_v28 = vpop.permute.xlu0 %2278  ;;  %v2287_v47 = vsel %vm2280_vm5, %v2277_v2, %v2269_v63  ;;  %v2283_v51 = vsel %vm2280_vm5, %v2269_v63, %v2277_v2 }
 0x2d4   : > { %v2288_v18 = vsel %vm2280_vm5, %v2279_v28, %v2271_v20  ;;  %v2284_v45 = vsel %vm2280_vm5, %v2271_v20, %v2279_v28  ;;  %v2298_v59 = vmul.f32 %v6157_v37, %v2287_v47  ;;  %v2299_v57 = vmul.f32 %v6159_v3, %v2283_v51 }
 0x2d5   : > { %v2300_v42 = vmul.f32 %v6157_v37, %v2288_v18  ;;  %v2301_v8 = vmul.f32 %v6159_v3, %v2284_v45 }
 0x2d7   : > { %2682 = vmatpush.msra.mxu2 %v2300_v42  ;;  %2841 = vmatpush.msrb.mxu1 %v2301_v8 }
 0x2d8   : > { %2418 = vrot.lane.b32.xlu1 %v6073_v1, %s5134_s17  ;;  %2420 = vrot.lane.b32.xlu2 %v6059_v11, %s5134_s17 }
 0x2d9   : > { %2410 = vrot.lane.b32.xlu0 %v6071_v4, %s5134_s17  ;;  %2683 = vmatpush.msra.mxu2 %v2298_v59 }
 0x2da   : > { %2842 = vmatpush.msrb.mxu1 %v2299_v57  ;;  %v2275_v19 = vpop.permute.xlu1 %2274  ;;  %v2221_v9 = vpop.permute.xlu2 %2220 }
 0x2db   : > { %v2267_v53 = vpop.permute.xlu0 %2266 }
 0x2dc   : > { %v2286_v44 = vsel %vm2280_vm5, %v2275_v19, %v2267_v53  ;;  %v2282_v48 = vsel %vm2280_vm5, %v2267_v53, %v2275_v19 }
 0x2dd   : > { %v2296_v5 = vmul.f32 %v6157_v37, %v2286_v44  ;;  %v2297_v39 = vmul.f32 %v6159_v3, %v2282_v48  ;;  %v2581_v48 = vld [vmem:[%s8184_s9 + $0x38] sm:$0xff] }
 0x2df   : > { %2684 = vmatpush.msra.mxu2 %v2296_v5  ;;  %2843 = vmatpush.msrb.mxu1 %v2297_v39  ;;  %v2577_v39 = vld [vmem:[%s8184_s9 + $0x18] sm:$0xff] }
 0x2e0   : > { %2368 = vrot.lane.b32.xlu1 %v6049_v27, %s8244_s20  ;;  %2370 = vrot.lane.b32.xlu2 %v6047_v34, %s8244_s20 }
 0x2e1   : > { %2378 = vrot.lane.b32.xlu0 %v6051_v33, %s8244_s20 }
 0x2e2   : > { %v2225_v22 = vpop.permute.xlu1 %2224  ;;  %v2227_v60 = vpop.permute.xlu2 %2226 }
 0x2e3   : > { %v2273_v61 = vpop.permute.xlu0 %2272  ;;  %v2242_v7 = vsel %vm2234_vm6, %v2233_v54, %v2225_v22  ;;  %v2238_v46 = vsel %vm2234_vm6, %v2225_v22, %v2233_v54 }
 0x2e4   : > { %v2285_v35 = vsel %vm2280_vm5, %v2273_v61, %v2265_v26  ;;  %v2281_v16 = vsel %vm2280_vm5, %v2265_v26, %v2273_v61  ;;  %v2254_v41 = vmul.f32 %v6195_v14, %v2242_v7  ;;  %v2255_v15 = vmul.f32 %v6203_v36, %v2238_v46  ;;  %v2585_v46 = vld [vmem:[%s8184_s9 + $0x58] sm:$0xff] }
 0x2e5   : > { %v2294_v17 = vmul.f32 %v6157_v37, %v2285_v35  ;;  %v2295_v52 = vmul.f32 %v6159_v3, %v2281_v16  ;;  %v6251_v26 = vperm.slane %v4766_v13, 0 }
 0x2e7   : > { %2685 = vmatpush.msra.mxu2 %v2294_v17  ;;  %2844 = vmatpush.msrb.mxu1 %v2295_v52  ;;  %8303 = vst [vmem:[#allocation17_spill] sm:$0xff] %v6251_v26 }
 0x2e8   : > { %2374 = vrot.lane.b32.xlu1 %v6059_v11, %s8244_s20  ;;  %2376 = vrot.lane.b32.xlu2 %v6061_v31, %s8244_s20 }
 0x2e9   : > { %2366 = vrot.lane.b32.xlu0 %v6063_v0, %s8244_s20  ;;  %2686 = vmatpush.msra.mxu2 %v2254_v41  ;;  %v2576_v41 = vld [vmem:[%s8184_s9 + $0x10] sm:$0xff] }
 0x2ea   : > { %2845 = vmatpush.msrb.mxu1 %v2255_v15  ;;  %v2231_v24 = vpop.permute.xlu1 %2230  ;;  %v2177_v23 = vpop.permute.xlu2 %2176  ;;  %v2580_v15 = vld [vmem:[%s8184_s9 + $0x30] sm:$0xff] }
 0x2eb   : > { %v2223_v58 = vpop.permute.xlu0 %2222 }
 0x2ec   : > { %v2241_v12 = vsel %vm2234_vm6, %v2231_v24, %v2223_v58  ;;  %v2237_v56 = vsel %vm2234_vm6, %v2223_v58, %v2231_v24  ;;  %v2067_v24 = vld [vmem:[%s8180_s5] ss:$8 sm:$0x3] }
 0x2ed   : > { %v2252_v62 = vmul.f32 %v6195_v14, %v2241_v12  ;;  %v2253_v43 = vmul.f32 %v6203_v36, %v2237_v56  ;;  %v6310_v58 = vperm.slane %v2067_v24, 1 }
 0x2ef   : > { %2687 = vmatpush.msra.mxu2 %v2252_v62  ;;  %2846 = vmatpush.msrb.mxu1 %v2253_v43  ;;  %8306 = vst [vmem:[#allocation20_spill] sm:$0xff] %v6310_v58 }
 0x2f0   : > { %2324 = vrot.lane.b32.xlu1 %v6047_v34, %s8198_s24  ;;  %2364 = vrot.lane.b32.xlu2 %v6071_v4, %s8244_s20 }
 0x2f1   : > { %2372 = vrot.lane.b32.xlu0 %v6073_v1, %s8244_s20 }
 0x2f2   : > { %v2219_v25 = vpop.permute.xlu1 %2218  ;;  %v2183_v40 = vpop.permute.xlu2 %2182 }
 0x2f3   : > { %v2229_v6 = vpop.permute.xlu0 %2228  ;;  %v2239_v32 = vsel %vm2234_vm6, %v2227_v60, %v2219_v25  ;;  %v2235_v49 = vsel %vm2234_vm6, %v2219_v25, %v2227_v60 }
 0x2f4   : > { %v2240_v55 = vsel %vm2234_vm6, %v2229_v6, %v2221_v9  ;;  %v2236_v29 = vsel %vm2234_vm6, %v2221_v9, %v2229_v6  ;;  %v2248_v20 = vmul.f32 %v6195_v14, %v2239_v32  ;;  %v2249_v2 = vmul.f32 %v6203_v36, %v2235_v49  ;;  %v2575_v32 = vld [vmem:[%s8184_s9 + $0x8] sm:$0xff] }
 0x2f5   : > { %v2250_v50 = vmul.f32 %v6195_v14, %v2240_v55  ;;  %v2251_v38 = vmul.f32 %v6203_v36, %v2236_v29  ;;  %v2584_v29 = vld [vmem:[%s8184_s9 + $0x50] sm:$0xff] }
 0x2f7   : > { %2688 = vmatpush.msra.mxu2 %v2250_v50  ;;  %2847 = vmatpush.msrb.mxu1 %v2251_v38  ;;  %v2579_v38 = vld [vmem:[%s8184_s9 + $0x28] sm:$0xff] }
 0x2f8   : > { %2330 = vrot.lane.b32.xlu1 %v6061_v31, %s8198_s24  ;;  %2332 = vrot.lane.b32.xlu2 %v6051_v33, %s8198_s24 }
 0x2f9   : > { %2322 = vrot.lane.b32.xlu0 %v6049_v27, %s8198_s24  ;;  %2689 = vmatpush.msra.mxu2 %v2248_v20 }
 0x2fa   : > { %2848 = vmatpush.msrb.mxu1 %v2249_v2  ;;  %v2187_v63 = vpop.permute.xlu1 %2186  ;;  %v2133_v54 = vpop.permute.xlu2 %2132 }
 0x2fb   : > { %v2179_v28 = vpop.permute.xlu0 %2178 }
 0x2fc   : > { %v2196_v18 = vsel %vm2188_vm7, %v2187_v63, %v2179_v28  ;;  %v2192_v45 = vsel %vm2188_vm7, %v2179_v28, %v2187_v63 }
 0x2fd   : > { %v2208_v47 = vmul.f32 %v6251_v26, %v2196_v18  ;;  %v2209_v42 = vmul.f32 %v6253_v30, %v2192_v45 }
 0x2ff   : > { %2690 = vmatpush.msra.mxu2 %v2208_v47  ;;  %2849 = vmatpush.msrb.mxu1 %v2209_v42  ;;  %v2583_v47 = vld [vmem:[%s8184_s9 + $0x48] sm:$0xff]  ;;  %v2574_v42 = vld [vmem:[%s8184_s9] sm:$0xff] }
 0x300   : > { %2318 = vrot.lane.b32.xlu1 %v6071_v4, %s8198_s24  ;;  %2320 = vrot.lane.b32.xlu2 %v6063_v0, %s8198_s24 }
 0x301   : > { %2328 = vrot.lane.b32.xlu0 %v6059_v11, %s8198_s24 }
 0x302   : > { %v2175_v8 = vpop.permute.xlu1 %2174  ;;  %v2139_v51 = vpop.permute.xlu2 %2138 }
 0x303   : > { %v2185_v59 = vpop.permute.xlu0 %2184  ;;  %v2194_v9 = vsel %vm2188_vm7, %v2183_v40, %v2175_v8  ;;  %v2190_v5 = vsel %vm2188_vm7, %v2175_v8, %v2183_v40  ;;  %v2578_v8 = vld [vmem:[%s8184_s9 + $0x20] sm:$0xff] }
 0x304   : > { %v2195_v57 = vsel %vm2188_vm7, %v2185_v59, %v2177_v23  ;;  %v2191_v19 = vsel %vm2188_vm7, %v2177_v23, %v2185_v59  ;;  %v2204_v10 = vmul.f32 %v6251_v26, %v2194_v9  ;;  %v2205_v22 = vmul.f32 %v6253_v30, %v2190_v5 }
 0x305   : > { %v2206_v53 = vmul.f32 %v6251_v26, %v2195_v57  ;;  %v2207_v44 = vmul.f32 %v6253_v30, %v2191_v19  ;;  %v6308_v23 = vperm.slane %v2067_v24, 0 }
 0x307   : > { %2691 = vmatpush.msra.mxu2 %v2206_v53  ;;  %2850 = vmatpush.msrb.mxu1 %v2207_v44  ;;  %8305 = vst [vmem:[#allocation19_spill] sm:$0xff] %v6308_v23 }
 0x308   : > { %2623 = vperm.xlu1 %4883, %v2581_v48   ;;  %2326 = vrot.lane.b32.xlu2 %v6073_v1, %s8198_s24 }
 0x309   : > { %2603 = vperm.xlu0 %4882, %v2577_v39   ;;  %2692 = vmatpush.msra.mxu2 %v2204_v10 }
 0x30a   : > { %2851 = vmatpush.msrb.mxu1 %v2205_v22  ;;  %v2181_v60 = vpop.permute.xlu1 %2180  ;;  %v6287_v61 = vpop.permute.xlu2 %2462  ;;  %v2082_v22 = vld [vmem:[%s8183_s8] sm:$0xff] }
 0x30b   : > { %v2173_v35 = vpop.permute.xlu0 %2172 }
 0x30c   : > { %v2193_v16 = vsel %vm2188_vm7, %v2181_v60, %v2173_v35  ;;  %v2189_v7 = vsel %vm2188_vm7, %v2173_v35, %v2181_v60 }
 0x30d   : > { %v2202_v17 = vmul.f32 %v6251_v26, %v2193_v16  ;;  %v2203_v52 = vmul.f32 %v6253_v30, %v2189_v7  ;;  %v2582_v7 = vld [vmem:[%s8184_s9 + $0x40] sm:$0xff] }
 0x30f   : > { %2693 = vmatpush.msra.mxu2 %v2202_v17  ;;  %2852 = vmatpush.msrb.mxu1 %v2203_v52 }
 0x310   : > { %2643 = vperm.xlu1 %4883, %v2585_v46   ;;  %2598 = vperm.xlu2 %4884, %v2576_v41  }
 0x311   : > { %2618 = vperm.xlu0 %4882, %v2580_v15  }
 0x312   : > { %v2131_v12 = vpop.permute.xlu1 %2130  ;;  %v2135_v56 = vpop.permute.xlu2 %2134 }
 0x313   : > { %v2141_v62 = vpop.permute.xlu0 %2140  ;;  %v2149_v40 = vsel %vm2142_vm8, %v2139_v51, %v2131_v12  ;;  %v2145_v50 = vsel %vm2142_vm8, %v2131_v12, %v2139_v51  ;;  %v4772_v51 = vld [vmem:[%s8180_s5 + $0x10] ss:$8 sm:$0x3] }
 0x314   : > { %v2150_v43 = vsel %vm2142_vm8, %v2141_v62, %v2133_v54  ;;  %v2146_v25 = vsel %vm2142_vm8, %v2133_v54, %v2141_v62  ;;  %v2160_v49 = vmul.f32 %v6308_v23, %v2149_v40  ;;  %v2161_v13 = vmul.f32 %v6310_v58, %v2145_v50  ;;  %v2085_v12 = vld [vmem:[%s8183_s8 + $0x18] sm:$0xff]  ;;  %v4771_v50 = vld [vmem:[%s8180_s5 + $0x7] ss:$8 sm:$0x3] }
 0x315   : > { %v2162_v6 = vmul.f32 %v6308_v23, %v2150_v43  ;;  %v2163_v55 = vmul.f32 %v6310_v58, %v2146_v25  ;;  %v6352_v59 = vperm.slane %v4772_v51, 0  ;;  %v6354_v57 = vperm.slane %v4772_v51, 1  ;;  %v6427_v51 = vld [vmem:[%s8183_s8 + $0x28] sm:$0xff] }
 0x317   : > { %2694 = vmatpush.msra.mxu2 %v2162_v6  ;;  %2853 = vmatpush.msrb.mxu1 %v2163_v55  ;;  %8307 = vst [vmem:[#allocation21_spill] sm:$0xff] %v6352_v59 }
 0x318   : > { %2638 = vperm.xlu1 %4883, %v2584_v29   ;;  %2593 = vperm.xlu2 %4884, %v2575_v32   ;;  %8308 = vst [vmem:[#allocation22_spill] sm:$0xff] %v6354_v57  ;;  %v2088_v32 = vld [vmem:[%s8183_s8 + $0x30] sm:$0xff] }
 0x319   : > { %2613 = vperm.xlu0 %4882, %v2579_v38   ;;  %2695 = vmatpush.msra.mxu2 %v2160_v49 }
 0x31a   : > { %2854 = vmatpush.msrb.mxu1 %v2161_v13  ;;  %v2137_v20 = vpop.permute.xlu1 %2136  ;;  %v2459_v2 = vpop.permute.xlu2 %2458 }
 0x31b   : > { %v2129_v63 = vpop.permute.xlu0 %2128 }
 0x31c   : > { %v2148_v54 = vsel %vm2142_vm8, %v2137_v20, %v2129_v63  ;;  %v2144_v28 = vsel %vm2142_vm8, %v2129_v63, %v2137_v20  ;;  %v6406_v20 = vld [vmem:[%s8183_s8 + $0x10] sm:$0xff]  ;;  %v6411_v63 = vperm.slane %v4771_v50, 0 }
 0x31d   : > { %v2158_v18 = vmul.f32 %v6308_v23, %v2148_v54  ;;  %v2159_v45 = vmul.f32 %v6310_v58, %v2144_v28 }
 0x31e   : > { %8310 = vst [vmem:[#allocation24_spill] sm:$0xff] %v6411_v63 }
 0x31f   : > { %2696 = vmatpush.msra.mxu2 %v2158_v18  ;;  %2855 = vmatpush.msrb.mxu1 %v2159_v45 }
 0x320   : > { %2633 = vperm.xlu1 %4883, %v2583_v47   ;;  %2588 = vperm.xlu2 %4884, %v2574_v42  }
 0x321   : > { %2608 = vperm.xlu0 %4882, %v2578_v8   ;;  %v2091_v8 = vld [vmem:[%s8183_s8 + $0x48] sm:$0xff] }
 0x322   : > { %v2127_v19 = vpop.permute.xlu1 %2126  ;;  %v2465_v9 = vpop.permute.xlu2 %2464 }
 0x323   : > { %v2471_v53 = vpop.permute.xlu0 %2470  ;;  %v2147_v44 = vsel %vm2142_vm8, %v2135_v56, %v2127_v19  ;;  %v2143_v48 = vsel %vm2142_vm8, %v2127_v19, %v2135_v56 }
 0x324   : > { %v2156_v5 = vmul.f32 %v6308_v23, %v2147_v44  ;;  %v2476_v39 = vsel %vm2472_vm9, %v6287_v61, %v2471_v53  ;;  %v2157_v10 = vmul.f32 %v6310_v58, %v2143_v48  ;;  %v2480_v60 = vsel %vm2472_vm9, %v2471_v53, %v6287_v61 }
 0x325   : > { %v2492_v35 = vmul.f32 %v6352_v59, %v2476_v39  ;;  %v2493_v16 = vmul.f32 %v6354_v57, %v2480_v60  ;;  %v2094_v60 = vld [vmem:[%s8183_s8 + $0x60] sm:$0xff] }
 0x326   : > { %2697 = vmatpush.msra.mxu2 %v2156_v5  ;;  %2856 = vmatpush.msrb.mxu1 %v2157_v10 }
 0x327   : > { %2800 = vmatpush.msrb.mxu0 %v2492_v35  ;;  %2698 = vmatmul.f32.vlgmr.msra.gmra.mxu2 %v2082_v22 }
 0x328   : > { %2857 = vmatmul.f32.vlgmr.msrb.gmra.mxu1 %v2082_v22  ;;  %2959 = vmatpush.msrb.mxu2 %v2493_v16 }
 0x329   : > { %2628 = vperm.xlu2 %4884, %v2582_v7   ;;  %v6449_v7 = vld [vmem:[%s8183_s8 + $0x40] sm:$0xff] }
 0x32a   : > { %v2469_v17 = vpop.permute.xlu1 %2468  ;;  %v2415_v41 = vpop.permute.xlu2 %2414 }
 0x32b   : > { %v2461_v52 = vpop.permute.xlu0 %2460 }
 0x32c   : > { %v2475_v61 = vsel %vm2472_vm9, %v2461_v52, %v2469_v17  ;;  %v2479_v46 = vsel %vm2472_vm9, %v2469_v17, %v2461_v52 }
 0x32d   : > { %v2490_v15 = vmul.f32 %v6352_v59, %v2475_v61  ;;  %v2491_v24 = vmul.f32 %v6354_v57, %v2479_v46 }
 0x32f   : > { %2801 = vmatpush.msrb.mxu0 %v2490_v15  ;;  %2960 = vmatpush.msrb.mxu2 %v2491_v24 }
 0x330   : > { %2701 = vmatmul.f32.gmra.mxu2 %v2085_v12  ;;  %2860 = vmatmul.f32.gmra.mxu1 %v2085_v12  ;;  %v2097_v12 = vld [vmem:[%s8183_s8 + $0x78] sm:$0xff] }
 0x332   : > { %v2457_v56 = vpop.permute.xlu1 %2456  ;;  %v2421_v38 = vpop.permute.xlu2 %2420 }
 0x333   : > { %v2467_v62 = vpop.permute.xlu0 %2466  ;;  %v2473_v40 = vsel %vm2472_vm9, %v2457_v56, %v2465_v9  ;;  %v2477_v6 = vsel %vm2472_vm9, %v2465_v9, %v2457_v56  ;;  %v4770_v56 = vld [vmem:[%s8180_s5 + $0x6] ss:$8 sm:$0x3] }
 0x334   : > { %v2474_v43 = vsel %vm2472_vm9, %v2459_v2, %v2467_v62  ;;  %v2478_v25 = vsel %vm2472_vm9, %v2467_v62, %v2459_v2  ;;  %v2486_v49 = vmul.f32 %v6352_v59, %v2473_v40  ;;  %v2487_v13 = vmul.f32 %v6354_v57, %v2477_v6  ;;  %v6468_v62 = vld [vmem:[%s8183_s8 + $0x58] sm:$0xff] }
 0x335   : > { %v2488_v55 = vmul.f32 %v6352_v59, %v2474_v43  ;;  %v2489_v29 = vmul.f32 %v6354_v57, %v2478_v25  ;;  %v6409_v2 = vperm.slane %v4771_v50, 1  ;;  %v6471_v43 = vperm.slane %v4770_v56, 0 }
 0x336   : > { %v6473_v25 = vperm.slane %v4770_v56, 1  ;;  %v6541_v56 = vld [vmem:[%s8183_s8 + $0xa0] sm:$0xff] }
 0x337   : > { %2802 = vmatpush.msrb.mxu0 %v2488_v55  ;;  %2961 = vmatpush.msrb.mxu2 %v2489_v29  ;;  %8309 = vst [vmem:[#allocation23_spill] sm:$0xff] %v6409_v2 }
 0x338   : > { %2704 = vmatmul.f32.gmra.mxu2 %v2088_v32  ;;  %2863 = vmatmul.f32.gmra.mxu1 %v2088_v32  ;;  %8311 = vst [vmem:[#allocation25_spill] sm:$0xff] %v6471_v43 }
 0x339   : > { %2803 = vmatpush.msrb.mxu0 %v2486_v49  ;;  %2962 = vmatpush.msrb.mxu2 %v2487_v13  ;;  %8312 = vst [vmem:[#allocation26_spill] sm:$0xff] %v6473_v25 }
 0x33a   : > { %4773 = vmatmul.msk.f32.vlgmr.msrb.gmra.mxu0 %vm557_vm0, %v6406_v20  ;;  %v2425_v54 = vpop.permute.xlu1 %2424  ;;  %v2371_v19 = vpop.permute.xlu2 %2370 }
 0x33b   : > { %v2417_v28 = vpop.permute.xlu0 %2416 }
 0x33c   : > { %v2434_v18 = vsel %vm2426_vm10, %v2425_v54, %v2417_v28  ;;  %v2430_v45 = vsel %vm2426_vm10, %v2417_v28, %v2425_v54  ;;  %v2100_v54 = vld [vmem:[%s8183_s8 + $0x90] sm:$0xff] }
 0x33d   : > { %v2447_v47 = vmul.f32 %v6409_v2, %v2434_v18  ;;  %v2446_v42 = vmul.f32 %v6411_v63, %v2430_v45  ;;  %v6495_v45 = vld [vmem:[%s8183_s8 + $0x70] sm:$0xff] }
 0x33f   : > { %2735 = vmatpush.msra.mxu3 %v2446_v42  ;;  %2894 = vmatpush.msra.mxu0 %v2447_v47 }
 0x340   : > { %2707 = vmatmul.f32.gmra.mxu2 %v2091_v8  ;;  %2866 = vmatmul.f32.gmra.mxu1 %v2091_v8 }
 0x342   : > { %4774 = vmatmul.msk.f32.gmra.mxu0 %vm557_vm0, %v6427_v51  ;;  %v2413_v9 = vpop.permute.xlu1 %2412  ;;  %v2377_v52 = vpop.permute.xlu2 %2376 }
 0x343   : > { %v2423_v53 = vpop.permute.xlu0 %2422  ;;  %v2432_v44 = vsel %vm2426_vm10, %v2421_v38, %v2413_v9  ;;  %v2428_v39 = vsel %vm2426_vm10, %v2413_v9, %v2421_v38 }
 0x344   : > { %v2433_v48 = vsel %vm2426_vm10, %v2423_v53, %v2415_v41  ;;  %v2429_v5 = vsel %vm2426_vm10, %v2415_v41, %v2423_v53  ;;  %v2442_v35 = vmul.f32 %v6411_v63, %v2428_v39  ;;  %v2443_v16 = vmul.f32 %v6409_v2, %v2432_v44  ;;  %v2103_v44 = vld [vmem:[%s8183_s8 + $0xa8] sm:$0xff] }
 0x345   : > { %v2444_v10 = vmul.f32 %v6411_v63, %v2429_v5  ;;  %v2445_v22 = vmul.f32 %v6409_v2, %v2433_v48  ;;  %v6511_v5 = vld [vmem:[%s8183_s8 + $0x88] sm:$0xff] }
 0x346   : > { %v4769_v39 = vld [vmem:[%s8180_s5 + $0x5] ss:$8 sm:$0x3] }
 0x347   : > { %2736 = vmatpush.msra.mxu3 %v2444_v10  ;;  %2895 = vmatpush.msra.mxu0 %v2445_v22 }
 0x348   : > { %2710 = vmatmul.f32.gmra.mxu2 %v2094_v60  ;;  %2869 = vmatmul.f32.gmra.mxu1 %v2094_v60  ;;  %v6519_v60 = vperm.slane %v4769_v39, 0 }
 0x349   : > { %2737 = vmatpush.msra.mxu3 %v2442_v35  ;;  %2896 = vmatpush.msra.mxu0 %v2443_v16  ;;  %v6521_v35 = vperm.slane %v4769_v39, 1 }
 0x34a   : > { %4775 = vmatmul.msk.f32.gmra.mxu0 %vm557_vm0, %v6449_v7  ;;  %v2419_v17 = vpop.permute.xlu1 %2418  ;;  %v2365_v38 = vpop.permute.xlu2 %2364  ;;  %8313 = vst [vmem:[#allocation27_spill] sm:$0xff] %v6519_v60 }
 0x34b   : > { %v2411_v61 = vpop.permute.xlu0 %2410  ;;  %8314 = vst [vmem:[#allocation28_spill] sm:$0xff] %v6521_v35 }
 0x34c   : > { %v2431_v46 = vsel %vm2426_vm10, %v2419_v17, %v2411_v61  ;;  %v2427_v41 = vsel %vm2426_vm10, %v2411_v61, %v2419_v17 }
 0x34d   : > { %v2440_v15 = vmul.f32 %v6411_v63, %v2427_v41  ;;  %v2441_v24 = vmul.f32 %v6409_v2, %v2431_v46 }
 0x34f   : > { %2738 = vmatpush.msra.mxu3 %v2440_v15  ;;  %2897 = vmatpush.msra.mxu0 %v2441_v24  ;;  %v2106_v15 = vld [vmem:[%s8183_s8 + $0xc0] sm:$0xff] }
 0x350   : > { %2713 = vmatmul.f32.gmra.mxu2 %v2097_v12  ;;  %2872 = vmatmul.f32.gmra.mxu1 %v2097_v12 }
 0x352   : > { %4776 = vmatmul.msk.f32.gmra.mxu0 %vm557_vm0, %v6468_v62  ;;  %v2369_v40 = vpop.permute.xlu1 %2368  ;;  %v2333_v48 = vpop.permute.xlu2 %2332 }
 0x353   : > { %v2379_v6 = vpop.permute.xlu0 %2378  ;;  %v2387_v55 = vsel %vm2380_vm11, %v2377_v52, %v2369_v40  ;;  %v2383_v50 = vsel %vm2380_vm11, %v2369_v40, %v2377_v52 }
 0x354   : > { %v2388_v29 = vsel %vm2380_vm11, %v2379_v6, %v2371_v19  ;;  %v2384_v32 = vsel %vm2380_vm11, %v2371_v19, %v2379_v6  ;;  %v2398_v28 = vmul.f32 %v6471_v43, %v2383_v50  ;;  %v2399_v18 = vmul.f32 %v6473_v25, %v2387_v55 }
 0x355   : > { %v2400_v49 = vmul.f32 %v6471_v43, %v2384_v32  ;;  %v2401_v13 = vmul.f32 %v6473_v25, %v2388_v29 }
 0x357   : > { %2739 = vmatpush.msra.mxu3 %v2400_v49  ;;  %2898 = vmatpush.msra.mxu0 %v2401_v13  ;;  %v2109_v49 = vld [vmem:[%s8183_s8 + $0xd8] sm:$0xff] }
 0x358   : > { %2716 = vmatmul.f32.gmra.mxu2 %v2100_v54  ;;  %2875 = vmatmul.f32.gmra.mxu1 %v2100_v54  ;;  %v6557_v13 = vld [vmem:[%s8183_s8 + $0xb8] sm:$0xff] }
 0x359   : > { %2740 = vmatpush.msra.mxu3 %v2398_v28  ;;  %2899 = vmatpush.msra.mxu0 %v2399_v18 }
 0x35a   : > { %4777 = vmatmul.msk.f32.gmra.mxu0 %vm557_vm0, %v6495_v45  ;;  %v2375_v47 = vpop.permute.xlu1 %2374  ;;  %v2321_v40 = vpop.permute.xlu2 %2320 }
 0x35b   : > { %v2367_v42 = vpop.permute.xlu0 %2366 }
 0x35c   : > { %v2386_v8 = vsel %vm2380_vm11, %v2375_v47, %v2367_v42  ;;  %v2382_v19 = vsel %vm2380_vm11, %v2367_v42, %v2375_v47 }
 0x35d   : > { %v2396_v9 = vmul.f32 %v6471_v43, %v2382_v19  ;;  %v2397_v53 = vmul.f32 %v6473_v25, %v2386_v8 }
 0x35f   : > { %2741 = vmatpush.msra.mxu3 %v2396_v9  ;;  %2900 = vmatpush.msra.mxu0 %v2397_v53 }
 0x360   : > { %2719 = vmatmul.f32.gmra.mxu2 %v2103_v44  ;;  %2878 = vmatmul.f32.gmra.mxu1 %v2103_v44  ;;  %v2112_v44 = vld [vmem:[%s8183_s8 + $0xf0] sm:$0xff] }
 0x362   : > { %4778 = vmatmul.msk.f32.gmra.mxu0 %vm557_vm0, %v6511_v5  ;;  %v2325_v10 = vpop.permute.xlu1 %2324  ;;  %v2327_v28 = vpop.permute.xlu2 %2326 }
 0x363   : > { %v2373_v22 = vpop.permute.xlu0 %2372  ;;  %v2342_v16 = vsel %vm2334_vm12, %v2333_v48, %v2325_v10  ;;  %v2338_v61 = vsel %vm2334_vm12, %v2325_v10, %v2333_v48  ;;  %v2108_v10 = vld [vmem:[%s8183_s8 + $0xd0] sm:$0xff] }
 0x364   : > { %v2385_v17 = vsel %vm2380_vm11, %v2373_v22, %v2365_v38  ;;  %v2381_v52 = vsel %vm2380_vm11, %v2365_v38, %v2373_v22  ;;  %v2354_v24 = vmul.f32 %v6519_v60, %v2338_v61  ;;  %v2355_v12 = vmul.f32 %v6521_v35, %v2342_v16  ;;  %v2115_v22 = vld [vmem:[%s8183_s8 + $0x108] sm:$0xff]  ;;  %v2114_v61 = vld [vmem:[%s8183_s8 + $0x100] sm:$0xff] }
 0x365   : > { %v2394_v46 = vmul.f32 %v6471_v43, %v2381_v52  ;;  %v2395_v41 = vmul.f32 %v6473_v25, %v2385_v17  ;;  %v2083_v16 = vld [vmem:[%s8183_s8 + $0x8] sm:$0xff]  ;;  %v2086_v52 = vld [vmem:[%s8183_s8 + $0x20] sm:$0xff] }
 0x366   : > { %v2111_v17 = vld [vmem:[%s8183_s8 + $0xe8] sm:$0xff] }
 0x367   : > { %2742 = vmatpush.msra.mxu3 %v2394_v46  ;;  %2901 = vmatpush.msra.mxu0 %v2395_v41  ;;  %v2089_v46 = vld [vmem:[%s8183_s8 + $0x38] sm:$0xff] }
 0x368   : > { %2722 = vmatmul.f32.gmra.mxu2 %v2106_v15  ;;  %2881 = vmatmul.f32.gmra.mxu1 %v2106_v15  ;;  %v2117_v41 = vld [vmem:[%s8183_s8 + $0x118] sm:$0xff]  ;;  %v2095_v15 = vld [vmem:[%s8183_s8 + $0x68] sm:$0xff] }
 0x369   : > { %2743 = vmatpush.msra.mxu3 %v2354_v24  ;;  %2902 = vmatpush.msra.mxu0 %v2355_v12  ;;  %v2104_v12 = vld [vmem:[%s8183_s8 + $0xb0] sm:$0xff] }
 0x36a   : > { %4779 = vmatmul.msk.f32.gmra.mxu0 %vm557_vm0, %v6541_v56  ;;  %v2331_v6 = vpop.permute.xlu1 %2330 }
 0x36b   : > { %v2323_v55 = vpop.permute.xlu0 %2322 }
 0x36c   : > { %v2341_v29 = vsel %vm2334_vm12, %v2331_v6, %v2323_v55  ;;  %v2337_v32 = vsel %vm2334_vm12, %v2323_v55, %v2331_v6 }
 0x36d   : > { %v2352_v50 = vmul.f32 %v6519_v60, %v2337_v32  ;;  %v2353_v38 = vmul.f32 %v6521_v35, %v2341_v29 }
 0x36f   : > { %2744 = vmatpush.msra.mxu3 %v2352_v50  ;;  %2903 = vmatpush.msra.mxu0 %v2353_v38  ;;  %v2113_v50 = vld [vmem:[%s8183_s8 + $0xf8] sm:$0xff] }
 0x370   : > { %2725 = vmatmul.f32.gmra.mxu2 %v2109_v49  ;;  %2884 = vmatmul.f32.gmra.mxu1 %v2109_v49  ;;  %v2116_v49 = vld [vmem:[%s8183_s8 + $0x110] sm:$0xff] }
 0x372   : > { %4780 = vmatmul.msk.f32.gmra.mxu0 %vm557_vm0, %v6557_v13  ;;  %v2319_v54 = vpop.permute.xlu1 %2318 }
 0x373   : > { %v2329_v18 = vpop.permute.xlu0 %2328  ;;  %v2339_v47 = vsel %vm2334_vm12, %v2327_v28, %v2319_v54  ;;  %v2335_v19 = vsel %vm2334_vm12, %v2319_v54, %v2327_v28 }
 0x374   : > { %v2340_v42 = vsel %vm2334_vm12, %v2329_v18, %v2321_v40  ;;  %v2336_v8 = vsel %vm2334_vm12, %v2321_v40, %v2329_v18  ;;  %v2348_v48 = vmul.f32 %v6519_v60, %v2335_v19  ;;  %v2349_v39 = vmul.f32 %v6521_v35, %v2339_v47 }
 0x375   : > { %v2350_v9 = vmul.f32 %v6519_v60, %v2336_v8  ;;  %v2351_v53 = vmul.f32 %v6521_v35, %v2340_v42 }
 0x377   : > { %2745 = vmatpush.msra.mxu3 %v2350_v9  ;;  %2904 = vmatpush.msra.mxu0 %v2351_v53 }
 0x378   : > { %2728 = vmatmul.f32.gmra.mxu2 %v2112_v44  ;;  %2887 = vmatmul.f32.gmra.mxu1 %v2112_v44 }
 0x379   : > { %2746 = vmatpush.msra.mxu3 %v2348_v48  ;;  %2905 = vmatpush.msra.mxu0 %v2349_v39 }
 0x37a   : > { %4781 = vmatmul.msk.f32.gmra.mxu0 %vm557_vm0, %v2108_v10 }
 0x37b   : > { %2747 = vmatpush.msra.mxu3 %v6047_v34  ;;  %2906 = vmatpush.msra.mxu0 %v6051_v33 }
 0x37d   : > { %2748 = vmatpush.msra.mxu3 %v6049_v27  ;;  %2907 = vmatpush.msra.mxu0 %v6061_v31 }
 0x37f   : > { %2749 = vmatpush.msra.mxu3 %v6063_v0  ;;  %2908 = vmatpush.msra.mxu0 %v6059_v11 }
 0x380   : > { %2731 = vmatmul.f32.gmra.mxu2 %v2115_v22  ;;  %2890 = vmatmul.f32.gmra.mxu1 %v2115_v22 }
 0x381   : > { %2750 = vmatpush.msra.mxu3 %v6071_v4  ;;  %2909 = vmatpush.msra.mxu0 %v6073_v1 }
 0x382   : > { %2751 = vmatmul.f32.vlgmr.msra.gmra.mxu3 %v2083_v16  ;;  %4782 = vmatmul.msk.f32.gmra.mxu0 %vm557_vm0, %v2111_v17 }
 0x388   : > { %4785 = vmatmul.msk.f32.vlgmr.msrb.gmra.mxu2 %vm557_vm0, %v6406_v20  ;;  %v2092_v20 = vld [vmem:[%s8183_s8 + $0x50] sm:$0xff] }
 0x38a   : > { %2754 = vmatmul.f32.gmra.mxu3 %v2086_v52  ;;  %4783 = vmatmul.msk.f32.gmra.mxu0 %vm557_vm0, %v2114_v61 }
 0x390   : > { %4786 = vmatmul.msk.f32.gmra.mxu2 %vm557_vm0, %v6427_v51  ;;  %v2098_v51 = vld [vmem:[%s8183_s8 + $0x80] sm:$0xff] }
 0x392   : > { %2757 = vmatmul.f32.gmra.mxu3 %v2089_v46  ;;  %4784 = vmatmul.msk.f32.gmra.mxu0 %vm557_vm0, %v2117_v41 }
 0x398   : > { %4787 = vmatmul.msk.f32.gmra.mxu2 %vm557_vm0, %v6449_v7  ;;  %v2101_v7 = vld [vmem:[%s8183_s8 + $0x98] sm:$0xff] }
 0x39a   : > { %2760 = vmatmul.f32.gmra.mxu3 %v2092_v20  ;;  %2910 = vmatmul.f32.vlgmr.msra.gmra.mxu0 %v2083_v16 }
 0x3a0   : > { %4788 = vmatmul.msk.f32.gmra.mxu2 %vm557_vm0, %v6468_v62 }
 0x3a2   : > { %2763 = vmatmul.f32.gmra.mxu3 %v2095_v15  ;;  %2913 = vmatmul.f32.gmra.mxu0 %v2086_v52  ;;  %v6695_v52 = vpop.permute.xlu0 %2603 }
 0x3a8   : > { %4789 = vmatmul.msk.f32.gmra.mxu2 %vm557_vm0, %v6495_v45 }
 0x3aa   : > { %2766 = vmatmul.f32.gmra.mxu3 %v2098_v51  ;;  %2916 = vmatmul.f32.gmra.mxu0 %v2089_v46  ;;  %v6634_v24 = vpop.f32.mrf.mxu2 }
 0x3b0   : > { %4790 = vmatmul.msk.f32.gmra.mxu2 %vm557_vm0, %v6511_v5  ;;  %v2107_v5 = vld [vmem:[%s8183_s8 + $0xc8] sm:$0xff] }
 0x3b2   : > { %2769 = vmatmul.f32.gmra.mxu3 %v2101_v7  ;;  %2919 = vmatmul.f32.gmra.mxu0 %v2092_v20 }
 0x3b3   : > { %v6645_v45 = vpop.f32.mrf.mxu2 }
 0x3b7   : > { %v6638_v62 = vpop.f32.mrf.mxu0 }
 0x3b8   : > { %4791 = vmatmul.msk.f32.gmra.mxu2 %vm557_vm0, %v6541_v56  ;;  %v2110_v56 = vld [vmem:[%s8183_s8 + $0xe0] sm:$0xff] }
 0x3ba   : > { %2772 = vmatmul.f32.gmra.mxu3 %v2104_v12  ;;  %2922 = vmatmul.f32.gmra.mxu0 %v2095_v15  ;;  %v6705_v15 = vpop.permute.xlu2 %2598 }
 0x3bb   : > { %v6654_v6 = vpop.f32.mrf.mxu2 }
 0x3bf   : > { %v6647_v40 = vpop.f32.mrf.mxu0 }
 0x3c0   : > { %4792 = vmatmul.msk.f32.gmra.mxu2 %vm557_vm0, %v6557_v13 }
 0x3c2   : > { %2775 = vmatmul.f32.gmra.mxu3 %v2107_v5  ;;  %2925 = vmatmul.f32.gmra.mxu0 %v2098_v51  ;;  %v6707_v51 = vpop.permute.xlu0 %2618  ;;  %v6717_v33 = vpop.permute.xlu2 %2593 }
 0x3c3   : > { %v6662_v29 = vpop.f32.mrf.mxu2 }
 0x3c7   : > { %v6656_v55 = vpop.f32.mrf.mxu0 }
 0x3c8   : > { %4793 = vmatmul.msk.f32.gmra.mxu2 %vm557_vm0, %v2108_v10 }
 0x3ca   : > { %2778 = vmatmul.f32.gmra.mxu3 %v2110_v56  ;;  %2928 = vmatmul.f32.gmra.mxu0 %v2101_v7  ;;  %v6719_v11 = vpop.permute.xlu0 %2613  ;;  %v6729_v4 = vpop.permute.xlu2 %2588 }
 0x3cb   : > { %v2711_v13 = vpop.f32.mrf.mxu2  ;;  %v2700_v59 = vadd.f32 %v6634_v24, %v6729_v4  ;;  %v2703_v24 = vadd.f32 %v6645_v45, %v6717_v33 }
 0x3cf   : > { %v6664_v32 = vpop.f32.mrf.mxu0 }
 0x3d0   : > { %4794 = vmatmul.msk.f32.gmra.mxu2 %vm557_vm0, %v2111_v17 }
 0x3d2   : > { %2781 = vmatmul.f32.gmra.mxu3 %v2113_v50  ;;  %2931 = vmatmul.f32.gmra.mxu0 %v2104_v12  ;;  %v6731_v58 = vpop.permute.xlu0 %2608  ;;  %v6748_v14 = vpop.permute.xlu2 %2628 }
 0x3d3   : > { %v2714_v28 = vpop.f32.mrf.mxu2  ;;  %v2712_v30 = vadd.f32 %v2711_v13, %v6731_v58 }
 0x3d4   : > { %v2715_v43 = vadd.f32 %v2714_v28, %v6719_v11 }
 0x3d7   : > { %v2817_v38 = vpop.f32.mrf.mxu0 }
 0x3d8   : > { %4795 = vmatmul.msk.f32.gmra.mxu2 %vm557_vm0, %v2114_v61 }
 0x3da   : > { %2784 = vmatmul.f32.gmra.mxu3 %v2116_v49  ;;  %2934 = vmatmul.f32.gmra.mxu0 %v2107_v5 }
 0x3db   : > { %v6679_v47 = vpop.f32.mrf.mxu2 }
 0x3df   : > { %v6674_v54 = vpop.f32.mrf.mxu0 }
 0x3e0   : > { %4796 = vmatmul.msk.f32.gmra.mxu2 %vm557_vm0, %v2117_v41  ;;  %v6701_v41 = vpop.f32.mrf.mxu1 }
 0x3e2   : > { %2937 = vmatmul.f32.gmra.mxu0 %v2110_v56 }
 0x3e3   : > { %v6683_v8 = vpop.f32.mrf.mxu2 }
 0x3e7   : > { %v6677_v18 = vpop.f32.mrf.mxu0 }
 0x3e8   : > { %v6711_v5 = vpop.f32.mrf.mxu1 }
 0x3ea   : > { %2940 = vmatmul.f32.gmra.mxu0 %v2113_v50  ;;  %v6715_v50 = vpop.permute.xlu1 %2623 }
 0x3eb   : > { %v2723_v9 = vpop.f32.mrf.mxu2 }
 0x3ef   : > { %v6681_v42 = vpop.f32.mrf.mxu0 }
 0x3f0   : > { %v6723_v31 = vpop.f32.mrf.mxu1 }
 0x3f2   : > { %2943 = vmatmul.f32.gmra.mxu0 %v2116_v49  ;;  %v6727_v0 = vpop.permute.xlu1 %2643 }
 0x3f3   : > { %v2726_v48 = vpop.f32.mrf.mxu2 }
 0x3f7   : > { %v2829_v19 = vpop.f32.mrf.mxu0 }
 0x3f8   : > { %v6740_v23 = vpop.f32.mrf.mxu1 }
 0x3fa   : > { %v6744_v25 = vpop.permute.xlu1 %2638 }
 0x3fb   : > { %v6689_v22 = vpop.f32.mrf.mxu2 }
 0x3ff   : > { %v6685_v53 = vpop.f32.mrf.mxu0 }
 0x400   : > { %v6755_v63 = vpop.f32.mrf.mxu1 }
 0x403   : > { %v6699_v46 = vpop.f32.mrf.mxu2 }
 0x405   : > { %v2752_v44 = vpop.f32.mrf.mxu3 }
 0x406   : > { %v2753_v35 = vadd.f32 %v2752_v44, %v2700_v59 }
 0x407   : > { %v6687_v10 = vpop.f32.mrf.mxu0 }
 0x408   : > { %v2806_v13 = vadd.f32 %v6638_v62, %v2753_v35 }
 0x40a   : > { %v3000_v59 = vmax.f32 %v2806_v13, 0.0 }
 0x40b   : > { %v6709_v12 = vpop.f32.mrf.mxu2 }
 0x40c   : > { %v3024_v21 = vmin.f32 %v3000_v59, 6.0  ;;  %v2706_v59 = vadd.f32 %v6654_v6, %v6705_v15 }
 0x40d   : > { %v2755_v39 = vpop.f32.mrf.mxu3 }
 0x40f   : > { %v6693_v17 = vpop.f32.mrf.mxu0 }
 0x413   : > { %v6721_v34 = vpop.f32.mrf.mxu2 }
 0x415   : > { %v6691_v16 = vpop.f32.mrf.mxu3 }
 0x417   : > { %v6703_v20 = vpop.f32.mrf.mxu0 }
 0x41b   : > { %v6734_v57 = vpop.f32.mrf.mxu2 }
 0x41d   : > { %v6697_v61 = vpop.f32.mrf.mxu3 }
 0x41f   : > { %v6713_v56 = vpop.f32.mrf.mxu0 }
 0x423   : > { %v6753_v2 = vpop.f32.mrf.mxu2 }
 0x425   : > { %v2764_v7 = vpop.f32.mrf.mxu3 }
 0x426   : > { %v2765_v36 = vadd.f32 %v2764_v7, %v2712_v30  ;;  %v2724_v30 = vadd.f32 %v2723_v9, %v6748_v14 }
 0x427   : > { %v6725_v27 = vpop.f32.mrf.mxu0 }
 0x428   : > { %v2818_v60 = vadd.f32 %v2817_v38, %v2765_v36  ;;  %v2756_v38 = vadd.f32 %v2755_v39, %v2703_v24 }
 0x42a   : > { %v3008_v7 = vmax.f32 %v2818_v60, 0.0  ;;  %v6761_v60 = vpop.permute.xlu1 %2633 }
 0x42c   : > { %v3032_v28 = vmin.f32 %v3008_v7, 6.0 }
 0x42d   : > { %v2767_v49 = vpop.f32.mrf.mxu3 }
 0x42e   : > { %v2768_v37 = vadd.f32 %v2767_v49, %v2715_v43  ;;  %v2727_v43 = vadd.f32 %v2726_v48, %v6761_v60  ;;  %v3048_v49 = vadd.f32 %v3032_v28, %v3024_v21  ;;  %v6775_v21 = vpop.f32.mrf.mxu1 }
 0x42f   : > { %v6742_v26 = vpop.f32.mrf.mxu0 }
 0x430   : > { %8315 = vst [vmem:[#allocation29_spill] sm:$0xff] %v6742_v26  ;;  %v2821_v35 = vadd.f32 %v6674_v54, %v2768_v37  ;;  %v2809_v26 = vadd.f32 %v6647_v40, %v2756_v38 }
 0x432   : > { %v3010_v13 = vmax.f32 %v2821_v35, 0.0 }
 0x434   : > { %v3034_v54 = vmin.f32 %v3010_v13, 6.0 }
 0x435   : > { %v2770_v1 = vpop.f32.mrf.mxu3 }
 0x437   : > { %v6759_v45 = vpop.f32.mrf.mxu0 }
 0x43d   : > { %v6738_v3 = vpop.f32.mrf.mxu3 }
 0x43f   : > { %v6783_v28 = vpop.f32.mrf.mxu0 }
 0x445   : > { %v2776_v36 = vpop.f32.mrf.mxu3 }
 0x446   : > { %v2777_v44 = vadd.f32 %v2776_v36, %v2724_v30  ;;  %v3002_v30 = vmax.f32 %v2809_v26, 0.0  ;;  %v6764_v36 = vpop.f32.mrf.mxu2  ;;  %v2718_v26 = vadd.f32 %v6679_v47, %v6707_v51 }
 0x448   : > { %v2830_v62 = vadd.f32 %v2829_v19, %v2777_v44  ;;  %v3026_v19 = vmin.f32 %v3002_v30, 6.0  ;;  %v2771_v44 = vadd.f32 %v2770_v1, %v2718_v26  ;;  %v2709_v26 = vadd.f32 %v6662_v29, %v6695_v52 }
 0x44a   : > { %v3016_v9 = vmax.f32 %v2830_v62, 0.0  ;;  %v3050_v38 = vadd.f32 %v3034_v54, %v3026_v19  ;;  %v2824_v47 = vadd.f32 %v6677_v18, %v2771_v44  ;;  %v6801_v18 = vpop.f32.mrf.mxu0  ;;  %v2733_v19 = vadd.f32 %v6699_v46, %v6727_v0 }
 0x44c   : > { %v3040_v39 = vmin.f32 %v3016_v9, 6.0  ;;  %v2759_v9 = vadd.f32 %v6691_v16, %v2706_v59  ;;  %v3012_v16 = vmax.f32 %v2824_v47, 0.0 }
 0x44d   : > { %v2779_v24 = vpop.f32.mrf.mxu3 }
 0x44e   : > { %v6766_v7 = vadd.f32 %v3048_v49, %v3040_v39  ;;  %v2780_v37 = vadd.f32 %v2779_v24, %v2727_v43  ;;  %v6789_v13 = vpop.f32.mrf.mxu2  ;;  %v2812_v1 = vadd.f32 %v6656_v55, %v2759_v9  ;;  %v3036_v30 = vmin.f32 %v3012_v16, 6.0 }
 0x44f   : > { %v2721_v55 = vadd.f32 %v6683_v8, %v6715_v50  ;;  %v2859_v16 = vadd.f32 %v6701_v41, %v6729_v4 }
 0x450   : > { %8316 = vst [vmem:[#allocation30_spill] sm:$0xff] %v6766_v7  ;;  %v2833_v40 = vadd.f32 %v6685_v53, %v2780_v37  ;;  %3128 = vrot.lane.b32.xlu0 %v6766_v7, %s8242_s29  ;;  %3168 = vrot.lane.b32.xlu2 %v6766_v7, %s8248_s28  ;;  %v2730_v53 = vadd.f32 %v6689_v22, %v6744_v25  ;;  %v6799_v22 = vpop.f32.mrf.mxu1  ;;  %v3004_v39 = vmax.f32 %v2812_v1, 0.0 }
 0x451   : > { %3208 = vrot.lane.b32.xlu1 %v6766_v7, %s8246_s27  ;;  %v2774_v59 = vadd.f32 %v6738_v3, %v2721_v55  ;;  %v2912_v55 = vadd.f32 %v6703_v20, %v2859_v16 }
 0x452   : > { %v3018_v48 = vmax.f32 %v2833_v40, 0.0 }
 0x454   : > { %v3042_v35 = vmin.f32 %v3018_v48, 6.0 }
 0x455   : > { %v2782_v62 = vpop.f32.mrf.mxu3 }
 0x456   : > { %v6786_v43 = vadd.f32 %v3050_v38, %v3042_v35  ;;  %v2783_v49 = vadd.f32 %v2782_v62, %v2730_v53  ;;  %v6811_v37 = vpop.f32.mrf.mxu2  ;;  %v2762_v38 = vadd.f32 %v6697_v61, %v2709_v26  ;;  %v2827_v35 = vadd.f32 %v6681_v42, %v2774_v59  ;;  %v6824_v62 = vpop.f32.mrf.mxu0 }
 0x458   : > { %8317 = vst [vmem:[#allocation31_spill] sm:$0xff] %v6786_v43  ;;  %3210 = vrot.lane.b32.xlu0 %v6786_v43, %s8246_s27  ;;  %3296 = vrot.lane.b32.xlu2 %v6766_v7, %s8244_s20  ;;  %v2836_v6 = vadd.f32 %v6687_v10, %v2783_v49  ;;  %v3028_v10 = vmin.f32 %v3004_v39, 6.0  ;;  %v6818_v53 = vpop.f32.mrf.mxu1  ;;  %v2815_v3 = vadd.f32 %v6664_v32, %v2762_v38  ;;  %v3014_v61 = vmax.f32 %v2827_v35, 0.0 }
 0x459   : > { %3336 = vrot.lane.b32.xlu1 %v6766_v7, %s5134_s17  ;;  %v2871_v32 = vadd.f32 %v6755_v63, %v6731_v58  ;;  %v2874_v63 = vadd.f32 %v6775_v21, %v6719_v11 }
 0x45a   : > { %v3020_v24 = vmax.f32 %v2836_v6, 0.0  ;;  %v3052_v48 = vadd.f32 %v3036_v30, %v3028_v10  ;;  %v3006_v9 = vmax.f32 %v2815_v3, 0.0  ;;  %v3038_v47 = vmin.f32 %v3014_v61, 6.0 }
 0x45c   : > { %v3044_v54 = vmin.f32 %v3020_v24, 6.0  ;;  %v2924_v24 = vadd.f32 %v6759_v45, %v2871_v32  ;;  %v2862_v45 = vadd.f32 %v6711_v5, %v6717_v33  ;;  %v2865_v32 = vadd.f32 %v6723_v31, %v6705_v15 }
 0x45d   : > { %v2785_v40 = vpop.f32.mrf.mxu3 }
 0x45e   : > { %v6821_v44 = vadd.f32 %v3052_v48, %v3044_v54  ;;  %v2786_v8 = vadd.f32 %v2785_v40, %v2733_v19  ;;  %v6834_v46 = vpop.f32.mrf.mxu2  ;;  %v2935_v1 = vpop.f32.mrf.mxu0  ;;  %v2977_v26 = vadd.f32 %v6764_v36, %v2924_v24  ;;  %v2927_v19 = vadd.f32 %v6783_v28, %v2874_v63  ;;  %v8323_v63 = vld [vmem:[#allocation29_spill] sm:$0xff] }
 0x45f   : > { %v2915_v38 = vadd.f32 %v6713_v56, %v2862_v45  ;;  %v2918_v16 = vadd.f32 %v6725_v27, %v2865_v32 }
 0x460   : > { %3338 = vrot.lane.b32.xlu0 %v6786_v43, %s5134_s17  ;;  %3130 = vrot.lane.b32.xlu2 %v6786_v43, %s8242_s29  ;;  %8318 = vst [vmem:[#allocation32_spill] sm:$0xff] %v6821_v44  ;;  %v2839_v29 = vadd.f32 %v6693_v17, %v2786_v8  ;;  %v2882_v49 = vpop.f32.mrf.mxu1  ;;  %v3030_v17 = vmin.f32 %v3006_v9, 6.0  ;;  %v3009_v41 = vmax.f32 %v2977_v26, 0.0  ;;  %v2980_v11 = vadd.f32 %v6789_v13, %v2927_v19 }
 0x461   : > { %3170 = vrot.lane.b32.xlu1 %v6786_v43, %s8248_s28  ;;  %v2883_v39 = vadd.f32 %v2882_v49, %v6748_v14  ;;  %v2965_v14 = vadd.f32 %v6709_v12, %v2912_v55  ;;  %v2971_v31 = vadd.f32 %v6734_v57, %v2918_v16  ;;  %v2880_v55 = vadd.f32 %v6818_v53, %v6715_v50 }
 0x462   : > { %v3022_v42 = vmax.f32 %v2839_v29, 0.0  ;;  %v3054_v30 = vadd.f32 %v3038_v47, %v3030_v17  ;;  %v3033_v35 = vmin.f32 %v3009_v41, 6.0  ;;  %v3011_v28 = vmax.f32 %v2980_v11, 0.0 }
 0x463   : > { %v2936_v10 = vadd.f32 %v2935_v1, %v2883_v39  ;;  %v3001_v48 = vmax.f32 %v2965_v14, 0.0  ;;  %v3005_v27 = vmax.f32 %v2971_v31, 0.0  ;;  %v2868_v26 = vadd.f32 %v6740_v23, %v6695_v52 }
 0x464   : > { %v3046_v6 = vmin.f32 %v3022_v42, 6.0  ;;  %v3035_v13 = vmin.f32 %v3011_v28, 6.0 }
 0x465   : > { %v3025_v33 = vmin.f32 %v3001_v48, 6.0  ;;  %v2921_v41 = vadd.f32 %v8323_v63, %v2868_v26  ;;  %v3490_v26 = vld [vmem:[%s8186_s11 + $0x10] sm:$0xff] }
 0x466   : > { %v2988_v54 = vpop.f32.mrf.mxu2  ;;  %v6849_v40 = vadd.f32 %v3054_v30, %v3046_v6  ;;  %v2938_v20 = vpop.f32.mrf.mxu0 }
 0x467   : > { %v2989_v58 = vadd.f32 %v2988_v54, %v2936_v10  ;;  %v3049_v56 = vadd.f32 %v3033_v35, %v3025_v33  ;;  %v3029_v10 = vmin.f32 %v3005_v27, 6.0  ;;  %v3491_v27 = vld [vmem:[%s8186_s11 + $0x18] sm:$0xff] }
 0x468   : > { %3172 = vrot.lane.b32.xlu0 %v6821_v44, %s8248_s28  ;;  %3212 = vrot.lane.b32.xlu2 %v6821_v44, %s8246_s27  ;;  %8319 = vst [vmem:[#allocation33_spill] sm:$0xff] %v6849_v40  ;;  %v2885_v4 = vpop.f32.mrf.mxu1 }
 0x469   : > { %3298 = vrot.lane.b32.xlu1 %v6786_v43, %s8244_s20  ;;  %v2886_v36 = vadd.f32 %v2885_v4, %v6761_v60  ;;  %v3017_v59 = vmax.f32 %v2989_v58, 0.0  ;;  %v2968_v60 = vadd.f32 %v6721_v34, %v2915_v38  ;;  %v2877_v34 = vadd.f32 %v6799_v22, %v6707_v51 }
 0x46a   : > { %v2933_v58 = vadd.f32 %v6824_v62, %v2880_v55 }
 0x46b   : > { %v2939_v8 = vadd.f32 %v2938_v20, %v2886_v36  ;;  %v3041_v5 = vmin.f32 %v3017_v59, 6.0  ;;  %v3003_v29 = vmax.f32 %v2968_v60, 0.0  ;;  %v2930_v6 = vadd.f32 %v6801_v18, %v2877_v34 }
 0x46c   : > { %v2986_v50 = vadd.f32 %v6834_v46, %v2933_v58 }
 0x46d   : > { %v6874_v3 = vadd.f32 %v3049_v56, %v3041_v5  ;;  %v3027_v42 = vmin.f32 %v3003_v29, 6.0  ;;  %v2983_v51 = vadd.f32 %v6811_v37, %v2930_v6 }
 0x46e   : > { %v2991_v12 = vpop.f32.mrf.mxu2  ;;  %v2941_v47 = vpop.f32.mrf.mxu0  ;;  %v3015_v52 = vmax.f32 %v2986_v50, 0.0  ;;  %v3493_v50 = vld [vmem:[%s8186_s11 + $0x28] sm:$0xff] }
 0x46f   : > { %v2992_v21 = vadd.f32 %v2991_v12, %v2939_v8  ;;  %8321 = vst [vmem:[#allocation34_spill] sm:$0xff] %v6874_v3  ;;  %v3051_v1 = vadd.f32 %v3035_v13, %v3027_v42  ;;  %v3013_v15 = vmax.f32 %v2983_v51, 0.0 }
 0x470   : > { %3300 = vrot.lane.b32.xlu0 %v6821_v44, %s8244_s20  ;;  %3340 = vrot.lane.b32.xlu2 %v6821_v44, %s5134_s17  ;;  %v2888_v9 = vpop.f32.mrf.mxu1  ;;  %v3039_v19 = vmin.f32 %v3015_v52, 6.0 }
 0x471   : > { %3132 = vrot.lane.b32.xlu1 %v6821_v44, %s8242_s29  ;;  %v3019_v61 = vmax.f32 %v2992_v21, 0.0  ;;  %v2889_v17 = vadd.f32 %v2888_v9, %v6744_v25  ;;  %v3037_v18 = vmin.f32 %v3013_v15, 6.0  ;;  %v3495_v15 = vld [vmem:[%s8186_s11 + $0x38] sm:$0xff] }
 0x473   : > { %v3043_v49 = vmin.f32 %v3019_v61, 6.0  ;;  %v2942_v24 = vadd.f32 %v2941_v47, %v2889_v17  ;;  %v3053_v14 = vadd.f32 %v3037_v18, %v3029_v10 }
 0x475   : > { %v6889_v39 = vadd.f32 %v3051_v1, %v3043_v49  ;;  %v3853_v49 = vld [vmem:[%s8187_s12 + $0x38] sm:$0xff] }
 0x476   : > { %v2994_v30 = vpop.f32.mrf.mxu2  ;;  %v2944_v54 = vpop.f32.mrf.mxu0 }
 0x477   : > { %8322 = vst [vmem:[#allocation35_spill] sm:$0xff] %v6889_v39  ;;  %v2995_v25 = vadd.f32 %v2994_v30, %v2942_v24 }
 0x478   : > { %3214 = vrot.lane.b32.xlu0 %v6849_v40, %s8246_s27  ;;  %3174 = vrot.lane.b32.xlu2 %v6849_v40, %s8248_s28  ;;  %v2891_v37 = vpop.f32.mrf.mxu1 }
 0x479   : > { %3260 = vrot.lane.b32.xlu1 %v6821_v44, %s8320_s23  ;;  %v3021_v22 = vmax.f32 %v2995_v25, 0.0  ;;  %v2892_v4 = vadd.f32 %v2891_v37, %v6727_v0  ;;  %v2974_v0 = vadd.f32 %v6753_v2, %v2921_v41 }
 0x47b   : > { %v3045_v57 = vmin.f32 %v3021_v22, 6.0  ;;  %v2945_v45 = vadd.f32 %v2944_v54, %v2892_v4  ;;  %v3007_v53 = vmax.f32 %v2974_v0, 0.0  ;;  %v3489_v4 = vld [vmem:[%s8186_s11 + $0x8] sm:$0xff]  ;;  %v3492_v0 = vld [vmem:[%s8186_s11 + $0x20] sm:$0xff] }
 0x47d   : > { %v6912_v20 = vadd.f32 %v3053_v14, %v3045_v57  ;;  %v3031_v48 = vmin.f32 %v3007_v53, 6.0  ;;  %v3494_v14 = vld [vmem:[%s8186_s11 + $0x30] sm:$0xff] }
 0x47e   : > { %v2997_v36 = vpop.f32.mrf.mxu2 }
 0x47f   : > { %8324 = vst [vmem:[#allocation29_spill] sm:$0xff] %v6912_v20  ;;  %v2998_v23 = vadd.f32 %v2997_v36, %v2945_v45  ;;  %v3055_v38 = vadd.f32 %v3039_v19, %v3031_v48 }
 0x480   : > { %3134 = vrot.lane.b32.xlu0 %v6849_v40, %s8242_s29  ;;  %3302 = vrot.lane.b32.xlu2 %v6849_v40, %s8244_s20 }
 0x481   : > { %3342 = vrot.lane.b32.xlu1 %v6849_v40, %s5134_s17  ;;  %v3023_v62 = vmax.f32 %v2998_v23, 0.0  ;;  %v3488_v23 = vld [vmem:[%s8186_s11] sm:$0xff] }
 0x483   : > { %v3047_v59 = vmin.f32 %v3023_v62, 6.0 }
 0x485   : > { %v6930_v2 = vadd.f32 %v3055_v38, %v3047_v59 }
 0x487   : > { %8325 = vst [vmem:[#allocation36_spill] sm:$0xff] %v6930_v2 }
 0x488   : > { %3262 = vrot.lane.b32.xlu0 %v6849_v40, %s8320_s23  ;;  %3216 = vrot.lane.b32.xlu2 %v6874_v3, %s8246_s27 }
 0x489   : > { %3136 = vrot.lane.b32.xlu1 %v6874_v3, %s8242_s29 }
 0x490   : > { %3176 = vrot.lane.b32.xlu0 %v6874_v3, %s8248_s28  ;;  %3344 = vrot.lane.b32.xlu2 %v6874_v3, %s5134_s17 }
 0x491   : > { %3218 = vrot.lane.b32.xlu1 %v6889_v39, %s8246_s27 }
 0x498   : > { %3304 = vrot.lane.b32.xlu0 %v6874_v3, %s8244_s20  ;;  %3178 = vrot.lane.b32.xlu2 %v6889_v39, %s8248_s28 }
 0x499   : > { %3346 = vrot.lane.b32.xlu1 %v6889_v39, %s5134_s17 }
 0x4a0   : > { %3138 = vrot.lane.b32.xlu0 %v6889_v39, %s8242_s29  ;;  %3306 = vrot.lane.b32.xlu2 %v6889_v39, %s8244_s20 }
 0x4a1   : > { %3180 = vrot.lane.b32.xlu1 %v6912_v20, %s8248_s28 }
 0x4a8   : > { %3220 = vrot.lane.b32.xlu0 %v6912_v20, %s8246_s27  ;;  %3140 = vrot.lane.b32.xlu2 %v6912_v20, %s8242_s29 }
 0x4a9   : > { %3308 = vrot.lane.b32.xlu1 %v6912_v20, %s8244_s20 }
 0x4aa   : > { %v6928_v46 = vpop.permute.xlu2 %3168 }
 0x4b0   : > { %3348 = vrot.lane.b32.xlu0 %v6912_v20, %s5134_s17  ;;  %3268 = vrot.lane.b32.xlu2 %v6912_v20, %s8320_s23 }
 0x4b1   : > { %3222 = vrot.lane.b32.xlu1 %v6930_v2, %s8246_s27  ;;  %s8350_s27 = smov 16  }
 0x4b2   : > { %v6938_v8 = vpop.permute.xlu2 %3296 }
 0x4b8   : > { %3266 = vrot.lane.b32.xlu0 %v6889_v39, %s8320_s23  ;;  %3350 = vrot.lane.b32.xlu2 %v6930_v2, %s5134_s17 }
 0x4b9   : > { %3094 = vrot.lane.b32.xlu1 %v6849_v40, %s8326_s26 }
 0x4ba   : > { %v6946_v35 = vpop.permute.xlu2 %3130 }
 0x4c0   : > { %3182 = vrot.lane.b32.xlu0 %v6930_v2, %s8248_s28  ;;  %3258 = vrot.lane.b32.xlu2 %v6786_v43, %s8320_s23  ;;  %s8347_s28 = smov 1  }
 0x4c1   : > { %3264 = vrot.lane.b32.xlu1 %v6874_v3, %s8320_s23 }
 0x4c2   : > { %v3129_v12 = vpop.permute.xlu0 %3128  ;;  %v6954_v11 = vpop.permute.xlu2 %3212 }
 0x4c3   : > { %v3209_v33 = vpop.permute.xlu1 %3208 }
 0x4c8   : > { %3310 = vrot.lane.b32.xlu0 %v6930_v2, %s8244_s20  ;;  %3092 = vrot.lane.b32.xlu2 %v6821_v44, %s8326_s26 }
 0x4c9   : > { %3142 = vrot.lane.b32.xlu1 %v6930_v2, %s8242_s29 }
 0x4ca   : > { %v6962_v5 = vpop.permute.xlu0 %3210  ;;  %v6964_v60 = vpop.permute.xlu2 %3340 }
 0x4cb   : > { %v6966_v21 = vpop.permute.xlu1 %3336 }
 0x4d0   : > { %3256 = vrot.lane.b32.xlu0 %v6766_v7, %s8320_s23  ;;  %3102 = vrot.lane.b32.xlu2 %v6930_v2, %s8326_s26 }
 0x4d1   : > { %3270 = vrot.lane.b32.xlu1 %v6930_v2, %s8320_s23 }
 0x4d2   : > { %v6974_v56 = vpop.permute.xlu0 %3338  ;;  %v6976_v28 = vpop.permute.xlu2 %3174 }
 0x4d3   : > { %v3171_v29 = vpop.permute.xlu1 %3170 }
 0x4d8   : > { %3100 = vrot.lane.b32.xlu0 %v6912_v20, %s8326_s26  ;;  %3098 = vrot.lane.b32.xlu2 %v6889_v39, %s8326_s26 }
 0x4d9   : > { %3090 = vrot.lane.b32.xlu1 %v6786_v43, %s8326_s26 }
 0x4da   : > { %v6984_v61 = vpop.permute.xlu0 %3172  ;;  %v6986_v13 = vpop.permute.xlu2 %3302 }
 0x4db   : > { %v3299_v9 = vpop.permute.xlu1 %3298 }
 0x4e0   : > { %3088 = vrot.lane.b32.xlu0 %v6766_v7, %s8326_s26  ;;  %3382 = vrot.lane.b32.xlu2 %v6849_v40, %s8327_s30 }
 0x4e1   : > { %3096 = vrot.lane.b32.xlu1 %v6874_v3, %s8326_s26 }
 0x4e2   : > { %v6994_v34 = vpop.permute.xlu0 %3300  ;;  %v3217_v42 = vpop.permute.xlu2 %3216 }
 0x4e3   : > { %v6998_v47 = vsel %vm2280_vm5, %v3209_v33, %v3217_v42  ;;  %v7002_v32 = vsel %vm2280_vm5, %v3217_v42, %v3209_v33  ;;  %v7004_v17 = vpop.permute.xlu1 %3132  ;;  %v8329_v33 = vld [vmem:[#allocation24_spill] sm:$0xff] }
 0x4e8   : > { %3378 = vrot.lane.b32.xlu0 %v6786_v43, %s8327_s30  ;;  %3388 = vrot.lane.b32.xlu2 %v6912_v20, %s8327_s30 }
 0x4e9   : > { %3380 = vrot.lane.b32.xlu1 %v6821_v44, %s8327_s30 }
 0x4ea   : > { %v7012_v1 = vpop.permute.xlu0 %3214  ;;  %v7014_v6 = vpop.permute.xlu2 %3344 }
 0x4eb   : > { %v7016_v16 = vpop.permute.xlu1 %3260 }
 0x4f0   : > { %3390 = vrot.lane.b32.xlu0 %v6930_v2, %s8327_s30  ;;  %3376 = vrot.lane.b32.xlu2 %v6766_v7, %s8327_s30 }
 0x4f1   : > { %3386 = vrot.lane.b32.xlu1 %v6889_v39, %s8327_s30 }
 0x4f2   : > { %v7024_v24 = vpop.permute.xlu0 %3134  ;;  %v3179_v30 = vpop.permute.xlu2 %3178 }
 0x4f3   : > { %v7028_v51 = vsel %vm2234_vm6, %v3171_v29, %v3179_v30  ;;  %v7032_v31 = vsel %vm2234_vm6, %v3179_v30, %v3171_v29  ;;  %v3343_v25 = vpop.permute.xlu1 %3342 }
 0x4f8   : > { %3384 = vrot.lane.b32.xlu0 %v6874_v3, %s8327_s30  ;;  %3533 = vperm.xlu2 %4884, %v3495_v15  }
 0x4f9   : > { %3513 = vperm.xlu1 %4883, %v3491_v27  }
 0x4fa   : > { %v7042_v22 = vpop.permute.xlu0 %3262  ;;  %v3307_v18 = vpop.permute.xlu2 %3306 }
 0x4fb   : > { %v7046_v37 = vsel %vm2380_vm11, %v3299_v9, %v3307_v18  ;;  %v7050_v55 = vsel %vm2380_vm11, %v3307_v18, %v3299_v9  ;;  %v3137_v10 = vpop.permute.xlu1 %3136  ;;  %v8330_v9 = vld [vmem:[#allocation23_spill] sm:$0xff] }
 0x4fc   : > { %v7054_v57 = vsel %vm2188_vm7, %v3129_v12, %v3137_v10  ;;  %v7058_v54 = vsel %vm2188_vm7, %v3137_v10, %v3129_v12 }
 0x500   : > { %3508 = vperm.xlu0 %4882, %v3490_v26   ;;  %3503 = vperm.xlu2 %4884, %v3489_v4  }
 0x501   : > { %3528 = vperm.xlu1 %4883, %v3494_v14  }
 0x502   : > { %v7069_v58 = vpop.permute.xlu0 %3176  ;;  %v7071_v63 = vpop.permute.xlu2 %3140 }
 0x503   : > { %v7077_v41 = vsel %vm2188_vm7, %v7004_v17, %v7071_v63  ;;  %v3219_v45 = vpop.permute.xlu1 %3218 }
 0x504   : > { %v7082_v36 = vsel %vm2280_vm5, %v6962_v5, %v3219_v45 }
 0x508   : > { %3523 = vperm.xlu0 %4882, %v3493_v50   ;;  %3518 = vperm.xlu2 %4884, %v3492_v0  }
 0x509   : > { %3498 = vperm.xlu1 %4883, %v3488_v23  }
 0x50a   : > { %v7093_v52 = vpop.permute.xlu0 %3304  ;;  %v7095_v53 = vpop.permute.xlu2 %3268 }
 0x50b   : > { %v3347_v62 = vpop.permute.xlu1 %3346 }
 0x50c   : > { %v3357_v10 = vsel %vm2426_vm10, %v3347_v62, %v6974_v56 }
 0x512   : > { %v7097_v19 = vpop.permute.xlu0 %3138  ;;  %v3351_v48 = vpop.permute.xlu2 %3350 }
 0x513   : > { %v3355_v59 = vsel %vm2426_vm10, %v3343_v25, %v3351_v48  ;;  %v3359_v38 = vsel %vm2426_vm10, %v3351_v48, %v3343_v25  ;;  %v3181_v12 = vpop.permute.xlu1 %3180  ;;  %v3353_v25 = vsel %vm2426_vm10, %v6974_v56, %v3347_v62  ;;  %v3356_v62 = vsel %vm2426_vm10, %v7014_v6, %v6966_v21  ;;  %v8331_v48 = vld [vmem:[#allocation13_spill] sm:$0xff] }
 0x514   : > { %v3366_v29 = vmul.f32 %v3355_v59, %v8329_v33  ;;  %v3367_v42 = vmul.f32 %v3359_v38, %v8330_v9  ;;  %v7108_v30 = vsel %vm2234_vm6, %v6984_v61, %v3181_v12  ;;  %v3229_v38 = vsel %vm2280_vm5, %v3219_v45, %v6962_v5 }
 0x516   : > { %3601 = vmatpush.msra.mxu1 %v3366_v29  ;;  %3724 = vmatpush.msrb.mxu0 %v3367_v42  ;;  %v3362_v29 = vmul.f32 %v3353_v25, %v8329_v33  ;;  %v3363_v42 = vmul.f32 %v3357_v10, %v8330_v9  ;;  %v3232_v25 = vmul.f32 %v7002_v32, %v8331_v48 }
 0x51a   : > { %v7110_v15 = vpop.permute.xlu0 %3220  ;;  %v7156_v5 = vpop.permute.xlu2 %3258 }
 0x51b   : > { %v3309_v27 = vpop.permute.xlu1 %3308  ;;  %v3230_v50 = vsel %vm2280_vm5, %v7110_v15, %v6954_v11 }
 0x522   : > { %v3349_v18 = vpop.permute.xlu0 %3348 }
 0x523   : > { %v3354_v26 = vsel %vm2426_vm10, %v6964_v60, %v3349_v18  ;;  %v3358_v4 = vsel %vm2426_vm10, %v3349_v18, %v6964_v60  ;;  %v7124_v14 = vpop.permute.xlu1 %3222  ;;  %v3352_v60 = vsel %vm2426_vm10, %v6966_v21, %v7014_v6  ;;  %v3236_v18 = vmul.f32 %v3230_v50, %v8331_v48 }
 0x524   : > { %v3364_v0 = vmul.f32 %v3354_v26, %v8329_v33  ;;  %v3365_v23 = vmul.f32 %v3358_v4, %v8330_v9  ;;  %v3231_v56 = vsel %vm2280_vm5, %v7124_v14, %v7012_v1  ;;  %v3360_v26 = vmul.f32 %v3352_v60, %v8329_v33 }
 0x525   : > { %v3238_v59 = vmul.f32 %v3231_v56, %v8331_v48  ;;  %v3361_v4 = vmul.f32 %v3356_v62, %v8330_v9  ;;  %v3234_v21 = vmul.f32 %v3229_v38, %v8331_v48  ;;  %v3190_v50 = vsel %vm2234_vm6, %v3181_v12, %v6984_v61  ;;  %v8332_v56 = vld [vmem:[#allocation15_spill] sm:$0xff]  ;;  %v7174_v62 = vpop.permute.xlu2 %3092 }
 0x526   : > { %3602 = vmatpush.msra.mxu1 %v3364_v0  ;;  %3725 = vmatpush.msrb.mxu0 %v3365_v23  ;;  %v3196_v32 = vmul.f32 %v3190_v50, %v8332_v56  ;;  %v3194_v61 = vmul.f32 %v7032_v31, %v8332_v56  ;;  %v8334_v50 = vld [vmem:[#allocation26_spill] sm:$0xff] }
 0x527   : > { %3560 = vmatpush.msrb.mxu3 %v3238_v59  ;;  %v3188_v59 = vsel %vm2234_vm6, %v7069_v58, %v6928_v46 }
 0x528   : > { %3603 = vmatpush.msra.mxu1 %v3362_v29  ;;  %3726 = vmatpush.msrb.mxu0 %v3363_v42  ;;  %v3192_v38 = vmul.f32 %v3188_v59, %v8332_v56  ;;  %v3314_v29 = vsel %vm2380_vm11, %v6994_v34, %v3309_v27  ;;  %v3318_v42 = vsel %vm2380_vm11, %v3309_v27, %v6994_v34  ;;  %v8335_v27 = vld [vmem:[#allocation17_spill] sm:$0xff] }
 0x529   : > { %3561 = vmatpush.msrb.mxu3 %v3236_v18 }
 0x52a   : > { %v7154_v6 = vpop.permute.xlu0 %3266  ;;  %3604 = vmatpush.msra.mxu1 %v3360_v26  ;;  %3727 = vmatpush.msrb.mxu0 %v3361_v4  ;;  %v3150_v4 = vsel %vm2188_vm7, %v7071_v63, %v7004_v17  ;;  %v3325_v17 = vmul.f32 %v3318_v42, %v8334_v50  ;;  %v3312_v63 = vsel %vm2380_vm11, %v6938_v8, %v7093_v52 }
 0x52b   : > { %3562 = vmatpush.msrb.mxu3 %v3234_v21  ;;  %v7158_v45 = vpop.permute.xlu1 %3094  ;;  %v8333_v21 = vld [vmem:[#allocation25_spill] sm:$0xff] }
 0x52d   : > { %3563 = vmatpush.msrb.mxu3 %v3232_v25  ;;  %v7219_v59 = vpop.permute.xlu2 %3102 }
 0x532   : > { %v7162_v10 = vpop.permute.xlu0 %3182 }
 0x533   : > { %v3191_v0 = vsel %vm2234_vm6, %v7162_v10, %v6976_v28  ;;  %v7171_v23 = vpop.permute.xlu1 %3264 }
 0x534   : > { %v3198_v60 = vmul.f32 %v3191_v0, %v8332_v56 }
 0x536   : > { %3564 = vmatpush.msrb.mxu3 %v3198_v60 }
 0x538   : > { %3565 = vmatpush.msrb.mxu3 %v3196_v32  ;;  %v3324_v32 = vmul.f32 %v3314_v29, %v8333_v21  ;;  %v3316_v29 = vsel %vm2380_vm11, %v7093_v52, %v6938_v8  ;;  %v3152_v8 = vmul.f32 %v7058_v54, %v8335_v27  ;;  %v3274_v52 = vsel %vm2334_vm12, %v7016_v16, %v7095_v53  ;;  %v8336_v54 = vld [vmem:[#allocation27_spill] sm:$0xff] }
 0x53a   : > { %v3311_v12 = vpop.permute.xlu0 %3310  ;;  %3566 = vmatpush.msrb.mxu3 %v3194_v61  ;;  %v3156_v61 = vmul.f32 %v3150_v4, %v8335_v27 }
 0x53b   : > { %v3315_v18 = vsel %vm2380_vm11, %v6986_v13, %v3311_v12  ;;  %v3319_v31 = vsel %vm2380_vm11, %v3311_v12, %v6986_v13  ;;  %v7196_v26 = vpop.permute.xlu1 %3142  ;;  %v3149_v13 = vsel %vm2188_vm7, %v7097_v19, %v6946_v35  ;;  %v3322_v12 = vmul.f32 %v7046_v37, %v8333_v21 }
 0x53c   : > { %v3326_v25 = vmul.f32 %v3315_v18, %v8333_v21  ;;  %v3327_v0 = vmul.f32 %v3319_v31, %v8334_v50  ;;  %v3151_v34 = vsel %vm2188_vm7, %v7196_v26, %v7024_v24  ;;  %3567 = vmatpush.msrb.mxu3 %v3192_v38  ;;  %v3323_v38 = vmul.f32 %v7050_v55, %v8334_v50 }
 0x53d   : > { %v3158_v60 = vmul.f32 %v3151_v34, %v8335_v27  ;;  %v3154_v42 = vmul.f32 %v3149_v13, %v8335_v27  ;;  %v3320_v18 = vmul.f32 %v3312_v63, %v8333_v21  ;;  %v3111_v37 = vsel %vm2142_vm8, %v7219_v59, %v7158_v45  ;;  %v8337_v13 = vld [vmem:[#allocation28_spill] sm:$0xff] }
 0x53e   : > { %3605 = vmatpush.msra.mxu1 %v3326_v25  ;;  %3728 = vmatpush.msrb.mxu0 %v3327_v0  ;;  %v3321_v55 = vmul.f32 %v3316_v29, %v8334_v50  ;;  %v3278_v25 = vsel %vm2334_vm12, %v7095_v53, %v7016_v16  ;;  %v3273_v16 = vsel %vm2334_vm12, %v7156_v5, %v7154_v6 }
 0x53f   : > { %3568 = vmatpush.msrb.mxu3 %v3158_v60  ;;  %v3284_v53 = vmul.f32 %v3274_v52, %v8336_v54  ;;  %v3227_v52 = vsel %vm2280_vm5, %v7012_v1, %v7124_v14  ;;  %v8339_v14 = vld [vmem:[#allocation14_spill] sm:$0xff] }
 0x540   : > { %3606 = vmatpush.msra.mxu1 %v3324_v32  ;;  %3729 = vmatpush.msrb.mxu0 %v3325_v17  ;;  %v8338_v17 = vld [vmem:[#allocation19_spill] sm:$0xff] }
 0x541   : > { %3569 = vmatpush.msrb.mxu3 %v3156_v61  ;;  %v3118_v63 = vmul.f32 %v3111_v37, %v8338_v17  ;;  %v3285_v61 = vmul.f32 %v3278_v25, %v8337_v13 }
 0x542   : > { %v3257_v31 = vpop.permute.xlu0 %3256  ;;  %3607 = vmatpush.msra.mxu1 %v3322_v12  ;;  %3730 = vmatpush.msrb.mxu0 %v3323_v38  ;;  %v3282_v38 = vmul.f32 %v3273_v16, %v8336_v54  ;;  %v7323_v16 = vld [vmem:[%s8185_s10] sm:$0xff] }
 0x543   : > { %3570 = vmatpush.msrb.mxu3 %v3154_v42  ;;  %v3271_v4 = vpop.permute.xlu1 %3270  ;;  %v3272_v12 = vsel %vm2334_vm12, %v3257_v31, %v7171_v23  ;;  %v3276_v29 = vsel %vm2334_vm12, %v7171_v23, %v3257_v31 }
 0x544   : > { %v3275_v0 = vsel %vm2334_vm12, %v7042_v22, %v3271_v4  ;;  %v3279_v34 = vsel %vm2334_vm12, %v3271_v4, %v7042_v22  ;;  %3608 = vmatpush.msra.mxu1 %v3320_v18  ;;  %3731 = vmatpush.msrb.mxu0 %v3321_v55  ;;  %v3277_v22 = vsel %vm2334_vm12, %v7154_v6, %v7156_v5  ;;  %v7276_v5 = vpop.permute.xlu2 %3098 }
 0x545   : > { %v3286_v60 = vmul.f32 %v3275_v0, %v8336_v54  ;;  %v3287_v32 = vmul.f32 %v3279_v34, %v8337_v13  ;;  %3571 = vmatpush.msrb.mxu3 %v3152_v8  ;;  %v3283_v42 = vmul.f32 %v3277_v22, %v8337_v13  ;;  %v3280_v18 = vmul.f32 %v3272_v12, %v8336_v54  ;;  %v3065_v34 = vld [vmem:[%s8185_s10 + $0x8] sm:$0xff] }
 0x546   : > { %v3281_v23 = vmul.f32 %v3276_v29, %v8337_v13  ;;  %v3187_v22 = vsel %vm2234_vm6, %v6976_v28, %v7162_v10  ;;  %v3233_v12 = vmul.f32 %v6998_v47, %v8339_v14  ;;  %v3068_v29 = vld [vmem:[%s8185_s10 + $0x20] sm:$0xff]  ;;  %v3184_v47 = vsel %vm2234_vm6, %v6928_v46, %v7069_v58 }
 0x547   : > { %3572 = vmatpush.msrb.mxu3 %v3118_v63  ;;  %3609 = vmatpush.msra.mxu1 %v3286_v60  ;;  %v3226_v60 = vsel %vm2280_vm5, %v6954_v11, %v7110_v15  ;;  %v3235_v15 = vmul.f32 %v7082_v36, %v8339_v14  ;;  %v7343_v36 = vld [vmem:[%s8185_s10 + $0x18] sm:$0xff] }
 0x548   : > { %3732 = vmatpush.msrb.mxu0 %v3287_v32  ;;  %v3239_v32 = vmul.f32 %v3227_v52, %v8339_v14  ;;  %v3237_v11 = vmul.f32 %v3226_v60, %v8339_v14  ;;  %v8341_v52 = vld [vmem:[#allocation21_spill] sm:$0xff]  ;;  %v8343_v60 = vld [vmem:[#allocation18_spill] sm:$0xff] }
 0x549   : > { %3610 = vmatpush.msra.mxu1 %v3284_v53 }
 0x54a   : > { %3733 = vmatpush.msrb.mxu0 %v3285_v61  ;;  %v7274_v6 = vpop.permute.xlu0 %3100 }
 0x54b   : > { %v3110_v37 = vsel %vm2142_vm8, %v7274_v6, %v7174_v62  ;;  %3611 = vmatpush.msra.mxu1 %v3282_v38  ;;  %v7283_v55 = vpop.permute.xlu1 %3090 }
 0x54c   : > { %3734 = vmatpush.msrb.mxu0 %v3283_v42  ;;  %v3109_v31 = vsel %vm2142_vm8, %v7276_v5, %v7283_v55  ;;  %v3116_v4 = vmul.f32 %v3110_v37, %v8338_v17  ;;  %v3383_v53 = vpop.permute.xlu2 %3382  ;;  %v8340_v42 = vld [vmem:[#allocation16_spill] sm:$0xff] }
 0x54d   : > { %3612 = vmatpush.msra.mxu1 %v3280_v18  ;;  %v3114_v8 = vmul.f32 %v3109_v31, %v8338_v17  ;;  %v3199_v18 = vmul.f32 %v3187_v22, %v8340_v42  ;;  %v3197_v28 = vmul.f32 %v7108_v30, %v8340_v42  ;;  %v3195_v37 = vmul.f32 %v7028_v51, %v8340_v42  ;;  %v3071_v51 = vld [vmem:[%s8185_s10 + $0x38] sm:$0xff] }
 0x54e   : > { %3735 = vmatpush.msrb.mxu0 %v3281_v23  ;;  %3573 = vmatpush.msrb.mxu3 %v3116_v4  ;;  %v3147_v23 = vsel %vm2188_vm7, %v7024_v24, %v7196_v26  ;;  %v3193_v31 = vmul.f32 %v3184_v47, %v8340_v42  ;;  %v8342_v26 = vld [vmem:[#allocation22_spill] sm:$0xff] }
 0x54f   : > { %3613 = vmatpush.msra.mxu1 %v6849_v40 }
 0x550   : > { %3736 = vmatpush.msrb.mxu0 %v6930_v2  ;;  %3574 = vmatpush.msrb.mxu3 %v3114_v8 }
 0x551   : > { %3614 = vmatpush.msra.mxu1 %v6821_v44 }
 0x552   : > { %3737 = vmatpush.msrb.mxu0 %v6912_v20  ;;  %v7300_v25 = vpop.permute.xlu0 %3088 }
 0x553   : > { %3615 = vmatpush.msra.mxu1 %v6786_v43  ;;  %v7303_v0 = vpop.permute.xlu1 %3096 }
 0x554   : > { %3738 = vmatpush.msrb.mxu0 %v6889_v39  ;;  %v3108_v1 = vsel %vm2142_vm8, %v7303_v0, %v7300_v25  ;;  %v3389_v10 = vpop.permute.xlu2 %3388 }
 0x555   : > { %3616 = vmatpush.msra.mxu1 %v6766_v7  ;;  %v3112_v63 = vmul.f32 %v3108_v1, %v8338_v17  ;;  %v3159_v1 = vmul.f32 %v3147_v23, %v8343_v60  ;;  %v8344_v23 = vld [vmem:[#allocation20_spill] sm:$0xff] }
 0x556   : > { %3739 = vmatpush.msrb.mxu0 %v6874_v3  ;;  %3617 = vmatmul.f32.vlgmr.msra.gmra.mxu1 %v3065_v34 }
 0x557   : > { %3683 = vmatpush.msrb.mxu1 %v3239_v32  ;;  %3575 = vmatpush.msrb.mxu3 %v3112_v63  ;;  %v7376_v63 = vld [vmem:[%s8185_s10 + $0x30] sm:$0xff] }
 0x558   : > { %3576 = vmatmul.f32.vlgmr.msrb.gmra.mxu3 %v7323_v16  ;;  %3740 = vmatmul.f32.vlgmr.msrb.gmra.mxu0 %v3065_v34 }
 0x559   : > { %3684 = vmatpush.msrb.mxu1 %v3237_v11 }
 0x55a   : > { %v3379_v61 = vpop.permute.xlu0 %3378 }
 0x55b   : > { %3685 = vmatpush.msrb.mxu1 %v3235_v15  ;;  %v3381_v38 = vpop.permute.xlu1 %3380  ;;  %v3157_v15 = vmul.f32 %v7077_v41, %v8343_v60  ;;  %v3107_v41 = vsel %vm2142_vm8, %v7158_v45, %v7219_v59  ;;  %v3074_v45 = vld [vmem:[%s8185_s10 + $0x50] sm:$0xff]  ;;  %v3106_v59 = vsel %vm2142_vm8, %v7174_v62, %v7274_v6  ;;  %v3104_v6 = vsel %vm2142_vm8, %v7300_v25, %v7303_v0  ;;  %v3076_v25 = vld [vmem:[%s8185_s10 + $0x60] sm:$0xff]  ;;  %v3069_v0 = vld [vmem:[%s8185_s10 + $0x28] sm:$0xff] }
 0x55c   : > { %v3394_v8 = vsel %vm2472_vm9, %v3381_v38, %v3389_v10  ;;  %v3398_v32 = vsel %vm2472_vm9, %v3389_v10, %v3381_v38  ;;  %v3117_v62 = vmul.f32 %v3106_v59, %v8344_v23 }
 0x55d   : > { %3686 = vmatpush.msrb.mxu1 %v3233_v12  ;;  %v3404_v22 = vmul.f32 %v3394_v8, %v8341_v52  ;;  %v3405_v38 = vmul.f32 %v3398_v32, %v8342_v26  ;;  %v3079_v8 = vld [vmem:[%s8185_s10 + $0x78] sm:$0xff] }
 0x55e   : > { %3620 = vmatmul.f32.gmra.mxu1 %v3068_v29  ;;  %v3075_v32 = vld [vmem:[%s8185_s10 + $0x58] sm:$0xff] }
 0x55f   : > { %3687 = vmatpush.msrb.mxu1 %v3199_v18 }
 0x560   : > { %3579 = vmatmul.f32.gmra.mxu3 %v7343_v36  ;;  %3743 = vmatmul.f32.gmra.mxu0 %v3068_v29  ;;  %v3377_v29 = vpop.permute.xlu2 %3376 }
 0x561   : > { %3688 = vmatpush.msrb.mxu1 %v3197_v28  ;;  %v3153_v28 = vmul.f32 %v7054_v57, %v8343_v60 }
 0x562   : > { %v3391_v30 = vpop.permute.xlu0 %3390 }
 0x563   : > { %3689 = vmatpush.msrb.mxu1 %v3195_v37  ;;  %v3395_v46 = vsel %vm2472_vm9, %v3383_v53, %v3391_v30  ;;  %v3399_v58 = vsel %vm2472_vm9, %v3391_v30, %v3383_v53  ;;  %v3387_v4 = vpop.permute.xlu1 %3386  ;;  %v3145_v53 = vsel %vm2188_vm7, %v6946_v35, %v7097_v19  ;;  %v3119_v30 = vmul.f32 %v3107_v41, %v8344_v23 }
 0x564   : > { %v3406_v24 = vmul.f32 %v3395_v46, %v8341_v52  ;;  %v3407_v34 = vmul.f32 %v3399_v58, %v8342_v26  ;;  %v3393_v11 = vsel %vm2472_vm9, %v3379_v61, %v3387_v4  ;;  %v3397_v12 = vsel %vm2472_vm9, %v3387_v4, %v3379_v61  ;;  %v3066_v58 = vld [vmem:[%s8185_s10 + $0x10] sm:$0xff] }
 0x565   : > { %3690 = vmatpush.msrb.mxu1 %v3193_v31  ;;  %v3155_v35 = vmul.f32 %v3145_v53, %v8343_v60  ;;  %v3402_v19 = vmul.f32 %v3393_v11, %v8341_v52  ;;  %v3403_v61 = vmul.f32 %v3397_v12, %v8342_v26  ;;  %v3073_v31 = vld [vmem:[%s8185_s10 + $0x48] sm:$0xff]  ;;  %v3105_v46 = vsel %vm2142_vm8, %v7283_v55, %v7276_v5  ;;  %v3086_v53 = vld [vmem:[%s8185_s10 + $0xb0] sm:$0xff]  ;;  %v3084_v12 = vld [vmem:[%s8185_s10 + $0xa0] sm:$0xff] }
 0x566   : > { %3623 = vmatmul.f32.gmra.mxu1 %v3071_v51  ;;  %3654 = vmatpush.msra.mxu3 %v3406_v24  ;;  %v3115_v4 = vmul.f32 %v3105_v46, %v8344_v23  ;;  %v3113_v5 = vmul.f32 %v3104_v6, %v8344_v23  ;;  %v3077_v55 = vld [vmem:[%s8185_s10 + $0x68] sm:$0xff]  ;;  %v3072_v24 = vld [vmem:[%s8185_s10 + $0x40] sm:$0xff] }
 0x567   : > { %3691 = vmatpush.msrb.mxu1 %v3159_v1  ;;  %3777 = vmatpush.msra.mxu2 %v3407_v34  ;;  %v3083_v34 = vld [vmem:[%s8185_s10 + $0x98] sm:$0xff]  ;;  %v3082_v1 = vld [vmem:[%s8185_s10 + $0x90] sm:$0xff]  ;;  %v3085_v11 = vld [vmem:[%s8185_s10 + $0xa8] sm:$0xff] }
 0x568   : > { %3582 = vmatmul.f32.gmra.mxu3 %v7376_v63  ;;  %3746 = vmatmul.f32.gmra.mxu0 %v3071_v51  ;;  %v3080_v51 = vld [vmem:[%s8185_s10 + $0x80] sm:$0xff] }
 0x569   : > { %3692 = vmatpush.msrb.mxu1 %v3157_v15  ;;  %3655 = vmatpush.msra.mxu3 %v3404_v22  ;;  %v3078_v15 = vld [vmem:[%s8185_s10 + $0x70] sm:$0xff]  ;;  %v3081_v22 = vld [vmem:[%s8185_s10 + $0x88] sm:$0xff] }
 0x56a   : > { %3778 = vmatpush.msra.mxu2 %v3405_v38  ;;  %v3385_v18 = vpop.permute.xlu0 %3384 }
 0x56b   : > { %3693 = vmatpush.msrb.mxu1 %v3155_v35  ;;  %v3392_v47 = vsel %vm2472_vm9, %v3377_v29, %v3385_v18  ;;  %v3396_v10 = vsel %vm2472_vm9, %v3385_v18, %v3377_v29  ;;  %3656 = vmatpush.msra.mxu3 %v3402_v19 }
 0x56c   : > { %v3400_v37 = vmul.f32 %v3392_v47, %v8341_v52  ;;  %v3401_v57 = vmul.f32 %v3396_v10, %v8342_v26  ;;  %3779 = vmatpush.msra.mxu2 %v3403_v61  ;;  %v3514_v47 = vpop.permute.xlu1 %3513 }
 0x56d   : > { %3694 = vmatpush.msrb.mxu1 %v3153_v28 }
 0x56e   : > { %3626 = vmatmul.f32.gmra.mxu1 %v3074_v45  ;;  %3657 = vmatpush.msra.mxu3 %v3400_v37 }
 0x56f   : > { %3695 = vmatpush.msrb.mxu1 %v3119_v30  ;;  %3780 = vmatpush.msra.mxu2 %v3401_v57 }
 0x570   : > { %3585 = vmatmul.f32.gmra.mxu3 %v3073_v31  ;;  %3749 = vmatmul.f32.gmra.mxu0 %v3074_v45 }
 0x571   : > { %3696 = vmatpush.msrb.mxu1 %v3117_v62  ;;  %4805 = vmatmul.msk.f32.vlgmr.msra.gmra.mxu2 %vm557_vm0, %v3066_v58 }
 0x572   : > { %v3509_v41 = vpop.permute.xlu0 %3508 }
 0x573   : > { %3697 = vmatpush.msrb.mxu1 %v3115_v4 }
 0x574   : > { %v7506_v4 = vpop.permute.xlu1 %3528 }
 0x575   : > { %3698 = vmatpush.msrb.mxu1 %v3113_v5 }
 0x576   : > { %3629 = vmatmul.f32.gmra.mxu1 %v3077_v55 }
 0x578   : > { %3588 = vmatmul.f32.gmra.mxu3 %v3076_v25  ;;  %3752 = vmatmul.f32.gmra.mxu0 %v3077_v55 }
 0x579   : > { %4806 = vmatmul.msk.f32.gmra.mxu2 %vm557_vm0, %v3069_v0 }
 0x57e   : > { %3632 = vmatmul.f32.gmra.mxu1 %v3080_v51 }
 0x580   : > { %3591 = vmatmul.f32.gmra.mxu3 %v3079_v8  ;;  %3755 = vmatmul.f32.gmra.mxu0 %v3080_v51 }
 0x581   : > { %4807 = vmatmul.msk.f32.gmra.mxu2 %vm557_vm0, %v3072_v24 }
 0x586   : > { %3635 = vmatmul.f32.gmra.mxu1 %v3083_v34 }
 0x588   : > { %3594 = vmatmul.f32.gmra.mxu3 %v3082_v1  ;;  %3758 = vmatmul.f32.gmra.mxu0 %v3083_v34 }
 0x589   : > { %4808 = vmatmul.msk.f32.gmra.mxu2 %vm557_vm0, %v3075_v32 }
 0x58e   : > { %3638 = vmatmul.f32.gmra.mxu1 %v3086_v53 }
 0x590   : > { %3597 = vmatmul.f32.gmra.mxu3 %v3085_v11  ;;  %3761 = vmatmul.f32.gmra.mxu0 %v3086_v53 }
 0x591   : > { %4809 = vmatmul.msk.f32.gmra.mxu2 %vm557_vm0, %v3078_v15 }
 0x596   : > { %3699 = vmatmul.f32.vlgmr.msrb.gmra.mxu1 %v7323_v16  ;;  %v3087_v16 = vld [vmem:[%s8185_s10 + $0xb8] sm:$0xff] }
 0x598   : > { %4797 = vmatmul.msk.f32.vlgmr.msra.gmra.mxu3 %vm557_vm0, %v3066_v58 }
 0x599   : > { %4810 = vmatmul.msk.f32.gmra.mxu2 %vm557_vm0, %v3081_v22 }
 0x59e   : > { %3702 = vmatmul.f32.gmra.mxu1 %v7343_v36 }
 0x5a0   : > { %4798 = vmatmul.msk.f32.gmra.mxu3 %vm557_vm0, %v3069_v0 }
 0x5a1   : > { %4811 = vmatmul.msk.f32.gmra.mxu2 %vm557_vm0, %v3084_v12 }
 0x5a6   : > { %3705 = vmatmul.f32.gmra.mxu1 %v7376_v63 }
 0x5a8   : > { %4799 = vmatmul.msk.f32.gmra.mxu3 %vm557_vm0, %v3072_v24  ;;  %v7511_v24 = vpop.permute.xlu2 %3533 }
 0x5a9   : > { %4812 = vmatmul.msk.f32.gmra.mxu2 %vm557_vm0, %v3087_v16 }
 0x5ae   : > { %3708 = vmatmul.f32.gmra.mxu1 %v3073_v31  ;;  %v7501_v31 = vpop.permute.xlu0 %3523 }
 0x5b0   : > { %4800 = vmatmul.msk.f32.gmra.mxu3 %vm557_vm0, %v3075_v32 }
 0x5b6   : > { %3711 = vmatmul.f32.gmra.mxu1 %v3076_v25 }
 0x5b8   : > { %4801 = vmatmul.msk.f32.gmra.mxu3 %vm557_vm0, %v3078_v15 }
 0x5be   : > { %3714 = vmatmul.f32.gmra.mxu1 %v3079_v8 }
 0x5c0   : > { %4802 = vmatmul.msk.f32.gmra.mxu3 %vm557_vm0, %v3081_v22 }
 0x5c6   : > { %3717 = vmatmul.f32.gmra.mxu1 %v3082_v1 }
 0x5c8   : > { %4803 = vmatmul.msk.f32.gmra.mxu3 %vm557_vm0, %v3084_v12 }
 0x5ce   : > { %3720 = vmatmul.f32.gmra.mxu1 %v3085_v11 }
 0x5d0   : > { %4804 = vmatmul.msk.f32.gmra.mxu3 %vm557_vm0, %v3087_v16 }
 0x5d3   : > { %v7495_v36 = vpop.f32.mrf.mxu1 }
 0x5d5   : > { %v3741_v5 = vpop.f32.mrf.mxu0 }
 0x5db   : > { %v3577_v63 = vpop.f32.mrf.mxu3  ;;  %v7497_v38 = vpop.f32.mrf.mxu1 }
 0x5dd   : > { %v7514_v53 = vpop.f32.mrf.mxu0 }
 0x5e3   : > { %v7499_v35 = vpop.f32.mrf.mxu3  ;;  %v3624_v19 = vpop.f32.mrf.mxu1 }
 0x5e5   : > { %v3747_v16 = vpop.f32.mrf.mxu0 }
 0x5eb   : > { %v3583_v29 = vpop.f32.mrf.mxu3  ;;  %v3627_v61 = vpop.f32.mrf.mxu1 }
 0x5ec   : > { %v3584_v18 = vadd.f32 %v3583_v29, %v3509_v41 }
 0x5ee   : > { %v3625_v28 = vadd.f32 %v3624_v19, %v3584_v18 }
 0x5f3   : > { %v3586_v10 = vpop.f32.mrf.mxu3  ;;  %v3630_v45 = vpop.f32.mrf.mxu1 }
 0x5f4   : > { %v3587_v59 = vadd.f32 %v3586_v10, %v3514_v47  ;;  %v3782_v51 = vpop.f32.mrf.mxu2 }
 0x5f6   : > { %v3628_v37 = vadd.f32 %v3627_v61, %v3587_v59  ;;  %v3504_v59 = vpop.permute.xlu2 %3503 }
 0x5fb   : > { %v3589_v57 = vpop.f32.mrf.mxu3  ;;  %v3633_v30 = vpop.f32.mrf.mxu1 }
 0x5fc   : > { %v7516_v11 = vpop.f32.mrf.mxu2 }
 0x5fe   : > { %v3519_v2 = vpop.permute.xlu2 %3518 }
 0x5ff   : > { %v3590_v44 = vadd.f32 %v3589_v57, %v3519_v2 }
 0x603   : > { %v3592_v46 = vpop.f32.mrf.mxu3  ;;  %v3636_v62 = vpop.f32.mrf.mxu1 }
 0x604   : > { %v3593_v6 = vadd.f32 %v3592_v46, %v7501_v31  ;;  %v3788_v19 = vpop.f32.mrf.mxu2  ;;  %v3750_v46 = vpop.f32.mrf.mxu0 }
 0x606   : > { %v7504_v58 = vadd.f32 %v3633_v30, %v3593_v6 }
 0x60b   : > { %v3595_v55 = vpop.f32.mrf.mxu3  ;;  %v3639_v25 = vpop.f32.mrf.mxu1 }
 0x60c   : > { %v3596_v0 = vadd.f32 %v3595_v55, %v7506_v4  ;;  %v3791_v6 = vpop.f32.mrf.mxu2 }
 0x60e   : > { %v7509_v8 = vadd.f32 %v3636_v62, %v3596_v0  ;;  %v3499_v62 = vpop.permute.xlu1 %3498 }
 0x60f   : > { %v3578_v7 = vadd.f32 %v3577_v63, %v3499_v62 }
 0x613   : > { %v3598_v34 = vpop.f32.mrf.mxu3  ;;  %v3700_v1 = vpop.f32.mrf.mxu1 }
 0x614   : > { %v3599_v32 = vadd.f32 %v3598_v34, %v7511_v24  ;;  %v3701_v34 = vadd.f32 %v3700_v1, %v3499_v62  ;;  %v3794_v43 = vpop.f32.mrf.mxu2  ;;  %v3619_v1 = vadd.f32 %v7495_v36, %v3578_v7 }
 0x616   : > { %v7518_v15 = vadd.f32 %v3639_v25, %v3599_v32  ;;  %v3742_v39 = vadd.f32 %v3741_v5, %v3701_v34  ;;  %v3581_v5 = vadd.f32 %v7499_v35, %v3504_v59 }
 0x61b   : > { %v3659_v22 = vpop.f32.mrf.mxu3  ;;  %v3703_v12 = vpop.f32.mrf.mxu1 }
 0x623   : > { %v3662_v29 = vpop.f32.mrf.mxu3  ;;  %v3706_v61 = vpop.f32.mrf.mxu1 }
 0x624   : > { %v3707_v18 = vadd.f32 %v3706_v61, %v3509_v41  ;;  %v3753_v41 = vpop.f32.mrf.mxu0 }
 0x626   : > { %v3748_v10 = vadd.f32 %v3747_v16, %v3707_v18 }
 0x628   : > { %v7520_v30 = vadd.f32 %v3788_v19, %v3748_v10  ;;  %v3783_v19 = vadd.f32 %v3782_v51, %v3742_v39 }
 0x62b   : > { %v3665_v55 = vpop.f32.mrf.mxu3  ;;  %v3709_v0 = vpop.f32.mrf.mxu1 }
 0x62c   : > { %v7522_v3 = vadd.f32 %v3665_v55, %v3625_v28  ;;  %v3710_v25 = vadd.f32 %v3709_v0, %v3514_v47  ;;  %v3807_v55 = vmax.f32 %v3783_v19, 0.0  ;;  %v3660_v47 = vadd.f32 %v3659_v22, %v3619_v1 }
 0x62d   : > { %v3631_v0 = vadd.f32 %v3630_v45, %v3590_v44  ;;  %v3704_v45 = vadd.f32 %v3703_v12, %v3504_v59 }
 0x62e   : > { %v3751_v32 = vadd.f32 %v3750_v46, %v3710_v25  ;;  %v3823_v62 = vmin.f32 %v3807_v55, 6.0  ;;  %v3806_v34 = vmax.f32 %v3660_v47, 0.0 }
 0x62f   : > { %v3745_v19 = vadd.f32 %v7514_v53, %v3704_v45 }
 0x630   : > { %v7524_v20 = vadd.f32 %v3791_v6, %v3751_v32  ;;  %v3822_v7 = vmin.f32 %v3806_v34, 6.0 }
 0x631   : > { %v3786_v59 = vadd.f32 %v7516_v11, %v3745_v19 }
 0x633   : > { %v3668_v16 = vpop.f32.mrf.mxu3  ;;  %v3712_v61 = vpop.f32.mrf.mxu1 }
 0x634   : > { %v7526_v18 = vadd.f32 %v3668_v16, %v3628_v37  ;;  %v3713_v10 = vadd.f32 %v3712_v61, %v3519_v2  ;;  %v3622_v37 = vadd.f32 %v7497_v38, %v3581_v5  ;;  %v3756_v38 = vpop.f32.mrf.mxu0  ;;  %v3797_v61 = vpop.f32.mrf.mxu2 }
 0x636   : > { %v3754_v28 = vadd.f32 %v3753_v41, %v3713_v10  ;;  %v3663_v36 = vadd.f32 %v3662_v29, %v3622_v37 }
 0x638   : > { %v3795_v46 = vadd.f32 %v3794_v43, %v3754_v28  ;;  %v3808_v22 = vmax.f32 %v3663_v36, 0.0  ;;  %v3810_v28 = vmax.f32 %v7522_v3, 0.0 }
 0x63a   : > { %v3815_v6 = vmax.f32 %v3795_v46, 0.0  ;;  %v3824_v10 = vmin.f32 %v3808_v22, 6.0  ;;  %v3809_v46 = vmax.f32 %v3786_v59, 0.0  ;;  %v3826_v5 = vmin.f32 %v3810_v28, 6.0 }
 0x63b   : > { %v3671_v63 = vpop.f32.mrf.mxu3  ;;  %v3715_v57 = vpop.f32.mrf.mxu1 }
 0x63c   : > { %v3831_v25 = vmin.f32 %v3815_v6, 6.0  ;;  %v3672_v39 = vadd.f32 %v3671_v63, %v3631_v0  ;;  %v3716_v44 = vadd.f32 %v3715_v57, %v7501_v31  ;;  %v3825_v63 = vmin.f32 %v3809_v46, 6.0  ;;  %v3800_v36 = vpop.f32.mrf.mxu2 }
 0x63e   : > { %v7531_v51 = vadd.f32 %v3831_v25, %v3823_v62  ;;  %v3814_v2 = vmax.f32 %v3672_v39, 0.0  ;;  %v3757_v41 = vadd.f32 %v3756_v38, %v3716_v44  ;;  %v3811_v38 = vmax.f32 %v7520_v30, 0.0 }
 0x640   : > { %8345 = vst [vmem:[#allocation4_spill] sm:$0xff] %v7531_v51  ;;  %v3830_v32 = vmin.f32 %v3814_v2, 6.0  ;;  %4114 = vrot.lane.b32.xlu2 %v7531_v51, %s5134_s17  ;;  %3946 = vrot.lane.b32.xlu0 %v7531_v51, %s8346_s18  ;;  %v3798_v31 = vadd.f32 %v3797_v61, %v3757_v41 }
 0x641   : > { %3986 = vrot.lane.b32.xlu1 %v7531_v51, %s8347_s28 }
 0x642   : > { %v7539_v43 = vadd.f32 %v3830_v32, %v3822_v7  ;;  %v3817_v55 = vmax.f32 %v3798_v31, 0.0 }
 0x643   : > { %v3674_v35 = vpop.f32.mrf.mxu3  ;;  %v3718_v57 = vpop.f32.mrf.mxu1 }
 0x644   : > { %8348 = vst [vmem:[#allocation24_spill] sm:$0xff] %v7539_v43  ;;  %v3675_v29 = vadd.f32 %v3674_v35, %v7504_v58  ;;  %v3833_v0 = vmin.f32 %v3817_v55, 6.0  ;;  %v3827_v35 = vmin.f32 %v3811_v38, 6.0 }
 0x646   : > { %v3816_v16 = vmax.f32 %v3675_v29, 0.0  ;;  %v7565_v34 = vadd.f32 %v3833_v0, %v3825_v63 }
 0x648   : > { %v3832_v1 = vmin.f32 %v3816_v16, 6.0  ;;  %4074 = vrot.lane.b32.xlu0 %v7531_v51, %s8349_s19  ;;  %3938 = vrot.lane.b32.xlu2 %v7539_v43, %s8346_s18  ;;  %8353 = vst [vmem:[#allocation15_spill] sm:$0xff] %v7565_v34  ;;  %v3803_v16 = vpop.f32.mrf.mxu2 }
 0x649   : > { %3906 = vrot.lane.b32.xlu1 %v7531_v51, %s8350_s27 }
 0x64a   : > { %v7550_v12 = vadd.f32 %v3832_v1, %v3824_v10  ;;  %v3813_v10 = vmax.f32 %v7524_v20, 0.0 }
 0x64b   : > { %v3677_v58 = vpop.f32.mrf.mxu3  ;;  %v3721_v30 = vpop.f32.mrf.mxu1 }
 0x64c   : > { %8351 = vst [vmem:[#allocation23_spill] sm:$0xff] %v7550_v12  ;;  %v3678_v53 = vadd.f32 %v3677_v58, %v7509_v8  ;;  %v3812_v8 = vmax.f32 %v7526_v18, 0.0  ;;  %v3759_v18 = vpop.f32.mrf.mxu0  ;;  %v3722_v22 = vadd.f32 %v3721_v30, %v7511_v24  ;;  %v3829_v31 = vmin.f32 %v3813_v10, 6.0 }
 0x64e   : > { %v3818_v47 = vmax.f32 %v3678_v53, 0.0  ;;  %v3828_v39 = vmin.f32 %v3812_v8, 6.0 }
 0x650   : > { %v3834_v6 = vmin.f32 %v3818_v47, 6.0  ;;  %4066 = vrot.lane.b32.xlu2 %v7539_v43, %s8349_s19  ;;  %3978 = vrot.lane.b32.xlu0 %v7539_v43, %s8347_s28 }
 0x651   : > { %4106 = vrot.lane.b32.xlu1 %v7539_v43, %s5134_s17 }
 0x652   : > { %v7561_v11 = vadd.f32 %v3834_v6, %v3826_v5 }
 0x653   : > { %v3680_v3 = vpop.f32.mrf.mxu3 }
 0x654   : > { %8352 = vst [vmem:[#allocation13_spill] sm:$0xff] %v7561_v11  ;;  %v3681_v62 = vadd.f32 %v3680_v3, %v7518_v15  ;;  %v3719_v15 = vadd.f32 %v3718_v57, %v7506_v4  ;;  %v3762_v29 = vpop.f32.mrf.mxu0 }
 0x655   : > { %v3763_v41 = vadd.f32 %v3762_v29, %v3722_v22 }
 0x656   : > { %v3820_v25 = vmax.f32 %v3681_v62, 0.0  ;;  %v3760_v7 = vadd.f32 %v3759_v18, %v3719_v15 }
 0x657   : > { %v3804_v61 = vadd.f32 %v3803_v16, %v3763_v41 }
 0x658   : > { %v3836_v37 = vmin.f32 %v3820_v25, 6.0  ;;  %3988 = vrot.lane.b32.xlu2 %v7565_v34, %s8347_s28  ;;  %3898 = vrot.lane.b32.xlu0 %v7539_v43, %s8350_s27  ;;  %v3801_v32 = vadd.f32 %v3800_v36, %v3760_v7 }
 0x659   : > { %4116 = vrot.lane.b32.xlu1 %v7565_v34, %s5134_s17  ;;  %v3821_v19 = vmax.f32 %v3804_v61, 0.0 }
 0x65a   : > { %v7573_v2 = vadd.f32 %v3836_v37, %v3828_v39  ;;  %v3819_v44 = vmax.f32 %v3801_v32, 0.0 }
 0x65b   : > { %v3837_v24 = vmin.f32 %v3821_v19, 6.0 }
 0x65c   : > { %8354 = vst [vmem:[#allocation25_spill] sm:$0xff] %v7573_v2  ;;  %v3835_v4 = vmin.f32 %v3819_v44, 6.0 }
 0x65d   : > { %v7629_v58 = vadd.f32 %v3837_v24, %v3829_v31 }
 0x65e   : > { %v7595_v45 = vadd.f32 %v3835_v4, %v3827_v35 }
 0x65f   : > { %8356 = vst [vmem:[#allocation27_spill] sm:$0xff] %v7629_v58 }
 0x660   : > { %3948 = vrot.lane.b32.xlu2 %v7565_v34, %s8346_s18  ;;  %3908 = vrot.lane.b32.xlu0 %v7565_v34, %s8350_s27  ;;  %8355 = vst [vmem:[#allocation17_spill] sm:$0xff] %v7595_v45 }
 0x661   : > { %3868 = vrot.lane.b32.xlu1 %v7565_v34, %s8326_s26 }
 0x668   : > { %4076 = vrot.lane.b32.xlu2 %v7565_v34, %s8349_s19  ;;  %4108 = vrot.lane.b32.xlu0 %v7550_v12, %s5134_s17 }
 0x669   : > { %3980 = vrot.lane.b32.xlu1 %v7550_v12, %s8347_s28 }
 0x670   : > { %3900 = vrot.lane.b32.xlu2 %v7550_v12, %s8350_s27  ;;  %3860 = vrot.lane.b32.xlu0 %v7550_v12, %s8326_s26 }
 0x671   : > { %3940 = vrot.lane.b32.xlu1 %v7550_v12, %s8346_s18 }
 0x678   : > { %3910 = vrot.lane.b32.xlu2 %v7595_v45, %s8350_s27  ;;  %3990 = vrot.lane.b32.xlu0 %v7595_v45, %s8347_s28 }
 0x679   : > { %4068 = vrot.lane.b32.xlu1 %v7550_v12, %s8349_s19 }
 0x680   : > { %4038 = vrot.lane.b32.xlu2 %v7595_v45, %s8320_s23  ;;  %4118 = vrot.lane.b32.xlu0 %v7595_v45, %s5134_s17 }
 0x681   : > { %3950 = vrot.lane.b32.xlu1 %v7595_v45, %s8346_s18 }
 0x688   : > { %3982 = vrot.lane.b32.xlu2 %v7561_v11, %s8347_s28  ;;  %3870 = vrot.lane.b32.xlu0 %v7595_v45, %s8326_s26 }
 0x689   : > { %4078 = vrot.lane.b32.xlu1 %v7595_v45, %s8349_s19 }
 0x690   : > { %4110 = vrot.lane.b32.xlu2 %v7561_v11, %s5134_s17  ;;  %3942 = vrot.lane.b32.xlu0 %v7561_v11, %s8346_s18 }
 0x691   : > { %3902 = vrot.lane.b32.xlu1 %v7561_v11, %s8350_s27 }
 0x698   : > { %3862 = vrot.lane.b32.xlu2 %v7561_v11, %s8326_s26  ;;  %4070 = vrot.lane.b32.xlu0 %v7561_v11, %s8349_s19 }
 0x699   : > { %4030 = vrot.lane.b32.xlu1 %v7561_v11, %s8320_s23 }
 0x69a   : > { %v4115_v1 = vpop.permute.xlu2 %4114 }
 0x6a0   : > { %4120 = vrot.lane.b32.xlu2 %v7629_v58, %s5134_s17  ;;  %3952 = vrot.lane.b32.xlu0 %v7629_v58, %s8346_s18 }
 0x6a1   : > { %3992 = vrot.lane.b32.xlu1 %v7629_v58, %s8347_s28 }
 0x6a2   : > { %v3939_v20 = vpop.permute.xlu2 %3938 }
 0x6a8   : > { %3872 = vrot.lane.b32.xlu2 %v7629_v58, %s8326_s26  ;;  %4080 = vrot.lane.b32.xlu0 %v7629_v58, %s8349_s19 }
 0x6a9   : > { %3912 = vrot.lane.b32.xlu1 %v7629_v58, %s8350_s27 }
 0x6aa   : > { %v4067_v59 = vpop.permute.xlu2 %4066 }
 0x6b0   : > { %3944 = vrot.lane.b32.xlu2 %v7573_v2, %s8346_s18  ;;  %3984 = vrot.lane.b32.xlu0 %v7573_v2, %s8347_s28 }
 0x6b1   : > { %4040 = vrot.lane.b32.xlu1 %v7629_v58, %s8320_s23 }
 0x6b2   : > { %v3947_v28 = vpop.permute.xlu0 %3946  ;;  %v3989_v53 = vpop.permute.xlu2 %3988 }
 0x6b3   : > { %v7651_v55 = vsel %vm2234_vm6, %v3939_v20, %v3947_v28  ;;  %v7655_v47 = vsel %vm2234_vm6, %v3947_v28, %v3939_v20  ;;  %v3987_v46 = vpop.permute.xlu1 %3986 }
 0x6b8   : > { %4072 = vrot.lane.b32.xlu2 %v7573_v2, %s8349_s19  ;;  %3904 = vrot.lane.b32.xlu0 %v7573_v2, %s8350_s27  ;;  %s8155_s19 = scalar_lea.vmem %s8191_s16, %s5233_s25 }
 0x6b9   : > { %4112 = vrot.lane.b32.xlu1 %v7573_v2, %s5134_s17 }
 0x6ba   : > { %v4075_v5 = vpop.permute.xlu0 %4074  ;;  %v3949_v6 = vpop.permute.xlu2 %3948 }
 0x6bb   : > { %v7665_v0 = vsel %vm2380_vm11, %v4067_v59, %v4075_v5  ;;  %v7669_v3 = vsel %vm2380_vm11, %v4075_v5, %v4067_v59  ;;  %v3907_v63 = vpop.permute.xlu1 %3906 }
 0x6bc   : > { %8357 = vst [vmem:[#allocation19_spill] sm:$0xff] %v7669_v3 }
 0x6c0   : > { %4028 = vrot.lane.b32.xlu2 %v7550_v12, %s8320_s23  ;;  %4036 = vrot.lane.b32.xlu0 %v7565_v34, %s8320_s23 }
 0x6c1   : > { %3858 = vrot.lane.b32.xlu1 %v7539_v43, %s8326_s26 }
 0x6c2   : > { %v4077_v8 = vpop.permute.xlu2 %4076  ;;  %v3979_v62 = vpop.permute.xlu0 %3978 }
 0x6c3   : > { %v4107_v25 = vpop.permute.xlu1 %4106  ;;  %v7679_v39 = vsel %vm2280_vm5, %v3979_v62, %v3987_v46  ;;  %v7683_v37 = vsel %vm2280_vm5, %v3987_v46, %v3979_v62  ;;  %v4260_v46 = vld [vmem:[%s8188_s13 + $0x10] sm:$0xff] }
 0x6c4   : > { %v7687_v57 = vsel %vm2426_vm10, %v4107_v25, %v4115_v1  ;;  %v7691_v15 = vsel %vm2426_vm10, %v4115_v1, %v4107_v25 }
 0x6c5   : > { %8358 = vst [vmem:[#allocation14_spill] sm:$0xff] %v7691_v15 }
 0x6c8   : > { %3866 = vrot.lane.b32.xlu2 %v7531_v51, %s8326_s26  ;;  %4032 = vrot.lane.b32.xlu0 %v7573_v2, %s8320_s23 }
 0x6c9   : > { %3864 = vrot.lane.b32.xlu1 %v7573_v2, %s8326_s26 }
 0x6ca   : > { %v3901_v18 = vpop.permute.xlu2 %3900  ;;  %v3899_v7 = vpop.permute.xlu0 %3898 }
 0x6cb   : > { %v4117_v36 = vpop.permute.xlu1 %4116  ;;  %v7701_v32 = vsel %vm2188_vm7, %v3899_v7, %v3907_v63  ;;  %v7705_v44 = vsel %vm2188_vm7, %v3907_v63, %v3899_v7  ;;  %v4261_v63 = vld [vmem:[%s8188_s13 + $0x18] sm:$0xff]  ;;  %v4536_v7 = vld [vmem:[%s8190_s15] sm:$0xff] }
 0x6d0   : > { %4158 = vrot.lane.b32.xlu2 %v7595_v45, %s8327_s30  ;;  %4026 = vrot.lane.b32.xlu0 %v7539_v43, %s8320_s23 }
 0x6d1   : > { %4034 = vrot.lane.b32.xlu1 %v7531_v51, %s8320_s23 }
 0x6d2   : > { %v7713_v38 = vpop.permute.xlu2 %3910  ;;  %v3909_v4 = vpop.permute.xlu0 %3908 }
 0x6d3   : > { %v3869_v35 = vpop.permute.xlu1 %3868  ;;  %v7717_v30 = vsel %vm2188_vm7, %v3901_v18, %v3909_v4  ;;  %v7721_v22 = vsel %vm2188_vm7, %v3909_v4, %v3901_v18  ;;  %v4258_v4 = vld [vmem:[%s8188_s13] sm:$0xff] }
 0x6d8   : > { %4152 = vrot.lane.b32.xlu2 %v7573_v2, %s8327_s30  ;;  %4160 = vrot.lane.b32.xlu0 %v7629_v58, %s8327_s30 }
 0x6d9   : > { %4150 = vrot.lane.b32.xlu1 %v7561_v11, %s8327_s30 }
 0x6da   : > { %v4109_v29 = vpop.permute.xlu0 %4108  ;;  %v7745_v24 = vpop.permute.xlu2 %4038 }
 0x6db   : > { %v3981_v41 = vpop.permute.xlu1 %3980  ;;  %v7731_v16 = vsel %vm2426_vm10, %v4109_v29, %v4117_v36  ;;  %v7735_v61 = vsel %vm2426_vm10, %v4117_v36, %v4109_v29  ;;  %v4259_v36 = vld [vmem:[%s8188_s13 + $0x8] sm:$0xff] }
 0x6dc   : > { %8359 = vst [vmem:[#allocation16_spill] sm:$0xff] %v7735_v61  ;;  %v7739_v19 = vsel %vm2280_vm5, %v3981_v41, %v3989_v53  ;;  %v7743_v10 = vsel %vm2280_vm5, %v3989_v53, %v3981_v41 }
 0x6e0   : > { %4146 = vrot.lane.b32.xlu2 %v7539_v43, %s8327_s30  ;;  %4148 = vrot.lane.b32.xlu0 %v7550_v12, %s8327_s30 }
 0x6e1   : > { %4156 = vrot.lane.b32.xlu1 %v7565_v34, %s8327_s30 }
 0x6e2   : > { %v3861_v1 = vpop.permute.xlu0 %3860  ;;  %v3983_v5 = vpop.permute.xlu2 %3982 }
 0x6e3   : > { %v3941_v31 = vpop.permute.xlu1 %3940  ;;  %v7755_v20 = vsel %vm2142_vm8, %v3861_v1, %v3869_v35  ;;  %v7759_v59 = vsel %vm2142_vm8, %v3869_v35, %v3861_v1  ;;  %v4539_v1 = vld [vmem:[%s8190_s15 + $0x18] sm:$0xff] }
 0x6e4   : > { %v7763_v28 = vsel %vm2234_vm6, %v3941_v31, %v3949_v6  ;;  %v7767_v53 = vsel %vm2234_vm6, %v3949_v6, %v3941_v31  ;;  %v4537_v31 = vld [vmem:[%s8190_s15 + $0x8] sm:$0xff] }
 0x6e8   : > { %4274 = vperm.xlu2 %4884, %v4260_v46   ;;  %4154 = vrot.lane.b32.xlu0 %v7531_v51, %s8327_s30  ;;  %v4538_v46 = vld [vmem:[%s8190_s15 + $0x10] sm:$0xff] }
 0x6e9   : > { %4279 = vperm.xlu1 %4883, %v4261_v63  }
 0x6ea   : > { %v3991_v62 = vpop.permute.xlu0 %3990  ;;  %v4111_v35 = vpop.permute.xlu2 %4110 }
 0x6eb   : > { %v4069_v25 = vpop.permute.xlu1 %4068  ;;  %v4000_v26 = vsel %vm2280_vm5, %v3991_v62, %v3983_v5 }
 0x6ec   : > { %v7779_v6 = vsel %vm2380_vm11, %v4069_v25, %v4077_v8  ;;  %v7783_v18 = vsel %vm2380_vm11, %v4077_v8, %v4069_v25  ;;  %v4006_v2 = vmul.f32 %v4000_v26, %v8331_v48 }
 0x6ed   : > { %8360 = vst [vmem:[#allocation18_spill] sm:$0xff] %v7783_v18 }
 0x6f0   : > { %4542 = vperm.xlu2 %4884, %v4536_v7   ;;  %4269 = vperm.xlu0 %4882, %v4259_v36  }
 0x6f1   : > { %4264 = vperm.xlu1 %4883, %v4258_v4  }
 0x6f2   : > { %v4119_v29 = vpop.permute.xlu0 %4118  ;;  %v7807_v63 = vpop.permute.xlu2 %3862 }
 0x6f3   : > { %v3951_v41 = vpop.permute.xlu1 %3950  ;;  %v7796_v8 = vsel %vm2426_vm10, %v4119_v29, %v4111_v35 }
 0x6f8   : > { %4557 = vperm.xlu2 %4884, %v4539_v1   ;;  %4547 = vperm.xlu0 %4882, %v4537_v31  }
 0x6f9   : > { %4552 = vperm.xlu1 %4883, %v4538_v46  }
 0x6fa   : > { %v7809_v25 = vpop.permute.xlu0 %3870  ;;  %v7815_v40 = vpop.permute.xlu2 %4120 }
 0x6fb   : > { %v7811_v7 = vpop.permute.xlu1 %4078 }
 0x702   : > { %v3943_v36 = vpop.permute.xlu0 %3942  ;;  %v7833_v46 = vpop.permute.xlu2 %3872 }
 0x703   : > { %v7813_v4 = vpop.permute.xlu1 %3902 }
 0x70a   : > { %v7817_v51 = vpop.permute.xlu0 %4070  ;;  %v3945_v13 = vpop.permute.xlu2 %3944 }
 0x70b   : > { %v7819_v34 = vpop.permute.xlu1 %4030  ;;  %v7825_v1 = vsel %vm2380_vm11, %v7811_v7, %v7817_v51 }
 0x70c   : > { %8361 = vst [vmem:[#allocation20_spill] sm:$0xff] %v7825_v1  ;;  %v7831_v31 = vsel %vm2334_vm12, %v7745_v24, %v7819_v34  ;;  %v3996_v1 = vsel %vm2280_vm5, %v3983_v5, %v3991_v62  ;;  %v4004_v5 = vmul.f32 %v7743_v10, %v8331_v48  ;;  %v4005_v62 = vmul.f32 %v7739_v19, %v8339_v14 }
 0x70d   : > { %8362 = vst [vmem:[#allocation37_spill] sm:$0xff] %v7831_v31  ;;  %v4007_v61 = vmul.f32 %v3996_v1, %v8339_v14 }
 0x712   : > { %v3953_v45 = vpop.permute.xlu0 %3952  ;;  %v7837_v43 = vpop.permute.xlu2 %4072 }
 0x713   : > { %v3993_v58 = vpop.permute.xlu1 %3992  ;;  %v3957_v26 = vsel %vm2234_vm6, %v3945_v13, %v3953_v45 }
 0x71a   : > { %v7835_v3 = vpop.permute.xlu0 %4080 }
 0x71b   : > { %v3913_v18 = vpop.permute.xlu1 %3912 }
 0x722   : > { %v3985_v12 = vpop.permute.xlu0 %3984 }
 0x723   : > { %v7843_v50 = vpop.permute.xlu1 %4040  ;;  %v3997_v31 = vsel %vm2280_vm5, %v3985_v12, %v3993_v58  ;;  %v4001_v52 = vsel %vm2280_vm5, %v3993_v58, %v3985_v12  ;;  %v3961_v12 = vsel %vm2234_vm6, %v3953_v45, %v3945_v13  ;;  %v4003_v58 = vmul.f32 %v7679_v39, %v8339_v14  ;;  %v7874_v13 = vpop.permute.xlu2 %4028 }
 0x724   : > { %v4008_v11 = vmul.f32 %v4001_v52, %v8331_v48  ;;  %v4009_v15 = vmul.f32 %v3997_v31, %v8339_v14  ;;  %v4002_v52 = vmul.f32 %v7683_v37, %v8331_v48  ;;  %v3956_v48 = vsel %vm2234_vm6, %v3943_v36, %v3951_v41 }
 0x725   : > { %v3968_v37 = vmul.f32 %v3961_v12, %v8332_v56  ;;  %v3969_v45 = vmul.f32 %v3957_v26, %v8340_v42  ;;  %v3962_v31 = vmul.f32 %v7655_v47, %v8332_v56  ;;  %v4092_v26 = vmul.f32 %v7779_v6, %v8333_v21 }
 0x726   : > { %4294 = vmatpush.msrb.mxu3 %v4008_v11  ;;  %4381 = vmatpush.msrb.mxu2 %v4009_v15  ;;  %v3960_v15 = vsel %vm2234_vm6, %v3951_v41, %v3943_v36  ;;  %v4132_v41 = vmul.f32 %v7731_v16, %v8329_v33  ;;  %v3965_v36 = vmul.f32 %v7763_v28, %v8340_v42 }
 0x727   : > { %v3966_v19 = vmul.f32 %v3960_v15, %v8332_v56  ;;  %v3963_v28 = vmul.f32 %v7651_v55, %v8340_v42 }
 0x728   : > { %4295 = vmatpush.msrb.mxu3 %v4006_v2  ;;  %4382 = vmatpush.msrb.mxu2 %v4007_v61  ;;  %v4124_v61 = vsel %vm2426_vm10, %v4111_v35, %v4119_v29  ;;  %v3967_v35 = vmul.f32 %v3956_v48, %v8340_v42  ;;  %v3964_v29 = vmul.f32 %v7767_v53, %v8332_v56 }
 0x729   : > { %v4134_v10 = vmul.f32 %v4124_v61, %v8329_v33  ;;  %v4085_v53 = vsel %vm2380_vm11, %v7837_v43, %v7835_v3  ;;  %v3920_v56 = vsel %vm2188_vm7, %v7713_v38, %v7813_v4  ;;  %v4084_v42 = vsel %vm2380_vm11, %v7817_v51, %v7811_v7 }
 0x72a   : > { %4296 = vmatpush.msrb.mxu3 %v4004_v5  ;;  %4383 = vmatpush.msrb.mxu2 %v4005_v62  ;;  %v3905_v11 = vpop.permute.xlu0 %3904  ;;  %v4130_v62 = vmul.f32 %v7687_v57, %v8329_v33  ;;  %v4096_v55 = vmul.f32 %v4085_v53, %v8333_v21  ;;  %v3926_v12 = vmul.f32 %v3920_v56, %v8335_v27 }
 0x72b   : > { %v7867_v2 = vpop.permute.xlu1 %4112  ;;  %v3921_v1 = vsel %vm2188_vm7, %v3913_v18, %v3905_v11  ;;  %v3917_v5 = vsel %vm2188_vm7, %v3905_v11, %v3913_v18  ;;  %v3916_v18 = vsel %vm2188_vm7, %v7813_v4, %v7713_v38  ;;  %v4094_v4 = vmul.f32 %v4084_v42, %v8333_v21 }
 0x72c   : > { %v4125_v14 = vsel %vm2426_vm10, %v7867_v2, %v7815_v40  ;;  %4297 = vmatpush.msrb.mxu3 %v4002_v52  ;;  %4384 = vmatpush.msrb.mxu2 %v4003_v58  ;;  %v3929_v57 = vmul.f32 %v3917_v5, %v8343_v60  ;;  %v3867_v52 = vpop.permute.xlu2 %3866  ;;  %v3927_v38 = vmul.f32 %v3916_v18, %v8343_v60  ;;  %v3849_v18 = vld [vmem:[%s8187_s12 + $0x18] sm:$0xff] }
 0x72d   : > { %v4136_v39 = vmul.f32 %v4125_v14, %v8329_v33  ;;  %v3928_v33 = vmul.f32 %v3921_v1, %v8335_v27  ;;  %v3924_v51 = vmul.f32 %v7721_v22, %v8335_v27  ;;  %v3925_v7 = vmul.f32 %v7717_v30, %v8343_v60 }
 0x72e   : > { %4298 = vmatpush.msrb.mxu3 %v3968_v37  ;;  %4385 = vmatpush.msrb.mxu2 %v3969_v45  ;;  %v4090_v11 = vmul.f32 %v7665_v0, %v8333_v21  ;;  %v3922_v58 = vmul.f32 %v7705_v44, %v8335_v27  ;;  %v3923_v22 = vmul.f32 %v7701_v32, %v8343_v60 }
 0x72f   : > { %4323 = vmatpush.msra.mxu1 %v4136_v39  ;;  %v3880_v30 = vsel %vm2142_vm8, %v7809_v25, %v7807_v63  ;;  %v4044_v27 = vsel %vm2334_vm12, %v7819_v34, %v7745_v24  ;;  %v3876_v44 = vsel %vm2142_vm8, %v7807_v63, %v7809_v25  ;;  %v3884_v14 = vmul.f32 %v7759_v59, %v8338_v17 }
 0x730   : > { %4299 = vmatpush.msrb.mxu3 %v3966_v19  ;;  %4386 = vmatpush.msrb.mxu2 %v3967_v35  ;;  %v4054_v48 = vmul.f32 %v4044_v27, %v8336_v54  ;;  %v3887_v37 = vmul.f32 %v3876_v44, %v8344_v23  ;;  %v3885_v19 = vmul.f32 %v7755_v20, %v8344_v23  ;;  %v8374_v27 = vld [vmem:[#allocation19_spill] sm:$0xff] }
 0x731   : > { %4324 = vmatpush.msra.mxu1 %v4134_v10  ;;  %v4129_v10 = vsel %vm2426_vm10, %v7815_v40, %v7867_v2 }
 0x732   : > { %4300 = vmatpush.msrb.mxu3 %v3964_v29  ;;  %v7901_v16 = vpop.permute.xlu0 %4036  ;;  %4387 = vmatpush.msrb.mxu2 %v3965_v36  ;;  %v4137_v2 = vmul.f32 %v4129_v10, %v8330_v9  ;;  %v4135_v36 = vmul.f32 %v7796_v8, %v8330_v9  ;;  %v3855_v10 = vld [vmem:[%s8187_s12 + $0x48] sm:$0xff] }
 0x733   : > { %v3859_v47 = vpop.permute.xlu1 %3858  ;;  %4325 = vmatpush.msra.mxu1 %v4132_v41  ;;  %v4043_v24 = vsel %vm2334_vm12, %v7874_v13, %v7901_v16  ;;  %v3846_v41 = vld [vmem:[%s8187_s12] sm:$0xff] }
 0x734   : > { %4301 = vmatpush.msrb.mxu3 %v3962_v31  ;;  %4388 = vmatpush.msrb.mxu2 %v3963_v28  ;;  %v4159_v63 = vpop.permute.xlu2 %4158  ;;  %v3878_v25 = vsel %vm2142_vm8, %v3867_v52, %v3859_v47  ;;  %v3874_v45 = vsel %vm2142_vm8, %v3859_v47, %v3867_v52  ;;  %v4052_v39 = vmul.f32 %v4043_v24, %v8336_v54  ;;  %v8365_v28 = vld [vmem:[#allocation14_spill] sm:$0xff]  ;;  %v8370_v52 = vld [vmem:[#allocation23_spill] sm:$0xff] }
 0x735   : > { %4326 = vmatpush.msra.mxu1 %v4130_v62  ;;  %v3882_v59 = vmul.f32 %v3878_v25, %v8338_v17  ;;  %v3883_v20 = vmul.f32 %v3874_v45, %v8344_v23  ;;  %v4089_v31 = vsel %vm2380_vm11, %v7835_v3, %v7837_v43  ;;  %v4131_v62 = vmul.f32 %v8365_v28, %v8330_v9  ;;  %v8366_v43 = vld [vmem:[#allocation13_spill] sm:$0xff] }
 0x736   : > { %4302 = vmatpush.msrb.mxu3 %v3928_v33  ;;  %4389 = vmatpush.msrb.mxu2 %v3929_v57  ;;  %v8367_v3 = vld [vmem:[#allocation21_spill] sm:$0xff]  ;;  %v8368_v33 = vld [vmem:[#allocation26_spill] sm:$0xff] }
 0x737   : > { %4327 = vmatpush.msra.mxu1 %v4096_v55  ;;  %v4097_v55 = vmul.f32 %v4089_v31, %v8368_v33  ;;  %v8369_v57 = vld [vmem:[#allocation22_spill] sm:$0xff] }
 0x738   : > { %4303 = vmatpush.msrb.mxu3 %v3926_v12  ;;  %4390 = vmatpush.msrb.mxu2 %v3927_v38  ;;  %v3847_v38 = vld [vmem:[%s8187_s12 + $0x8] sm:$0xff] }
 0x739   : > { %4328 = vmatpush.msra.mxu1 %v4094_v4  ;;  %v8371_v4 = vld [vmem:[#allocation20_spill] sm:$0xff] }
 0x73a   : > { %4304 = vmatpush.msrb.mxu3 %v3924_v51  ;;  %v7935_v15 = vpop.permute.xlu0 %4032  ;;  %4391 = vmatpush.msrb.mxu2 %v3925_v7  ;;  %v4095_v51 = vmul.f32 %v8371_v4, %v8368_v33 }
 0x73b   : > { %v3865_v6 = vpop.permute.xlu1 %3864  ;;  %4329 = vmatpush.msra.mxu1 %v4092_v26  ;;  %v4045_v21 = vsel %vm2334_vm12, %v7935_v15, %v7843_v50 }
 0x73c   : > { %v3877_v60 = vsel %vm2142_vm8, %v3865_v6, %v7833_v46  ;;  %v3881_v0 = vsel %vm2142_vm8, %v7833_v46, %v3865_v6  ;;  %v4056_v32 = vmul.f32 %v4045_v21, %v8336_v54  ;;  %4305 = vmatpush.msrb.mxu3 %v3922_v58  ;;  %4392 = vmatpush.msrb.mxu2 %v3923_v22  ;;  %v4153_v53 = vpop.permute.xlu2 %4152  ;;  %v8373_v58 = vld [vmem:[#allocation18_spill] sm:$0xff] }
 0x73d   : > { %v3888_v61 = vmul.f32 %v3881_v0, %v8338_v17  ;;  %v3889_v34 = vmul.f32 %v3877_v60, %v8344_v23  ;;  %4330 = vmatpush.msra.mxu1 %v4090_v11  ;;  %v3886_v46 = vmul.f32 %v3880_v30, %v8338_v17  ;;  %v8363_v23 = vld [vmem:[#allocation16_spill] sm:$0xff]  ;;  %v4093_v22 = vmul.f32 %v8373_v58, %v8368_v33 }
 0x73e   : > { %v4133_v1 = vmul.f32 %v8363_v23, %v8330_v9  ;;  %v8372_v11 = vld [vmem:[#allocation24_spill] sm:$0xff]  ;;  %v4049_v30 = vsel %vm2334_vm12, %v7843_v50, %v7935_v15  ;;  %v4091_v60 = vmul.f32 %v8374_v27, %v8368_v33 }
 0x73f   : > { %4306 = vmatpush.msrb.mxu3 %v3888_v61  ;;  %4331 = vmatpush.msra.mxu1 %v4056_v32  ;;  %v3852_v32 = vld [vmem:[%s8187_s12 + $0x30] sm:$0xff]  ;;  %v8375_v15 = vld [vmem:[#allocation28_spill] sm:$0xff] }
 0x740   : > { %4393 = vmatpush.msrb.mxu2 %v3889_v34  ;;  %v4057_v61 = vmul.f32 %v4049_v30, %v8375_v15  ;;  %v3854_v23 = vld [vmem:[%s8187_s12 + $0x40] sm:$0xff] }
 0x741   : > { %4307 = vmatpush.msrb.mxu3 %v3886_v46  ;;  %4332 = vmatpush.msra.mxu1 %v4054_v48  ;;  %v4047_v46 = vsel %vm2334_vm12, %v7901_v16, %v7874_v13  ;;  %v3850_v48 = vld [vmem:[%s8187_s12 + $0x20] sm:$0xff] }
 0x742   : > { %4394 = vmatpush.msrb.mxu2 %v3887_v37  ;;  %v7984_v35 = vpop.permute.xlu0 %4026  ;;  %v8376_v37 = vld [vmem:[#allocation37_spill] sm:$0xff] }
 0x743   : > { %v7987_v29 = vpop.permute.xlu1 %4034  ;;  %4308 = vmatpush.msrb.mxu3 %v3884_v14  ;;  %4333 = vmatpush.msra.mxu1 %v4052_v39  ;;  %v4053_v14 = vmul.f32 %v4047_v46, %v8375_v15 }
 0x744   : > { %4395 = vmatpush.msrb.mxu2 %v3885_v19  ;;  %v4042_v40 = vsel %vm2334_vm12, %v7984_v35, %v7987_v29  ;;  %v4046_v25 = vsel %vm2334_vm12, %v7987_v29, %v7984_v35  ;;  %v4147_v13 = vpop.permute.xlu2 %4146  ;;  %v3848_v29 = vld [vmem:[%s8187_s12 + $0x10] sm:$0xff] }
 0x745   : > { %v4050_v17 = vmul.f32 %v4042_v40, %v8336_v54  ;;  %4309 = vmatpush.msrb.mxu3 %v3882_v59  ;;  %v8364_v54 = vld [vmem:[#allocation25_spill] sm:$0xff]  ;;  %v4051_v45 = vmul.f32 %v4046_v25, %v8375_v15  ;;  %v8379_v40 = vld [vmem:[#allocation15_spill] sm:$0xff] }
 0x746   : > { %4396 = vmatpush.msrb.mxu2 %v3883_v20  ;;  %4310 = vmatmul.f32.vlgmr.msrb.gmra.mxu3 %v3846_v41  ;;  %v8378_v20 = vld [vmem:[#allocation17_spill] sm:$0xff] }
 0x747   : > { %4397 = vmatmul.f32.vlgmr.msrb.gmra.mxu2 %v3846_v41  ;;  %4410 = vmatpush.msra.mxu3 %v4137_v2  ;;  %v8377_v41 = vld [vmem:[#allocation27_spill] sm:$0xff]  ;;  %v8380_v2 = vld [vmem:[#allocation4_spill] sm:$0xff] }
 0x748   : > { %4334 = vmatpush.msra.mxu1 %v4050_v17  ;;  %v3851_v17 = vld [vmem:[%s8187_s12 + $0x28] sm:$0xff] }
 0x749   : > { %4411 = vmatpush.msra.mxu3 %v4135_v36  ;;  %v3856_v36 = vld [vmem:[%s8187_s12 + $0x50] sm:$0xff] }
 0x74a   : > { %4335 = vmatpush.msra.mxu1 %v8364_v54  ;;  %v4161_v5 = vpop.permute.xlu0 %4160 }
 0x74b   : > { %4412 = vmatpush.msra.mxu3 %v4133_v1  ;;  %v4151_v8 = vpop.permute.xlu1 %4150  ;;  %v4165_v56 = vsel %vm2472_vm9, %v4153_v53, %v4161_v5  ;;  %v4169_v47 = vsel %vm2472_vm9, %v4161_v5, %v4153_v53  ;;  %v3857_v1 = vld [vmem:[%s8187_s12 + $0x58] sm:$0xff] }
 0x74c   : > { %4336 = vmatpush.msra.mxu1 %v8366_v43  ;;  %v4176_v42 = vmul.f32 %v4165_v56, %v8367_v3  ;;  %v4164_v9 = vsel %vm2472_vm9, %v4151_v8, %v4159_v63  ;;  %v4177_v12 = vmul.f32 %v4169_v47, %v8369_v57  ;;  %v4168_v7 = vsel %vm2472_vm9, %v4159_v63, %v4151_v8 }
 0x74d   : > { %4413 = vmatpush.msra.mxu3 %v4131_v62  ;;  %v4174_v26 = vmul.f32 %v4164_v9, %v8367_v3  ;;  %v4175_v6 = vmul.f32 %v4168_v7, %v8369_v57  ;;  %v4055_v63 = vmul.f32 %v8376_v37, %v8375_v15 }
 0x74e   : > { %4337 = vmatpush.msra.mxu1 %v8370_v52  ;;  %4313 = vmatmul.f32.gmra.mxu3 %v3849_v18 }
 0x74f   : > { %4400 = vmatmul.f32.gmra.mxu2 %v3849_v18  ;;  %4414 = vmatpush.msra.mxu3 %v4097_v55 }
 0x750   : > { %4338 = vmatpush.msra.mxu1 %v8372_v11  ;;  %4364 = vmatpush.msra.mxu0 %v4176_v42 }
 0x751   : > { %4339 = vmatmul.f32.vlgmr.msra.gmra.mxu1 %v3847_v38  ;;  %4415 = vmatpush.msra.mxu3 %v4095_v51 }
 0x752   : > { %4451 = vmatpush.msrb.mxu1 %v4177_v12  ;;  %4365 = vmatpush.msra.mxu0 %v4174_v26  ;;  %v4149_v21 = vpop.permute.xlu0 %4148 }
 0x753   : > { %4416 = vmatpush.msra.mxu3 %v4093_v22  ;;  %v4157_v0 = vpop.permute.xlu1 %4156 }
 0x754   : > { %4452 = vmatpush.msrb.mxu1 %v4175_v6  ;;  %v4163_v44 = vsel %vm2472_vm9, %v4149_v21, %v4157_v0  ;;  %v4167_v50 = vsel %vm2472_vm9, %v4157_v0, %v4149_v21 }
 0x755   : > { %v4172_v34 = vmul.f32 %v4163_v44, %v8367_v3  ;;  %v4173_v24 = vmul.f32 %v4167_v50, %v8369_v57  ;;  %4417 = vmatpush.msra.mxu3 %v4091_v60 }
 0x756   : > { %4316 = vmatmul.f32.gmra.mxu3 %v3852_v32 }
 0x757   : > { %4403 = vmatmul.f32.gmra.mxu2 %v3852_v32  ;;  %4418 = vmatpush.msra.mxu3 %v4057_v61 }
 0x758   : > { %4366 = vmatpush.msra.mxu0 %v4172_v34  ;;  %4453 = vmatpush.msrb.mxu1 %v4173_v24 }
 0x759   : > { %4342 = vmatmul.f32.gmra.mxu1 %v3850_v48  ;;  %4419 = vmatpush.msra.mxu3 %v4055_v63 }
 0x75a   : > { %v4155_v16 = vpop.permute.xlu0 %4154 }
 0x75b   : > { %4420 = vmatpush.msra.mxu3 %v4053_v14  ;;  %v4162_v39 = vsel %vm2472_vm9, %v4147_v13, %v4155_v16  ;;  %v4166_v19 = vsel %vm2472_vm9, %v4155_v16, %v4147_v13  ;;  %v4280_v33 = vpop.permute.xlu1 %4279 }
 0x75c   : > { %v4170_v35 = vmul.f32 %v4162_v39, %v8367_v3  ;;  %v4171_v59 = vmul.f32 %v4166_v19, %v8369_v57 }
 0x75d   : > { %4421 = vmatpush.msra.mxu3 %v4051_v45 }
 0x75e   : > { %4319 = vmatmul.f32.gmra.mxu3 %v3855_v10  ;;  %4367 = vmatpush.msra.mxu0 %v4170_v35 }
 0x75f   : > { %4406 = vmatmul.f32.gmra.mxu2 %v3855_v10  ;;  %4422 = vmatpush.msra.mxu3 %v8377_v41 }
 0x760   : > { %4454 = vmatpush.msrb.mxu1 %v4171_v59  ;;  %4813 = vmatmul.msk.f32.vlgmr.msra.gmra.mxu0 %vm557_vm0, %v3848_v29 }
 0x761   : > { %4345 = vmatmul.f32.gmra.mxu1 %v3853_v49  ;;  %4423 = vmatpush.msra.mxu3 %v8378_v20 }
 0x762   : > { %v4270_v51 = vpop.permute.xlu0 %4269 }
 0x763   : > { %4424 = vmatpush.msra.mxu3 %v8379_v40  ;;  %v4265_v30 = vpop.permute.xlu1 %4264 }
 0x765   : > { %4425 = vmatpush.msra.mxu3 %v8380_v2 }
 0x766   : > { %4426 = vmatmul.f32.vlgmr.msra.gmra.mxu3 %v3847_v38  ;;  %v4275_v38 = vpop.permute.xlu2 %4274 }
 0x768   : > { %4814 = vmatmul.msk.f32.gmra.mxu0 %vm557_vm0, %v3851_v17 }
 0x769   : > { %4348 = vmatmul.f32.gmra.mxu1 %v3856_v36 }
 0x76e   : > { %4429 = vmatmul.f32.gmra.mxu3 %v3850_v48 }
 0x770   : > { %4815 = vmatmul.msk.f32.gmra.mxu0 %vm557_vm0, %v3854_v23 }
 0x771   : > { %4817 = vmatmul.msk.f32.vlgmr.msrb.gmra.mxu1 %vm557_vm0, %v3848_v29 }
 0x776   : > { %4432 = vmatmul.f32.gmra.mxu3 %v3853_v49 }
 0x778   : > { %4816 = vmatmul.msk.f32.gmra.mxu0 %vm557_vm0, %v3857_v1 }
 0x779   : > { %4818 = vmatmul.msk.f32.gmra.mxu1 %vm557_vm0, %v3851_v17 }
 0x77e   : > { %4435 = vmatmul.f32.gmra.mxu3 %v3856_v36 }
 0x781   : > { %4819 = vmatmul.msk.f32.gmra.mxu1 %vm557_vm0, %v3854_v23 }
 0x789   : > { %4820 = vmatmul.msk.f32.gmra.mxu1 %vm557_vm0, %v3857_v1  ;;  %vm4560_vm0 = vcmask 785408  }
 0x7c9   : > { %v4311_v31 = vpop.f32.mrf.mxu3 }
 0x7ca   : > { %v4398_v18 = vpop.f32.mrf.mxu2  ;;  %v4312_v6 = vadd.f32 %v4311_v31, %v4265_v30 }
 0x7cb   : > { %v4399_v49 = vadd.f32 %v4398_v18, %v4265_v30 }
 0x7ce   : > { %v4340_v53 = vpop.f32.mrf.mxu1 }
 0x7cf   : > { %v4341_v32 = vadd.f32 %v4340_v53, %v4312_v6 }
 0x7d1   : > { %v4314_v5 = vpop.f32.mrf.mxu3 }
 0x7d2   : > { %v4401_v9 = vpop.f32.mrf.mxu2  ;;  %v4315_v26 = vadd.f32 %v4314_v5, %v4270_v51 }
 0x7d3   : > { %v4402_v35 = vadd.f32 %v4401_v9, %v4270_v51  ;;  %v4509_v9 = vld [vmem:[%s8189_s14 + $0x8] sm:$0xff] }
 0x7d6   : > { %v4343_v28 = vpop.f32.mrf.mxu1 }
 0x7d7   : > { %v4344_v21 = vadd.f32 %v4343_v28, %v4315_v26 }
 0x7d9   : > { %v4317_v62 = vpop.f32.mrf.mxu3 }
 0x7da   : > { %v4318_v4 = vadd.f32 %v4317_v62, %v4275_v38  ;;  %v4404_v44 = vpop.f32.mrf.mxu2 }
 0x7db   : > { %v4405_v19 = vadd.f32 %v4404_v44, %v4275_v38  ;;  %v4543_v38 = vpop.permute.xlu2 %4542 }
 0x7dd   : > { %v4369_v8 = vpop.f32.mrf.mxu0 }
 0x7de   : > { %v4346_v56 = vpop.f32.mrf.mxu1  ;;  %v4370_v34 = vadd.f32 %v4369_v8, %v4341_v32 }
 0x7df   : > { %v4347_v58 = vadd.f32 %v4346_v56, %v4318_v4 }
 0x7e0   : > { %v4468_v25 = vmax.f32 %v4370_v34, 0.0 }
 0x7e1   : > { %v4320_v47 = vpop.f32.mrf.mxu3 }
 0x7e2   : > { %v4321_v22 = vadd.f32 %v4320_v47, %v4280_v33  ;;  %v4476_v45 = vmin.f32 %v4468_v25, 6.0  ;;  %v4407_v39 = vpop.f32.mrf.mxu2  ;;  %v8392_v25 = vld [vmem:[#allocation12_spill] sm:$0xff] }
 0x7e3   : > { %v4408_v59 = vadd.f32 %v4407_v39, %v4280_v33  ;;  %v8383_v33 = vld [vmem:[#allocation31_spill] sm:$0xff] }
 0x7e5   : > { %v4372_v3 = vpop.f32.mrf.mxu0 }
 0x7e6   : > { %v4349_v42 = vpop.f32.mrf.mxu1  ;;  %v4373_v50 = vadd.f32 %v4372_v3, %v4344_v21  ;;  %v8390_v21 = vld [vmem:[#allocation10_spill] sm:$0xff] }
 0x7e7   : > { %v4350_v27 = vadd.f32 %v4349_v42, %v4321_v22  ;;  %v8382_v42 = vld [vmem:[#allocation32_spill] sm:$0xff]  ;;  %v4548_v22 = vpop.permute.xlu0 %4547 }
 0x7e8   : > { %v4470_v37 = vmax.f32 %v4373_v50, 0.0  ;;  %v8391_v50 = vld [vmem:[#allocation6_spill] sm:$0xff] }
 0x7e9   : > { %v4427_v55 = vpop.f32.mrf.mxu3 }
 0x7ea   : > { %v4478_v13 = vmin.f32 %v4470_v37, 6.0  ;;  %v4428_v31 = vadd.f32 %v4427_v55, %v4399_v49  ;;  %v8384_v55 = vld [vmem:[#allocation30_spill] sm:$0xff] }
 0x7ed   : > { %v4375_v57 = vpop.f32.mrf.mxu0 }
 0x7ee   : > { %v4456_v12 = vpop.f32.mrf.mxu1  ;;  %v4376_v60 = vadd.f32 %v4375_v57, %v4347_v58  ;;  %v8385_v57 = vld [vmem:[#allocation36_spill] sm:$0xff] }
 0x7ef   : > { %v4457_v28 = vadd.f32 %v4456_v12, %v4428_v31  ;;  %v4511_v12 = vld [vmem:[%s8189_s14 + $0x18] sm:$0xff] }
 0x7f0   : > { %v4472_v24 = vmax.f32 %v4376_v60, 0.0  ;;  %v8396_v31 = vld [vmem:[#allocation7_spill] sm:$0xff] }
 0x7f1   : > { %v4430_v7 = vpop.f32.mrf.mxu3  ;;  %v4469_v18 = vmax.f32 %v4457_v28, 0.0 }
 0x7f2   : > { %v4480_v14 = vmin.f32 %v4472_v24, 6.0  ;;  %v4431_v17 = vadd.f32 %v4430_v7, %v4402_v35  ;;  %v8389_v7 = vld [vmem:[#allocation11_spill] sm:$0xff] }
 0x7f5   : > { %v4378_v0 = vpop.f32.mrf.mxu0 }
 0x7f6   : > { %v4379_v15 = vadd.f32 %v4378_v0, %v4350_v27  ;;  %v4459_v61 = vpop.f32.mrf.mxu1  ;;  %v4553_v0 = vpop.permute.xlu1 %4552 }
 0x7f7   : > { %v4460_v53 = vadd.f32 %v4459_v61, %v4431_v17 }
 0x7f8   : > { %v4474_v46 = vmax.f32 %v4379_v15, 0.0 }
 0x7f9   : > { %v4433_v48 = vpop.f32.mrf.mxu3  ;;  %v4471_v56 = vmax.f32 %v4460_v53, 0.0 }
 0x7fa   : > { %v4482_v63 = vmin.f32 %v4474_v46, 6.0  ;;  %v4434_v29 = vadd.f32 %v4433_v48, %v4405_v19  ;;  %v4558_v48 = vpop.permute.xlu2 %4557  ;;  %v8394_v19 = vld [vmem:[#allocation5_spill] sm:$0xff] }
 0x7fc   : > { %4577 = vmatpush.msrb.mxu0 %v4482_v63 }
 0x7fe   : > { %v4462_v16 = vpop.f32.mrf.mxu1  ;;  %4578 = vmatpush.msrb.mxu0 %v4480_v14 }
 0x7ff   : > { %v4463_v36 = vadd.f32 %v4462_v16, %v4434_v29  ;;  %v8393_v16 = vld [vmem:[#allocation9_spill] sm:$0xff] }
 0x800   : > { %4579 = vmatpush.msrb.mxu0 %v4478_v13 }
 0x801   : > { %v4436_v10 = vpop.f32.mrf.mxu3  ;;  %v4473_v62 = vmax.f32 %v4463_v36, 0.0 }
 0x802   : > { %4580 = vmatpush.msrb.mxu0 %v4476_v45  ;;  %v4437_v23 = vadd.f32 %v4436_v10, %v4408_v59 }
 0x803   : > { %v4481_v3 = vmin.f32 %v4473_v62, 6.0 }
 0x804   : > { %4581 = vmatpush.msrb.mxu0 %v8364_v54  ;;  %v8381_v54 = vld [vmem:[#allocation33_spill] sm:$0xff] }
 0x806   : > { %v4465_v1 = vpop.f32.mrf.mxu1  ;;  %4582 = vmatpush.msrb.mxu0 %v8366_v43  ;;  %v4479_v43 = vmin.f32 %v4471_v56, 6.0 }
 0x807   : > { %v4466_v5 = vadd.f32 %v4465_v1, %v4437_v23  ;;  %v8395_v23 = vld [vmem:[#allocation8_spill] sm:$0xff] }
 0x808   : > { %4583 = vmatpush.msrb.mxu0 %v8370_v52  ;;  %v4477_v52 = vmin.f32 %v4469_v18, 6.0 }
 0x809   : > { %v4475_v8 = vmax.f32 %v4466_v5, 0.0 }
 0x80a   : > { %4584 = vmatpush.msrb.mxu0 %v8372_v11  ;;  %v4508_v11 = vld [vmem:[%s8189_s14] sm:$0xff] }
 0x80b   : > { %v4483_v47 = vmin.f32 %v4475_v8, 6.0 }
 0x80c   : > { %4585 = vmatpush.msrb.mxu0 %v8381_v54 }
 0x80d   : > { %4606 = vmatpush.msra.mxu2 %v4483_v47  ;;  %4834 = vmatpush.msrb.mxu3 %v4483_v47 }
 0x80e   : > { %4586 = vmatpush.msrb.mxu0 %v8382_v42 }
 0x80f   : > { %4607 = vmatpush.msra.mxu2 %v4481_v3  ;;  %4835 = vmatpush.msrb.mxu3 %v4481_v3 }
 0x810   : > { %4587 = vmatpush.msrb.mxu0 %v8383_v33 }
 0x811   : > { %4608 = vmatpush.msra.mxu2 %v4479_v43  ;;  %4836 = vmatpush.msrb.mxu3 %v4479_v43 }
 0x812   : > { %4588 = vmatpush.msrb.mxu0 %v8384_v55 }
 0x813   : > { %4609 = vmatpush.msra.mxu2 %v4477_v52  ;;  %4837 = vmatpush.msrb.mxu3 %v4477_v52 }
 0x814   : > { %4821 = vmatmul.msk.f32.vlgmr.msrb.gmra.mxu0 %vm4560_vm0, %v4508_v11 }
 0x815   : > { %4610 = vmatpush.msra.mxu2 %v8377_v41  ;;  %4838 = vmatpush.msrb.mxu3 %v8377_v41  ;;  %v8386_v41 = vld [vmem:[#allocation29_spill] sm:$0xff] }
 0x817   : > { %4611 = vmatpush.msra.mxu2 %v8378_v20  ;;  %4839 = vmatpush.msrb.mxu3 %v8378_v20  ;;  %v8387_v20 = vld [vmem:[#allocation35_spill] sm:$0xff] }
 0x819   : > { %4612 = vmatpush.msra.mxu2 %v8379_v40  ;;  %4840 = vmatpush.msrb.mxu3 %v8379_v40  ;;  %v4510_v40 = vld [vmem:[%s8189_s14 + $0x10] sm:$0xff] }
 0x81b   : > { %4613 = vmatpush.msra.mxu2 %v8380_v2  ;;  %4841 = vmatpush.msrb.mxu3 %v8380_v2  ;;  %v8388_v2 = vld [vmem:[#allocation34_spill] sm:$0xff] }
 0x81c   : > { %4822 = vmatmul.msk.f32.gmra.mxu0 %vm4560_vm0, %v4509_v9 }
 0x81d   : > { %4614 = vmatpush.msra.mxu2 %v8385_v57  ;;  %4842 = vmatpush.msrb.mxu3 %v8385_v57 }
 0x81f   : > { %4615 = vmatpush.msra.mxu2 %v8386_v41  ;;  %4843 = vmatpush.msrb.mxu3 %v8386_v41 }
 0x821   : > { %4616 = vmatpush.msra.mxu2 %v8387_v20  ;;  %4844 = vmatpush.msrb.mxu3 %v8387_v20 }
 0x823   : > { %4617 = vmatpush.msra.mxu2 %v8388_v2  ;;  %4845 = vmatpush.msrb.mxu3 %v8388_v2 }
 0x824   : > { %4823 = vmatmul.msk.f32.gmra.mxu0 %vm4560_vm0, %v4510_v40  ;;  %4825 = vmatmul.msk.f32.vlgmr.msra.gmra.mxu2 %vm4560_vm0, %v4508_v11 }
 0x825   : > { %4827 = vmatmul.msk.f32.vlgmr.msrb.gmra.mxu3 %vm4560_vm0, %v4510_v40 }
 0x82c   : > { %4824 = vmatmul.msk.f32.gmra.mxu0 %vm4560_vm0, %v4511_v12  ;;  %4826 = vmatmul.msk.f32.gmra.mxu2 %vm4560_vm0, %v4509_v9 }
 0x82d   : > { %4828 = vmatmul.msk.f32.gmra.mxu3 %vm4560_vm0, %v4511_v12 }
 0x891   : > { %v4590_v4 = vpop.f32.mrf.mxu0 }
 0x892   : > { %v4591_v51 = vadd.f32 %v4590_v4, %v4543_v38 }
 0x894   : > { %v4639_v26 = vadd.f32 %v4591_v51, %v8389_v7 }
 0x896   : > { %v4647_v58 = vmax.f32 %v4639_v26, 0.0 }
 0x898   : > { %4655 = vst [vmem:[%s8155_s19] sm:$0xff] %v4647_v58 }
 0x899   : > { %v4593_v30 = vpop.f32.mrf.mxu0 }
 0x89a   : > { %v4594_v6 = vadd.f32 %v4593_v30, %v4548_v22 }
 0x89c   : > { %v4641_v27 = vadd.f32 %v4594_v6, %v8390_v21 }
 0x89e   : > { %v4649_v60 = vmax.f32 %v4641_v27, 0.0 }
 0x8a0   : > { %4657 = vst [vmem:[%s8155_s19 + $0x10] sm:$0xff] %v4649_v60 }
 0x8a1   : > { %v4596_v32 = vpop.f32.mrf.mxu0 }
 0x8a2   : > { %v4597_v44 = vadd.f32 %v4596_v32, %v4553_v0 }
 0x8a4   : > { %v4643_v15 = vadd.f32 %v4597_v44, %v8391_v50 }
 0x8a6   : > { %v4651_v61 = vmax.f32 %v4643_v15, 0.0 }
 0x8a7   : > { %v4619_v34 = vpop.f32.mrf.mxu2 }
 0x8a8   : > { %4659 = vst [vmem:[%s8155_s19 + $0x20] sm:$0xff] %v4651_v61  ;;  %v4620_v24 = vadd.f32 %v4619_v34, %v4543_v38  ;;  %v4625_v46 = vpop.f32.mrf.mxu3 }
 0x8a9   : > { %v4626_v37 = vadd.f32 %v4625_v46, %v4553_v0  ;;  %v4599_v63 = vpop.f32.mrf.mxu0 }
 0x8aa   : > { %v4640_v14 = vadd.f32 %v4620_v24, %v8392_v25  ;;  %v4600_v13 = vadd.f32 %v4599_v63, %v4558_v48 }
 0x8ab   : > { %v4644_v45 = vadd.f32 %v4626_v37, %v8393_v16 }
 0x8ac   : > { %v4648_v39 = vmax.f32 %v4640_v14, 0.0  ;;  %v4645_v10 = vadd.f32 %v4600_v13, %v8394_v19 }
 0x8ad   : > { %v4652_v35 = vmax.f32 %v4644_v45, 0.0 }
 0x8ae   : > { %4656 = vst [vmem:[%s8155_s19 + $0x8] sm:$0xff] %v4648_v39  ;;  %v4653_v59 = vmax.f32 %v4645_v10, 0.0 }
 0x8af   : > { %4660 = vst [vmem:[%s8155_s19 + $0x28] sm:$0xff] %v4652_v35  ;;  %v4622_v29 = vpop.f32.mrf.mxu2 }
 0x8b0   : > { %4661 = vst [vmem:[%s8155_s19 + $0x30] sm:$0xff] %v4653_v59  ;;  %v4623_v49 = vadd.f32 %v4622_v29, %v4548_v22  ;;  %v4628_v17 = vpop.f32.mrf.mxu3 }
 0x8b1   : > { %v4629_v36 = vadd.f32 %v4628_v17, %v4558_v48 }
 0x8b2   : > { %v4642_v1 = vadd.f32 %v4623_v49, %v8395_v23 }
 0x8b3   : > { %v4646_v53 = vadd.f32 %v4629_v36, %v8396_v31 }
 0x8b4   : > { %v4650_v5 = vmax.f32 %v4642_v1, 0.0 }
 0x8b5   : > { %v4654_v28 = vmax.f32 %v4646_v53, 0.0 }
 0x8b6   : > { %4658 = vst [vmem:[%s8155_s19 + $0x18] sm:$0xff] %v4650_v5 }
 0x8b7   : > { %4662 = vst [vmem:[%s8155_s19 + $0x38] sm:$0xff] %v4654_v28 }
 0x8b8 PF: > { %s26_s21 = sadd.s32 1, %s5107_s21  }
 0x8b9   : > { %p23_p4 = scmp.ge.s32.totalorder %s26_s21, 4  }
 0x8bb   :  { %25 = sbr.rel (!%p23_p4) target bundleno = 2 (0x2), region = 147 }

</bundles_post_ra>
